<compile_context>
chip_gen: v7x
topology: tpu7x:2x2x1
jax: 0.10.0
libtpu: 0.0.40
codegen_flags: <defaults>
</compile_context>

<pallas_src>
import numpy as np
import jax
import jax.numpy as jnp
from jax import lax
from jax.experimental import pallas as pl
from jax.experimental.pallas import tpu as pltpu


# ----------------------------------------------------------------------------
# helpers
# ----------------------------------------------------------------------------
def _round_up(x, m):
    return (x + m - 1) // m * m


def _bn_fold(gamma, beta, mean, var, eps=1e-5):
    scale = gamma / jnp.sqrt(var + eps)
    shift = beta - mean * scale
    return scale.astype(jnp.float32), shift.astype(jnp.float32)


# ----------------------------------------------------------------------------
# fused whole-network kernel
# ----------------------------------------------------------------------------
def _make_kernel(cfg):
    C, K1, K2 = cfg["C"], cfg["K1"], cfg["K2"]
    pW, Lc1, T1p = cfg["pW"], cfg["Lc1"], cfg["T1p"]
    M1, YM1 = cfg["M1"], cfg["YM1"]
    cW, Lc2, Lz = cfg["cW"], cfg["Lc2"], cfg["Lz"]
    M2, YM2 = cfg["M2"], cfg["YM2"]
    FPC, NCP = cfg["FPC"], cfg["NCP"]
    f32, bf16 = jnp.float32, jnp.bfloat16

    def kernel(plane_ref, w1_ref, sh1_ref, msk1_ref,
               s1_ref, w2_ref, sh2_ref, msk2_ref, s2_ref,
               w1e_ref, b1_ref, w2fc_ref, b2_ref,
               out_ref,
               p1_s, ym1_s, zs_s, p2_s, ym2_s, feat_s):
        # ---- conv1 (1->32, k7, s2, p3) + BN + ReLU ------------------------
        # In-kernel im2col: each of the 49 taps is a unit-stride shifted
        # slice of one of the 4 stride-2 parity planes of the padded input.
        p1_s[T1p - 8:T1p, :] = jnp.zeros((8, Lc1), bf16)
        for t in range(K1 * K1):
            kh, kw = divmod(t, K1)
            a, qr = kh // 2, kh % 2
            b, qc = kw // 2, kw % 2
            src = 2 * qr + qc
            off = a * pW + b
            p1_s[t:t + 1, :] = plane_ref[0, src:src + 1, off:off + Lc1]
        a1 = jnp.dot(w1_ref[...], p1_s[...], preferred_element_type=f32)
        y1 = jnp.maximum(a1 + sh1_ref[...], 0.0) * msk1_ref[...]

        # ---- pool1 (3x3, s2, p1): dense 3x3 max + selection matmul --------
        ym1_s[:, 0:M1] = jnp.zeros((C, M1), f32)
        ym1_s[:, M1 + Lc1:YM1] = jnp.zeros((C, YM1 - M1 - Lc1), f32)
        ym1_s[:, M1:M1 + Lc1] = y1
        m1 = None
        for dr in (-1, 0, 1):
            for dc in (-1, 0, 1):
                s = M1 + dr * pW + dc
                v = ym1_s[:, s:s + Lc1]
                m1 = v if m1 is None else jnp.maximum(m1, v)
        # S1 picks the even (row, col) positions and drops them, zero-padded
        # by 2, straight into conv2's input canvas layout.
        z = jnp.dot(m1.astype(bf16), s1_ref[...], preferred_element_type=f32)
        zs_s[...] = z.astype(bf16)

        # ---- conv2 (32->32, k5, s1, p2) + BN + ReLU: one big-K matmul -----
        for t in range(K2 * K2):
            kh, kw = divmod(t, K2)
            off = kh * cW + kw
            p2_s[t * C:(t + 1) * C, :] = zs_s[:, off:off + Lc2]
        a2 = jnp.dot(w2_ref[...], p2_s[...], preferred_element_type=f32)
        y2 = jnp.maximum(a2 + sh2_ref[...], 0.0) * msk2_ref[...]

        # ---- pool2 (3x3, s2, p1) -------------------------------------------
        ym2_s[:, 0:M2] = jnp.zeros((C, M2), f32)
        ym2_s[:, M2 + Lc2:YM2] = jnp.zeros((C, YM2 - M2 - Lc2), f32)
        ym2_s[:, M2:M2 + Lc2] = y2
        m2 = None
        for dr in (-1, 0, 1):
            for dc in (-1, 0, 1):
                s = M2 + dr * cW + dc
                v = ym2_s[:, s:s + Lc2]
                m2 = v if m2 is None else jnp.maximum(m2, v)
        y2p = jnp.dot(m2.astype(bf16), s2_ref[...], preferred_element_type=f32)

        # ---- AdaptiveAvgPool2d((5,5)) (identity here) + flatten + FC head --
        for c in range(C):
            feat_s[0:1, c * FPC:(c + 1) * FPC] = y2p[c:c + 1, :]
        feat = feat_s[0:1, :].astype(bf16)
        h = jnp.dot(feat, w1e_ref[...], preferred_element_type=f32)
        h = jnp.maximum(h + b1_ref[...], 0.0)
        logits = jnp.dot(h.astype(bf16), w2fc_ref[...],
                         preferred_element_type=f32) + b2_ref[...]
        out_ref[0] = jnp.broadcast_to(logits, (8, NCP))

    return kernel


# ----------------------------------------------------------------------------
# wrapper: layout prep (weights / constant selection matrices) + pallas_call
# ----------------------------------------------------------------------------
def student_s_forward(x, params):
    N, Cin, H, W = x.shape
    assert Cin == 1 and H % 2 == 0 and W % 2 == 0
    C, K1, K2 = 32, 7, 5

    # layer geometry
    H1, W1 = (H + 6 - 7) // 2 + 1, (W + 6 - 7) // 2 + 1        # conv1 (s2, p3)
    H2, W2 = (H1 - 1) // 2 + 1, (W1 - 1) // 2 + 1              # pool1
    H3, W3 = H2, W2                                            # conv2 (s1, p2)
    H4, W4 = (H3 - 1) // 2 + 1, (W3 - 1) // 2 + 1              # pool2
    assert (H4, W4) == (5, 5), "fused path assumes the adaptive pool is identity"
    # TODO(synk): general AdaptiveAvgPool2d((5,5)) for other input geometries.

    # static canvas sizes
    pH, pW = (H + 6) // 2, (W + 6) // 2            # stride-2 parity plane dims
    Lc1 = _round_up(pH * pW, 128)                  # conv1 output canvas lanes
    LP = _round_up(Lc1 + 3 * pW + 3, 128)          # plane slab lanes (tap room)
    M1 = 128
    YM1 = M1 + Lc1 + 128
    cH, cW = H3 + 4, W3 + 4                        # conv2 zero-padded input canvas
    Lc2 = _round_up(cH * cW, 128)                  # conv2 output canvas lanes
    Lz = _round_up(Lc2 + (K2 - 1) * cW + (K2 - 1), 128)
    M2 = 128
    YM2 = M2 + Lc2 + 128
    T1p = _round_up(K1 * K1, 8)                    # 49 -> 56 padded taps
    FPC = _round_up(H4 * W4, 32)                   # per-channel fc stride (32)
    HID = params["fc1_w"].shape[0]
    assert HID == 128
    nc = params["fc2_w"].shape[0]
    assert nc <= 128
    NCP = 128

    # --- compile-time constants: selection matrices + validity masks --------
    s1_np = np.zeros((Lc1, Lz), np.float32)
    for ph in range(H2):
        for pw in range(W2):
            s1_np[(2 * ph) * pW + 2 * pw, (ph + 2) * cW + (pw + 2)] = 1.0
    s2_np = np.zeros((Lc2, FPC), np.float32)
    for ph in range(H4):
        for pw in range(W4):
            s2_np[(2 * ph) * cW + 2 * pw, ph * W4 + pw] = 1.0
    msk1_np = np.zeros((1, Lc1), np.float32)
    for r in range(H1):
        msk1_np[0, r * pW:r * pW + W1] = 1.0
    msk2_np = np.zeros((1, Lc2), np.float32)
    for r in range(H3):
        msk2_np[0, r * cW:r * cW + W3] = 1.0
    s1c = jnp.asarray(s1_np).astype(jnp.bfloat16)
    s2c = jnp.asarray(s2_np).astype(jnp.bfloat16)
    msk1c = jnp.asarray(msk1_np)
    msk2c = jnp.asarray(msk2_np)

    # --- weight prep (BN scale folded in f32 before the bf16 cast) ----------
    sc1, sh1 = _bn_fold(params["bn1_gamma"], params["bn1_beta"],
                        params["bn1_mean"], params["bn1_var"])
    sc2, sh2 = _bn_fold(params["bn2_gamma"], params["bn2_beta"],
                        params["bn2_mean"], params["bn2_var"])
    w1 = params["conv1_w"].reshape(C, K1 * K1) * sc1[:, None]
    w1 = jnp.pad(w1, ((0, 0), (0, T1p - K1 * K1))).astype(jnp.bfloat16)
    w2 = jnp.transpose(params["conv2_w"], (0, 2, 3, 1)).reshape(C, K2 * K2 * C)
    w2 = (w2 * sc2[:, None]).astype(jnp.bfloat16)
    sh1 = sh1.reshape(C, 1)
    sh2 = sh2.reshape(C, 1)
    w1e = params["fc1_w"].reshape(HID, C, H4 * W4)
    w1e = jnp.pad(w1e, ((0, 0), (0, 0), (0, FPC - H4 * W4)))
    w1e = jnp.transpose(w1e, (1, 2, 0)).reshape(C * FPC, HID).astype(jnp.bfloat16)
    b1 = params["fc1_b"].reshape(1, HID).astype(jnp.float32)
    w2fc = jnp.zeros((HID, NCP), jnp.float32).at[:, :nc].set(params["fc2_w"].T)
    w2fc = w2fc.astype(jnp.bfloat16)
    b2 = jnp.zeros((1, NCP), jnp.float32).at[:, :nc].set(params["fc2_b"][None, :])

    # --- input prep: tiny 3-op space-to-depth of the padded image -----------
    xp = jnp.pad(x[:, 0], ((0, 0), (3, 3), (3, 3)))
    planes = xp.reshape(N, pH, 2, pW, 2).transpose(0, 2, 4, 1, 3)
    planes = planes.reshape(N, 4, pH * pW)
    planes = jnp.pad(planes, ((0, 0), (0, 0), (0, LP - pH * pW)))
    planes = planes.astype(jnp.bfloat16)

    cfg = dict(C=C, K1=K1, K2=K2, pW=pW, Lc1=Lc1, T1p=T1p, M1=M1, YM1=YM1,
               cW=cW, Lc2=Lc2, Lz=Lz, M2=M2, YM2=YM2, FPC=FPC, NCP=NCP)
    kernel = _make_kernel(cfg)

    def _fixed(shape):
        return pl.BlockSpec(shape, lambda n: (0,) * len(shape))

    in_specs = [
        pl.BlockSpec((1, 4, LP), lambda n: (n, 0, 0)),   # parity planes
        _fixed((C, T1p)), _fixed((C, 1)), _fixed((1, Lc1)),
        _fixed((Lc1, Lz)), _fixed((C, K2 * K2 * C)), _fixed((C, 1)),
        _fixed((1, Lc2)), _fixed((Lc2, FPC)),
        _fixed((C * FPC, HID)), _fixed((1, HID)),
        _fixed((HID, NCP)), _fixed((1, NCP)),
    ]
    out_specs = pl.BlockSpec((1, 8, NCP), lambda n: (n, 0, 0))
    scratch_shapes = [
        pltpu.VMEM((T1p, Lc1), jnp.bfloat16),      # conv1 patch matrix
        pltpu.VMEM((C, YM1), jnp.float32),         # conv1 out (margined)
        pltpu.VMEM((C, Lz), jnp.bfloat16),         # conv2 input canvas
        pltpu.VMEM((K2 * K2 * C, Lc2), jnp.bfloat16),  # conv2 patch matrix
        pltpu.VMEM((C, YM2), jnp.float32),         # conv2 out (margined)
        pltpu.VMEM((8, C * FPC), jnp.float32),     # flattened feature row
    ]

    flops = 2 * N * (T1p * C * Lc1 + C * Lc1 * Lz + (K2 * K2 * C) * C * Lc2
                     + C * Lc2 * FPC + C * FPC * HID + HID * NCP)
    bytes_accessed = int(
        2 * (planes.size + w1.size + w2.size + s1c.size + s2c.size
             + w1e.size + w2fc.size)
        + 4 * (sh1.size + sh2.size + msk1c.size + msk2c.size + b1.size + b2.size)
        + 4 * N * 8 * NCP)

    out = pl.pallas_call(
        kernel,
        out_shape=jax.ShapeDtypeStruct((N, 8, NCP), jnp.float32),
        grid=(N,),
        in_specs=in_specs,
        out_specs=out_specs,
        scratch_shapes=scratch_shapes,
        compiler_params=pltpu.CompilerParams(
            dimension_semantics=("parallel",)),
        cost_estimate=pl.CostEstimate(flops=int(flops), transcendentals=0,
                                      bytes_accessed=bytes_accessed),
    )(planes, w1, sh1, msk1c, s1c, w2, sh2, msk2c, s2c, w1e, b1, w2fc, b2)
    return out[:, 0, :nc]


# ----------------------------------------------------------------------------
# Pure-JAX reference (correctness check only)
# ----------------------------------------------------------------------------
def reference_forward(x, params, eps=1e-5):
    def conv(v, w, stride, pad):
        return lax.conv_general_dilated(
            v, w, window_strides=(stride, stride),
            padding=((pad, pad), (pad, pad)),
            dimension_numbers=("NCHW", "OIHW", "NCHW"))

    def bn(v, g, b, m, var):
        g, b, m, var = (t[None, :, None, None] for t in (g, b, m, var))
        return (v - m) / jnp.sqrt(var + eps) * g + b

    def maxpool(v):
        return lax.reduce_window(
            v, -jnp.inf, lax.max,
            window_dimensions=(1, 1, 3, 3), window_strides=(1, 1, 2, 2),
            padding=((0, 0), (0, 0), (1, 1), (1, 1)))

    y = jax.nn.relu(bn(conv(x, params["conv1_w"], 2, 3),
                       params["bn1_gamma"], params["bn1_beta"],
                       params["bn1_mean"], params["bn1_var"]))
    y = maxpool(y)
    y = jax.nn.relu(bn(conv(y, params["conv2_w"], 1, 2),
                       params["bn2_gamma"], params["bn2_beta"],
                       params["bn2_mean"], params["bn2_var"]))
    y = maxpool(y)
    assert y.shape[2:] == (5, 5)     # AdaptiveAvgPool2d((5,5)) is the identity
    feat = y.reshape(y.shape[0], -1)
    h = jax.nn.relu(feat @ params["fc1_w"].T + params["fc1_b"])
    return h @ params["fc2_w"].T + params["fc2_b"]


# ----------------------------------------------------------------------------
if __name__ == "__main__":
    num_classes = 10
    key = jax.random.PRNGKey(0)
    ks = jax.random.split(key, 8)

    params = {
        "conv1_w": 0.1 * jax.random.normal(ks[0], (32, 1, 7, 7), jnp.float32),
        "bn1_gamma": jnp.ones((32,), jnp.float32),
        "bn1_beta": jnp.zeros((32,), jnp.float32),
        "bn1_mean": jnp.zeros((32,), jnp.float32),
        "bn1_var": jnp.ones((32,), jnp.float32),
        "conv2_w": 0.05 * jax.random.normal(ks[1], (32, 32, 5, 5), jnp.float32),
        "bn2_gamma": jnp.ones((32,), jnp.float32),
        "bn2_beta": jnp.zeros((32,), jnp.float32),
        "bn2_mean": jnp.zeros((32,), jnp.float32),
        "bn2_var": jnp.ones((32,), jnp.float32),
        "fc1_w": 0.03 * jax.random.normal(ks[2], (128, 32 * 5 * 5), jnp.float32),
        "fc1_b": 0.01 * jax.random.normal(ks[3], (128,), jnp.float32),
        "fc2_w": 0.05 * jax.random.normal(ks[4], (num_classes, 128), jnp.float32),
        "fc2_b": 0.01 * jax.random.normal(ks[5], (num_classes,), jnp.float32),
    }

    # Input 40x40 -> conv1:20 -> pool1:10 -> conv2:10 -> pool2:5 -> adaptive(5,5)
    x = jax.random.normal(ks[6], (2, 1, 40, 40), jnp.float32)

    forward = jax.jit(student_s_forward)
    out = jax.block_until_ready(forward(x, params))
    ref = jax.block_until_ready(reference_forward(x, params))

    assert out.shape == (2, num_classes), out.shape
    np.testing.assert_allclose(np.asarray(out), np.asarray(ref),
                               rtol=5e-2, atol=5e-2)
    print("KERNEL_OK")
</pallas_src>

<mosaic_0001>
module attributes {stable_mosaic.version = 11 : i64} {
  func.func @kernel(%arg0: i32, %arg1: memref<1x4x768xbf16, #tpu.memory_space<vmem>>, %arg2: memref<32x56xbf16, #tpu.memory_space<vmem>>, %arg3: memref<32x1xf32, #tpu.memory_space<vmem>>, %arg4: memref<1x640xf32, #tpu.memory_space<vmem>>, %arg5: memref<640x384xbf16, #tpu.memory_space<vmem>>, %arg6: memref<32x800xbf16, #tpu.memory_space<vmem>>, %arg7: memref<32x1xf32, #tpu.memory_space<vmem>>, %arg8: memref<1x256xf32, #tpu.memory_space<vmem>>, %arg9: memref<256x32xbf16, #tpu.memory_space<vmem>>, %arg10: memref<1024x128xbf16, #tpu.memory_space<vmem>>, %arg11: memref<1x128xf32, #tpu.memory_space<vmem>>, %arg12: memref<128x128xbf16, #tpu.memory_space<vmem>>, %arg13: memref<1x128xf32, #tpu.memory_space<vmem>>, %arg14: memref<1x8x128xf32, #tpu.memory_space<vmem>>, %arg15: memref<56x640xbf16, #tpu.memory_space<vmem>>, %arg16: memref<32x896xf32, #tpu.memory_space<vmem>>, %arg17: memref<32x384xbf16, #tpu.memory_space<vmem>>, %arg18: memref<800x256xbf16, #tpu.memory_space<vmem>>, %arg19: memref<32x512xf32, #tpu.memory_space<vmem>>, %arg20: memref<8x1024xf32, #tpu.memory_space<vmem>>) attributes {dimension_semantics = [#tpu.dimension_semantics<parallel>], iteration_bounds = array<i64: 2>, scalar_prefetch = 0 : i64, scratch_operands = 6 : i64, tpu.core_type = #tpu.core_type<tc>, window_params = [{transform_indices = @transform_0, window_bounds = array<i64: 1, 4, 768>}, {pipeline_mode = #tpu.pipeline_mode<synchronous>, transform_indices = @transform_1, window_bounds = array<i64: 32, 56>}, {pipeline_mode = #tpu.pipeline_mode<synchronous>, transform_indices = @transform_2, window_bounds = array<i64: 32, 1>}, {pipeline_mode = #tpu.pipeline_mode<synchronous>, transform_indices = @transform_3, window_bounds = array<i64: 1, 640>}, {pipeline_mode = #tpu.pipeline_mode<synchronous>, transform_indices = @transform_4, window_bounds = array<i64: 640, 384>}, {pipeline_mode = #tpu.pipeline_mode<synchronous>, transform_indices = @transform_5, window_bounds = array<i64: 32, 800>}, {pipeline_mode = #tpu.pipeline_mode<synchronous>, transform_indices = @transform_6, window_bounds = array<i64: 32, 1>}, {pipeline_mode = #tpu.pipeline_mode<synchronous>, transform_indices = @transform_7, window_bounds = array<i64: 1, 256>}, {pipeline_mode = #tpu.pipeline_mode<synchronous>, transform_indices = @transform_8, window_bounds = array<i64: 256, 32>}, {pipeline_mode = #tpu.pipeline_mode<synchronous>, transform_indices = @transform_9, window_bounds = array<i64: 1024, 128>}, {pipeline_mode = #tpu.pipeline_mode<synchronous>, transform_indices = @transform_10, window_bounds = array<i64: 1, 128>}, {pipeline_mode = #tpu.pipeline_mode<synchronous>, transform_indices = @transform_11, window_bounds = array<i64: 128, 128>}, {pipeline_mode = #tpu.pipeline_mode<synchronous>, transform_indices = @transform_12, window_bounds = array<i64: 1, 128>}, {transform_indices = @transform_13, window_bounds = array<i64: 1, 8, 128>}]} {
    %cst = arith.constant 0.000000e+00 : bf16
    %0 = vector.broadcast %cst : bf16 to vector<8x640xbf16>
    %c48 = arith.constant 48 : index
    %c0 = arith.constant 0 : index
    %1 = vector.load %arg15[%c48, %c0] : memref<56x640xbf16, #tpu.memory_space<vmem>>, vector<8x640xbf16>
    tpu.vector_store %arg15[%c48, %c0], %0 {strides = array<i32>} : memref<56x640xbf16, #tpu.memory_space<vmem>>, vector<8x640xbf16>,
    %c0_0 = arith.constant 0 : index
    %c0_1 = arith.constant 0 : index
    %c0_2 = arith.constant 0 : index
    %2 = vector.load %arg1[%c0_0, %c0_1, %c0_2] : memref<1x4x768xbf16, #tpu.memory_space<vmem>>, vector<1x1x640xbf16>
    %3 = vector.shape_cast %2 : vector<1x1x640xbf16> to vector<1x640xbf16>
    %c0_3 = arith.constant 0 : index
    %c0_4 = arith.constant 0 : index
    %4 = vector.load %arg15[%c0_3, %c0_4] : memref<56x640xbf16, #tpu.memory_space<vmem>>, vector<1x640xbf16>
    tpu.vector_store %arg15[%c0_3, %c0_4], %3 {strides = array<i32>} : memref<56x640xbf16, #tpu.memory_space<vmem>>, vector<1x640xbf16>,
    %c0_5 = arith.constant 0 : index
    %c1 = arith.constant 1 : index
    %c0_6 = arith.constant 0 : index
    %5 = vector.load %arg1[%c0_5, %c1, %c0_6] : memref<1x4x768xbf16, #tpu.memory_space<vmem>>, vector<1x1x640xbf16>
    %6 = vector.shape_cast %5 : vector<1x1x640xbf16> to vector<1x640xbf16>
    %c1_7 = arith.constant 1 : index
    %c0_8 = arith.constant 0 : index
    %7 = vector.load %arg15[%c1_7, %c0_8] : memref<56x640xbf16, #tpu.memory_space<vmem>>, vector<1x640xbf16>
    tpu.vector_store %arg15[%c1_7, %c0_8], %6 {strides = array<i32>} : memref<56x640xbf16, #tpu.memory_space<vmem>>, vector<1x640xbf16>,
    %c0_9 = arith.constant 0 : index
    %c0_10 = arith.constant 0 : index
    %c1_11 = arith.constant 1 : index
    %8 = vector.load %arg1[%c0_9, %c0_10, %c1_11] : memref<1x4x768xbf16, #tpu.memory_space<vmem>>, vector<1x1x640xbf16>
    %9 = vector.shape_cast %8 : vector<1x1x640xbf16> to vector<1x640xbf16>
    %c2 = arith.constant 2 : index
    %c0_12 = arith.constant 0 : index
    %10 = vector.load %arg15[%c2, %c0_12] : memref<56x640xbf16, #tpu.memory_space<vmem>>, vector<1x640xbf16>
    tpu.vector_store %arg15[%c2, %c0_12], %9 {strides = array<i32>} : memref<56x640xbf16, #tpu.memory_space<vmem>>, vector<1x640xbf16>,
    %c0_13 = arith.constant 0 : index
    %c1_14 = arith.constant 1 : index
    %c1_15 = arith.constant 1 : index
    %11 = vector.load %arg1[%c0_13, %c1_14, %c1_15] : memref<1x4x768xbf16, #tpu.memory_space<vmem>>, vector<1x1x640xbf16>
    %12 = vector.shape_cast %11 : vector<1x1x640xbf16> to vector<1x640xbf16>
    %c3 = arith.constant 3 : index
    %c0_16 = arith.constant 0 : index
    %13 = vector.load %arg15[%c3, %c0_16] : memref<56x640xbf16, #tpu.memory_space<vmem>>, vector<1x640xbf16>
    tpu.vector_store %arg15[%c3, %c0_16], %12 {strides = array<i32>} : memref<56x640xbf16, #tpu.memory_space<vmem>>, vector<1x640xbf16>,
    %c0_17 = arith.constant 0 : index
    %c0_18 = arith.constant 0 : index
    %c2_19 = arith.constant 2 : index
    %14 = vector.load %arg1[%c0_17, %c0_18, %c2_19] : memref<1x4x768xbf16, #tpu.memory_space<vmem>>, vector<1x1x640xbf16>
    %15 = vector.shape_cast %14 : vector<1x1x640xbf16> to vector<1x640xbf16>
    %c4 = arith.constant 4 : index
    %c0_20 = arith.constant 0 : index
    %16 = vector.load %arg15[%c4, %c0_20] : memref<56x640xbf16, #tpu.memory_space<vmem>>, vector<1x640xbf16>
    tpu.vector_store %arg15[%c4, %c0_20], %15 {strides = array<i32>} : memref<56x640xbf16, #tpu.memory_space<vmem>>, vector<1x640xbf16>,
    %c0_21 = arith.constant 0 : index
    %c1_22 = arith.constant 1 : index
    %c2_23 = arith.constant 2 : index
    %17 = vector.load %arg1[%c0_21, %c1_22, %c2_23] : memref<1x4x768xbf16, #tpu.memory_space<vmem>>, vector<1x1x640xbf16>
    %18 = vector.shape_cast %17 : vector<1x1x640xbf16> to vector<1x640xbf16>
    %c5 = arith.constant 5 : index
    %c0_24 = arith.constant 0 : index
    %19 = vector.load %arg15[%c5, %c0_24] : memref<56x640xbf16, #tpu.memory_space<vmem>>, vector<1x640xbf16>
    tpu.vector_store %arg15[%c5, %c0_24], %18 {strides = array<i32>} : memref<56x640xbf16, #tpu.memory_space<vmem>>, vector<1x640xbf16>,
    %c0_25 = arith.constant 0 : index
    %c0_26 = arith.constant 0 : index
    %c3_27 = arith.constant 3 : index
    %20 = vector.load %arg1[%c0_25, %c0_26, %c3_27] : memref<1x4x768xbf16, #tpu.memory_space<vmem>>, vector<1x1x640xbf16>
    %21 = vector.shape_cast %20 : vector<1x1x640xbf16> to vector<1x640xbf16>
    %c6 = arith.constant 6 : index
    %c0_28 = arith.constant 0 : index
    %22 = vector.load %arg15[%c6, %c0_28] : memref<56x640xbf16, #tpu.memory_space<vmem>>, vector<1x640xbf16>
    tpu.vector_store %arg15[%c6, %c0_28], %21 {strides = array<i32>} : memref<56x640xbf16, #tpu.memory_space<vmem>>, vector<1x640xbf16>,
    %c0_29 = arith.constant 0 : index
    %c2_30 = arith.constant 2 : index
    %c0_31 = arith.constant 0 : index
    %23 = vector.load %arg1[%c0_29, %c2_30, %c0_31] : memref<1x4x768xbf16, #tpu.memory_space<vmem>>, vector<1x1x640xbf16>
    %24 = vector.shape_cast %23 : vector<1x1x640xbf16> to vector<1x640xbf16>
    %c7 = arith.constant 7 : index
    %c0_32 = arith.constant 0 : index
    %25 = vector.load %arg15[%c7, %c0_32] : memref<56x640xbf16, #tpu.memory_space<vmem>>, vector<1x640xbf16>
    tpu.vector_store %arg15[%c7, %c0_32], %24 {strides = array<i32>} : memref<56x640xbf16, #tpu.memory_space<vmem>>, vector<1x640xbf16>,
    %c0_33 = arith.constant 0 : index
    %c3_34 = arith.constant 3 : index
    %c0_35 = arith.constant 0 : index
    %26 = vector.load %arg1[%c0_33, %c3_34, %c0_35] : memref<1x4x768xbf16, #tpu.memory_space<vmem>>, vector<1x1x640xbf16>
    %27 = vector.shape_cast %26 : vector<1x1x640xbf16> to vector<1x640xbf16>
    %c8 = arith.constant 8 : index
    %c0_36 = arith.constant 0 : index
    %28 = vector.load %arg15[%c8, %c0_36] : memref<56x640xbf16, #tpu.memory_space<vmem>>, vector<1x640xbf16>
    tpu.vector_store %arg15[%c8, %c0_36], %27 {strides = array<i32>} : memref<56x640xbf16, #tpu.memory_space<vmem>>, vector<1x640xbf16>,
    %c0_37 = arith.constant 0 : index
    %c2_38 = arith.constant 2 : index
    %c1_39 = arith.constant 1 : index
    %29 = vector.load %arg1[%c0_37, %c2_38, %c1_39] : memref<1x4x768xbf16, #tpu.memory_space<vmem>>, vector<1x1x640xbf16>
    %30 = vector.shape_cast %29 : vector<1x1x640xbf16> to vector<1x640xbf16>
    %c9 = arith.constant 9 : index
    %c0_40 = arith.constant 0 : index
    %31 = vector.load %arg15[%c9, %c0_40] : memref<56x640xbf16, #tpu.memory_space<vmem>>, vector<1x640xbf16>
    tpu.vector_store %arg15[%c9, %c0_40], %30 {strides = array<i32>} : memref<56x640xbf16, #tpu.memory_space<vmem>>, vector<1x640xbf16>,
    %c0_41 = arith.constant 0 : index
    %c3_42 = arith.constant 3 : index
    %c1_43 = arith.constant 1 : index
    %32 = vector.load %arg1[%c0_41, %c3_42, %c1_43] : memref<1x4x768xbf16, #tpu.memory_space<vmem>>, vector<1x1x640xbf16>
    %33 = vector.shape_cast %32 : vector<1x1x640xbf16> to vector<1x640xbf16>
    %c10 = arith.constant 10 : index
    %c0_44 = arith.constant 0 : index
    %34 = vector.load %arg15[%c10, %c0_44] : memref<56x640xbf16, #tpu.memory_space<vmem>>, vector<1x640xbf16>
    tpu.vector_store %arg15[%c10, %c0_44], %33 {strides = array<i32>} : memref<56x640xbf16, #tpu.memory_space<vmem>>, vector<1x640xbf16>,
    %c0_45 = arith.constant 0 : index
    %c2_46 = arith.constant 2 : index
    %c2_47 = arith.constant 2 : index
    %35 = vector.load %arg1[%c0_45, %c2_46, %c2_47] : memref<1x4x768xbf16, #tpu.memory_space<vmem>>, vector<1x1x640xbf16>
    %36 = vector.shape_cast %35 : vector<1x1x640xbf16> to vector<1x640xbf16>
    %c11 = arith.constant 11 : index
    %c0_48 = arith.constant 0 : index
    %37 = vector.load %arg15[%c11, %c0_48] : memref<56x640xbf16, #tpu.memory_space<vmem>>, vector<1x640xbf16>
    tpu.vector_store %arg15[%c11, %c0_48], %36 {strides = array<i32>} : memref<56x640xbf16, #tpu.memory_space<vmem>>, vector<1x640xbf16>,
    %c0_49 = arith.constant 0 : index
    %c3_50 = arith.constant 3 : index
    %c2_51 = arith.constant 2 : index
    %38 = vector.load %arg1[%c0_49, %c3_50, %c2_51] : memref<1x4x768xbf16, #tpu.memory_space<vmem>>, vector<1x1x640xbf16>
    %39 = vector.shape_cast %38 : vector<1x1x640xbf16> to vector<1x640xbf16>
    %c12 = arith.constant 12 : index
    %c0_52 = arith.constant 0 : index
    %40 = vector.load %arg15[%c12, %c0_52] : memref<56x640xbf16, #tpu.memory_space<vmem>>, vector<1x640xbf16>
    tpu.vector_store %arg15[%c12, %c0_52], %39 {strides = array<i32>} : memref<56x640xbf16, #tpu.memory_space<vmem>>, vector<1x640xbf16>,
    %c0_53 = arith.constant 0 : index
    %c2_54 = arith.constant 2 : index
    %c3_55 = arith.constant 3 : index
    %41 = vector.load %arg1[%c0_53, %c2_54, %c3_55] : memref<1x4x768xbf16, #tpu.memory_space<vmem>>, vector<1x1x640xbf16>
    %42 = vector.shape_cast %41 : vector<1x1x640xbf16> to vector<1x640xbf16>
    %c13 = arith.constant 13 : index
    %c0_56 = arith.constant 0 : index
    %43 = vector.load %arg15[%c13, %c0_56] : memref<56x640xbf16, #tpu.memory_space<vmem>>, vector<1x640xbf16>
    tpu.vector_store %arg15[%c13, %c0_56], %42 {strides = array<i32>} : memref<56x640xbf16, #tpu.memory_space<vmem>>, vector<1x640xbf16>,
    %c0_57 = arith.constant 0 : index
    %c0_58 = arith.constant 0 : index
    %c23 = arith.constant 23 : index
    %44 = vector.load %arg1[%c0_57, %c0_58, %c23] : memref<1x4x768xbf16, #tpu.memory_space<vmem>>, vector<1x1x640xbf16>
    %45 = vector.shape_cast %44 : vector<1x1x640xbf16> to vector<1x640xbf16>
    %c14 = arith.constant 14 : index
    %c0_59 = arith.constant 0 : index
    %46 = vector.load %arg15[%c14, %c0_59] : memref<56x640xbf16, #tpu.memory_space<vmem>>, vector<1x640xbf16>
    tpu.vector_store %arg15[%c14, %c0_59], %45 {strides = array<i32>} : memref<56x640xbf16, #tpu.memory_space<vmem>>, vector<1x640xbf16>,
    %c0_60 = arith.constant 0 : index
    %c1_61 = arith.constant 1 : index
    %c23_62 = arith.constant 23 : index
    %47 = vector.load %arg1[%c0_60, %c1_61, %c23_62] : memref<1x4x768xbf16, #tpu.memory_space<vmem>>, vector<1x1x640xbf16>
    %48 = vector.shape_cast %47 : vector<1x1x640xbf16> to vector<1x640xbf16>
    %c15 = arith.constant 15 : index
    %c0_63 = arith.constant 0 : index
    %49 = vector.load %arg15[%c15, %c0_63] : memref<56x640xbf16, #tpu.memory_space<vmem>>, vector<1x640xbf16>
    tpu.vector_store %arg15[%c15, %c0_63], %48 {strides = array<i32>} : memref<56x640xbf16, #tpu.memory_space<vmem>>, vector<1x640xbf16>,
    %c0_64 = arith.constant 0 : index
    %c0_65 = arith.constant 0 : index
    %c24 = arith.constant 24 : index
    %50 = vector.load %arg1[%c0_64, %c0_65, %c24] : memref<1x4x768xbf16, #tpu.memory_space<vmem>>, vector<1x1x640xbf16>
    %51 = vector.shape_cast %50 : vector<1x1x640xbf16> to vector<1x640xbf16>
    %c16 = arith.constant 16 : index
    %c0_66 = arith.constant 0 : index
    %52 = vector.load %arg15[%c16, %c0_66] : memref<56x640xbf16, #tpu.memory_space<vmem>>, vector<1x640xbf16>
    tpu.vector_store %arg15[%c16, %c0_66], %51 {strides = array<i32>} : memref<56x640xbf16, #tpu.memory_space<vmem>>, vector<1x640xbf16>,
    %c0_67 = arith.constant 0 : index
    %c1_68 = arith.constant 1 : index
    %c24_69 = arith.constant 24 : index
    %53 = vector.load %arg1[%c0_67, %c1_68, %c24_69] : memref<1x4x768xbf16, #tpu.memory_space<vmem>>, vector<1x1x640xbf16>
    %54 = vector.shape_cast %53 : vector<1x1x640xbf16> to vector<1x640xbf16>
    %c17 = arith.constant 17 : index
    %c0_70 = arith.constant 0 : index
    %55 = vector.load %arg15[%c17, %c0_70] : memref<56x640xbf16, #tpu.memory_space<vmem>>, vector<1x640xbf16>
    tpu.vector_store %arg15[%c17, %c0_70], %54 {strides = array<i32>} : memref<56x640xbf16, #tpu.memory_space<vmem>>, vector<1x640xbf16>,
    %c0_71 = arith.constant 0 : index
    %c0_72 = arith.constant 0 : index
    %c25 = arith.constant 25 : index
    %56 = vector.load %arg1[%c0_71, %c0_72, %c25] : memref<1x4x768xbf16, #tpu.memory_space<vmem>>, vector<1x1x640xbf16>
    %57 = vector.shape_cast %56 : vector<1x1x640xbf16> to vector<1x640xbf16>
    %c18 = arith.constant 18 : index
    %c0_73 = arith.constant 0 : index
    %58 = vector.load %arg15[%c18, %c0_73] : memref<56x640xbf16, #tpu.memory_space<vmem>>, vector<1x640xbf16>
    tpu.vector_store %arg15[%c18, %c0_73], %57 {strides = array<i32>} : memref<56x640xbf16, #tpu.memory_space<vmem>>, vector<1x640xbf16>,
    %c0_74 = arith.constant 0 : index
    %c1_75 = arith.constant 1 : index
    %c25_76 = arith.constant 25 : index
    %59 = vector.load %arg1[%c0_74, %c1_75, %c25_76] : memref<1x4x768xbf16, #tpu.memory_space<vmem>>, vector<1x1x640xbf16>
    %60 = vector.shape_cast %59 : vector<1x1x640xbf16> to vector<1x640xbf16>
    %c19 = arith.constant 19 : index
    %c0_77 = arith.constant 0 : index
    %61 = vector.load %arg15[%c19, %c0_77] : memref<56x640xbf16, #tpu.memory_space<vmem>>, vector<1x640xbf16>
    tpu.vector_store %arg15[%c19, %c0_77], %60 {strides = array<i32>} : memref<56x640xbf16, #tpu.memory_space<vmem>>, vector<1x640xbf16>,
    %c0_78 = arith.constant 0 : index
    %c0_79 = arith.constant 0 : index
    %c26 = arith.constant 26 : index
    %62 = vector.load %arg1[%c0_78, %c0_79, %c26] : memref<1x4x768xbf16, #tpu.memory_space<vmem>>, vector<1x1x640xbf16>
    %63 = vector.shape_cast %62 : vector<1x1x640xbf16> to vector<1x640xbf16>
    %c20 = arith.constant 20 : index
    %c0_80 = arith.constant 0 : index
    %64 = vector.load %arg15[%c20, %c0_80] : memref<56x640xbf16, #tpu.memory_space<vmem>>, vector<1x640xbf16>
    tpu.vector_store %arg15[%c20, %c0_80], %63 {strides = array<i32>} : memref<56x640xbf16, #tpu.memory_space<vmem>>, vector<1x640xbf16>,
    %c0_81 = arith.constant 0 : index
    %c2_82 = arith.constant 2 : index
    %c23_83 = arith.constant 23 : index
    %65 = vector.load %arg1[%c0_81, %c2_82, %c23_83] : memref<1x4x768xbf16, #tpu.memory_space<vmem>>, vector<1x1x640xbf16>
    %66 = vector.shape_cast %65 : vector<1x1x640xbf16> to vector<1x640xbf16>
    %c21 = arith.constant 21 : index
    %c0_84 = arith.constant 0 : index
    %67 = vector.load %arg15[%c21, %c0_84] : memref<56x640xbf16, #tpu.memory_space<vmem>>, vector<1x640xbf16>
    tpu.vector_store %arg15[%c21, %c0_84], %66 {strides = array<i32>} : memref<56x640xbf16, #tpu.memory_space<vmem>>, vector<1x640xbf16>,
    %c0_85 = arith.constant 0 : index
    %c3_86 = arith.constant 3 : index
    %c23_87 = arith.constant 23 : index
    %68 = vector.load %arg1[%c0_85, %c3_86, %c23_87] : memref<1x4x768xbf16, #tpu.memory_space<vmem>>, vector<1x1x640xbf16>
    %69 = vector.shape_cast %68 : vector<1x1x640xbf16> to vector<1x640xbf16>
    %c22 = arith.constant 22 : index
    %c0_88 = arith.constant 0 : index
    %70 = vector.load %arg15[%c22, %c0_88] : memref<56x640xbf16, #tpu.memory_space<vmem>>, vector<1x640xbf16>
    tpu.vector_store %arg15[%c22, %c0_88], %69 {strides = array<i32>} : memref<56x640xbf16, #tpu.memory_space<vmem>>, vector<1x640xbf16>,
    %c0_89 = arith.constant 0 : index
    %c2_90 = arith.constant 2 : index
    %c24_91 = arith.constant 24 : index
    %71 = vector.load %arg1[%c0_89, %c2_90, %c24_91] : memref<1x4x768xbf16, #tpu.memory_space<vmem>>, vector<1x1x640xbf16>
    %72 = vector.shape_cast %71 : vector<1x1x640xbf16> to vector<1x640xbf16>
    %c23_92 = arith.constant 23 : index
    %c0_93 = arith.constant 0 : index
    %73 = vector.load %arg15[%c23_92, %c0_93] : memref<56x640xbf16, #tpu.memory_space<vmem>>, vector<1x640xbf16>
    tpu.vector_store %arg15[%c23_92, %c0_93], %72 {strides = array<i32>} : memref<56x640xbf16, #tpu.memory_space<vmem>>, vector<1x640xbf16>,
    %c0_94 = arith.constant 0 : index
    %c3_95 = arith.constant 3 : index
    %c24_96 = arith.constant 24 : index
    %74 = vector.load %arg1[%c0_94, %c3_95, %c24_96] : memref<1x4x768xbf16, #tpu.memory_space<vmem>>, vector<1x1x640xbf16>
    %75 = vector.shape_cast %74 : vector<1x1x640xbf16> to vector<1x640xbf16>
    %c24_97 = arith.constant 24 : index
    %c0_98 = arith.constant 0 : index
    %76 = vector.load %arg15[%c24_97, %c0_98] : memref<56x640xbf16, #tpu.memory_space<vmem>>, vector<1x640xbf16>
    tpu.vector_store %arg15[%c24_97, %c0_98], %75 {strides = array<i32>} : memref<56x640xbf16, #tpu.memory_space<vmem>>, vector<1x640xbf16>,
    %c0_99 = arith.constant 0 : index
    %c2_100 = arith.constant 2 : index
    %c25_101 = arith.constant 25 : index
    %77 = vector.load %arg1[%c0_99, %c2_100, %c25_101] : memref<1x4x768xbf16, #tpu.memory_space<vmem>>, vector<1x1x640xbf16>
    %78 = vector.shape_cast %77 : vector<1x1x640xbf16> to vector<1x640xbf16>
    %c25_102 = arith.constant 25 : index
    %c0_103 = arith.constant 0 : index
    %79 = vector.load %arg15[%c25_102, %c0_103] : memref<56x640xbf16, #tpu.memory_space<vmem>>, vector<1x640xbf16>
    tpu.vector_store %arg15[%c25_102, %c0_103], %78 {strides = array<i32>} : memref<56x640xbf16, #tpu.memory_space<vmem>>, vector<1x640xbf16>,
    %c0_104 = arith.constant 0 : index
    %c3_105 = arith.constant 3 : index
    %c25_106 = arith.constant 25 : index
    %80 = vector.load %arg1[%c0_104, %c3_105, %c25_106] : memref<1x4x768xbf16, #tpu.memory_space<vmem>>, vector<1x1x640xbf16>
    %81 = vector.shape_cast %80 : vector<1x1x640xbf16> to vector<1x640xbf16>
    %c26_107 = arith.constant 26 : index
    %c0_108 = arith.constant 0 : index
    %82 = vector.load %arg15[%c26_107, %c0_108] : memref<56x640xbf16, #tpu.memory_space<vmem>>, vector<1x640xbf16>
    tpu.vector_store %arg15[%c26_107, %c0_108], %81 {strides = array<i32>} : memref<56x640xbf16, #tpu.memory_space<vmem>>, vector<1x640xbf16>,
    %c0_109 = arith.constant 0 : index
    %c2_110 = arith.constant 2 : index
    %c26_111 = arith.constant 26 : index
    %83 = vector.load %arg1[%c0_109, %c2_110, %c26_111] : memref<1x4x768xbf16, #tpu.memory_space<vmem>>, vector<1x1x640xbf16>
    %84 = vector.shape_cast %83 : vector<1x1x640xbf16> to vector<1x640xbf16>
    %c27 = arith.constant 27 : index
    %c0_112 = arith.constant 0 : index
    %85 = vector.load %arg15[%c27, %c0_112] : memref<56x640xbf16, #tpu.memory_space<vmem>>, vector<1x640xbf16>
    tpu.vector_store %arg15[%c27, %c0_112], %84 {strides = array<i32>} : memref<56x640xbf16, #tpu.memory_space<vmem>>, vector<1x640xbf16>,
    %c0_113 = arith.constant 0 : index
    %c0_114 = arith.constant 0 : index
    %c46 = arith.constant 46 : index
    %86 = vector.load %arg1[%c0_113, %c0_114, %c46] : memref<1x4x768xbf16, #tpu.memory_space<vmem>>, vector<1x1x640xbf16>
    %87 = vector.shape_cast %86 : vector<1x1x640xbf16> to vector<1x640xbf16>
    %c28 = arith.constant 28 : index
    %c0_115 = arith.constant 0 : index
    %88 = vector.load %arg15[%c28, %c0_115] : memref<56x640xbf16, #tpu.memory_space<vmem>>, vector<1x640xbf16>
    tpu.vector_store %arg15[%c28, %c0_115], %87 {strides = array<i32>} : memref<56x640xbf16, #tpu.memory_space<vmem>>, vector<1x640xbf16>,
    %c0_116 = arith.constant 0 : index
    %c1_117 = arith.constant 1 : index
    %c46_118 = arith.constant 46 : index
    %89 = vector.load %arg1[%c0_116, %c1_117, %c46_118] : memref<1x4x768xbf16, #tpu.memory_space<vmem>>, vector<1x1x640xbf16>
    %90 = vector.shape_cast %89 : vector<1x1x640xbf16> to vector<1x640xbf16>
    %c29 = arith.constant 29 : index
    %c0_119 = arith.constant 0 : index
    %91 = vector.load %arg15[%c29, %c0_119] : memref<56x640xbf16, #tpu.memory_space<vmem>>, vector<1x640xbf16>
    tpu.vector_store %arg15[%c29, %c0_119], %90 {strides = array<i32>} : memref<56x640xbf16, #tpu.memory_space<vmem>>, vector<1x640xbf16>,
    %c0_120 = arith.constant 0 : index
    %c0_121 = arith.constant 0 : index
    %c47 = arith.constant 47 : index
    %92 = vector.load %arg1[%c0_120, %c0_121, %c47] : memref<1x4x768xbf16, #tpu.memory_space<vmem>>, vector<1x1x640xbf16>
    %93 = vector.shape_cast %92 : vector<1x1x640xbf16> to vector<1x640xbf16>
    %c30 = arith.constant 30 : index
    %c0_122 = arith.constant 0 : index
    %94 = vector.load %arg15[%c30, %c0_122] : memref<56x640xbf16, #tpu.memory_space<vmem>>, vector<1x640xbf16>
    tpu.vector_store %arg15[%c30, %c0_122], %93 {strides = array<i32>} : memref<56x640xbf16, #tpu.memory_space<vmem>>, vector<1x640xbf16>,
    %c0_123 = arith.constant 0 : index
    %c1_124 = arith.constant 1 : index
    %c47_125 = arith.constant 47 : index
    %95 = vector.load %arg1[%c0_123, %c1_124, %c47_125] : memref<1x4x768xbf16, #tpu.memory_space<vmem>>, vector<1x1x640xbf16>
    %96 = vector.shape_cast %95 : vector<1x1x640xbf16> to vector<1x640xbf16>
    %c31 = arith.constant 31 : index
    %c0_126 = arith.constant 0 : index
    %97 = vector.load %arg15[%c31, %c0_126] : memref<56x640xbf16, #tpu.memory_space<vmem>>, vector<1x640xbf16>
    tpu.vector_store %arg15[%c31, %c0_126], %96 {strides = array<i32>} : memref<56x640xbf16, #tpu.memory_space<vmem>>, vector<1x640xbf16>,
    %c0_127 = arith.constant 0 : index
    %c0_128 = arith.constant 0 : index
    %c48_129 = arith.constant 48 : index
    %98 = vector.load %arg1[%c0_127, %c0_128, %c48_129] : memref<1x4x768xbf16, #tpu.memory_space<vmem>>, vector<1x1x640xbf16>
    %99 = vector.shape_cast %98 : vector<1x1x640xbf16> to vector<1x640xbf16>
    %c32 = arith.constant 32 : index
    %c0_130 = arith.constant 0 : index
    %100 = vector.load %arg15[%c32, %c0_130] : memref<56x640xbf16, #tpu.memory_space<vmem>>, vector<1x640xbf16>
    tpu.vector_store %arg15[%c32, %c0_130], %99 {strides = array<i32>} : memref<56x640xbf16, #tpu.memory_space<vmem>>, vector<1x640xbf16>,
    %c0_131 = arith.constant 0 : index
    %c1_132 = arith.constant 1 : index
    %c48_133 = arith.constant 48 : index
    %101 = vector.load %arg1[%c0_131, %c1_132, %c48_133] : memref<1x4x768xbf16, #tpu.memory_space<vmem>>, vector<1x1x640xbf16>
    %102 = vector.shape_cast %101 : vector<1x1x640xbf16> to vector<1x640xbf16>
    %c33 = arith.constant 33 : index
    %c0_134 = arith.constant 0 : index
    %103 = vector.load %arg15[%c33, %c0_134] : memref<56x640xbf16, #tpu.memory_space<vmem>>, vector<1x640xbf16>
    tpu.vector_store %arg15[%c33, %c0_134], %102 {strides = array<i32>} : memref<56x640xbf16, #tpu.memory_space<vmem>>, vector<1x640xbf16>,
    %c0_135 = arith.constant 0 : index
    %c0_136 = arith.constant 0 : index
    %c49 = arith.constant 49 : index
    %104 = vector.load %arg1[%c0_135, %c0_136, %c49] : memref<1x4x768xbf16, #tpu.memory_space<vmem>>, vector<1x1x640xbf16>
    %105 = vector.shape_cast %104 : vector<1x1x640xbf16> to vector<1x640xbf16>
    %c34 = arith.constant 34 : index
    %c0_137 = arith.constant 0 : index
    %106 = vector.load %arg15[%c34, %c0_137] : memref<56x640xbf16, #tpu.memory_space<vmem>>, vector<1x640xbf16>
    tpu.vector_store %arg15[%c34, %c0_137], %105 {strides = array<i32>} : memref<56x640xbf16, #tpu.memory_space<vmem>>, vector<1x640xbf16>,
    %c0_138 = arith.constant 0 : index
    %c2_139 = arith.constant 2 : index
    %c46_140 = arith.constant 46 : index
    %107 = vector.load %arg1[%c0_138, %c2_139, %c46_140] : memref<1x4x768xbf16, #tpu.memory_space<vmem>>, vector<1x1x640xbf16>
    %108 = vector.shape_cast %107 : vector<1x1x640xbf16> to vector<1x640xbf16>
    %c35 = arith.constant 35 : index
    %c0_141 = arith.constant 0 : index
    %109 = vector.load %arg15[%c35, %c0_141] : memref<56x640xbf16, #tpu.memory_space<vmem>>, vector<1x640xbf16>
    tpu.vector_store %arg15[%c35, %c0_141], %108 {strides = array<i32>} : memref<56x640xbf16, #tpu.memory_space<vmem>>, vector<1x640xbf16>,
    %c0_142 = arith.constant 0 : index
    %c3_143 = arith.constant 3 : index
    %c46_144 = arith.constant 46 : index
    %110 = vector.load %arg1[%c0_142, %c3_143, %c46_144] : memref<1x4x768xbf16, #tpu.memory_space<vmem>>, vector<1x1x640xbf16>
    %111 = vector.shape_cast %110 : vector<1x1x640xbf16> to vector<1x640xbf16>
    %c36 = arith.constant 36 : index
    %c0_145 = arith.constant 0 : index
    %112 = vector.load %arg15[%c36, %c0_145] : memref<56x640xbf16, #tpu.memory_space<vmem>>, vector<1x640xbf16>
    tpu.vector_store %arg15[%c36, %c0_145], %111 {strides = array<i32>} : memref<56x640xbf16, #tpu.memory_space<vmem>>, vector<1x640xbf16>,
    %c0_146 = arith.constant 0 : index
    %c2_147 = arith.constant 2 : index
    %c47_148 = arith.constant 47 : index
    %113 = vector.load %arg1[%c0_146, %c2_147, %c47_148] : memref<1x4x768xbf16, #tpu.memory_space<vmem>>, vector<1x1x640xbf16>
    %114 = vector.shape_cast %113 : vector<1x1x640xbf16> to vector<1x640xbf16>
    %c37 = arith.constant 37 : index
    %c0_149 = arith.constant 0 : index
    %115 = vector.load %arg15[%c37, %c0_149] : memref<56x640xbf16, #tpu.memory_space<vmem>>, vector<1x640xbf16>
    tpu.vector_store %arg15[%c37, %c0_149], %114 {strides = array<i32>} : memref<56x640xbf16, #tpu.memory_space<vmem>>, vector<1x640xbf16>,
    %c0_150 = arith.constant 0 : index
    %c3_151 = arith.constant 3 : index
    %c47_152 = arith.constant 47 : index
    %116 = vector.load %arg1[%c0_150, %c3_151, %c47_152] : memref<1x4x768xbf16, #tpu.memory_space<vmem>>, vector<1x1x640xbf16>
    %117 = vector.shape_cast %116 : vector<1x1x640xbf16> to vector<1x640xbf16>
    %c38 = arith.constant 38 : index
    %c0_153 = arith.constant 0 : index
    %118 = vector.load %arg15[%c38, %c0_153] : memref<56x640xbf16, #tpu.memory_space<vmem>>, vector<1x640xbf16>
    tpu.vector_store %arg15[%c38, %c0_153], %117 {strides = array<i32>} : memref<56x640xbf16, #tpu.memory_space<vmem>>, vector<1x640xbf16>,
    %c0_154 = arith.constant 0 : index
    %c2_155 = arith.constant 2 : index
    %c48_156 = arith.constant 48 : index
    %119 = vector.load %arg1[%c0_154, %c2_155, %c48_156] : memref<1x4x768xbf16, #tpu.memory_space<vmem>>, vector<1x1x640xbf16>
    %120 = vector.shape_cast %119 : vector<1x1x640xbf16> to vector<1x640xbf16>
    %c39 = arith.constant 39 : index
    %c0_157 = arith.constant 0 : index
    %121 = vector.load %arg15[%c39, %c0_157] : memref<56x640xbf16, #tpu.memory_space<vmem>>, vector<1x640xbf16>
    tpu.vector_store %arg15[%c39, %c0_157], %120 {strides = array<i32>} : memref<56x640xbf16, #tpu.memory_space<vmem>>, vector<1x640xbf16>,
    %c0_158 = arith.constant 0 : index
    %c3_159 = arith.constant 3 : index
    %c48_160 = arith.constant 48 : index
    %122 = vector.load %arg1[%c0_158, %c3_159, %c48_160] : memref<1x4x768xbf16, #tpu.memory_space<vmem>>, vector<1x1x640xbf16>
    %123 = vector.shape_cast %122 : vector<1x1x640xbf16> to vector<1x640xbf16>
    %c40 = arith.constant 40 : index
    %c0_161 = arith.constant 0 : index
    %124 = vector.load %arg15[%c40, %c0_161] : memref<56x640xbf16, #tpu.memory_space<vmem>>, vector<1x640xbf16>
    tpu.vector_store %arg15[%c40, %c0_161], %123 {strides = array<i32>} : memref<56x640xbf16, #tpu.memory_space<vmem>>, vector<1x640xbf16>,
    %c0_162 = arith.constant 0 : index
    %c2_163 = arith.constant 2 : index
    %c49_164 = arith.constant 49 : index
    %125 = vector.load %arg1[%c0_162, %c2_163, %c49_164] : memref<1x4x768xbf16, #tpu.memory_space<vmem>>, vector<1x1x640xbf16>
    %126 = vector.shape_cast %125 : vector<1x1x640xbf16> to vector<1x640xbf16>
    %c41 = arith.constant 41 : index
    %c0_165 = arith.constant 0 : index
    %127 = vector.load %arg15[%c41, %c0_165] : memref<56x640xbf16, #tpu.memory_space<vmem>>, vector<1x640xbf16>
    tpu.vector_store %arg15[%c41, %c0_165], %126 {strides = array<i32>} : memref<56x640xbf16, #tpu.memory_space<vmem>>, vector<1x640xbf16>,
    %c0_166 = arith.constant 0 : index
    %c0_167 = arith.constant 0 : index
    %c69 = arith.constant 69 : index
    %128 = vector.load %arg1[%c0_166, %c0_167, %c69] : memref<1x4x768xbf16, #tpu.memory_space<vmem>>, vector<1x1x640xbf16>
    %129 = vector.shape_cast %128 : vector<1x1x640xbf16> to vector<1x640xbf16>
    %c42 = arith.constant 42 : index
    %c0_168 = arith.constant 0 : index
    %130 = vector.load %arg15[%c42, %c0_168] : memref<56x640xbf16, #tpu.memory_space<vmem>>, vector<1x640xbf16>
    tpu.vector_store %arg15[%c42, %c0_168], %129 {strides = array<i32>} : memref<56x640xbf16, #tpu.memory_space<vmem>>, vector<1x640xbf16>,
    %c0_169 = arith.constant 0 : index
    %c1_170 = arith.constant 1 : index
    %c69_171 = arith.constant 69 : index
    %131 = vector.load %arg1[%c0_169, %c1_170, %c69_171] : memref<1x4x768xbf16, #tpu.memory_space<vmem>>, vector<1x1x640xbf16>
    %132 = vector.shape_cast %131 : vector<1x1x640xbf16> to vector<1x640xbf16>
    %c43 = arith.constant 43 : index
    %c0_172 = arith.constant 0 : index
    %133 = vector.load %arg15[%c43, %c0_172] : memref<56x640xbf16, #tpu.memory_space<vmem>>, vector<1x640xbf16>
    tpu.vector_store %arg15[%c43, %c0_172], %132 {strides = array<i32>} : memref<56x640xbf16, #tpu.memory_space<vmem>>, vector<1x640xbf16>,
    %c0_173 = arith.constant 0 : index
    %c0_174 = arith.constant 0 : index
    %c70 = arith.constant 70 : index
    %134 = vector.load %arg1[%c0_173, %c0_174, %c70] : memref<1x4x768xbf16, #tpu.memory_space<vmem>>, vector<1x1x640xbf16>
    %135 = vector.shape_cast %134 : vector<1x1x640xbf16> to vector<1x640xbf16>
    %c44 = arith.constant 44 : index
    %c0_175 = arith.constant 0 : index
    %136 = vector.load %arg15[%c44, %c0_175] : memref<56x640xbf16, #tpu.memory_space<vmem>>, vector<1x640xbf16>
    tpu.vector_store %arg15[%c44, %c0_175], %135 {strides = array<i32>} : memref<56x640xbf16, #tpu.memory_space<vmem>>, vector<1x640xbf16>,
    %c0_176 = arith.constant 0 : index
    %c1_177 = arith.constant 1 : index
    %c70_178 = arith.constant 70 : index
    %137 = vector.load %arg1[%c0_176, %c1_177, %c70_178] : memref<1x4x768xbf16, #tpu.memory_space<vmem>>, vector<1x1x640xbf16>
    %138 = vector.shape_cast %137 : vector<1x1x640xbf16> to vector<1x640xbf16>
    %c45 = arith.constant 45 : index
    %c0_179 = arith.constant 0 : index
    %139 = vector.load %arg15[%c45, %c0_179] : memref<56x640xbf16, #tpu.memory_space<vmem>>, vector<1x640xbf16>
    tpu.vector_store %arg15[%c45, %c0_179], %138 {strides = array<i32>} : memref<56x640xbf16, #tpu.memory_space<vmem>>, vector<1x640xbf16>,
    %c0_180 = arith.constant 0 : index
    %c0_181 = arith.constant 0 : index
    %c71 = arith.constant 71 : index
    %140 = vector.load %arg1[%c0_180, %c0_181, %c71] : memref<1x4x768xbf16, #tpu.memory_space<vmem>>, vector<1x1x640xbf16>
    %141 = vector.shape_cast %140 : vector<1x1x640xbf16> to vector<1x640xbf16>
    %c46_182 = arith.constant 46 : index
    %c0_183 = arith.constant 0 : index
    %142 = vector.load %arg15[%c46_182, %c0_183] : memref<56x640xbf16, #tpu.memory_space<vmem>>, vector<1x640xbf16>
    tpu.vector_store %arg15[%c46_182, %c0_183], %141 {strides = array<i32>} : memref<56x640xbf16, #tpu.memory_space<vmem>>, vector<1x640xbf16>,
    %c0_184 = arith.constant 0 : index
    %c1_185 = arith.constant 1 : index
    %c71_186 = arith.constant 71 : index
    %143 = vector.load %arg1[%c0_184, %c1_185, %c71_186] : memref<1x4x768xbf16, #tpu.memory_space<vmem>>, vector<1x1x640xbf16>
    %144 = vector.shape_cast %143 : vector<1x1x640xbf16> to vector<1x640xbf16>
    %c47_187 = arith.constant 47 : index
    %c0_188 = arith.constant 0 : index
    %145 = vector.load %arg15[%c47_187, %c0_188] : memref<56x640xbf16, #tpu.memory_space<vmem>>, vector<1x640xbf16>
    tpu.vector_store %arg15[%c47_187, %c0_188], %144 {strides = array<i32>} : memref<56x640xbf16, #tpu.memory_space<vmem>>, vector<1x640xbf16>,
    %c0_189 = arith.constant 0 : index
    %c0_190 = arith.constant 0 : index
    %c72 = arith.constant 72 : index
    %146 = vector.load %arg1[%c0_189, %c0_190, %c72] : memref<1x4x768xbf16, #tpu.memory_space<vmem>>, vector<1x1x640xbf16>
    %147 = vector.shape_cast %146 : vector<1x1x640xbf16> to vector<1x640xbf16>
    %c48_191 = arith.constant 48 : index
    %c0_192 = arith.constant 0 : index
    %148 = vector.load %arg15[%c48_191, %c0_192] : memref<56x640xbf16, #tpu.memory_space<vmem>>, vector<1x640xbf16>
    tpu.vector_store %arg15[%c48_191, %c0_192], %147 {strides = array<i32>} : memref<56x640xbf16, #tpu.memory_space<vmem>>, vector<1x640xbf16>,
    %c0_193 = arith.constant 0 : index
    %c0_194 = arith.constant 0 : index
    %149 = vector.load %arg2[%c0_193, %c0_194] : memref<32x56xbf16, #tpu.memory_space<vmem>>, vector<32x56xbf16>
    %c0_195 = arith.constant 0 : index
    %c0_196 = arith.constant 0 : index
    %150 = vector.load %arg15[%c0_195, %c0_196] : memref<56x640xbf16, #tpu.memory_space<vmem>>, vector<56x640xbf16>
    %cst_197 = arith.constant dense<0.000000e+00> : vector<32x640xf32>
    %151 = tpu.matmul %149, %150, %cst_197 {dimension_numbers = #tpu.dot_dimension_numbers<[1], [0], [0], [1], [0, 0, 1, 1], [], []>} : vector<32x56xbf16>, vector<56x640xbf16>, vector<32x640xf32> -> vector<32x640xf32>
    %c0_198 = arith.constant 0 : index
    %c0_199 = arith.constant 0 : index
    %152 = vector.load %arg3[%c0_198, %c0_199] : memref<32x1xf32, #tpu.memory_space<vmem>>, vector<32x1xf32>
    %153 = vector.broadcast %152 : vector<32x1xf32> to vector<32x640xf32>
    %154 = arith.addf %151, %153 : vector<32x640xf32>
    %cst_200 = arith.constant 0.000000e+00 : f32
    %155 = vector.broadcast %cst_200 : f32 to vector<32x640xf32>
    %156 = arith.maximumf %154, %155 : vector<32x640xf32>
    %c0_201 = arith.constant 0 : index
    %c0_202 = arith.constant 0 : index
    %157 = vector.load %arg4[%c0_201, %c0_202] : memref<1x640xf32, #tpu.memory_space<vmem>>, vector<1x640xf32>
    %158 = vector.broadcast %157 : vector<1x640xf32> to vector<32x640xf32>
    %159 = arith.mulf %156, %158 : vector<32x640xf32>
    %cst_203 = arith.constant 0.000000e+00 : f32
    %160 = vector.broadcast %cst_203 : f32 to vector<32x128xf32>
    %c0_204 = arith.constant 0 : index
    %c0_205 = arith.constant 0 : index
    %161 = vector.load %arg16[%c0_204, %c0_205] : memref<32x896xf32, #tpu.memory_space<vmem>>, vector<32x128xf32>
    tpu.vector_store %arg16[%c0_204, %c0_205], %160 {strides = array<i32>} : memref<32x896xf32, #tpu.memory_space<vmem>>, vector<32x128xf32>,
    %cst_206 = arith.constant 0.000000e+00 : f32
    %162 = vector.broadcast %cst_206 : f32 to vector<32x128xf32>
    %c0_207 = arith.constant 0 : index
    %c768 = arith.constant 768 : index
    %163 = vector.load %arg16[%c0_207, %c768] : memref<32x896xf32, #tpu.memory_space<vmem>>, vector<32x128xf32>
    tpu.vector_store %arg16[%c0_207, %c768], %162 {strides = array<i32>} : memref<32x896xf32, #tpu.memory_space<vmem>>, vector<32x128xf32>,
    %c0_208 = arith.constant 0 : index
    %c128 = arith.constant 128 : index
    %164 = vector.load %arg16[%c0_208, %c128] : memref<32x896xf32, #tpu.memory_space<vmem>>, vector<32x640xf32>
    tpu.vector_store %arg16[%c0_208, %c128], %159 {strides = array<i32>} : memref<32x896xf32, #tpu.memory_space<vmem>>, vector<32x640xf32>,
    %c0_209 = arith.constant 0 : index
    %c104 = arith.constant 104 : index
    %165 = vector.load %arg16[%c0_209, %c104] : memref<32x896xf32, #tpu.memory_space<vmem>>, vector<32x640xf32>
    %c0_210 = arith.constant 0 : index
    %c105 = arith.constant 105 : index
    %166 = vector.load %arg16[%c0_210, %c105] : memref<32x896xf32, #tpu.memory_space<vmem>>, vector<32x640xf32>
    %167 = arith.maximumf %165, %166 : vector<32x640xf32>
    %c0_211 = arith.constant 0 : index
    %c106 = arith.constant 106 : index
    %168 = vector.load %arg16[%c0_211, %c106] : memref<32x896xf32, #tpu.memory_space<vmem>>, vector<32x640xf32>
    %169 = arith.maximumf %167, %168 : vector<32x640xf32>
    %c0_212 = arith.constant 0 : index
    %c127 = arith.constant 127 : index
    %170 = vector.load %arg16[%c0_212, %c127] : memref<32x896xf32, #tpu.memory_space<vmem>>, vector<32x640xf32>
    %171 = arith.maximumf %169, %170 : vector<32x640xf32>
    %c0_213 = arith.constant 0 : index
    %c128_214 = arith.constant 128 : index
    %172 = vector.load %arg16[%c0_213, %c128_214] : memref<32x896xf32, #tpu.memory_space<vmem>>, vector<32x640xf32>
    %173 = arith.maximumf %171, %172 : vector<32x640xf32>
    %c0_215 = arith.constant 0 : index
    %c129 = arith.constant 129 : index
    %174 = vector.load %arg16[%c0_215, %c129] : memref<32x896xf32, #tpu.memory_space<vmem>>, vector<32x640xf32>
    %175 = arith.maximumf %173, %174 : vector<32x640xf32>
    %c0_216 = arith.constant 0 : index
    %c150 = arith.constant 150 : index
    %176 = vector.load %arg16[%c0_216, %c150] : memref<32x896xf32, #tpu.memory_space<vmem>>, vector<32x640xf32>
    %177 = arith.maximumf %175, %176 : vector<32x640xf32>
    %c0_217 = arith.constant 0 : index
    %c151 = arith.constant 151 : index
    %178 = vector.load %arg16[%c0_217, %c151] : memref<32x896xf32, #tpu.memory_space<vmem>>, vector<32x640xf32>
    %179 = arith.maximumf %177, %178 : vector<32x640xf32>
    %c0_218 = arith.constant 0 : index
    %c152 = arith.constant 152 : index
    %180 = vector.load %arg16[%c0_218, %c152] : memref<32x896xf32, #tpu.memory_space<vmem>>, vector<32x640xf32>
    %181 = arith.maximumf %179, %180 : vector<32x640xf32>
    %182 = arith.truncf %181 : vector<32x640xf32> to vector<32x640xbf16>
    %c0_219 = arith.constant 0 : index
    %c0_220 = arith.constant 0 : index
    %183 = vector.load %arg5[%c0_219, %c0_220] : memref<640x384xbf16, #tpu.memory_space<vmem>>, vector<640x384xbf16>
    %cst_221 = arith.constant dense<0.000000e+00> : vector<32x384xf32>
    %184 = tpu.matmul %182, %183, %cst_221 {dimension_numbers = #tpu.dot_dimension_numbers<[1], [0], [0], [1], [0, 0, 1, 1], [], []>} : vector<32x640xbf16>, vector<640x384xbf16>, vector<32x384xf32> -> vector<32x384xf32>
    %185 = arith.truncf %184 : vector<32x384xf32> to vector<32x384xbf16>
    %c0_222 = arith.constant 0 : index
    %c0_223 = arith.constant 0 : index
    %186 = vector.load %arg17[%c0_222, %c0_223] : memref<32x384xbf16, #tpu.memory_space<vmem>>, vector<32x384xbf16>
    tpu.vector_store %arg17[%c0_222, %c0_223], %185 {strides = array<i32>} : memref<32x384xbf16, #tpu.memory_space<vmem>>, vector<32x384xbf16>,
    %c0_224 = arith.constant 0 : index
    %c0_225 = arith.constant 0 : index
    %187 = vector.load %arg17[%c0_224, %c0_225] : memref<32x384xbf16, #tpu.memory_space<vmem>>, vector<32x256xbf16>
    %c0_226 = arith.constant 0 : index
    %c0_227 = arith.constant 0 : index
    %188 = vector.load %arg18[%c0_226, %c0_227] : memref<800x256xbf16, #tpu.memory_space<vmem>>, vector<32x256xbf16>
    tpu.vector_store %arg18[%c0_226, %c0_227], %187 {strides = array<i32>} : memref<800x256xbf16, #tpu.memory_space<vmem>>, vector<32x256xbf16>,
    %c0_228 = arith.constant 0 : index
    %c1_229 = arith.constant 1 : index
    %189 = vector.load %arg17[%c0_228, %c1_229] : memref<32x384xbf16, #tpu.memory_space<vmem>>, vector<32x256xbf16>
    %c32_230 = arith.constant 32 : index
    %c0_231 = arith.constant 0 : index
    %190 = vector.load %arg18[%c32_230, %c0_231] : memref<800x256xbf16, #tpu.memory_space<vmem>>, vector<32x256xbf16>
    tpu.vector_store %arg18[%c32_230, %c0_231], %189 {strides = array<i32>} : memref<800x256xbf16, #tpu.memory_space<vmem>>, vector<32x256xbf16>,
    %c0_232 = arith.constant 0 : index
    %c2_233 = arith.constant 2 : index
    %191 = vector.load %arg17[%c0_232, %c2_233] : memref<32x384xbf16, #tpu.memory_space<vmem>>, vector<32x256xbf16>
    %c64 = arith.constant 64 : index
    %c0_234 = arith.constant 0 : index
    %192 = vector.load %arg18[%c64, %c0_234] : memref<800x256xbf16, #tpu.memory_space<vmem>>, vector<32x256xbf16>
    tpu.vector_store %arg18[%c64, %c0_234], %191 {strides = array<i32>} : memref<800x256xbf16, #tpu.memory_space<vmem>>, vector<32x256xbf16>,
    %c0_235 = arith.constant 0 : index
    %c3_236 = arith.constant 3 : index
    %193 = vector.load %arg17[%c0_235, %c3_236] : memref<32x384xbf16, #tpu.memory_space<vmem>>, vector<32x256xbf16>
    %c96 = arith.constant 96 : index
    %c0_237 = arith.constant 0 : index
    %194 = vector.load %arg18[%c96, %c0_237] : memref<800x256xbf16, #tpu.memory_space<vmem>>, vector<32x256xbf16>
    tpu.vector_store %arg18[%c96, %c0_237], %193 {strides = array<i32>} : memref<800x256xbf16, #tpu.memory_space<vmem>>, vector<32x256xbf16>,
    %c0_238 = arith.constant 0 : index
    %c4_239 = arith.constant 4 : index
    %195 = vector.load %arg17[%c0_238, %c4_239] : memref<32x384xbf16, #tpu.memory_space<vmem>>, vector<32x256xbf16>
    %c128_240 = arith.constant 128 : index
    %c0_241 = arith.constant 0 : index
    %196 = vector.load %arg18[%c128_240, %c0_241] : memref<800x256xbf16, #tpu.memory_space<vmem>>, vector<32x256xbf16>
    tpu.vector_store %arg18[%c128_240, %c0_241], %195 {strides = array<i32>} : memref<800x256xbf16, #tpu.memory_space<vmem>>, vector<32x256xbf16>,
    %c0_242 = arith.constant 0 : index
    %c14_243 = arith.constant 14 : index
    %197 = vector.load %arg17[%c0_242, %c14_243] : memref<32x384xbf16, #tpu.memory_space<vmem>>, vector<32x256xbf16>
    %c160 = arith.constant 160 : index
    %c0_244 = arith.constant 0 : index
    %198 = vector.load %arg18[%c160, %c0_244] : memref<800x256xbf16, #tpu.memory_space<vmem>>, vector<32x256xbf16>
    tpu.vector_store %arg18[%c160, %c0_244], %197 {strides = array<i32>} : memref<800x256xbf16, #tpu.memory_space<vmem>>, vector<32x256xbf16>,
    %c0_245 = arith.constant 0 : index
    %c15_246 = arith.constant 15 : index
    %199 = vector.load %arg17[%c0_245, %c15_246] : memref<32x384xbf16, #tpu.memory_space<vmem>>, vector<32x256xbf16>
    %c192 = arith.constant 192 : index
    %c0_247 = arith.constant 0 : index
    %200 = vector.load %arg18[%c192, %c0_247] : memref<800x256xbf16, #tpu.memory_space<vmem>>, vector<32x256xbf16>
    tpu.vector_store %arg18[%c192, %c0_247], %199 {strides = array<i32>} : memref<800x256xbf16, #tpu.memory_space<vmem>>, vector<32x256xbf16>,
    %c0_248 = arith.constant 0 : index
    %c16_249 = arith.constant 16 : index
    %201 = vector.load %arg17[%c0_248, %c16_249] : memref<32x384xbf16, #tpu.memory_space<vmem>>, vector<32x256xbf16>
    %c224 = arith.constant 224 : index
    %c0_250 = arith.constant 0 : index
    %202 = vector.load %arg18[%c224, %c0_250] : memref<800x256xbf16, #tpu.memory_space<vmem>>, vector<32x256xbf16>
    tpu.vector_store %arg18[%c224, %c0_250], %201 {strides = array<i32>} : memref<800x256xbf16, #tpu.memory_space<vmem>>, vector<32x256xbf16>,
    %c0_251 = arith.constant 0 : index
    %c17_252 = arith.constant 17 : index
    %203 = vector.load %arg17[%c0_251, %c17_252] : memref<32x384xbf16, #tpu.memory_space<vmem>>, vector<32x256xbf16>
    %c256 = arith.constant 256 : index
    %c0_253 = arith.constant 0 : index
    %204 = vector.load %arg18[%c256, %c0_253] : memref<800x256xbf16, #tpu.memory_space<vmem>>, vector<32x256xbf16>
    tpu.vector_store %arg18[%c256, %c0_253], %203 {strides = array<i32>} : memref<800x256xbf16, #tpu.memory_space<vmem>>, vector<32x256xbf16>,
    %c0_254 = arith.constant 0 : index
    %c18_255 = arith.constant 18 : index
    %205 = vector.load %arg17[%c0_254, %c18_255] : memref<32x384xbf16, #tpu.memory_space<vmem>>, vector<32x256xbf16>
    %c288 = arith.constant 288 : index
    %c0_256 = arith.constant 0 : index
    %206 = vector.load %arg18[%c288, %c0_256] : memref<800x256xbf16, #tpu.memory_space<vmem>>, vector<32x256xbf16>
    tpu.vector_store %arg18[%c288, %c0_256], %205 {strides = array<i32>} : memref<800x256xbf16, #tpu.memory_space<vmem>>, vector<32x256xbf16>,
    %c0_257 = arith.constant 0 : index
    %c28_258 = arith.constant 28 : index
    %207 = vector.load %arg17[%c0_257, %c28_258] : memref<32x384xbf16, #tpu.memory_space<vmem>>, vector<32x256xbf16>
    %c320 = arith.constant 320 : index
    %c0_259 = arith.constant 0 : index
    %208 = vector.load %arg18[%c320, %c0_259] : memref<800x256xbf16, #tpu.memory_space<vmem>>, vector<32x256xbf16>
    tpu.vector_store %arg18[%c320, %c0_259], %207 {strides = array<i32>} : memref<800x256xbf16, #tpu.memory_space<vmem>>, vector<32x256xbf16>,
    %c0_260 = arith.constant 0 : index
    %c29_261 = arith.constant 29 : index
    %209 = vector.load %arg17[%c0_260, %c29_261] : memref<32x384xbf16, #tpu.memory_space<vmem>>, vector<32x256xbf16>
    %c352 = arith.constant 352 : index
    %c0_262 = arith.constant 0 : index
    %210 = vector.load %arg18[%c352, %c0_262] : memref<800x256xbf16, #tpu.memory_space<vmem>>, vector<32x256xbf16>
    tpu.vector_store %arg18[%c352, %c0_262], %209 {strides = array<i32>} : memref<800x256xbf16, #tpu.memory_space<vmem>>, vector<32x256xbf16>,
    %c0_263 = arith.constant 0 : index
    %c30_264 = arith.constant 30 : index
    %211 = vector.load %arg17[%c0_263, %c30_264] : memref<32x384xbf16, #tpu.memory_space<vmem>>, vector<32x256xbf16>
    %c384 = arith.constant 384 : index
    %c0_265 = arith.constant 0 : index
    %212 = vector.load %arg18[%c384, %c0_265] : memref<800x256xbf16, #tpu.memory_space<vmem>>, vector<32x256xbf16>
    tpu.vector_store %arg18[%c384, %c0_265], %211 {strides = array<i32>} : memref<800x256xbf16, #tpu.memory_space<vmem>>, vector<32x256xbf16>,
    %c0_266 = arith.constant 0 : index
    %c31_267 = arith.constant 31 : index
    %213 = vector.load %arg17[%c0_266, %c31_267] : memref<32x384xbf16, #tpu.memory_space<vmem>>, vector<32x256xbf16>
    %c416 = arith.constant 416 : index
    %c0_268 = arith.constant 0 : index
    %214 = vector.load %arg18[%c416, %c0_268] : memref<800x256xbf16, #tpu.memory_space<vmem>>, vector<32x256xbf16>
    tpu.vector_store %arg18[%c416, %c0_268], %213 {strides = array<i32>} : memref<800x256xbf16, #tpu.memory_space<vmem>>, vector<32x256xbf16>,
    %c0_269 = arith.constant 0 : index
    %c32_270 = arith.constant 32 : index
    %215 = vector.load %arg17[%c0_269, %c32_270] : memref<32x384xbf16, #tpu.memory_space<vmem>>, vector<32x256xbf16>
    %c448 = arith.constant 448 : index
    %c0_271 = arith.constant 0 : index
    %216 = vector.load %arg18[%c448, %c0_271] : memref<800x256xbf16, #tpu.memory_space<vmem>>, vector<32x256xbf16>
    tpu.vector_store %arg18[%c448, %c0_271], %215 {strides = array<i32>} : memref<800x256xbf16, #tpu.memory_space<vmem>>, vector<32x256xbf16>,
    %c0_272 = arith.constant 0 : index
    %c42_273 = arith.constant 42 : index
    %217 = vector.load %arg17[%c0_272, %c42_273] : memref<32x384xbf16, #tpu.memory_space<vmem>>, vector<32x256xbf16>
    %c480 = arith.constant 480 : index
    %c0_274 = arith.constant 0 : index
    %218 = vector.load %arg18[%c480, %c0_274] : memref<800x256xbf16, #tpu.memory_space<vmem>>, vector<32x256xbf16>
    tpu.vector_store %arg18[%c480, %c0_274], %217 {strides = array<i32>} : memref<800x256xbf16, #tpu.memory_space<vmem>>, vector<32x256xbf16>,
    %c0_275 = arith.constant 0 : index
    %c43_276 = arith.constant 43 : index
    %219 = vector.load %arg17[%c0_275, %c43_276] : memref<32x384xbf16, #tpu.memory_space<vmem>>, vector<32x256xbf16>
    %c512 = arith.constant 512 : index
    %c0_277 = arith.constant 0 : index
    %220 = vector.load %arg18[%c512, %c0_277] : memref<800x256xbf16, #tpu.memory_space<vmem>>, vector<32x256xbf16>
    tpu.vector_store %arg18[%c512, %c0_277], %219 {strides = array<i32>} : memref<800x256xbf16, #tpu.memory_space<vmem>>, vector<32x256xbf16>,
    %c0_278 = arith.constant 0 : index
    %c44_279 = arith.constant 44 : index
    %221 = vector.load %arg17[%c0_278, %c44_279] : memref<32x384xbf16, #tpu.memory_space<vmem>>, vector<32x256xbf16>
    %c544 = arith.constant 544 : index
    %c0_280 = arith.constant 0 : index
    %222 = vector.load %arg18[%c544, %c0_280] : memref<800x256xbf16, #tpu.memory_space<vmem>>, vector<32x256xbf16>
    tpu.vector_store %arg18[%c544, %c0_280], %221 {strides = array<i32>} : memref<800x256xbf16, #tpu.memory_space<vmem>>, vector<32x256xbf16>,
    %c0_281 = arith.constant 0 : index
    %c45_282 = arith.constant 45 : index
    %223 = vector.load %arg17[%c0_281, %c45_282] : memref<32x384xbf16, #tpu.memory_space<vmem>>, vector<32x256xbf16>
    %c576 = arith.constant 576 : index
    %c0_283 = arith.constant 0 : index
    %224 = vector.load %arg18[%c576, %c0_283] : memref<800x256xbf16, #tpu.memory_space<vmem>>, vector<32x256xbf16>
    tpu.vector_store %arg18[%c576, %c0_283], %223 {strides = array<i32>} : memref<800x256xbf16, #tpu.memory_space<vmem>>, vector<32x256xbf16>,
    %c0_284 = arith.constant 0 : index
    %c46_285 = arith.constant 46 : index
    %225 = vector.load %arg17[%c0_284, %c46_285] : memref<32x384xbf16, #tpu.memory_space<vmem>>, vector<32x256xbf16>
    %c608 = arith.constant 608 : index
    %c0_286 = arith.constant 0 : index
    %226 = vector.load %arg18[%c608, %c0_286] : memref<800x256xbf16, #tpu.memory_space<vmem>>, vector<32x256xbf16>
    tpu.vector_store %arg18[%c608, %c0_286], %225 {strides = array<i32>} : memref<800x256xbf16, #tpu.memory_space<vmem>>, vector<32x256xbf16>,
    %c0_287 = arith.constant 0 : index
    %c56 = arith.constant 56 : index
    %227 = vector.load %arg17[%c0_287, %c56] : memref<32x384xbf16, #tpu.memory_space<vmem>>, vector<32x256xbf16>
    %c640 = arith.constant 640 : index
    %c0_288 = arith.constant 0 : index
    %228 = vector.load %arg18[%c640, %c0_288] : memref<800x256xbf16, #tpu.memory_space<vmem>>, vector<32x256xbf16>
    tpu.vector_store %arg18[%c640, %c0_288], %227 {strides = array<i32>} : memref<800x256xbf16, #tpu.memory_space<vmem>>, vector<32x256xbf16>,
    %c0_289 = arith.constant 0 : index
    %c57 = arith.constant 57 : index
    %229 = vector.load %arg17[%c0_289, %c57] : memref<32x384xbf16, #tpu.memory_space<vmem>>, vector<32x256xbf16>
    %c672 = arith.constant 672 : index
    %c0_290 = arith.constant 0 : index
    %230 = vector.load %arg18[%c672, %c0_290] : memref<800x256xbf16, #tpu.memory_space<vmem>>, vector<32x256xbf16>
    tpu.vector_store %arg18[%c672, %c0_290], %229 {strides = array<i32>} : memref<800x256xbf16, #tpu.memory_space<vmem>>, vector<32x256xbf16>,
    %c0_291 = arith.constant 0 : index
    %c58 = arith.constant 58 : index
    %231 = vector.load %arg17[%c0_291, %c58] : memref<32x384xbf16, #tpu.memory_space<vmem>>, vector<32x256xbf16>
    %c704 = arith.constant 704 : index
    %c0_292 = arith.constant 0 : index
    %232 = vector.load %arg18[%c704, %c0_292] : memref<800x256xbf16, #tpu.memory_space<vmem>>, vector<32x256xbf16>
    tpu.vector_store %arg18[%c704, %c0_292], %231 {strides = array<i32>} : memref<800x256xbf16, #tpu.memory_space<vmem>>, vector<32x256xbf16>,
    %c0_293 = arith.constant 0 : index
    %c59 = arith.constant 59 : index
    %233 = vector.load %arg17[%c0_293, %c59] : memref<32x384xbf16, #tpu.memory_space<vmem>>, vector<32x256xbf16>
    %c736 = arith.constant 736 : index
    %c0_294 = arith.constant 0 : index
    %234 = vector.load %arg18[%c736, %c0_294] : memref<800x256xbf16, #tpu.memory_space<vmem>>, vector<32x256xbf16>
    tpu.vector_store %arg18[%c736, %c0_294], %233 {strides = array<i32>} : memref<800x256xbf16, #tpu.memory_space<vmem>>, vector<32x256xbf16>,
    %c0_295 = arith.constant 0 : index
    %c60 = arith.constant 60 : index
    %235 = vector.load %arg17[%c0_295, %c60] : memref<32x384xbf16, #tpu.memory_space<vmem>>, vector<32x256xbf16>
    %c768_296 = arith.constant 768 : index
    %c0_297 = arith.constant 0 : index
    %236 = vector.load %arg18[%c768_296, %c0_297] : memref<800x256xbf16, #tpu.memory_space<vmem>>, vector<32x256xbf16>
    tpu.vector_store %arg18[%c768_296, %c0_297], %235 {strides = array<i32>} : memref<800x256xbf16, #tpu.memory_space<vmem>>, vector<32x256xbf16>,
    %c0_298 = arith.constant 0 : index
    %c0_299 = arith.constant 0 : index
    %237 = vector.load %arg6[%c0_298, %c0_299] : memref<32x800xbf16, #tpu.memory_space<vmem>>, vector<32x800xbf16>
    %c0_300 = arith.constant 0 : index
    %c0_301 = arith.constant 0 : index
    %238 = vector.load %arg18[%c0_300, %c0_301] : memref<800x256xbf16, #tpu.memory_space<vmem>>, vector<800x256xbf16>
    %cst_302 = arith.constant dense<0.000000e+00> : vector<32x256xf32>
    %239 = tpu.matmul %237, %238, %cst_302 {dimension_numbers = #tpu.dot_dimension_numbers<[1], [0], [0], [1], [0, 0, 1, 1], [], []>} : vector<32x800xbf16>, vector<800x256xbf16>, vector<32x256xf32> -> vector<32x256xf32>
    %c0_303 = arith.constant 0 : index
    %c0_304 = arith.constant 0 : index
    %240 = vector.load %arg7[%c0_303, %c0_304] : memref<32x1xf32, #tpu.memory_space<vmem>>, vector<32x1xf32>
    %241 = vector.broadcast %240 : vector<32x1xf32> to vector<32x256xf32>
    %242 = arith.addf %239, %241 : vector<32x256xf32>
    %cst_305 = arith.constant 0.000000e+00 : f32
    %243 = vector.broadcast %cst_305 : f32 to vector<32x256xf32>
    %244 = arith.maximumf %242, %243 : vector<32x256xf32>
    %c0_306 = arith.constant 0 : index
    %c0_307 = arith.constant 0 : index
    %245 = vector.load %arg8[%c0_306, %c0_307] : memref<1x256xf32, #tpu.memory_space<vmem>>, vector<1x256xf32>
    %246 = vector.broadcast %245 : vector<1x256xf32> to vector<32x256xf32>
    %247 = arith.mulf %244, %246 : vector<32x256xf32>
    %cst_308 = arith.constant 0.000000e+00 : f32
    %248 = vector.broadcast %cst_308 : f32 to vector<32x128xf32>
    %c0_309 = arith.constant 0 : index
    %c0_310 = arith.constant 0 : index
    %249 = vector.load %arg19[%c0_309, %c0_310] : memref<32x512xf32, #tpu.memory_space<vmem>>, vector<32x128xf32>
    tpu.vector_store %arg19[%c0_309, %c0_310], %248 {strides = array<i32>} : memref<32x512xf32, #tpu.memory_space<vmem>>, vector<32x128xf32>,
    %cst_311 = arith.constant 0.000000e+00 : f32
    %250 = vector.broadcast %cst_311 : f32 to vector<32x128xf32>
    %c0_312 = arith.constant 0 : index
    %c384_313 = arith.constant 384 : index
    %251 = vector.load %arg19[%c0_312, %c384_313] : memref<32x512xf32, #tpu.memory_space<vmem>>, vector<32x128xf32>
    tpu.vector_store %arg19[%c0_312, %c384_313], %250 {strides = array<i32>} : memref<32x512xf32, #tpu.memory_space<vmem>>, vector<32x128xf32>,
    %c0_314 = arith.constant 0 : index
    %c128_315 = arith.constant 128 : index
    %252 = vector.load %arg19[%c0_314, %c128_315] : memref<32x512xf32, #tpu.memory_space<vmem>>, vector<32x256xf32>
    tpu.vector_store %arg19[%c0_314, %c128_315], %247 {strides = array<i32>} : memref<32x512xf32, #tpu.memory_space<vmem>>, vector<32x256xf32>,
    %c0_316 = arith.constant 0 : index
    %c113 = arith.constant 113 : index
    %253 = vector.load %arg19[%c0_316, %c113] : memref<32x512xf32, #tpu.memory_space<vmem>>, vector<32x256xf32>
    %c0_317 = arith.constant 0 : index
    %c114 = arith.constant 114 : index
    %254 = vector.load %arg19[%c0_317, %c114] : memref<32x512xf32, #tpu.memory_space<vmem>>, vector<32x256xf32>
    %255 = arith.maximumf %253, %254 : vector<32x256xf32>
    %c0_318 = arith.constant 0 : index
    %c115 = arith.constant 115 : index
    %256 = vector.load %arg19[%c0_318, %c115] : memref<32x512xf32, #tpu.memory_space<vmem>>, vector<32x256xf32>
    %257 = arith.maximumf %255, %256 : vector<32x256xf32>
    %c0_319 = arith.constant 0 : index
    %c127_320 = arith.constant 127 : index
    %258 = vector.load %arg19[%c0_319, %c127_320] : memref<32x512xf32, #tpu.memory_space<vmem>>, vector<32x256xf32>
    %259 = arith.maximumf %257, %258 : vector<32x256xf32>
    %c0_321 = arith.constant 0 : index
    %c128_322 = arith.constant 128 : index
    %260 = vector.load %arg19[%c0_321, %c128_322] : memref<32x512xf32, #tpu.memory_space<vmem>>, vector<32x256xf32>
    %261 = arith.maximumf %259, %260 : vector<32x256xf32>
    %c0_323 = arith.constant 0 : index
    %c129_324 = arith.constant 129 : index
    %262 = vector.load %arg19[%c0_323, %c129_324] : memref<32x512xf32, #tpu.memory_space<vmem>>, vector<32x256xf32>
    %263 = arith.maximumf %261, %262 : vector<32x256xf32>
    %c0_325 = arith.constant 0 : index
    %c141 = arith.constant 141 : index
    %264 = vector.load %arg19[%c0_325, %c141] : memref<32x512xf32, #tpu.memory_space<vmem>>, vector<32x256xf32>
    %265 = arith.maximumf %263, %264 : vector<32x256xf32>
    %c0_326 = arith.constant 0 : index
    %c142 = arith.constant 142 : index
    %266 = vector.load %arg19[%c0_326, %c142] : memref<32x512xf32, #tpu.memory_space<vmem>>, vector<32x256xf32>
    %267 = arith.maximumf %265, %266 : vector<32x256xf32>
    %c0_327 = arith.constant 0 : index
    %c143 = arith.constant 143 : index
    %268 = vector.load %arg19[%c0_327, %c143] : memref<32x512xf32, #tpu.memory_space<vmem>>, vector<32x256xf32>
    %269 = arith.maximumf %267, %268 : vector<32x256xf32>
    %270 = arith.truncf %269 : vector<32x256xf32> to vector<32x256xbf16>
    %c0_328 = arith.constant 0 : index
    %c0_329 = arith.constant 0 : index
    %271 = vector.load %arg9[%c0_328, %c0_329] : memref<256x32xbf16, #tpu.memory_space<vmem>>, vector<256x32xbf16>
    %cst_330 = arith.constant dense<0.000000e+00> : vector<32x32xf32>
    %272 = tpu.matmul %270, %271, %cst_330 {dimension_numbers = #tpu.dot_dimension_numbers<[1], [0], [0], [1], [0, 0, 1, 1], [], []>} : vector<32x256xbf16>, vector<256x32xbf16>, vector<32x32xf32> -> vector<32x32xf32>
    %273 = vector.extract_strided_slice %272 {offsets = [0, 0], sizes = [1, 32], strides = [1, 1]} : vector<32x32xf32> to vector<1x32xf32>
    %c0_331 = arith.constant 0 : index
    %c0_332 = arith.constant 0 : index
    %274 = vector.load %arg20[%c0_331, %c0_332] : memref<8x1024xf32, #tpu.memory_space<vmem>>, vector<1x32xf32>
    tpu.vector_store %arg20[%c0_331, %c0_332], %273 {strides = array<i32>} : memref<8x1024xf32, #tpu.memory_space<vmem>>, vector<1x32xf32>,
    %275 = vector.extract_strided_slice %272 {offsets = [1, 0], sizes = [1, 32], strides = [1, 1]} : vector<32x32xf32> to vector<1x32xf32>
    %c0_333 = arith.constant 0 : index
    %c32_334 = arith.constant 32 : index
    %276 = vector.load %arg20[%c0_333, %c32_334] : memref<8x1024xf32, #tpu.memory_space<vmem>>, vector<1x32xf32>
    tpu.vector_store %arg20[%c0_333, %c32_334], %275 {strides = array<i32>} : memref<8x1024xf32, #tpu.memory_space<vmem>>, vector<1x32xf32>,
    %277 = vector.extract_strided_slice %272 {offsets = [2, 0], sizes = [1, 32], strides = [1, 1]} : vector<32x32xf32> to vector<1x32xf32>
    %c0_335 = arith.constant 0 : index
    %c64_336 = arith.constant 64 : index
    %278 = vector.load %arg20[%c0_335, %c64_336] : memref<8x1024xf32, #tpu.memory_space<vmem>>, vector<1x32xf32>
    tpu.vector_store %arg20[%c0_335, %c64_336], %277 {strides = array<i32>} : memref<8x1024xf32, #tpu.memory_space<vmem>>, vector<1x32xf32>,
    %279 = vector.extract_strided_slice %272 {offsets = [3, 0], sizes = [1, 32], strides = [1, 1]} : vector<32x32xf32> to vector<1x32xf32>
    %c0_337 = arith.constant 0 : index
    %c96_338 = arith.constant 96 : index
    %280 = vector.load %arg20[%c0_337, %c96_338] : memref<8x1024xf32, #tpu.memory_space<vmem>>, vector<1x32xf32>
    tpu.vector_store %arg20[%c0_337, %c96_338], %279 {strides = array<i32>} : memref<8x1024xf32, #tpu.memory_space<vmem>>, vector<1x32xf32>,
    %281 = vector.extract_strided_slice %272 {offsets = [4, 0], sizes = [1, 32], strides = [1, 1]} : vector<32x32xf32> to vector<1x32xf32>
    %c0_339 = arith.constant 0 : index
    %c128_340 = arith.constant 128 : index
    %282 = vector.load %arg20[%c0_339, %c128_340] : memref<8x1024xf32, #tpu.memory_space<vmem>>, vector<1x32xf32>
    tpu.vector_store %arg20[%c0_339, %c128_340], %281 {strides = array<i32>} : memref<8x1024xf32, #tpu.memory_space<vmem>>, vector<1x32xf32>,
    %283 = vector.extract_strided_slice %272 {offsets = [5, 0], sizes = [1, 32], strides = [1, 1]} : vector<32x32xf32> to vector<1x32xf32>
    %c0_341 = arith.constant 0 : index
    %c160_342 = arith.constant 160 : index
    %284 = vector.load %arg20[%c0_341, %c160_342] : memref<8x1024xf32, #tpu.memory_space<vmem>>, vector<1x32xf32>
    tpu.vector_store %arg20[%c0_341, %c160_342], %283 {strides = array<i32>} : memref<8x1024xf32, #tpu.memory_space<vmem>>, vector<1x32xf32>,
    %285 = vector.extract_strided_slice %272 {offsets = [6, 0], sizes = [1, 32], strides = [1, 1]} : vector<32x32xf32> to vector<1x32xf32>
    %c0_343 = arith.constant 0 : index
    %c192_344 = arith.constant 192 : index
    %286 = vector.load %arg20[%c0_343, %c192_344] : memref<8x1024xf32, #tpu.memory_space<vmem>>, vector<1x32xf32>
    tpu.vector_store %arg20[%c0_343, %c192_344], %285 {strides = array<i32>} : memref<8x1024xf32, #tpu.memory_space<vmem>>, vector<1x32xf32>,
    %287 = vector.extract_strided_slice %272 {offsets = [7, 0], sizes = [1, 32], strides = [1, 1]} : vector<32x32xf32> to vector<1x32xf32>
    %c0_345 = arith.constant 0 : index
    %c224_346 = arith.constant 224 : index
    %288 = vector.load %arg20[%c0_345, %c224_346] : memref<8x1024xf32, #tpu.memory_space<vmem>>, vector<1x32xf32>
    tpu.vector_store %arg20[%c0_345, %c224_346], %287 {strides = array<i32>} : memref<8x1024xf32, #tpu.memory_space<vmem>>, vector<1x32xf32>,
    %289 = vector.extract_strided_slice %272 {offsets = [8, 0], sizes = [1, 32], strides = [1, 1]} : vector<32x32xf32> to vector<1x32xf32>
    %c0_347 = arith.constant 0 : index
    %c256_348 = arith.constant 256 : index
    %290 = vector.load %arg20[%c0_347, %c256_348] : memref<8x1024xf32, #tpu.memory_space<vmem>>, vector<1x32xf32>
    tpu.vector_store %arg20[%c0_347, %c256_348], %289 {strides = array<i32>} : memref<8x1024xf32, #tpu.memory_space<vmem>>, vector<1x32xf32>,
    %291 = vector.extract_strided_slice %272 {offsets = [9, 0], sizes = [1, 32], strides = [1, 1]} : vector<32x32xf32> to vector<1x32xf32>
    %c0_349 = arith.constant 0 : index
    %c288_350 = arith.constant 288 : index
    %292 = vector.load %arg20[%c0_349, %c288_350] : memref<8x1024xf32, #tpu.memory_space<vmem>>, vector<1x32xf32>
    tpu.vector_store %arg20[%c0_349, %c288_350], %291 {strides = array<i32>} : memref<8x1024xf32, #tpu.memory_space<vmem>>, vector<1x32xf32>,
    %293 = vector.extract_strided_slice %272 {offsets = [10, 0], sizes = [1, 32], strides = [1, 1]} : vector<32x32xf32> to vector<1x32xf32>
    %c0_351 = arith.constant 0 : index
    %c320_352 = arith.constant 320 : index
    %294 = vector.load %arg20[%c0_351, %c320_352] : memref<8x1024xf32, #tpu.memory_space<vmem>>, vector<1x32xf32>
    tpu.vector_store %arg20[%c0_351, %c320_352], %293 {strides = array<i32>} : memref<8x1024xf32, #tpu.memory_space<vmem>>, vector<1x32xf32>,
    %295 = vector.extract_strided_slice %272 {offsets = [11, 0], sizes = [1, 32], strides = [1, 1]} : vector<32x32xf32> to vector<1x32xf32>
    %c0_353 = arith.constant 0 : index
    %c352_354 = arith.constant 352 : index
    %296 = vector.load %arg20[%c0_353, %c352_354] : memref<8x1024xf32, #tpu.memory_space<vmem>>, vector<1x32xf32>
    tpu.vector_store %arg20[%c0_353, %c352_354], %295 {strides = array<i32>} : memref<8x1024xf32, #tpu.memory_space<vmem>>, vector<1x32xf32>,
    %297 = vector.extract_strided_slice %272 {offsets = [12, 0], sizes = [1, 32], strides = [1, 1]} : vector<32x32xf32> to vector<1x32xf32>
    %c0_355 = arith.constant 0 : index
    %c384_356 = arith.constant 384 : index
    %298 = vector.load %arg20[%c0_355, %c384_356] : memref<8x1024xf32, #tpu.memory_space<vmem>>, vector<1x32xf32>
    tpu.vector_store %arg20[%c0_355, %c384_356], %297 {strides = array<i32>} : memref<8x1024xf32, #tpu.memory_space<vmem>>, vector<1x32xf32>,
    %299 = vector.extract_strided_slice %272 {offsets = [13, 0], sizes = [1, 32], strides = [1, 1]} : vector<32x32xf32> to vector<1x32xf32>
    %c0_357 = arith.constant 0 : index
    %c416_358 = arith.constant 416 : index
    %300 = vector.load %arg20[%c0_357, %c416_358] : memref<8x1024xf32, #tpu.memory_space<vmem>>, vector<1x32xf32>
    tpu.vector_store %arg20[%c0_357, %c416_358], %299 {strides = array<i32>} : memref<8x1024xf32, #tpu.memory_space<vmem>>, vector<1x32xf32>,
    %301 = vector.extract_strided_slice %272 {offsets = [14, 0], sizes = [1, 32], strides = [1, 1]} : vector<32x32xf32> to vector<1x32xf32>
    %c0_359 = arith.constant 0 : index
    %c448_360 = arith.constant 448 : index
    %302 = vector.load %arg20[%c0_359, %c448_360] : memref<8x1024xf32, #tpu.memory_space<vmem>>, vector<1x32xf32>
    tpu.vector_store %arg20[%c0_359, %c448_360], %301 {strides = array<i32>} : memref<8x1024xf32, #tpu.memory_space<vmem>>, vector<1x32xf32>,
    %303 = vector.extract_strided_slice %272 {offsets = [15, 0], sizes = [1, 32], strides = [1, 1]} : vector<32x32xf32> to vector<1x32xf32>
    %c0_361 = arith.constant 0 : index
    %c480_362 = arith.constant 480 : index
    %304 = vector.load %arg20[%c0_361, %c480_362] : memref<8x1024xf32, #tpu.memory_space<vmem>>, vector<1x32xf32>
    tpu.vector_store %arg20[%c0_361, %c480_362], %303 {strides = array<i32>} : memref<8x1024xf32, #tpu.memory_space<vmem>>, vector<1x32xf32>,
    %305 = vector.extract_strided_slice %272 {offsets = [16, 0], sizes = [1, 32], strides = [1, 1]} : vector<32x32xf32> to vector<1x32xf32>
    %c0_363 = arith.constant 0 : index
    %c512_364 = arith.constant 512 : index
    %306 = vector.load %arg20[%c0_363, %c512_364] : memref<8x1024xf32, #tpu.memory_space<vmem>>, vector<1x32xf32>
    tpu.vector_store %arg20[%c0_363, %c512_364], %305 {strides = array<i32>} : memref<8x1024xf32, #tpu.memory_space<vmem>>, vector<1x32xf32>,
    %307 = vector.extract_strided_slice %272 {offsets = [17, 0], sizes = [1, 32], strides = [1, 1]} : vector<32x32xf32> to vector<1x32xf32>
    %c0_365 = arith.constant 0 : index
    %c544_366 = arith.constant 544 : index
    %308 = vector.load %arg20[%c0_365, %c544_366] : memref<8x1024xf32, #tpu.memory_space<vmem>>, vector<1x32xf32>
    tpu.vector_store %arg20[%c0_365, %c544_366], %307 {strides = array<i32>} : memref<8x1024xf32, #tpu.memory_space<vmem>>, vector<1x32xf32>,
    %309 = vector.extract_strided_slice %272 {offsets = [18, 0], sizes = [1, 32], strides = [1, 1]} : vector<32x32xf32> to vector<1x32xf32>
    %c0_367 = arith.constant 0 : index
    %c576_368 = arith.constant 576 : index
    %310 = vector.load %arg20[%c0_367, %c576_368] : memref<8x1024xf32, #tpu.memory_space<vmem>>, vector<1x32xf32>
    tpu.vector_store %arg20[%c0_367, %c576_368], %309 {strides = array<i32>} : memref<8x1024xf32, #tpu.memory_space<vmem>>, vector<1x32xf32>,
    %311 = vector.extract_strided_slice %272 {offsets = [19, 0], sizes = [1, 32], strides = [1, 1]} : vector<32x32xf32> to vector<1x32xf32>
    %c0_369 = arith.constant 0 : index
    %c608_370 = arith.constant 608 : index
    %312 = vector.load %arg20[%c0_369, %c608_370] : memref<8x1024xf32, #tpu.memory_space<vmem>>, vector<1x32xf32>
    tpu.vector_store %arg20[%c0_369, %c608_370], %311 {strides = array<i32>} : memref<8x1024xf32, #tpu.memory_space<vmem>>, vector<1x32xf32>,
    %313 = vector.extract_strided_slice %272 {offsets = [20, 0], sizes = [1, 32], strides = [1, 1]} : vector<32x32xf32> to vector<1x32xf32>
    %c0_371 = arith.constant 0 : index
    %c640_372 = arith.constant 640 : index
    %314 = vector.load %arg20[%c0_371, %c640_372] : memref<8x1024xf32, #tpu.memory_space<vmem>>, vector<1x32xf32>
    tpu.vector_store %arg20[%c0_371, %c640_372], %313 {strides = array<i32>} : memref<8x1024xf32, #tpu.memory_space<vmem>>, vector<1x32xf32>,
    %315 = vector.extract_strided_slice %272 {offsets = [21, 0], sizes = [1, 32], strides = [1, 1]} : vector<32x32xf32> to vector<1x32xf32>
    %c0_373 = arith.constant 0 : index
    %c672_374 = arith.constant 672 : index
    %316 = vector.load %arg20[%c0_373, %c672_374] : memref<8x1024xf32, #tpu.memory_space<vmem>>, vector<1x32xf32>
    tpu.vector_store %arg20[%c0_373, %c672_374], %315 {strides = array<i32>} : memref<8x1024xf32, #tpu.memory_space<vmem>>, vector<1x32xf32>,
    %317 = vector.extract_strided_slice %272 {offsets = [22, 0], sizes = [1, 32], strides = [1, 1]} : vector<32x32xf32> to vector<1x32xf32>
    %c0_375 = arith.constant 0 : index
    %c704_376 = arith.constant 704 : index
    %318 = vector.load %arg20[%c0_375, %c704_376] : memref<8x1024xf32, #tpu.memory_space<vmem>>, vector<1x32xf32>
    tpu.vector_store %arg20[%c0_375, %c704_376], %317 {strides = array<i32>} : memref<8x1024xf32, #tpu.memory_space<vmem>>, vector<1x32xf32>,
    %319 = vector.extract_strided_slice %272 {offsets = [23, 0], sizes = [1, 32], strides = [1, 1]} : vector<32x32xf32> to vector<1x32xf32>
    %c0_377 = arith.constant 0 : index
    %c736_378 = arith.constant 736 : index
    %320 = vector.load %arg20[%c0_377, %c736_378] : memref<8x1024xf32, #tpu.memory_space<vmem>>, vector<1x32xf32>
    tpu.vector_store %arg20[%c0_377, %c736_378], %319 {strides = array<i32>} : memref<8x1024xf32, #tpu.memory_space<vmem>>, vector<1x32xf32>,
    %321 = vector.extract_strided_slice %272 {offsets = [24, 0], sizes = [1, 32], strides = [1, 1]} : vector<32x32xf32> to vector<1x32xf32>
    %c0_379 = arith.constant 0 : index
    %c768_380 = arith.constant 768 : index
    %322 = vector.load %arg20[%c0_379, %c768_380] : memref<8x1024xf32, #tpu.memory_space<vmem>>, vector<1x32xf32>
    tpu.vector_store %arg20[%c0_379, %c768_380], %321 {strides = array<i32>} : memref<8x1024xf32, #tpu.memory_space<vmem>>, vector<1x32xf32>,
    %323 = vector.extract_strided_slice %272 {offsets = [25, 0], sizes = [1, 32], strides = [1, 1]} : vector<32x32xf32> to vector<1x32xf32>
    %c0_381 = arith.constant 0 : index
    %c800 = arith.constant 800 : index
    %324 = vector.load %arg20[%c0_381, %c800] : memref<8x1024xf32, #tpu.memory_space<vmem>>, vector<1x32xf32>
    tpu.vector_store %arg20[%c0_381, %c800], %323 {strides = array<i32>} : memref<8x1024xf32, #tpu.memory_space<vmem>>, vector<1x32xf32>,
    %325 = vector.extract_strided_slice %272 {offsets = [26, 0], sizes = [1, 32], strides = [1, 1]} : vector<32x32xf32> to vector<1x32xf32>
    %c0_382 = arith.constant 0 : index
    %c832 = arith.constant 832 : index
    %326 = vector.load %arg20[%c0_382, %c832] : memref<8x1024xf32, #tpu.memory_space<vmem>>, vector<1x32xf32>
    tpu.vector_store %arg20[%c0_382, %c832], %325 {strides = array<i32>} : memref<8x1024xf32, #tpu.memory_space<vmem>>, vector<1x32xf32>,
    %327 = vector.extract_strided_slice %272 {offsets = [27, 0], sizes = [1, 32], strides = [1, 1]} : vector<32x32xf32> to vector<1x32xf32>
    %c0_383 = arith.constant 0 : index
    %c864 = arith.constant 864 : index
    %328 = vector.load %arg20[%c0_383, %c864] : memref<8x1024xf32, #tpu.memory_space<vmem>>, vector<1x32xf32>
    tpu.vector_store %arg20[%c0_383, %c864], %327 {strides = array<i32>} : memref<8x1024xf32, #tpu.memory_space<vmem>>, vector<1x32xf32>,
    %329 = vector.extract_strided_slice %272 {offsets = [28, 0], sizes = [1, 32], strides = [1, 1]} : vector<32x32xf32> to vector<1x32xf32>
    %c0_384 = arith.constant 0 : index
    %c896 = arith.constant 896 : index
    %330 = vector.load %arg20[%c0_384, %c896] : memref<8x1024xf32, #tpu.memory_space<vmem>>, vector<1x32xf32>
    tpu.vector_store %arg20[%c0_384, %c896], %329 {strides = array<i32>} : memref<8x1024xf32, #tpu.memory_space<vmem>>, vector<1x32xf32>,
    %331 = vector.extract_strided_slice %272 {offsets = [29, 0], sizes = [1, 32], strides = [1, 1]} : vector<32x32xf32> to vector<1x32xf32>
    %c0_385 = arith.constant 0 : index
    %c928 = arith.constant 928 : index
    %332 = vector.load %arg20[%c0_385, %c928] : memref<8x1024xf32, #tpu.memory_space<vmem>>, vector<1x32xf32>
    tpu.vector_store %arg20[%c0_385, %c928], %331 {strides = array<i32>} : memref<8x1024xf32, #tpu.memory_space<vmem>>, vector<1x32xf32>,
    %333 = vector.extract_strided_slice %272 {offsets = [30, 0], sizes = [1, 32], strides = [1, 1]} : vector<32x32xf32> to vector<1x32xf32>
    %c0_386 = arith.constant 0 : index
    %c960 = arith.constant 960 : index
    %334 = vector.load %arg20[%c0_386, %c960] : memref<8x1024xf32, #tpu.memory_space<vmem>>, vector<1x32xf32>
    tpu.vector_store %arg20[%c0_386, %c960], %333 {strides = array<i32>} : memref<8x1024xf32, #tpu.memory_space<vmem>>, vector<1x32xf32>,
    %335 = vector.extract_strided_slice %272 {offsets = [31, 0], sizes = [1, 32], strides = [1, 1]} : vector<32x32xf32> to vector<1x32xf32>
    %c0_387 = arith.constant 0 : index
    %c992 = arith.constant 992 : index
    %336 = vector.load %arg20[%c0_387, %c992] : memref<8x1024xf32, #tpu.memory_space<vmem>>, vector<1x32xf32>
    tpu.vector_store %arg20[%c0_387, %c992], %335 {strides = array<i32>} : memref<8x1024xf32, #tpu.memory_space<vmem>>, vector<1x32xf32>,
    %c0_388 = arith.constant 0 : index
    %c0_389 = arith.constant 0 : index
    %337 = vector.load %arg20[%c0_388, %c0_389] : memref<8x1024xf32, #tpu.memory_space<vmem>>, vector<1x1024xf32>
    %338 = arith.truncf %337 : vector<1x1024xf32> to vector<1x1024xbf16>
    %c0_390 = arith.constant 0 : index
    %c0_391 = arith.constant 0 : index
    %339 = vector.load %arg10[%c0_390, %c0_391] : memref<1024x128xbf16, #tpu.memory_space<vmem>>, vector<1024x128xbf16>
    %cst_392 = arith.constant dense<0.000000e+00> : vector<1x128xf32>
    %340 = tpu.matmul %338, %339, %cst_392 {dimension_numbers = #tpu.dot_dimension_numbers<[1], [0], [0], [1], [0, 0, 1, 1], [], []>} : vector<1x1024xbf16>, vector<1024x128xbf16>, vector<1x128xf32> -> vector<1x128xf32>
    %c0_393 = arith.constant 0 : index
    %c0_394 = arith.constant 0 : index
    %341 = vector.load %arg11[%c0_393, %c0_394] : memref<1x128xf32, #tpu.memory_space<vmem>>, vector<1x128xf32>
    %342 = arith.addf %340, %341 : vector<1x128xf32>
    %cst_395 = arith.constant 0.000000e+00 : f32
    %343 = vector.broadcast %cst_395 : f32 to vector<1x128xf32>
    %344 = arith.maximumf %342, %343 : vector<1x128xf32>
    %345 = arith.truncf %344 : vector<1x128xf32> to vector<1x128xbf16>
    %c0_396 = arith.constant 0 : index
    %c0_397 = arith.constant 0 : index
    %346 = vector.load %arg12[%c0_396, %c0_397] : memref<128x128xbf16, #tpu.memory_space<vmem>>, vector<128x128xbf16>
    %cst_398 = arith.constant dense<0.000000e+00> : vector<1x128xf32>
    %347 = tpu.matmul %345, %346, %cst_398 {dimension_numbers = #tpu.dot_dimension_numbers<[1], [0], [0], [1], [0, 0, 1, 1], [], []>} : vector<1x128xbf16>, vector<128x128xbf16>, vector<1x128xf32> -> vector<1x128xf32>
    %c0_399 = arith.constant 0 : index
    %c0_400 = arith.constant 0 : index
    %348 = vector.load %arg13[%c0_399, %c0_400] : memref<1x128xf32, #tpu.memory_space<vmem>>, vector<1x128xf32>
    %349 = arith.addf %347, %348 : vector<1x128xf32>
    %350 = vector.shape_cast %349 : vector<1x128xf32> to vector<1x128xf32>
    %351 = vector.broadcast %350 : vector<1x128xf32> to vector<8x128xf32>
    %c0_401 = arith.constant 0 : index
    %c0_402 = arith.constant 0 : index
    %c0_403 = arith.constant 0 : index
    %352 = vector.load %arg14[%c0_401, %c0_402, %c0_403] : memref<1x8x128xf32, #tpu.memory_space<vmem>>, vector<1x8x128xf32>
    %353 = vector.shape_cast %352 : vector<1x8x128xf32> to vector<8x128xf32>
    %354 = vector.shape_cast %351 : vector<8x128xf32> to vector<1x8x128xf32>
    tpu.vector_store %arg14[%c0_401, %c0_402, %c0_403], %354 {strides = array<i32>} : memref<1x8x128xf32, #tpu.memory_space<vmem>>, vector<1x8x128xf32>,
    return
  }
  func.func @transform_0(%arg0: i32) -> (i32, i32, i32) {
    %c0_i32 = arith.constant 0 : i32
    %c0_i32_0 = arith.constant 0 : i32
    %c0_i32_1 = arith.constant 0 : i32
    return %arg0, %c0_i32, %c0_i32_0 : i32, i32, i32
  }
  func.func @transform_1(%arg0: i32) -> (i32, i32) {
    %c0_i32 = arith.constant 0 : i32
    %c0_i32_0 = arith.constant 0 : i32
    %c0_i32_1 = arith.constant 0 : i32
    return %c0_i32, %c0_i32_0 : i32, i32
  }
  func.func @transform_2(%arg0: i32) -> (i32, i32) {
    %c0_i32 = arith.constant 0 : i32
    %c0_i32_0 = arith.constant 0 : i32
    %c0_i32_1 = arith.constant 0 : i32
    return %c0_i32, %c0_i32_0 : i32, i32
  }
  func.func @transform_3(%arg0: i32) -> (i32, i32) {
    %c0_i32 = arith.constant 0 : i32
    %c0_i32_0 = arith.constant 0 : i32
    %c0_i32_1 = arith.constant 0 : i32
    return %c0_i32, %c0_i32_0 : i32, i32
  }
  func.func @transform_4(%arg0: i32) -> (i32, i32) {
    %c0_i32 = arith.constant 0 : i32
    %c0_i32_0 = arith.constant 0 : i32
    %c0_i32_1 = arith.constant 0 : i32
    return %c0_i32, %c0_i32_0 : i32, i32
  }
  func.func @transform_5(%arg0: i32) -> (i32, i32) {
    %c0_i32 = arith.constant 0 : i32
    %c0_i32_0 = arith.constant 0 : i32
    %c0_i32_1 = arith.constant 0 : i32
    return %c0_i32, %c0_i32_0 : i32, i32
  }
  func.func @transform_6(%arg0: i32) -> (i32, i32) {
    %c0_i32 = arith.constant 0 : i32
    %c0_i32_0 = arith.constant 0 : i32
    %c0_i32_1 = arith.constant 0 : i32
    return %c0_i32, %c0_i32_0 : i32, i32
  }
  func.func @transform_7(%arg0: i32) -> (i32, i32) {
    %c0_i32 = arith.constant 0 : i32
    %c0_i32_0 = arith.constant 0 : i32
    %c0_i32_1 = arith.constant 0 : i32
    return %c0_i32, %c0_i32_0 : i32, i32
  }
  func.func @transform_8(%arg0: i32) -> (i32, i32) {
    %c0_i32 = arith.constant 0 : i32
    %c0_i32_0 = arith.constant 0 : i32
    %c0_i32_1 = arith.constant 0 : i32
    return %c0_i32, %c0_i32_0 : i32, i32
  }
  func.func @transform_9(%arg0: i32) -> (i32, i32) {
    %c0_i32 = arith.constant 0 : i32
    %c0_i32_0 = arith.constant 0 : i32
    %c0_i32_1 = arith.constant 0 : i32
    return %c0_i32, %c0_i32_0 : i32, i32
  }
  func.func @transform_10(%arg0: i32) -> (i32, i32) {
    %c0_i32 = arith.constant 0 : i32
    %c0_i32_0 = arith.constant 0 : i32
    %c0_i32_1 = arith.constant 0 : i32
    return %c0_i32, %c0_i32_0 : i32, i32
  }
  func.func @transform_11(%arg0: i32) -> (i32, i32) {
    %c0_i32 = arith.constant 0 : i32
    %c0_i32_0 = arith.constant 0 : i32
    %c0_i32_1 = arith.constant 0 : i32
    return %c0_i32, %c0_i32_0 : i32, i32
  }
  func.func @transform_12(%arg0: i32) -> (i32, i32) {
    %c0_i32 = arith.constant 0 : i32
    %c0_i32_0 = arith.constant 0 : i32
    %c0_i32_1 = arith.constant 0 : i32
    return %c0_i32, %c0_i32_0 : i32, i32
  }
  func.func @transform_13(%arg0: i32) -> (i32, i32, i32) {
    %c0_i32 = arith.constant 0 : i32
    %c0_i32_0 = arith.constant 0 : i32
    %c0_i32_1 = arith.constant 0 : i32
    return %arg0, %c0_i32, %c0_i32_0 : i32, i32, i32
  }
}

</mosaic_0001>

<bundles_post_ra>
// kernel: student_s_forward.1
= control target key start
LH: loop header
LB: loop body
LE: loop exit
PB: predicated region body
PF: predicated region fallthrough
CT: control target
= control target key end

     0   :  { %s10964_s25 = smov 0   ;;  %s15455_s0 = inlined_call_operand.vmem [shape: bf16[2,4,768], index: 0, kind: input, shape index: {}]   ;;  %s15456_s1 = inlined_call_operand.vmem [shape: bf16[32,56], index: 1, kind: input, shape index: {}]   ;;  %s15457_s2 = inlined_call_operand.vmem [shape: f32[32,1], index: 2, kind: input, shape index: {}]   ;;  %s15458_s3 = inlined_call_operand.vmem [shape: f32[1,640], index: 3, kind: input, shape index: {}]   ;;  %s15459_s4 = inlined_call_operand.vmem [shape: bf16[640,384], index: 4, kind: input, shape index: {}]   ;;  %s15460_s5 = inlined_call_operand.vmem [shape: bf16[32,800], index: 5, kind: input, shape index: {}]   ;;  %s15461_s6 = inlined_call_operand.vmem [shape: f32[32,1], index: 6, kind: input, shape index: {}]   ;;  %s15462_s7 = inlined_call_operand.vmem [shape: f32[1,256], index: 7, kind: input, shape index: {}]   ;;  %s15463_s8 = inlined_call_operand.vmem [shape: bf16[256,32], index: 8, kind: input, shape index: {}]   ;;  %s15464_s9 = inlined_call_operand.vmem [shape: bf16[1024,128], index: 9, kind: input, shape index: {}]   ;;  %s15465_s10 = inlined_call_operand.vmem [shape: f32[1,128], index: 10, kind: input, shape index: {}]   ;;  %s15466_s11 = inlined_call_operand.vmem [shape: bf16[128,128], index: 11, kind: input, shape index: {}]   ;;  %s15467_s12 = inlined_call_operand.vmem [shape: f32[1,128], index: 12, kind: input, shape index: {}]   ;;  %s15468_s13 = inlined_call_operand.vmem [shape: f32[2,8,128], index: 13, kind: output, shape index: {}]  }
   0x1 LB: > { %s9044_s26 = sadd.s32 4294967295, %s10849_s25   ;;  %p9048_p0 = scmp.ge.s32.totalorder %s10849_s25, 1  ;;  %s10849_s25 = sphi %s10964_s25, %s23_s25  }
   0x2   : > { %p387_p1 = scmp.lt.s32.totalorder %s10849_s25, 3 }
   0x4   : > { %p388_p2 = pnand %p9048_p0, %p387_p1 }
   0x6   : > { %391 = sbr.rel (%p388_p2) target bundleno = 3153 (0xc51), region = 72 }
   0xd   : > { %p430_p3 = scmp.lt.s32.totalorder %s9044_s26, 1  ;;  %v451_v0 = vlaneseq  ;;  %v10851_v1 = vmov 1983009808   ;;  %s15656_s14 = smov 126   ;;  %vm472_vm0 = vcmask 1040384   ;;  %vm475_vm4 = vcmask 1044484  }
   0xe   : > { %v449_v2 = vunpack.c.l.s4 %v10851_v1  ;;  %s10853_s15 = smov 127   ;;  %s15593_s16 = smov 125   ;;  %vm473_vm1 = vsmask.f32 256  ;;  %vm476_vm3 = vsmask.f32 4352 }
   0xf   : > { %s16329_s26 = smov (!%p430_p3, %s9044_s26), 1  ;;  %v10974_v3 = vshrl.u32 %v451_v0, 7  ;;  %s10855_s17 = smov 105   ;;  %vm11078_vm2 = vmand %vm472_vm0, %vm473_vm1  ;;  %vm517_vm7 = vsmask.f32 7938  ;;  %vm15470_vm13 = vcmask 1042434  }
  0x10   : > { %v450_v4 = vunpack.c.0.s8 %v449_v2  ;;  %s9671_s27 = smul.u32 12, %s16329_s26  ;;  %s10856_s18 = smov 104   ;;  %vm477_vm5 = vmand %vm475_vm4, %vm476_vm3  ;;  %vm519_vm8 = vsmask.f32 7954  ;;  %vm701_vm12 = vsmask.f32 2304 }
  0x11   : > { %15658 = vst [vmem:[#allocation8_spill] sm:$0xff] %v10974_v3  ;;  %s10857_s19 = smov 103   ;;  %s15487_s20 = smov 102   ;;  %vm11097_vm6 = vmor %vm477_vm5, %vm11078_vm2  ;;  %vm15469_vm14 = vcmask 1046534   ;;  %vm704_vm15 = vsmask.f32 6400 }
  0x12   : > { %v10978_v5 = vsub.s32 %v450_v4, %v10974_v3  ;;  %s10983_s30 = scalar_lea.vmem %s15455_s0, %s9671_s27  ;;  %s15497_s21 = smov 82   ;;  %vm11129_vm9 = vmand %vm472_vm0, %vm517_vm7  ;;  %vm15472_vm0 = vcmask 1043459   ;;  %vm15505_vm1 = vcmask 1043456   ;;  %vm822_vm5 = vsmask.f32 3328 }
  0x13   : > { %v655_v6 = vld [vmem:[%s10983_s30] sm:$0x55]  ;;  %v1012_v12 = vld [vmem:[%s10983_s30] sm:$0xaa]  ;;  %s10860_s22 = smov 81   ;;  %s10861_s23 = smov 80   ;;  %vm520_vm10 = vmand %vm475_vm4, %vm519_vm8 }
  0x14   : > { %v531_v7 = vld [vmem:[%s10983_s30] sm:$0x55]  ;;  %v673_v9 = vrot.slane %v655_v6, %v10978_v5  ;;  %v659_v10 = vcombine.low %v655_v6, %v655_v6  ;;  %v1140_v13 = vld [vmem:[%s10983_s30] sm:$0xaa]  ;;  %v1016_v18 = vcombine.high %v1012_v12, %v1012_v12  ;;  %v1023_v23 = vrot.slane %v1012_v12, %v10978_v5  ;;  %s10862_s24 = smov 79   ;;  %s10863_s27 = smov 59   ;;  %vm11140_vm11 = vmor %vm520_vm10, %vm11129_vm9 }
  0x15   : > { %v774_v8 = vld [vmem:[%s10983_s30] sm:$0x55]  ;;  %v542_v11 = vrot.slane %v531_v7, %v10978_v5  ;;  %v1144_v19 = vcombine.high %v1140_v13, %v1140_v13  ;;  %v535_v21 = vcombine.high %v531_v7, %v531_v7  ;;  %v1151_v30 = vrot.slane %v1140_v13, %v10978_v5  ;;  %v1713_v45 = vld [vmem:[%s10983_s30] sm:$0xaa]  ;;  %s10864_s28 = smov 58   ;;  %s10865_s29 = smov 57   ;;  %vm11187_vm4 = vmand %vm15470_vm13, %vm701_vm12 }
  0x16   : > { %v785_v14 = vrot.slane %v774_v8, %v10978_v5  ;;  %v778_v15 = vcombine.high %v774_v8, %v774_v8  ;;  %684 = vrot.lane.b32.xlu1 %v673_v9, %s15656_s14  ;;  %v666_v17 = vrot.slane %v659_v10, %v10978_v5  ;;  %v1030_v25 = vrot.slane %v1016_v18, %v10978_v5  ;;  %v1268_v27 = vld [vmem:[%s10983_s30] sm:$0x55]  ;;  %v1841_v50 = vld [vmem:[%s10983_s30] sm:$0xaa]  ;;  %vm11195_vm8 = vmand %vm15469_vm14, %vm704_vm15 }
  0x17   : > { %v557_v16 = vrot.slane %v542_v11, 7  ;;  %v1158_v26 = vrot.slane %v1144_v19, %v10978_v5  ;;  %v1039_v28 = vshrl.u32 %v1023_v23, 16  ;;  %v549_v29 = vrot.slane %v535_v21, %v10978_v5  ;;  %v1379_v38 = vld [vmem:[%s10983_s30] sm:$0x55]  ;;  %v1975_v61 = vld [vmem:[%s10983_s30] sm:$0xaa]  ;;  %vm11213_vm14 = vmor %vm11195_vm8, %vm11187_vm4 }
  0x18   : > { %v792_v20 = vrot.slane %v778_v15, %v10978_v5  ;;  %v800_v22 = vrot.slane %v785_v14, 5  ;;  %v1044_v31 = vshrl.u32 %v1030_v25, 16  ;;  %v1272_v33 = vcombine.high %v1268_v27, %v1268_v27  ;;  %v1484_v39 = vld [vmem:[%s10983_s30] sm:$0x55]  ;;  %vm11223_vm15 = vmand %vm15472_vm0, %vm822_vm5 }
  0x19   : > { %560 = vrot.lane.b32.xlu0 %v557_v16, %s10853_s15  ;;  %v1171_v32 = vshrl.u32 %v1158_v26, 16  ;;  %v558_v34 = vrot.slane %v549_v29, 7  ;;  %v1167_v35 = vshrl.u32 %v1151_v30, 16  ;;  %v1279_v41 = vrot.slane %v1268_v27, %v10978_v5  ;;  %v1595_v53 = vld [vmem:[%s10983_s30] sm:$0x55] }
  0x1a   : > { %682 = vrot.lane.b32.xlu1 %v666_v17, %s15656_s14  ;;  %v801_v24 = vrot.slane %v792_v20, 5  ;;  %v1286_v37 = vrot.slane %v1272_v33, %v10978_v5  ;;  %v1383_v43 = vcombine.high %v1379_v38, %v1379_v38  ;;  %v1488_v44 = vcombine.high %v1484_v39, %v1484_v39  ;;  %v2210_v12 = vld [vmem:[%s10983_s30] sm:$0x55] }
  0x1b   : > { %v1173_v36 = vrot.slane %v1171_v32, 7  ;;  %v1169_v40 = vrot.slane %v1167_v35, 7  ;;  %v1294_v46 = vrot.slane %v1279_v41, 5  ;;  %v1717_v49 = vcombine.high %v1713_v45, %v1713_v45  ;;  %v2103_v15 = vld [vmem:[%s10983_s30] sm:$0x55] }
  0x1c   : > { %v1295_v42 = vrot.slane %v1286_v37, 5  ;;  %v1397_v47 = vrot.slane %v1383_v43, %v10978_v5  ;;  %v1502_v48 = vrot.slane %v1488_v44, %v10978_v5  ;;  %v1390_v51 = vrot.slane %v1379_v38, %v10978_v5  ;;  %v2426_v23 = vld [vmem:[%s10983_s30] sm:$0x55]  ;;  %v2799_v37 = vld [vmem:[%s10983_s30] sm:$0xaa] }
  0x1d   : > { %803 = vrot.lane.b32.xlu0 %v800_v22, %s15593_s16  ;;  %v1495_v52 = vrot.slane %v1484_v39, %v10978_v5  ;;  %v1845_v54 = vcombine.high %v1841_v50, %v1841_v50  ;;  %v1731_v56 = vrot.slane %v1717_v49, %v10978_v5  ;;  %v1599_v58 = vcombine.low %v1595_v53, %v1595_v53  ;;  %v2321_v22 = vld [vmem:[%s10983_s30] sm:$0x55] }
  0x1e   : > { %805 = vrot.lane.b32.xlu1 %v801_v24, %s15593_s16  ;;  %v1511_v55 = vrot.slane %v1502_v48, 7  ;;  %v1724_v59 = vrot.slane %v1713_v45, %v10978_v5  ;;  %v1613_v62 = vrot.slane %v1595_v53, %v10978_v5  ;;  %v1852_v2 = vrot.slane %v1841_v50, %v10978_v5  ;;  %v2543_v24 = vld [vmem:[%s10983_s30] sm:$0xaa]  ;;  %v2933_v48 = vld [vmem:[%s10983_s30] sm:$0x55] }
  0x1f   : > { %v1510_v57 = vrot.slane %v1495_v52, 7  ;;  %v1859_v60 = vrot.slane %v1845_v54, %v10978_v5  ;;  %v1744_v63 = vshrl.u32 %v1731_v56, 16  ;;  %v1606_v0 = vrot.slane %v1599_v58, %v10978_v5 }
  0x20   : > { %v1740_v1 = vshrl.u32 %v1724_v59, 16  ;;  %v1979_v7 = vcombine.high %v1975_v61, %v1975_v61  ;;  %v1868_v9 = vshrl.u32 %v1852_v2, 16  ;;  %v1986_v14 = vrot.slane %v1975_v61, %v10978_v5  ;;  %v3151_v61 = vld [vmem:[%s10983_s30] sm:$0x55] }
  0x21   : > { %1053 = vrot.lane.b32.xlu0 %v1039_v28, %s10853_s15  ;;  %v1873_v4 = vshrl.u32 %v1859_v60, 16  ;;  %v1746_v6 = vrot.slane %v1744_v63, 6  ;;  %v2214_v17 = vcombine.high %v2210_v12, %v2210_v12  ;;  %v2107_v19 = vcombine.low %v2103_v15, %v2103_v15 }
  0x22   : > { %1055 = vrot.lane.b32.xlu1 %v1044_v31, %s10853_s15  ;;  %v1742_v8 = vrot.slane %v1740_v1, 6  ;;  %v1993_v11 = vrot.slane %v1979_v7, %v10978_v5  ;;  %v9082_v13 = vrot.slane %v1868_v9, 9  ;;  %v2002_v18 = vshrl.u32 %v1986_v14, 16  ;;  %v2671_v31 = vld [vmem:[%s10983_s30] sm:$0xaa] }
  0x23   : > { %v9083_v10 = vrot.slane %v1873_v4, 9  ;;  %v2121_v20 = vrot.slane %v2103_v15, %v10978_v5  ;;  %v2228_v21 = vrot.slane %v2214_v17, %v10978_v5  ;;  %v2114_v25 = vrot.slane %v2107_v19, %v10978_v5  ;;  %v595_v1 = vld [vmem:[%s10983_s30] sm:$0x55] }
  0x24   : > { %v2007_v16 = vshrl.u32 %v1993_v11, 16  ;;  %v2221_v26 = vrot.slane %v2210_v12, %v10978_v5  ;;  %v2325_v28 = vcombine.high %v2321_v22, %v2321_v22  ;;  %v2430_v29 = vcombine.high %v2426_v23, %v2426_v23  ;;  %v945_v11 = vld [vmem:[%s10983_s30] sm:$0xaa] }
  0x25   : > { %562 = vrot.lane.b32.xlu0 %v558_v34, %s10853_s15  ;;  %v2237_v27 = vrot.slane %v2228_v21, 5  ;;  %v2547_v30 = vcombine.high %v2543_v24, %v2543_v24  ;;  %v2332_v38 = vrot.slane %v2321_v22, %v10978_v5  ;;  %v2437_v39 = vrot.slane %v2426_v23, %v10978_v5  ;;  %v10839_v12 = vld.sshfl [vmem:[%s10983_s30] sm:$0x55 pattern:$0x76325410] }
  0x26   : > { %1180 = vrot.lane.b32.xlu1 %v1173_v36, %s15656_s14  ;;  %v2236_v32 = vrot.slane %v2221_v26, 5  ;;  %v2339_v33 = vrot.slane %v2325_v28, %v10978_v5  ;;  %v2444_v34 = vrot.slane %v2430_v29, %v10978_v5  ;;  %v2675_v36 = vcombine.high %v2671_v31, %v2671_v31  ;;  %v10840_v15 = vld.sshfl [vmem:[%s10983_s30] sm:$0xaa pattern:$0x76325410] }
  0x27   : > { %v2561_v35 = vrot.slane %v2547_v30, %v10978_v5  ;;  %v2803_v44 = vcombine.high %v2799_v37, %v2799_v37  ;;  %v2452_v45 = vrot.slane %v2437_v39, 7  ;;  %v2810_v54 = vrot.slane %v2799_v37, %v10978_v5 }
  0x28   : > { %v2453_v41 = vrot.slane %v2444_v34, 7  ;;  %v2689_v43 = vrot.slane %v2675_v36, %v10978_v5  ;;  %v2944_v4 = vrot.slane %v2933_v48, %v10978_v5  ;;  %v3155_v7 = vcombine.high %v3151_v61, %v3151_v61  ;;  %v716_v34 = vld [vmem:[%s10983_s30] sm:$0x55] }
  0x29   : > { %1178 = vrot.lane.b32.xlu0 %v1169_v40, %s15656_s14  ;;  %v2554_v40 = vrot.slane %v2543_v24, %v10978_v5  ;;  %v2826_v59 = vshrl.u32 %v2810_v54, 16  ;;  %v15661_v14 = vmov 0  ;;  %v3162_v19 = vrot.slane %v3151_v61, %v10978_v5 }
  0x2a   : > { %1299 = vrot.lane.b32.xlu1 %v1295_v42, %s10855_s17  ;;  %v2574_v42 = vshrl.u32 %v2561_v35, 16  ;;  %v2702_v50 = vshrl.u32 %v2689_v43, 16  ;;  %v15662_v14 = vsel %vm11097_vm6, 4294967295, %v15661_v14  ;;  %v3169_v17 = vrot.slane %v3155_v7, %v10978_v5 }
  0x2b   : > { %v9105_v2 = vrot.slane %v2826_v59, 9  ;;  %v949_v23 = vcombine.high %v945_v11, %v945_v11  ;;  %v919_v24 = vshrl.u32 %v10840_v15, 16  ;;  %v3177_v29 = vrot.slane %v3162_v19, 5 }
  0x2c   : > { %v2576_v49 = vrot.slane %v2574_v42, 7  ;;  %v3178_v26 = vrot.slane %v3169_v17, 5  ;;  %v606_v30 = vrot.slane %v595_v1, %v10978_v5  ;;  %vm825_vm7 = vsmask.f32 7424 }
  0x2d   : > { %1297 = vrot.lane.b32.xlu0 %v1294_v46, %s10855_s17  ;;  %v2570_v46 = vshrl.u32 %v2554_v40, 16  ;;  %v9058_v28 = vrot.slane %v919_v24, 9  ;;  %v963_v35 = vrot.slane %v949_v23, %v10978_v5  ;;  %vm15471_vm12 = vcmask 1047559  }
  0x2e   : > { %1407 = vrot.lane.b32.xlu1 %v1397_v47, %s10856_s18  ;;  %v2682_v47 = vrot.slane %v2671_v31, %v10978_v5  ;;  %v956_v31 = vrot.slane %v945_v11, %v10978_v5  ;;  %vm580_vm8 = vsmask.f32 1280  ;;  %vm11232_vm13 = vmand %vm15471_vm12, %vm825_vm7  ;;  %vm15502_vm3 = vcmask 1045509  }
  0x2f   : > { %v2572_v52 = vrot.slane %v2570_v46, 7  ;;  %v977_v46 = vshll.u32 %v963_v35, 16  ;;  %vm583_vm5 = vsmask.f32 5376  ;;  %vm15678_vm10 = vcmask 1031168   ;;  %vm11258_vm7 = vmor %vm11232_vm13, %vm11223_vm15 }
  0x30   : > { %v2698_v53 = vshrl.u32 %v2682_v47, 16  ;;  %vm15477_vm13 = vcmask 1039360   ;;  %vm15685_vm0 = vsmask.f32 7950 }
  0x31   : > { %1405 = vrot.lane.b32.xlu0 %v1390_v51, %s10856_s18  ;;  %v2817_v51 = vrot.slane %v2803_v44, %v10978_v5  ;;  %v621_v44 = vrot.slane %v606_v30, 7  ;;  %v9063_v59 = vrot.slane %v977_v46, 9 }
  0x32   : > { %1515 = vrot.lane.b32.xlu1 %v1511_v55, %s10857_s19  ;;  %v2704_v55 = vrot.slane %v2702_v50, 6  ;;  %v2700_v58 = vrot.slane %v2698_v53, 6  ;;  %v1649_v50 = vld [vmem:[%s10983_s30] sm:$0xaa] }
  0x33   : > { %v2831_v56 = vshrl.u32 %v2817_v51, 16  ;;  %v734_v51 = vrot.slane %v716_v34, %v10978_v5  ;;  %v1660_v11 = vrot.slane %v1649_v50, %v10978_v5 }
  0x35   : > { %1513 = vrot.lane.b32.xlu0 %v1510_v57, %s10857_s19  ;;  %v2937_v57 = vcombine.high %v2933_v48, %v2933_v48  ;;  %v15663_v48 = vmov 0 }
  0x36   : > { %1624 = vrot.lane.b32.xlu1 %v1613_v62, %s15487_s20  ;;  %v9106_v62 = vrot.slane %v2831_v56, 9  ;;  %v15664_v48 = vsel %vm11129_vm9, 4294967295, %v15663_v48 }
  0x37   : > { %v2951_v63 = vrot.slane %v2937_v57, %v10978_v5  ;;  %15665 = vst [vmem:[#allocation9_spill] sm:$0xff] %v15664_v48 }
  0x39   : > { %1622 = vrot.lane.b32.xlu0 %v1606_v0, %s15487_s20  ;;  %v3044_v0 = vld [vmem:[%s10983_s30] sm:$0x55] }
  0x3a   : > { %1753 = vrot.lane.b32.xlu1 %v1746_v6, %s10855_s17  ;;  %v2960_v6 = vrot.slane %v2951_v63, 7  ;;  %v3048_v9 = vcombine.low %v3044_v0, %v3044_v0 }
  0x3c   : > { %v3055_v21 = vrot.slane %v3048_v9, %v10978_v5  ;;  %v1432_v9 = vld [vmem:[%s10983_s30] sm:$0x55] }
  0x3d   : > { %1751 = vrot.lane.b32.xlu0 %v1742_v8, %s10855_s17  ;;  %v2959_v8 = vrot.slane %v2944_v4, 7  ;;  %v1777_v4 = vld [vmem:[%s10983_s30] sm:$0xaa]  ;;  %v1443_v23 = vrot.slane %v1432_v9, %v10978_v5  ;;  %v1436_v30 = vcombine.high %v1432_v9, %v1432_v9 }
  0x3e   : > { %1884 = vrot.lane.b32.xlu1 %v9083_v10, %s10856_s18  ;;  %v599_v10 = vcombine.high %v595_v1, %v595_v1  ;;  %v1653_v1 = vcombine.high %v1649_v50, %v1649_v50 }
  0x40   : > { %v613_v22 = vrot.slane %v599_v10, %v10978_v5  ;;  %v1540_v10 = vld [vmem:[%s10983_s30] sm:$0x55]  ;;  %v1667_v15 = vrot.slane %v1653_v1, %v10978_v5 }
  0x41   : > { %1882 = vrot.lane.b32.xlu0 %v9082_v13, %s10856_s18  ;;  %v1079_v13 = vld [vmem:[%s10983_s30] sm:$0xaa]  ;;  %v1544_v19 = vcombine.high %v1540_v10, %v1540_v10  ;;  %v1551_v24 = vrot.slane %v1540_v10, %v10978_v5  ;;  %v15674_v10 = vmov 0 }
  0x42   : > { %2018 = vrot.lane.b32.xlu1 %v2007_v16, %s10857_s19  ;;  %v3062_v16 = vrot.slane %v3044_v0, %v10978_v5  ;;  %v1090_v39 = vrot.slane %v1079_v13, %v10978_v5  ;;  %v15675_v10 = vsel %vm11223_vm15, 4294967295, %v15674_v10 }
  0x45   : > { %2016 = vrot.lane.b32.xlu0 %v2002_v18, %s10857_s19  ;;  %v479_v18 = vld [vmem:[#allocation2] sm:$0x11] }
  0x46   : > { %2132 = vrot.lane.b32.xlu1 %v2121_v20, %s15497_s21  ;;  %v480_v20 = vsel %vm11097_vm6, %v10839_v12, %v479_v18 }
  0x47   : > { %481 = vst [vmem:[#allocation2] sm:$0x11] %v480_v20  ;;  %v1676_v20 = vshll.u32 %v1660_v11, 16 }
  0x49   : > { %2130 = vrot.lane.b32.xlu0 %v2114_v25, %s15497_s21  ;;  %v1204_v25 = vld [vmem:[%s10983_s30] sm:$0xaa]  ;;  %v1678_v35 = vrot.slane %v1676_v20, 7 }
  0x4a   : > { %2241 = vrot.lane.b32.xlu1 %v2237_v27, %s10860_s22  ;;  %v1083_v27 = vcombine.high %v1079_v13, %v1079_v13  ;;  %v1208_v36 = vcombine.high %v1204_v25, %v1204_v25  ;;  %v1215_v42 = vrot.slane %v1204_v25, %v10978_v5  ;;  %v1680_v25 = vshll.u32 %v1667_v15, 16 }
  0x4c   : > { %v1097_v40 = vrot.slane %v1083_v27, %v10978_v5  ;;  %v1222_v47 = vrot.slane %v1208_v36, %v10978_v5  ;;  %v1231_v56 = vshll.u32 %v1215_v42, 16  ;;  %v1788_v27 = vrot.slane %v1777_v4, %v10978_v5  ;;  %v11174_v42 = vld.sshfl [vmem:[%s10983_s30] sm:$0xaa pattern:$0x76325410] }
  0x4d   : > { %2239 = vrot.lane.b32.xlu0 %v2236_v32, %s10860_s22  ;;  %v936_v32 = vld [vmem:[#allocation2 + $0x14] sm:$0x11]  ;;  %v1682_v36 = vrot.slane %v1680_v25, 7 }
  0x4e   : > { %2349 = vrot.lane.b32.xlu1 %v2339_v33, %s10861_s23  ;;  %v622_v33 = vrot.slane %v613_v22, 7  ;;  %v937_v37 = vsel %vm11097_vm6, %v9058_v28, %v936_v32  ;;  %v522_v43 = vld [vmem:[#allocation2] sm:$0x11]  ;;  %v1109_v53 = vshll.u32 %v1097_v40, 16  ;;  %v1235_v61 = vshll.u32 %v1222_v47, 16 }
  0x4f   : > { %938 = vst [vmem:[#allocation2 + $0x14] sm:$0x11] %v937_v37  ;;  %v1804_v37 = vshll.u32 %v1788_v27, 16  ;;  %v1450_v40 = vrot.slane %v1436_v30, %v10978_v5  ;;  %v9738_v46 = vpack.i.bf16 %v1682_v36, %v1678_v35  ;;  %v828_v30 = vld [vmem:[#allocation2] sm:$0x88] }
  0x50   : > { %v1237_v7 = vrot.slane %v1235_v61, 7  ;;  %v11274_v35 = vld [vmem:[%s10983_s30 + $0x8] ss:$0 sps:$4 sm:$0x55]  }
  0x51   : > { %2347 = vrot.lane.b32.xlu0 %v2332_v38, %s10861_s23  ;;  %v10841_v38 = vld.sshfl [vmem:[%s10983_s30] sm:$0x55 pattern:$0x76325410]  ;;  %v1806_v47 = vrot.slane %v1804_v37, 6 }
  0x52   : > { %2457 = vrot.lane.b32.xlu1 %v2453_v41, %s10862_s24  ;;  %v972_v41 = vshll.u32 %v956_v31, 16  ;;  %v523_v57 = vsel %vm11140_vm11, %v10841_v38, %v522_v43  ;;  %v1558_v31 = vrot.slane %v1544_v19, %v10978_v5  ;;  %v2735_v19 = vld [vmem:[%s10983_s30] sm:$0xaa] }
  0x53   : > { %524 = vst [vmem:[#allocation2] sm:$0x11] %v523_v57  ;;  %v1070_v57 = vld [vmem:[#allocation2 + $0x14] sm:$0x22] }
  0x55   : > { %2455 = vrot.lane.b32.xlu0 %v2452_v45, %s10862_s24  ;;  %v720_v45 = vcombine.low %v716_v34, %v716_v34  ;;  %v1566_v34 = vrot.slane %v1551_v24, 7 }
  0x56   : > { %2583 = vrot.lane.b32.xlu1 %v2576_v49, %s15497_s21  ;;  %v1324_v49 = vld [vmem:[%s10983_s30] sm:$0x55] }
  0x57   : > { %v1335_v0 = vrot.slane %v1324_v49, %v10978_v5 }
  0x59   : > { %2581 = vrot.lane.b32.xlu0 %v2572_v52, %s15497_s21  ;;  %v1106_v52 = vshll.u32 %v1090_v39, 16  ;;  %v1350_v13 = vrot.slane %v1335_v0, 5  ;;  %v864_v0 = vshll.u32 %v11174_v42, 16 }
  0x5a   : > { %2711 = vrot.lane.b32.xlu1 %v2704_v55, %s10860_s22  ;;  %v9062_v55 = vrot.slane %v972_v41, 9  ;;  %v1567_v41 = vrot.slane %v1558_v31, 7 }
  0x5b   : > { %v9728_v63 = vpack.i.bf16 %v1109_v53, %v1106_v52  ;;  %v2266_v52 = vld [vmem:[%s10983_s30] sm:$0x55] }
  0x5c   : > { %v2270_v15 = vcombine.high %v2266_v52, %v2266_v52 }
  0x5d   : > { %2709 = vrot.lane.b32.xlu0 %v2700_v58, %s10860_s22  ;;  %v727_v58 = vrot.slane %v720_v45, %v10978_v5  ;;  %v11177_v45 = vld [vmem:[%s10983_s30] sm:$0x55] }
  0x5e   : > { %2842 = vrot.lane.b32.xlu1 %v9106_v62, %s10861_s23  ;;  %v1908_v62 = vld [vmem:[%s10983_s30] sm:$0xaa]  ;;  %v2175_v24 = vrot.slane %v11177_v45, %v10978_v5  ;;  %v2284_v25 = vrot.slane %v2270_v15, %v10978_v5 }
  0x5f   : > { %v1912_v12 = vcombine.high %v1908_v62, %v1908_v62 }
  0x61   : > { %2840 = vrot.lane.b32.xlu0 %v9105_v2, %s10861_s23  ;;  %v1233_v2 = vrot.slane %v1231_v56, 7  ;;  %v1926_v22 = vrot.slane %v1912_v12, %v10978_v5  ;;  %v2161_v56 = vcombine.low %v11177_v45, %v11177_v45 }
  0x62   : > { %2964 = vrot.lane.b32.xlu1 %v2960_v6, %s10863_s27  ;;  %v9723_v6 = vpack.i.bf16 %v9063_v59, %v9062_v55  ;;  %v15668_v55 = vmov 0 }
  0x63   : > { %v9733_v17 = vpack.i.bf16 %v1237_v7, %v1233_v2  ;;  %v15669_v55 = vsel %vm11187_vm4, 4294967295, %v15668_v55  ;;  %v2168_v2 = vrot.slane %v2161_v56, %v10978_v5  ;;  %v11218_v7 = vld.sshfl [vmem:[%s10983_s30 + $0x8] sm:$0x22 pattern:$0x76325410]  ;;  %vm15686_vm4 = vcmask 1043459  }
  0x64   : > { %vm11296_vm15 = vmand %vm15686_vm4, %vm15685_vm0  ;;  %vm15691_vm0 = vsmask.f32 7966  ;;  %vm15692_vm4 = vcmask 1047559  }
  0x65   : > { %2962 = vrot.lane.b32.xlu0 %v2959_v8, %s10863_s27  ;;  %v1328_v8 = vcombine.high %v1324_v49, %v1324_v49 }
  0x66   : > { %3073 = vrot.lane.b32.xlu1 %v3062_v16, %s10864_s28  ;;  %v1781_v16 = vcombine.high %v1777_v4, %v1777_v4 }
  0x67   : > { %v1342_v18 = vrot.slane %v1328_v8, %v10978_v5  ;;  %v707_v8 = vld [vmem:[#allocation2] sm:$0x44] }
  0x68   : > { %v1795_v28 = vrot.slane %v1781_v16, %v10978_v5 }
  0x69   : > { %3071 = vrot.lane.b32.xlu0 %v3055_v21, %s10864_s28  ;;  %v1919_v21 = vrot.slane %v1908_v62, %v10978_v5 }
  0x6a   : > { %3182 = vrot.lane.b32.xlu1 %v3178_v26, %s10865_s29  ;;  %v2042_v26 = vld [vmem:[%s10983_s30] sm:$0xaa]  ;;  %v1808_v38 = vshll.u32 %v1795_v28, 16 }
  0x6b   : > { %v1935_v32 = vshll.u32 %v1919_v21, 16  ;;  %v2046_v39 = vcombine.high %v2042_v26, %v2042_v26  ;;  %v2053_v50 = vrot.slane %v2042_v26, %v10978_v5  ;;  %v11250_v26 = vshrl.u32 %v11218_v7, 16 }
  0x6c   : > { %v1810_v49 = vrot.slane %v1808_v38, 6  ;;  %v2739_v38 = vcombine.high %v2735_v19, %v2735_v19 }
  0x6d   : > { %3180 = vrot.lane.b32.xlu0 %v3177_v29, %s10865_s29  ;;  %v1351_v29 = vrot.slane %v1342_v18, 5  ;;  %v9086_v43 = vrot.slane %v1935_v32, 9  ;;  %v2482_v18 = vld [vmem:[%s10983_s30] sm:$0xaa] }
  0x6e   : > { %626 = vrot.lane.b32.xlu1 %v622_v33, %s10853_s15  ;;  %v1940_v33 = vshll.u32 %v1926_v22, 16  ;;  %v9743_v62 = vpack.i.bf16 %v1810_v49, %v1806_v47  ;;  %v2486_v36 = vcombine.high %v2482_v18, %v2482_v18  ;;  %v2493_v37 = vrot.slane %v2482_v18, %v10978_v5 }
  0x6f   : > { %v1177_v47 = vrot.slane %v11250_v26, 7  ;;  %v15687_v49 = vmov 0 }
  0x70   : > { %v15688_v49 = vsel %vm11296_vm15, 4294967295, %v15687_v49 }
  0x71   : > { %624 = vrot.lane.b32.xlu0 %v621_v44, %s10853_s15  ;;  %v9087_v44 = vrot.slane %v1940_v33, 9 }
  0x72   : > { %745 = vrot.lane.b32.xlu1 %v734_v51, %s15656_s14  ;;  %v2060_v51 = vrot.slane %v2046_v39, %v10978_v5  ;;  %v2746_v39 = vrot.slane %v2735_v19, %v10978_v5  ;;  %v681_v19 = vrot.slane %v11274_v35, %v10978_v5 }
  0x73   : > { %v9748_v53 = vpack.i.bf16 %v9087_v44, %v9086_v43 }
  0x74   : > { %v2072_v59 = vshll.u32 %v2060_v51, 16 }
  0x75   : > { %743 = vrot.lane.b32.xlu0 %v727_v58, %s15656_s14  ;;  %v2069_v58 = vshll.u32 %v2053_v50, 16 }
  0x76   : > { %9729 = vrot.lane.b32.xlu1 %v9728_v63, %s15656_s14  ;;  %v2277_v63 = vrot.slane %v2266_v52, %v10978_v5 }
  0x77   : > { %v9753_v11 = vpack.i.bf16 %v2072_v59, %v2069_v58  ;;  %v11314_v59 = vrot.slane %v2486_v36, %v10978_v5 }
  0x78   : > { %v2292_v12 = vrot.slane %v2277_v63, 5  ;;  %v2753_v63 = vrot.slane %v2739_v38, %v10978_v5 }
  0x79   : > { %9724 = vrot.lane.b32.xlu0 %v9723_v6, %s10853_s15 }
  0x7a   : > { %1353 = vrot.lane.b32.xlu1 %v1350_v13, %s10855_s17  ;;  %v11228_v13 = vld.sshfl [vmem:[%s10983_s30 + $0x8] sm:$0x11 pattern:$0x76325410] }
  0x7b   : > { %v11264_v32 = vrot.slane %v11228_v13, 7  ;;  %v11287_v43 = vrot.slane %v11228_v13, 5 }
  0x7d   : > { %9734 = vrot.lane.b32.xlu0 %v9733_v17, %s15593_s16 }
  0x7e   : > { %1458 = vrot.lane.b32.xlu1 %v1443_v23, %s10856_s18 }
  0x81   : > { %1355 = vrot.lane.b32.xlu0 %v1351_v29, %s10855_s17 }
  0x82   : > { %1569 = vrot.lane.b32.xlu1 %v1566_v34, %s10857_s19 }
  0x85   : > { %1460 = vrot.lane.b32.xlu0 %v1450_v40, %s10856_s18  ;;  %v2607_v40 = vld [vmem:[%s10983_s30] sm:$0xaa] }
  0x86   : > { %9739 = vrot.lane.b32.xlu1 %v9738_v46, %s10855_s17  ;;  %v2293_v46 = vrot.slane %v2284_v25, 5  ;;  %v2618_v15 = vrot.slane %v2607_v40, %v10978_v5 }
  0x88   : > { %v11199_v61 = vpop.permute.xlu1 %684 }
  0x89   : > { %1571 = vrot.lane.b32.xlu0 %v1567_v41, %s10857_s19  ;;  %v15521_v4 = vrot.slane %v11199_v61, 4  ;;  %v11279_v41 = vrot.slane %v864_v0, 6  ;;  %v11319_v0 = vshll.u32 %v2746_v39, 16  ;;  %v2766_v39 = vshll.u32 %v2753_v63, 16  ;;  %v1315_v63 = vld [vmem:[#allocation2 + $0x14] sm:$0x88] }
  0x8a   : > { %9749 = vrot.lane.b32.xlu1 %v9748_v53, %s10857_s19  ;;  %v2611_v53 = vcombine.high %v2607_v40, %v2607_v40  ;;  %v2634_v40 = vshll.u32 %v2618_v15, 16 }
  0x8b   : > { %v11205_v1 = vpop.permute.xlu0 %560  ;;  %v2764_v35 = vrot.slane %v11319_v0, 6 }
  0x8c   : > { %v683_v9 = vpop.permute.xlu1 %682  ;;  %v2625_v25 = vrot.slane %v2611_v53, %v10978_v5 }
  0x8d   : > { %9744 = vrot.lane.b32.xlu0 %v9743_v62, %s10856_s18  ;;  %v688_v16 = vrot.slane %v683_v9, 4  ;;  %v11316_v62 = vshll.u32 %v2493_v37, 16 }
  0x8e   : > { %2184 = vrot.lane.b32.xlu1 %v2168_v2, %s15497_s21  ;;  %v566_v2 = vrot.slane %v11205_v1, 4 }
  0x8f   : > { %v804_v20 = vpop.permute.xlu0 %803  ;;  %v691_v21 = vsel %vm15505_vm1, %v688_v16, %v15521_v4  ;;  %v2866_v16 = vld [vmem:[%s10983_s30] sm:$0xaa] }
  0x90   : > { %v693_v22 = vsel %vm15678_vm10, %v683_v9, %v691_v21  ;;  %v11243_v23 = vpop.permute.xlu1 %805  ;;  %v809_v28 = vrot.slane %v804_v20, 4  ;;  %vm15681_vm10 = vcmask 1041409   ;;  %v2870_v36 = vcombine.high %v2866_v16, %v2866_v16 }
  0x91   : > { %9754 = vrot.lane.b32.xlu0 %v9753_v11, %s15487_s20  ;;  %v708_v27 = vsel %vm11213_vm14, %v693_v22, %v707_v8  ;;  %v15523_v31 = vrot.slane %v11243_v23, 4  ;;  %vm11269_vm12 = vmand %vm15681_vm10, %vm580_vm8  ;;  %vm15684_vm10 = vcmask 1022976   ;;  %v586_v11 = vld [vmem:[#allocation2] sm:$0x22]  ;;  %v2877_v53 = vrot.slane %v2866_v16, %v10978_v5 }
  0x92   : > { %709 = vst [vmem:[#allocation2] sm:$0x44] %v708_v27  ;;  %2295 = vrot.lane.b32.xlu1 %v2292_v12, %s10860_s22  ;;  %vm584_vm8 = vmand %vm15502_vm3, %vm583_vm5  ;;  %v2884_v15 = vrot.slane %v2870_v36, %v10978_v5 }
  0x93   : > { %v1054_v33 = vpop.permute.xlu0 %1053  ;;  %v812_v42 = vsel %vm15505_vm1, %v809_v28, %v15523_v31  ;;  %vm11305_vm5 = vmor %vm584_vm8, %vm11269_vm12  ;;  %v1195_v28 = vld [vmem:[#allocation2 + $0x14] sm:$0x44] }
  0x94   : > { %v814_v44 = vsel %vm15684_vm10, %v804_v20, %v812_v42  ;;  %v11290_v45 = vpop.permute.xlu1 %1055  ;;  %v1059_v51 = vrot.slane %v1054_v33, 4  ;;  %vm11324_vm8 = vmand %vm15692_vm4, %vm15691_vm0  ;;  %vm15482_vm10 = vcmask 859136   ;;  %vm15480_vm4 = vcmask 850944  }
  0x95   : > { %2186 = vrot.lane.b32.xlu0 %v2175_v24, %s15497_s21  ;;  %v829_v50 = vsel %vm11258_vm7, %v814_v44, %v828_v30  ;;  %v15518_v52 = vrot.slane %v11290_v45, 4  ;;  %v2374_v24 = vld [vmem:[%s10983_s30] sm:$0x55]  ;;  %vm11358_vm0 = vmor %vm11324_vm8, %vm11296_vm15  ;;  %vm15697_vm8 = vcmask 1031168  }
  0x96   : > { %830 = vst [vmem:[#allocation2] sm:$0x88] %v829_v50  ;;  %564 = vrot.lane.b32.xlu1 %v11264_v32, %s10853_s15  ;;  %v2378_v16 = vcombine.high %v2374_v24, %v2374_v24 }
  0x97   : > { %v11311_v58 = vpop.permute.xlu0 %562  ;;  %v1062_v9 = vsel %vm15505_vm1, %v1059_v51, %v15518_v52  ;;  %v2638_v51 = vshll.u32 %v2625_v25, 16  ;;  %v2893_v25 = vshll.u32 %v2877_v53, 16 }
  0x98   : > { %v15524_v12 = vrot.slane %v11311_v58, 4  ;;  %v1063_v17 = vsel %vm15477_vm13, %v1054_v33, %v1062_v9  ;;  %v11335_v18 = vpop.permute.xlu1 %1180  ;;  %v2512_v33 = vshll.u32 %v11314_v59, 16 }
  0x99   : > { %2297 = vrot.lane.b32.xlu0 %v2293_v46, %s10860_s22  ;;  %v1071_v20 = vsel %vm11305_vm5, %v1063_v17, %v1070_v57  ;;  %v15520_v22 = vrot.slane %v11335_v18, 4  ;;  %v2989_v17 = vld [vmem:[%s10983_s30] sm:$0x55] }
  0x9a   : > { %v570_v21 = vsel %vm15505_vm1, %v566_v2, %v15524_v12  ;;  %1072 = vst [vmem:[#allocation2 + $0x14] sm:$0x22] %v1071_v20  ;;  %807 = vrot.lane.b32.xlu1 %v11287_v43, %s15593_s16  ;;  %v2385_v2 = vrot.slane %v2374_v24, %v10978_v5  ;;  %v9758_v36 = vpack.i.bf16 %v2512_v33, %v11316_v62  ;;  %v10531_v12 = vld [vmem:[%s10983_s30 + $0x8] ss:$0 sps:$4 sm:$0x55]  }
  0x9b   : > { %v572_v27 = vsel %vm15477_vm13, %v11205_v1, %v570_v21  ;;  %v1179_v30 = vpop.permute.xlu0 %1178  ;;  %v2636_v21 = vrot.slane %v2634_v40, 7  ;;  %v2392_v40 = vrot.slane %v2378_v16, %v10978_v5  ;;  %v3000_v33 = vrot.slane %v2989_v17, %v10978_v5 }
  0x9c   : > { %v587_v1 = vsel %vm11305_vm5, %v572_v27, %v586_v11  ;;  %v1184_v38 = vrot.slane %v1179_v30, 4  ;;  %v11364_v42 = vpop.permute.xlu1 %1299  ;;  %v2768_v11 = vrot.slane %v2766_v39, 6  ;;  %v2898_v39 = vshll.u32 %v2884_v15, 16 }
  0x9d   : > { %588 = vst [vmem:[#allocation2] sm:$0x22] %v587_v1  ;;  %686 = vrot.lane.b32.xlu0 %v681_v19, %s15656_s14  ;;  %v883_v44 = vld [vmem:[#allocation2] sm:$0x88]  ;;  %v15494_v50 = vrot.slane %v11364_v42, 4  ;;  %vm15478_vm13 = vcmask 834560  }
  0x9e   : > { %v1187_v46 = vsel %vm15505_vm1, %v1184_v38, %v15520_v22  ;;  %v884_v57 = vsel %vm11358_vm0, %v11279_v41, %v883_v44  ;;  %1182 = vrot.lane.b32.xlu1 %v1177_v47, %s15656_s14  ;;  %v2640_v38 = vrot.slane %v2638_v51, 7  ;;  %v11408_v51 = vld [vmem:[%s10983_s30] sm:$0x55] }
  0x9f   : > { %v1188_v59 = vsel %vm15697_vm8, %v1179_v30, %v1187_v46  ;;  %v1298_v0 = vpop.permute.xlu0 %1297  ;;  %885 = vst [vmem:[#allocation2] sm:$0x88] %v884_v57  ;;  %vm15479_vm8 = vcmask 842752   ;;  %v1531_v57 = vld [vmem:[#allocation2 + $0x28] sm:$0x22] }
  0xa0   : > { %v1196_v8 = vsel %vm11213_vm14, %v1188_v59, %v1195_v28  ;;  %v1303_v9 = vrot.slane %v1298_v0, 4  ;;  %v11383_v41 = vpop.permute.xlu1 %1407  ;;  %v1423_v28 = vld [vmem:[#allocation2 + $0x28] sm:$0x11]  ;;  %v9763_v16 = vpack.i.bf16 %v2640_v38, %v2636_v21 }
  0xa1   : > { %1197 = vst [vmem:[#allocation2 + $0x14] sm:$0x44] %v1196_v8  ;;  %1057 = vrot.lane.b32.xlu0 %v11250_v26, %s10853_s15  ;;  %v15493_v20 = vrot.slane %v11383_v41, 4  ;;  %v9109_v8 = vrot.slane %v2893_v25, 9 }
  0xa2   : > { %v1306_v19 = vsel %vm15505_vm1, %v1303_v9, %v15494_v50  ;;  %2400 = vrot.lane.b32.xlu1 %v2385_v2, %s10861_s23  ;;  %v9110_v9 = vrot.slane %v2898_v39, 9 }
  0xa3   : > { %v1308_v27 = vsel %vm15482_vm10, %v1298_v0, %v1306_v19  ;;  %v1406_v30 = vpop.permute.xlu0 %1405  ;;  %v2993_v19 = vcombine.high %v2989_v17, %v2989_v17  ;;  %v1640_v17 = vld [vmem:[#allocation2 + $0x28] sm:$0x44] }
  0xa4   : > { %v1316_v24 = vsel %vm11258_vm7, %v1308_v27, %v1315_v63  ;;  %v1411_v1 = vrot.slane %v1406_v30, 4  ;;  %v11397_v44 = vpop.permute.xlu1 %1515  ;;  %v9768_v63 = vpack.i.bf16 %v2768_v11, %v2764_v35  ;;  %v3207_v27 = vld [vmem:[%s10983_s30] sm:$0x55]  ;;  %v3015_v11 = vrot.slane %v3000_v33, 7 }
  0xa5   : > { %1317 = vst [vmem:[#allocation2 + $0x14] sm:$0x88] %v1316_v24  ;;  %1301 = vrot.lane.b32.xlu0 %v11287_v43, %s10855_s17  ;;  %v15490_v62 = vrot.slane %v11397_v44, 4  ;;  %v9773_v38 = vpack.i.bf16 %v9110_v9, %v9109_v8  ;;  %v3007_v39 = vrot.slane %v2993_v19, %v10978_v5  ;;  %v3218_v33 = vrot.slane %v3207_v27, %v10978_v5 }
  0xa6   : > { %v1414_v46 = vsel %vm15505_vm1, %v1411_v1, %v15493_v20  ;;  %9759 = vrot.lane.b32.xlu1 %v9758_v36, %s15497_s21  ;;  %v3102_v36 = vcombine.low %v11408_v51, %v11408_v51 }
  0xa7   : > { %v1416_v53 = vsel %vm15480_vm4, %v1406_v30, %v1414_v46  ;;  %v1514_v59 = vpop.permute.xlu0 %1513  ;;  %v3016_v9 = vrot.slane %v3007_v39, 7 }
  0xa8   : > { %v1424_v0 = vsel %vm11097_vm6, %v1416_v53, %v1423_v28  ;;  %v1519_v2 = vrot.slane %v1514_v59, 4  ;;  %v11414_v15 = vpop.permute.xlu1 %1624 }
  0xa9   : > { %1425 = vst [vmem:[#allocation2 + $0x28] sm:$0x11] %v1424_v0  ;;  %2402 = vrot.lane.b32.xlu0 %v2392_v40, %s10861_s23  ;;  %v15492_v35 = vrot.slane %v11414_v15, 4 }
  0xaa   : > { %v1522_v30 = vsel %vm15505_vm1, %v1519_v2, %v15490_v62  ;;  %9769 = vrot.lane.b32.xlu1 %v9768_v63, %s10861_s23  ;;  %v1768_v2 = vld [vmem:[#allocation2 + $0x28] sm:$0x88]  ;;  %v2726_v62 = vld [vmem:[#allocation2 + $0x50] sm:$0x88] }
  0xab   : > { %v1524_v28 = vsel %vm15479_vm8, %v1514_v59, %v1522_v30  ;;  %v1623_v25 = vpop.permute.xlu0 %1622  ;;  %v3109_v59 = vrot.slane %v3102_v36, %v10978_v5 }
  0xac   : > { %v1532_v21 = vsel %vm11305_vm5, %v1524_v28, %v1531_v57  ;;  %v1628_v24 = vrot.slane %v1623_v25, 4  ;;  %v11428_v1 = vpop.permute.xlu1 %1753 }
  0xad   : > { %1533 = vst [vmem:[#allocation2 + $0x28] sm:$0x22] %v1532_v21  ;;  %9764 = vrot.lane.b32.xlu0 %v9763_v16, %s10860_s22  ;;  %v15485_v46 = vrot.slane %v11428_v1, 4  ;;  %v3211_v16 = vcombine.high %v3207_v27, %v3207_v27 }
  0xae   : > { %v1631_v40 = vsel %vm15505_vm1, %v1628_v24, %v15492_v35  ;;  %3018 = vrot.lane.b32.xlu1 %v3015_v11, %s10863_s27  ;;  %v3233_v11 = vrot.slane %v3218_v33, 5  ;;  %v3116_v24 = vrot.slane %v11408_v51, %v10978_v5  ;;  %v2033_v51 = vld [vmem:[#allocation2 + $0x3c] sm:$0x22] }
  0xaf   : > { %v1633_v53 = vsel %vm15478_vm13, %v1623_v25, %v1631_v40  ;;  %v1752_v57 = vpop.permute.xlu0 %1751  ;;  %vm15501_vm13 = vcmask 670720  }
  0xb0   : > { %v1641_v63 = vsel %vm11213_vm14, %v1633_v53, %v1640_v17  ;;  %v1757_v0 = vrot.slane %v1752_v57, 4  ;;  %v11442_v8 = vpop.permute.xlu1 %1884  ;;  %v1899_v17 = vld [vmem:[#allocation2 + $0x3c] sm:$0x11] }
  0xb1   : > { %1642 = vst [vmem:[#allocation2 + $0x28] sm:$0x44] %v1641_v63  ;;  %9774 = vrot.lane.b32.xlu0 %v9773_v38, %s10862_s24  ;;  %v15486_v30 = vrot.slane %v11442_v8, 4  ;;  %v3225_v38 = vrot.slane %v3211_v16, %v10978_v5 }
  0xb2   : > { %v1760_v19 = vsel %vm15505_vm1, %v1757_v0, %v15485_v46  ;;  %3125 = vrot.lane.b32.xlu1 %v3109_v59, %s10864_s28  ;;  %v2473_v46 = vld [vmem:[#allocation2 + $0x50] sm:$0x22] }
  0xb3   : > { %v1761_v28 = vsel %vm15482_vm10, %v1752_v57, %v1760_v19  ;;  %v1883_v25 = vpop.permute.xlu0 %1882  ;;  %v10525_v57 = vld [vmem:[%s10983_s30 + $0x8] ss:$0 sps:$4 sm:$0x55]   ;;  %vm15499_vm10 = vcmask 646144  }
  0xb4   : > { %v1769_v36 = vsel %vm11258_vm7, %v1761_v28, %v1768_v2  ;;  %v1888_v21 = vrot.slane %v1883_v25, 4  ;;  %v11453_v27 = vpop.permute.xlu1 %2018  ;;  %v3234_v2 = vrot.slane %v3225_v38, 5  ;;  %v1621_v28 = vrot.slane %v10525_v57, %v10978_v5  ;;  %v10526_v57 = vld [vmem:[%s10983_s30 + $0x8] ss:$0 sps:$4 sm:$0x55]  }
  0xb5   : > { %1770 = vst [vmem:[#allocation2 + $0x28] sm:$0x88] %v1769_v36  ;;  %3020 = vrot.lane.b32.xlu0 %v3016_v9, %s10863_s27  ;;  %v15483_v40 = vrot.slane %v11453_v27, 4 }
  0xb6   : > { %v1891_v39 = vsel %vm15505_vm1, %v1888_v21, %v15486_v30  ;;  %3236 = vrot.lane.b32.xlu1 %v3233_v11, %s10865_s29  ;;  %v2148_v21 = vld [vmem:[#allocation2 + $0x3c] sm:$0x44] }
  0xb7   : > { %v1892_v33 = vsel %vm15480_vm4, %v1883_v25, %v1891_v39  ;;  %v2017_v53 = vpop.permute.xlu0 %2016  ;;  %vm15503_vm4 = vcmask 654336  }
  0xb8   : > { %v1900_v59 = vsel %vm11097_vm6, %v1892_v33, %v1899_v17  ;;  %v2022_v63 = vrot.slane %v2017_v53, 4  ;;  %v11468_v0 = vpop.permute.xlu1 %2132 }
  0xb9   : > { %1901 = vst [vmem:[#allocation2 + $0x3c] sm:$0x11] %v1900_v59  ;;  %3127 = vrot.lane.b32.xlu0 %v3116_v24, %s10864_s28  ;;  %v15484_v16 = vrot.slane %v11468_v0, 4 }
  0xba   : > { %v2025_v9 = vsel %vm15505_vm1, %v2022_v63, %v15483_v40  ;;  %1409 = vrot.lane.b32.xlu1 %v11228_v13, %s10856_s18  ;;  %v10832_v40 = vld [vmem:[%s10983_s30] sm:$0xaa] }
  0xbb   : > { %v2026_v19 = vsel %vm15479_vm8, %v2017_v53, %v2025_v9  ;;  %v2131_v11 = vpop.permute.xlu0 %2130  ;;  %v9084_v53 = vrot.slane %v11250_v26, 9  ;;  %vm15500_vm8 = vcmask 662528   ;;  %v1750_v9 = vrot.slane %v11250_v26, 6 }
  0xbc   : > { %v2034_v25 = vsel %vm11305_vm5, %v2026_v19, %v2033_v51  ;;  %v2136_v36 = vrot.slane %v2131_v11, 4  ;;  %v11481_v17 = vpop.permute.xlu1 %2241  ;;  %v2257_v51 = vld [vmem:[#allocation2 + $0x3c] sm:$0x88]  ;;  %v10866_v19 = vmov 0  }
  0xbd   : > { %2035 = vst [vmem:[#allocation2 + $0x3c] sm:$0x22] %v2034_v25  ;;  %3238 = vrot.lane.b32.xlu0 %v3234_v2, %s10865_s29  ;;  %v15481_v38 = vrot.slane %v11481_v17, 4  ;;  %440 = vst [vmem:[#allocation2 + $0x78] sm:$0xff] %v10866_v19  ;;  %3520 = vmatprep.mubr.bf16.mxu1 %v10866_v19 }
  0xbe   : > { %v2139_v24 = vsel %vm15505_vm1, %v2136_v36, %v15484_v16  ;;  %1626 = vrot.lane.b32.xlu1 %v1621_v28, %s15487_s20  ;;  %441 = vst [vmem:[#allocation2 + $0x80] sm:$0xff] %v10866_v19  ;;  %442 = vst [vmem:[#allocation2 + $0x88] sm:$0xf] %v10866_v19  ;;  %9778 = vset.pattern.permute.xlu0 %v10866_v19  ;;  %v896_v16 = vcombine.high %v10832_v40, %v10832_v40  ;;  %s15496_s20 = smov 56  }
  0xbf   : > { %v2141_v39 = vsel %vm15501_vm13, %v2131_v11, %v2139_v24  ;;  %v2240_v33 = vpop.permute.xlu0 %2239  ;;  %9779 = vset.pattern.permute.xlu1 %v10866_v19 }
  0xc0   : > { %v2149_v59 = vsel %vm11213_vm14, %v2141_v39, %v2148_v21  ;;  %v2245_v63 = vrot.slane %v2240_v33, 4  ;;  %v11494_v2 = vpop.permute.xlu1 %2349  ;;  %v2129_v21 = vrot.slane %v10526_v57, %v10978_v5 }
  0xc1   : > { %2150 = vst [vmem:[#allocation2 + $0x3c] sm:$0x44] %v2149_v59  ;;  %1517 = vrot.lane.b32.xlu0 %v11264_v32, %s10857_s19  ;;  %v15488_v28 = vrot.slane %v11494_v2, 4  ;;  %v3262_v59 = vld [vmem:[%s10983_s30] sm:$0x55] }
  0xc2   : > { %v2248_v11 = vsel %vm15505_vm1, %v2245_v63, %v15481_v38  ;;  %1886 = vrot.lane.b32.xlu1 %v9084_v53, %s10856_s18  ;;  %v2365_v63 = vld [vmem:[#allocation2 + $0x50] sm:$0x11] }
  0xc3   : > { %v2250_v25 = vsel %vm15500_vm8, %v2240_v33, %v2248_v11  ;;  %v2348_v36 = vpop.permute.xlu0 %2347  ;;  %v3273_v11 = vrot.slane %v3262_v59, %v10978_v5 }
  0xc4   : > { %v2258_v24 = vsel %vm11258_vm7, %v2250_v25, %v2257_v51  ;;  %v2353_v39 = vrot.slane %v2348_v36, 4  ;;  %v11511_v38 = vpop.permute.xlu1 %2457 }
  0xc5   : > { %2259 = vst [vmem:[#allocation2 + $0x3c] sm:$0x88] %v2258_v24  ;;  %1755 = vrot.lane.b32.xlu0 %v1750_v9, %s10855_s17  ;;  %v15489_v57 = vrot.slane %v11511_v38, 4 }
  0xc6   : > { %v2356_v33 = vsel %vm15505_vm1, %v2353_v39, %v15488_v28  ;;  %2134 = vrot.lane.b32.xlu1 %v2129_v21, %s15497_s21 }
  0xc7   : > { %v2358_v51 = vsel %vm15503_vm4, %v2348_v36, %v2356_v33  ;;  %v2456_v19 = vpop.permute.xlu0 %2455  ;;  %v3266_v36 = vcombine.high %v3262_v59, %v3262_v59  ;;  %v910_v59 = vrot.slane %v896_v16, %v10978_v5 }
  0xc8   : > { %v2366_v25 = vsel %vm11097_vm6, %v2358_v51, %v2365_v63  ;;  %v2461_v24 = vrot.slane %v2456_v19, 4  ;;  %v11526_v30 = vpop.permute.xlu1 %2583 }
  0xc9   : > { %2367 = vst [vmem:[#allocation2 + $0x50] sm:$0x11] %v2366_v25  ;;  %2020 = vrot.lane.b32.xlu0 %v11250_v26, %s10857_s19  ;;  %v15491_v39 = vrot.slane %v11526_v30, 4  ;;  %v2598_v25 = vld [vmem:[#allocation2 + $0x50] sm:$0x44] }
  0xca   : > { %v2464_v21 = vsel %vm15505_vm1, %v2461_v24, %v15489_v57  ;;  %3288 = vrot.lane.b32.xlu1 %v3273_v11, %s15496_s20  ;;  %v11553_v57 = vld.sshfl [vmem:[%s10983_s30 + $0x8] sm:$0x2 pattern:$0x76325410]  ;;  %v3089_v26 = vld [vmem:[#allocation2 + $0x64] sm:$0x44] }
  0xcb   : > { %v2466_v63 = vsel %vm15499_vm10, %v2456_v19, %v2464_v21  ;;  %v2582_v40 = vpop.permute.xlu0 %2581  ;;  %v3280_v19 = vrot.slane %v3266_v36, %v10978_v5  ;;  %v929_v35 = vshrl.u32 %v11553_v57, 16  ;;  %vm641_vm10 = vsmask.f32 7942 }
  0xcc   : > { %v2474_v33 = vsel %vm11305_vm5, %v2466_v63, %v2473_v46  ;;  %v2587_v51 = vrot.slane %v2582_v40, 4  ;;  %v11539_v28 = vpop.permute.xlu1 %2711  ;;  %v924_v46 = vshrl.u32 %v910_v59, 16  ;;  %v10833_v63 = vld [vmem:[%s10983_s30] sm:$0x55] }
  0xcd   : > { %2475 = vst [vmem:[#allocation2 + $0x50] sm:$0x22] %v2474_v33  ;;  %2243 = vrot.lane.b32.xlu0 %v11287_v43, %s10860_s22  ;;  %v15495_v24 = vrot.slane %v11539_v28, 4  ;;  %v447_v33 = vcombine.high %v10833_v63, %v10833_v63  ;;  %v9060_v20 = vrot.slane %v929_v35, 9  ;;  %v2857_v35 = vld [vmem:[#allocation2 + $0x64] sm:$0x11] }
  0xce   : > { %v2590_v11 = vsel %vm15505_vm1, %v2587_v51, %v15491_v39  ;;  %2351 = vrot.lane.b32.xlu1 %v11228_v13, %s10861_s23  ;;  %v9059_v39 = vrot.slane %v924_v46, 9  ;;  %v10528_v13 = vld [vmem:[%s10983_s30 + $0x8] ss:$0 sps:$4 sm:$0x55]  }
  0xcf   : > { %v2591_v21 = vsel %vm15501_vm13, %v2582_v40, %v2590_v11  ;;  %v2710_v16 = vpop.permute.xlu0 %2709  ;;  %v939_v40 = vld [vmem:[#allocation2 + $0x1c] sm:$0x11]  ;;  %v11569_v46 = vld.sshfl [vmem:[%s10983_s30 + $0x8] sm:$0x1 pattern:$0x76325410]  ;;  %v461_v50 = vrot.slane %v447_v33, %v10978_v5 }
  0xd0   : > { %v2599_v36 = vsel %vm11213_vm14, %v2591_v21, %v2598_v25  ;;  %v2715_v51 = vrot.slane %v2710_v16, 4  ;;  %v11558_v59 = vpop.permute.xlu1 %2842  ;;  %v940_v25 = vsel %vm11097_vm6, %v9059_v39, %v939_v40  ;;  %v485_v40 = vld [vmem:[#allocation2 + $0x10] sm:$0x1]  ;;  %v482_v33 = vld [vmem:[#allocation2 + $0x8] sm:$0x11]  ;;  %vm15511_vm13 = vcmask 482304  }
  0xd1   : > { %2600 = vst [vmem:[#allocation2 + $0x50] sm:$0x44] %v2599_v36  ;;  %3290 = vrot.lane.b32.xlu0 %v3280_v19, %s15496_s20  ;;  %v15510_v63 = vrot.slane %v11558_v59, 4  ;;  %941 = vst [vmem:[#allocation2 + $0x1c] sm:$0x11] %v940_v25  ;;  %v10547_v25 = vld [vmem:[%s15456_s1] sm:$0xff]  }
  0xd2   : > { %v2718_v11 = vsel %vm15505_vm1, %v2715_v51, %v15495_v24  ;;  %2585 = vrot.lane.b32.xlu1 %v1177_v47, %s15497_s21  ;;  %v942_v36 = vld [vmem:[#allocation2 + $0x24] sm:$0x1]  ;;  %v486_v47 = vsel %vm11078_vm2, %v11569_v46, %v485_v40  ;;  %s15734_s20 = smov 82   ;;  %s15737_s21 = smov 102  }
  0xd3   : > { %v2719_v21 = vsel %vm15500_vm8, %v2710_v16, %v2718_v11  ;;  %v2841_v19 = vpop.permute.xlu0 %2840  ;;  %v943_v39 = vsel %vm11078_vm2, %v9060_v20, %v942_v36  ;;  %v3070_v11 = vrot.slane %v10528_v13, %v10978_v5  ;;  %487 = vst [vmem:[#allocation2 + $0x10] sm:$0x1] %v486_v47  ;;  %vm15504_vm8 = vcmask 457728  }
  0xd4   : > { %v2727_v51 = vsel %vm11258_vm7, %v2719_v21, %v2726_v62  ;;  %v2846_v24 = vrot.slane %v2841_v19, 4  ;;  %v11580_v16 = vpop.permute.xlu1 %2964  ;;  %944 = vst [vmem:[#allocation2 + $0x24] sm:$0x1] %v943_v39  ;;  %v483_v21 = vsel %vm11097_vm6, %v461_v50, %v482_v33  ;;  %v10834_v39 = vld [vmem:[%s10983_s30] sm:$0x55]  ;;  %9578 = vmatprep.mubr.msk.bf16.mxu0 %vm15504_vm8, %v10547_v25  ;;  %vm15698_vm8 = vcmask 1041409  }
  0xd5   : > { %2728 = vst [vmem:[#allocation2 + $0x50] sm:$0x88] %v2727_v51  ;;  %2459 = vrot.lane.b32.xlu0 %v11264_v32, %s10862_s24  ;;  %v15508_v20 = vrot.slane %v11580_v16, 4  ;;  %v2980_v51 = vld [vmem:[#allocation2 + $0x64] sm:$0x22]  ;;  %v492_v40 = vcombine.high %v10834_v39, %v10834_v39  ;;  %vm11619_vm3 = vmand %vm15698_vm8, %vm641_vm10  ;;  %v15699_v33 = vmov 0 }
  0xd6   : > { %v2849_v62 = vsel %vm15505_vm1, %v2846_v24, %v15510_v63  ;;  %2844 = vrot.lane.b32.xlu1 %v9084_v53, %s10861_s23  ;;  %484 = vst [vmem:[#allocation2 + $0x8] sm:$0x11] %v483_v21  ;;  %v15700_v33 = vsel %vm11619_vm3, 4294967295, %v15699_v33  ;;  %v10529_v39 = vld [vmem:[%s10983_s30 + $0x8] ss:$0 sps:$4 sm:$0x55]  }
  0xd7   : > { %v2850_v36 = vsel %vm15503_vm4, %v2841_v19, %v2849_v62  ;;  %v2963_v24 = vpop.permute.xlu0 %2962  ;;  %v506_v25 = vrot.slane %v492_v40, %v10978_v5  ;;  %vm15701_vm4 = vsmask.f32 7958  ;;  %vm760_vm10 = vsmask.f32 7946 }
  0xd8   : > { %v2858_v13 = vsel %vm11097_vm6, %v2850_v36, %v2857_v35  ;;  %v2968_v47 = vrot.slane %v2963_v24, 4  ;;  %v11605_v50 = vpop.permute.xlu1 %3073  ;;  %v11615_v35 = vshll.u32 %v11218_v7, 16  ;;  %vm15705_vm8 = vcmask 1043456  }
  0xd9   : > { %2859 = vst [vmem:[#allocation2 + $0x64] sm:$0x11] %v2858_v13  ;;  %2713 = vrot.lane.b32.xlu0 %v1750_v9, %s10860_s22  ;;  %v15509_v19 = vrot.slane %v11605_v50, 4 }
  0xda   : > { %v2971_v53 = vsel %vm15505_vm1, %v2968_v47, %v15508_v20  ;;  %3075 = vrot.lane.b32.xlu1 %v3070_v11, %s10864_s28  ;;  %vm15702_vm1 = vcmask 1045509   ;;  %v528_v11 = vld [vmem:[#allocation2 + $0x10] sm:$0x1]  ;;  %v11644_v13 = vrot.slane %v11615_v35, 9 }
  0xdb   : > { %v2973_v62 = vsel %vm15511_vm13, %v2963_v24, %v2971_v53  ;;  %v3072_v9 = vpop.permute.xlu0 %3071  ;;  %vm11630_vm6 = vmand %vm15702_vm1, %vm15701_vm4  ;;  %v529_v47 = vsel %vm11129_vm9, %v11569_v46, %v528_v11  ;;  %vm15706_vm1 = vcmask 474112   ;;  %vm15558_vm4 = vcmask 465920  }
  0xdc   : > { %v2981_v21 = vsel %vm11305_vm5, %v2973_v62, %v2980_v51  ;;  %v3077_v36 = vrot.slane %v3072_v9, 4  ;;  %v11635_v24 = vpop.permute.xlu1 %3182  ;;  %530 = vst [vmem:[#allocation2 + $0x10] sm:$0x1] %v529_v47  ;;  %vm15709_vm13 = vcmask 1043456   ;;  %v11674_v11 = vrot.slane %v11615_v35, 7 }
  0xdd   : > { %2982 = vst [vmem:[#allocation2 + $0x64] sm:$0x22] %v2981_v21  ;;  %2966 = vrot.lane.b32.xlu0 %v11264_v32, %s10863_s27  ;;  %v15516_v40 = vrot.slane %v11635_v24, 4  ;;  %v525_v53 = vld [vmem:[#allocation2 + $0x8] sm:$0x11]  ;;  %vm15715_vm9 = vcmask 1046534  }
  0xde   : > { %v3080_v51 = vsel %vm15705_vm8, %v3077_v36, %v15509_v19  ;;  %628 = vrot.lane.b32.xlu1 %v11264_v32, %s10853_s15  ;;  %v3198_v21 = vld [vmem:[#allocation2 + $0x64] sm:$0x88]  ;;  %v526_v36 = vsel %vm11140_vm11, %v506_v25, %v525_v53  ;;  %vm11660_vm8 = vmor %vm11630_vm6, %vm11619_vm3  ;;  %vm15710_vm6 = vcmask 1042434   ;;  %v646_v53 = vld [vmem:[#allocation2] sm:$0x22] }
  0xdf   : > { %v3082_v62 = vsel %vm15706_vm1, %v3072_v9, %v3080_v51  ;;  %v3181_v20 = vpop.permute.xlu0 %3180  ;;  %527 = vst [vmem:[#allocation2 + $0x8] sm:$0x11] %v526_v36  ;;  %vm11678_vm1 = vmand %vm15710_vm6, %vm760_vm10  ;;  %vm15717_vm10 = vcmask 1043456   ;;  %vm15718_vm6 = vcmask 1039360  }
  0xe0   : > { %v3090_v19 = vsel %vm11213_vm14, %v3082_v62, %v3089_v26  ;;  %v3186_v63 = vrot.slane %v3181_v20, 4  ;;  %v11664_v9 = vpop.permute.xlu1 %626  ;;  %v742_v26 = vrot.slane %v10529_v39, %v10978_v5 }
  0xe1   : > { %3091 = vst [vmem:[#allocation2 + $0x64] sm:$0x44] %v3090_v19  ;;  %3184 = vrot.lane.b32.xlu0 %v11287_v43, %s10865_s29  ;;  %v15517_v7 = vrot.slane %v11664_v9, 4  ;;  %v15711_v19 = vmov 0 }
  0xe2   : > { %v3189_v25 = vsel %vm15709_vm13, %v3186_v63, %v15516_v40  ;;  %v15712_v19 = vsel %vm11678_vm1, 4294967295, %v15711_v19  ;;  %990 = vrot.lane.b32.xlu1 %v11644_v13, %s10853_s15  ;;  %vm15714_vm13 = vsmask.f32 7962 }
  0xe3   : > { %15713 = vst [vmem:[#allocation10_spill] sm:$0xff] %v15712_v19  ;;  %v3191_v51 = vsel %vm15558_vm4, %v3181_v20, %v3189_v25  ;;  %v625_v39 = vpop.permute.xlu0 %624  ;;  %vm763_vm3 = vmand %vm15715_vm9, %vm15714_vm13  ;;  %vm15771_vm4 = vnez %v15669_v55 }
  0xe4   : > { %v3199_v63 = vsel %vm11258_vm7, %v3191_v51, %v3198_v21  ;;  %v630_v47 = vrot.slane %v625_v39, 4  ;;  %v11689_v62 = vpop.permute.xlu1 %745  ;;  %vm11703_vm9 = vmor %vm763_vm3, %vm11678_vm1  ;;  %vm15723_vm3 = vcmask 1031168  }
  0xe5   : > { %3200 = vst [vmem:[#allocation2 + $0x64] sm:$0x88] %v3199_v63  ;;  %15716 = vst [vmem:[#allocation11_spill] sm:$0xff] %v11689_v62  ;;  %747 = vrot.lane.b32.xlu0 %v742_v26, %s15656_s14  ;;  %v15519_v36 = vrot.slane %v11689_v62, 4  ;;  %v15719_v26 = vmov 0 }
  0xe6   : > { %v633_v20 = vsel %vm15717_vm10, %v630_v47, %v15517_v7  ;;  %1246 = vrot.lane.b32.xlu1 %v11674_v11, %s15593_s16  ;;  %v15720_v26 = vsel %vm11703_vm9, 4294967295, %v15719_v26  ;;  %vm15722_vm13 = vmmov %vm15717_vm10  ;;  %v11718_v7 = vld.sshfl [vmem:[%s10983_s30 + $0x8] sm:$0x11 pattern:$0x76325410]  ;;  %s10874_s16 = smov 111  }
  0xe7   : > { %v634_v25 = vsel %vm15718_vm6, %v625_v39, %v633_v20  ;;  %v744_v21 = vpop.permute.xlu0 %743  ;;  %vm15725_vm6 = vmmov %vm15723_vm3 }
  0xe8   : > { %v647_v51 = vsel %vm11660_vm8, %v634_v25, %v646_v53  ;;  %v749_v63 = vrot.slane %v744_v21, 4  ;;  %v11707_v47 = vpop.permute.xlu1 %9729  ;;  %v765_v25 = vld [vmem:[#allocation2] sm:$0x44] }
  0xe9   : > { %648 = vst [vmem:[#allocation2] sm:$0x22] %v647_v51  ;;  %15721 = vst [vmem:[#allocation12_spill] sm:$0xff] %v11707_v47  ;;  %1118 = vrot.lane.b32.xlu0 %v11615_v35, %s15656_s14  ;;  %v15522_v20 = vunpack.i.h.bf16 %v11707_v47  ;;  %v9731_v53 = vunpack.i.l.bf16 %v11707_v47  ;;  %v1003_v47 = vld [vmem:[#allocation2 + $0x14] sm:$0x11] }
  0xea   : > { %v752_v39 = vsel %vm15722_vm13, %v749_v63, %v15519_v36  ;;  %1462 = vrot.lane.b32.xlu1 %v11718_v7, %s10856_s18  ;;  %vm15727_vm13 = vmmov %vm15717_vm10 }
  0xeb   : > { %v753_v40 = vsel %vm15723_vm3, %v744_v21, %v752_v39  ;;  %v11722_v51 = vpop.permute.xlu0 %9724  ;;  %v11728_v63 = vrot.slane %v15522_v20, 4  ;;  %v1120_v36 = vrot.slane %v9731_v53, 4  ;;  %v1131_v20 = vld [vmem:[#allocation2 + $0x14] sm:$0x22]  ;;  %vm15728_vm3 = vcmask 1039360  }
  0xec   : > { %v766_v52 = vsel %vm11703_vm9, %v753_v40, %v765_v25  ;;  %v15529_v22 = vunpack.i.h.bf16 %v11722_v51  ;;  %v9726_v21 = vunpack.i.l.bf16 %v11722_v51  ;;  %v1354_v39 = vpop.permute.xlu1 %1353 }
  0xed   : > { %15724 = vst [vmem:[#allocation13_spill] sm:$0xff] %v11728_v63  ;;  %767 = vst [vmem:[#allocation2] sm:$0x44] %v766_v52  ;;  %1357 = vrot.lane.b32.xlu0 %v11287_v43, %s10855_s17  ;;  %v1123_v4 = vsel %vm15717_vm10, %v1120_v36, %v11728_v63  ;;  %v1359_v62 = vrot.slane %v1354_v39, 4 }
  0xee   : > { %v11738_v40 = vrot.slane %v15529_v22, 4  ;;  %v1124_v25 = vsel %vm15725_vm6, %v9731_v53, %v1123_v4  ;;  %v992_v31 = vrot.slane %v9726_v21, 4  ;;  %1691 = vrot.lane.b32.xlu1 %v11674_v11, %s10855_s17  ;;  %v1814_v22 = vrot.slane %v11615_v35, 6 }
  0xef   : > { %v11743_v52 = vpop.permute.xlu0 %9734  ;;  %v1132_v3 = vsel %vm11660_vm8, %v1124_v25, %v1131_v20  ;;  %vm15731_vm6 = vcmask 1022976  }
  0xf0   : > { %15726 = vst [vmem:[#allocation14_spill] sm:$0xff] %v11743_v52  ;;  %v15535_v36 = vunpack.i.h.bf16 %v11743_v52  ;;  %v9736_v63 = vunpack.i.l.bf16 %v11743_v52  ;;  %1133 = vst [vmem:[#allocation2 + $0x14] sm:$0x22] %v1132_v3  ;;  %v995_v4 = vsel %vm15727_vm13, %v992_v31, %v11738_v40  ;;  %v1459_v53 = vpop.permute.xlu1 %1458  ;;  %v1259_v52 = vld [vmem:[#allocation2 + $0x14] sm:$0x44] }
  0xf1   : > { %1573 = vrot.lane.b32.xlu0 %v11264_v32, %s10857_s19  ;;  %v996_v19 = vsel %vm15728_vm3, %v9726_v21, %v995_v4  ;;  %v2183_v32 = vrot.slane %v10531_v12, %v10978_v5  ;;  %vm15732_vm13 = vmmov %vm15717_vm10  ;;  %vm15733_vm3 = vcmask 859136  }
  0xf2   : > { %v11758_v20 = vrot.slane %v15535_v36, 4  ;;  %v1248_v25 = vrot.slane %v9736_v63, 4  ;;  %v1004_v3 = vsel %vm11140_vm11, %v996_v19, %v1003_v47  ;;  %1953 = vrot.lane.b32.xlu1 %v11644_v13, %s10857_s19  ;;  %v1464_v47 = vrot.slane %v1459_v53, 4 }
  0xf3   : > { %v11764_v31 = vpop.permute.xlu0 %1355  ;;  %1005 = vst [vmem:[#allocation2 + $0x14] sm:$0x11] %v1004_v3  ;;  %v1370_v3 = vld [vmem:[#allocation2 + $0x14] sm:$0x88] }
  0xf4   : > { %15729 = vst [vmem:[#allocation15_spill] sm:$0xff] %v11758_v20  ;;  %15730 = vst [vmem:[#allocation16_spill] sm:$0xff] %v11764_v31  ;;  %v1251_v21 = vsel %vm15717_vm10, %v1248_v25, %v11758_v20  ;;  %v15539_v4 = vrot.slane %v11764_v31, 4  ;;  %v1570_v48 = vpop.permute.xlu1 %1569  ;;  %v1586_v31 = vld [vmem:[#allocation2 + $0x28] sm:$0x22] }
  0xf5   : > { %v1252_v36 = vsel %vm15731_vm6, %v9736_v63, %v1251_v21  ;;  %1819 = vrot.lane.b32.xlu0 %v1814_v22, %s10856_s18  ;;  %v9103_v21 = vld.sshfl [vmem:[%s10983_s30 + $0x8] sm:$0x22 pattern:$0x76325410]  ;;  %vm15738_vm6 = vcmask 850944  }
  0xf6   : > { %v1260_v19 = vsel %vm11703_vm9, %v1252_v36, %v1259_v52  ;;  %v1362_v12 = vsel %vm15732_vm13, %v1359_v62, %v15539_v4  ;;  %2188 = vrot.lane.b32.xlu1 %v2183_v32, %s15734_s20  ;;  %v1575_v62 = vrot.slane %v1570_v48, 4  ;;  %vm15740_vm13 = vmmov %vm15717_vm10 }
  0xf7   : > { %1261 = vst [vmem:[#allocation2 + $0x14] sm:$0x44] %v1260_v19  ;;  %v1363_v25 = vsel %vm15733_vm3, %v1354_v39, %v1362_v12  ;;  %v11779_v20 = vpop.permute.xlu0 %1460  ;;  %v1475_v19 = vld [vmem:[#allocation2 + $0x28] sm:$0x11]  ;;  %vm15741_vm3 = vmmov %vm15717_vm10 }
  0xf8   : > { %15735 = vst [vmem:[#allocation17_spill] sm:$0xff] %v11779_v20  ;;  %v1371_v22 = vsel %vm11358_vm0, %v1363_v25, %v1370_v3  ;;  %v15540_v63 = vrot.slane %v11779_v20, 4  ;;  %v11784_v52 = vpop.permute.xlu1 %9739 }
  0xf9   : > { %1372 = vst [vmem:[#allocation2 + $0x14] sm:$0x88] %v1371_v22  ;;  %15736 = vst [vmem:[#allocation18_spill] sm:$0xff] %v11784_v52  ;;  %2081 = vrot.lane.b32.xlu0 %v11615_v35, %s15737_s21  ;;  %v15541_v36 = vunpack.i.h.bf16 %v11784_v52  ;;  %v9741_v32 = vunpack.i.l.bf16 %v11784_v52  ;;  %v1704_v52 = vld [vmem:[#allocation2 + $0x28] sm:$0x44]  ;;  %s10869_s21 = smov 24  }
  0xfa   : > { %v1467_v39 = vsel %vm15717_vm10, %v1464_v47, %v15540_v63  ;;  %2404 = vrot.lane.b32.xlu1 %v11718_v7, %s10861_s23  ;;  %vm15742_vm10 = vcmask 859136  }
  0xfb   : > { %v1468_v12 = vsel %vm15738_vm6, %v1459_v53, %v1467_v39  ;;  %v11797_v3 = vpop.permute.xlu0 %1571  ;;  %v11803_v47 = vrot.slane %v15541_v36, 4  ;;  %v1693_v22 = vrot.slane %v9741_v32, 4  ;;  %v2770_v53 = vshll.u32 %v9103_v21, 16  ;;  %v10537_v36 = vld [vmem:[%s10983_s30 + $0x8] ss:$0 sps:$4 sm:$0x55]  }
  0xfc   : > { %v1476_v25 = vsel %vm11140_vm11, %v1468_v12, %v1475_v19  ;;  %v15548_v4 = vrot.slane %v11797_v3, 4  ;;  %v11806_v63 = vpop.permute.xlu1 %9749  ;;  %vm15743_vm6 = vcmask 842752  }
  0xfd   : > { %1477 = vst [vmem:[#allocation2 + $0x28] sm:$0x11] %v1476_v25  ;;  %15739 = vst [vmem:[#allocation19_spill] sm:$0xff] %v11806_v63  ;;  %2299 = vrot.lane.b32.xlu0 %v11287_v43, %s10860_s22  ;;  %v1696_v7 = vsel %vm15740_vm13, %v1693_v22, %v11803_v47  ;;  %v15547_v19 = vunpack.i.h.bf16 %v11806_v63  ;;  %v9751_v12 = vunpack.i.l.bf16 %v11806_v63 }
  0xfe   : > { %v1578_v39 = vsel %vm15741_vm3, %v1575_v62, %v15548_v4  ;;  %v1697_v25 = vsel %vm15742_vm10, %v9741_v32, %v1696_v7  ;;  %2649 = vrot.lane.b32.xlu1 %v11674_v11, %s10860_s22  ;;  %vm15746_vm13 = vmmov %vm15741_vm3  ;;  %v1966_v4 = vld [vmem:[#allocation2 + $0x3c] sm:$0x11] }
  0xff   : > { %v1579_v20 = vsel %vm15743_vm6, %v1570_v48, %v1578_v39  ;;  %v11822_v43 = vpop.permute.xlu0 %9744  ;;  %v1705_v62 = vsel %vm11703_vm9, %v1697_v25, %v1704_v52  ;;  %v11830_v22 = vrot.slane %v15547_v19, 4  ;;  %v1955_v32 = vrot.slane %v9751_v12, 4  ;;  %vm15747_vm3 = vmmov %vm15743_vm6 }
 0x100   : > { %15744 = vst [vmem:[#allocation20_spill] sm:$0xff] %v11822_v43  ;;  %v1587_v21 = vsel %vm11660_vm8, %v1579_v20, %v1586_v31  ;;  %v10534_v7 = vld [vmem:[#allocation2 + $0x4] ss:$20 sps:$4 sm:$0xff]   ;;  %1706 = vst [vmem:[#allocation2 + $0x28] sm:$0x44] %v1705_v62  ;;  %v15550_v48 = vunpack.i.h.bf16 %v11822_v43  ;;  %v9746_v11 = vunpack.i.l.bf16 %v11822_v43  ;;  %v2185_v39 = vpop.permute.xlu1 %2184  ;;  %v2772_v25 = vrot.slane %v2770_v53, 6 }
 0x101   : > { %15745 = vst [vmem:[#allocation21_spill] sm:$0xff] %v11830_v22  ;;  %1588 = vst [vmem:[#allocation2 + $0x28] sm:$0x22] %v1587_v21  ;;  %2521 = vrot.lane.b32.xlu0 %v11615_v35, %s15734_s20  ;;  %v10536_v52 = vld [vmem:[#allocation2] ss:$20 sps:$4 sm:$0xff]   ;;  %v1958_v20 = vsel %vm15746_vm13, %v1955_v32, %v11830_v22  ;;  %3488 = vmatprep.subr.bf16.mxu1 %v10534_v7  ;;  %v3124_v35 = vrot.slane %v10537_v36, %v10978_v5  ;;  %vm15751_vm6 = vcmask 850944  }
 0x102   : > { %v9113_v31 = vld.sshfl [vmem:[%s10983_s30 + $0x8] sm:$0x11 pattern:$0x76325410]  ;;  %v1959_v19 = vsel %vm15747_vm3, %v9751_v12, %v1958_v20  ;;  %v11842_v62 = vrot.slane %v15550_v48, 4  ;;  %v1821_v21 = vrot.slane %v9746_v11, 4  ;;  %2911 = vrot.lane.b32.xlu1 %v11644_v13, %s10862_s24  ;;  %3489 = vmatpush1.bf16.msra.mxu1 %v10536_v52  ;;  %vm15750_vm10 = vmmov %vm15746_vm13 }
 0x103   : > { %v11846_v63 = vpop.permute.xlu0 %9754  ;;  %v1967_v53 = vsel %vm11140_vm11, %v1959_v19, %v1966_v4  ;;  %v3017_v13 = vrot.slane %v9113_v31, 7  ;;  %v1832_v48 = vld [vmem:[#allocation2 + $0x28] sm:$0x88]  ;;  %v2190_v43 = vrot.slane %v2185_v39, 4  ;;  %vm15753_vm13 = vmmov %vm15750_vm10  ;;  %vm15754_vm3 = vcmask 834560   ;;  %s15756_s24 = smov 56  }
 0x104   : > { %15748 = vst [vmem:[#allocation22_spill] sm:$0xff] %v11842_v62  ;;  %15749 = vst [vmem:[#allocation23_spill] sm:$0xff] %v11846_v63  ;;  %v15552_v32 = vunpack.i.h.bf16 %v11846_v63  ;;  %v9756_v12 = vunpack.i.l.bf16 %v11846_v63  ;;  %v1824_v7 = vsel %vm15750_vm10, %v1821_v21, %v11842_v62  ;;  %v2296_v20 = vpop.permute.xlu1 %2295  ;;  %v3235_v63 = vrot.slane %v9113_v31, 5  ;;  %v589_v22 = vld [vmem:[#allocation2 + $0x8] sm:$0x22] }
 0x105   : > { %1968 = vst [vmem:[#allocation2 + $0x3c] sm:$0x11] %v1967_v53  ;;  %2777 = vrot.lane.b32.xlu0 %v2772_v25, %s10861_s23  ;;  %v1825_v52 = vsel %vm15751_vm6, %v9746_v11, %v1824_v7  ;;  %v2094_v11 = vld [vmem:[#allocation2 + $0x3c] sm:$0x22]  ;;  %vm15755_vm6 = vcmask 670720  }
 0x106   : > { %v11859_v36 = vrot.slane %v15552_v32, 4  ;;  %v2083_v4 = vrot.slane %v9756_v12, 4  ;;  %v1833_v19 = vsel %vm11358_vm0, %v1825_v52, %v1832_v48  ;;  %3129 = vrot.lane.b32.xlu1 %v3124_v35, %s10864_s28  ;;  %v2301_v35 = vrot.slane %v2296_v20, 4  ;;  %s10871_s28 = smov 114  }
 0x107   : > { %v11864_v53 = vpop.permute.xlu0 %2186  ;;  %1834 = vst [vmem:[#allocation2 + $0x28] sm:$0x88] %v1833_v19  ;;  %v592_v19 = vld [vmem:[#allocation2 + $0x10] sm:$0x2] }
 0x108   : > { %15752 = vst [vmem:[#allocation24_spill] sm:$0xff] %v11859_v36  ;;  %v2086_v25 = vsel %vm15753_vm13, %v2083_v4, %v11859_v36  ;;  %v15557_v21 = vrot.slane %v11864_v53, 4  ;;  %v565_v32 = vpop.permute.xlu1 %564  ;;  %v2201_v36 = vld [vmem:[#allocation2 + $0x3c] sm:$0x44]  ;;  %vm15758_vm13 = vmmov %vm15750_vm10 }
 0x109   : > { %v2087_v7 = vsel %vm15754_vm3, %v9756_v12, %v2086_v25  ;;  %3022 = vrot.lane.b32.xlu0 %v3017_v13, %s10863_s27  ;;  %v568_v4 = vrot.slane %v565_v32, 4  ;;  %v10836_v13 = vld [vmem:[%s10983_s30] sm:$0xaa]  ;;  %vm15759_vm3 = vcmask 1039360   ;;  %s16287_s27 = smov 125   ;;  %s10880_s30 = smov 96  }
 0x10a   : > { %v2095_v48 = vsel %vm11660_vm8, %v2087_v7, %v2094_v11  ;;  %v2193_v52 = vsel %vm15750_vm10, %v2190_v43, %v15557_v21  ;;  %3292 = vrot.lane.b32.xlu1 %v9113_v31, %s15756_s24  ;;  %v841_v25 = vcombine.high %v10836_v13, %v10836_v13  ;;  %v15757_v7 = vrot.slane %v11311_v58, 4  ;;  %vm15760_vm10 = vmmov %vm15759_vm3  ;;  %v2312_v13 = vld [vmem:[#allocation2 + $0x3c] sm:$0x88]  ;;  %s10873_s24 = smov 112  }
 0x10b   : > { %2096 = vst [vmem:[#allocation2 + $0x3c] sm:$0x22] %v2095_v48  ;;  %v2194_v62 = vsel %vm15755_vm6, %v2185_v39, %v2193_v52  ;;  %v11878_v12 = vpop.permute.xlu0 %2297  ;;  %v575_v21 = vsel %vm15759_vm3, %v565_v32, %v568_v4  ;;  %vm15761_vm6 = vmmov %vm15758_vm13 }
 0x10c   : > { %v2202_v11 = vsel %vm11703_vm9, %v2194_v62, %v2201_v36  ;;  %v573_v43 = vsel %vm15758_vm13, %v15757_v7, %v568_v4  ;;  %v15567_v48 = vrot.slane %v11878_v12, 4  ;;  %v593_v31 = vsel %vm11269_vm12, %v575_v21, %v592_v19  ;;  %v808_v52 = vpop.permute.xlu1 %807  ;;  %v834_v36 = vld [vmem:[#allocation2 + $0x10] sm:$0x8]  ;;  %vm15764_vm3 = vmmov %vm15761_vm6 }
 0x10d   : > { %2203 = vst [vmem:[#allocation2 + $0x3c] sm:$0x44] %v2202_v11  ;;  %v574_v39 = vsel %vm15760_vm10, %v11311_v58, %v573_v43  ;;  %3240 = vrot.lane.b32.xlu0 %v3235_v63, %s10865_s29  ;;  %594 = vst [vmem:[#allocation2 + $0x10] sm:$0x2] %v593_v31  ;;  %v811_v4 = vrot.slane %v808_v52, 4  ;;  %vm15762_vm13 = vcmask 662528   ;;  %v855_v21 = vrot.slane %v841_v25, %v10978_v5 }
 0x10e   : > { %v590_v62 = vsel %vm11305_vm5, %v574_v39, %v589_v22  ;;  %v2304_v32 = vsel %vm15761_vm6, %v2301_v35, %v15567_v48  ;;  %v831_v11 = vld [vmem:[#allocation2 + $0x8] sm:$0x88]  ;;  %v15763_v22 = vrot.slane %v11243_v23, 4  ;;  %vm15765_vm10 = vcmask 1022976   ;;  %v713_v35 = vld [vmem:[#allocation2 + $0x10] sm:$0x4] }
 0x10f   : > { %591 = vst [vmem:[#allocation2 + $0x8] sm:$0x22] %v590_v62  ;;  %v2305_v58 = vsel %vm15762_vm13, %v2296_v20, %v2304_v32  ;;  %v687_v19 = vpop.permute.xlu0 %686  ;;  %v817_v43 = vsel %vm15765_vm10, %v808_v52, %v811_v4  ;;  %v872_v31 = vshll.u32 %v11553_v57, 16  ;;  %vm15766_vm6 = vmmov %vm15765_vm10  ;;  %vm15767_vm13 = vnez %v15675_v10  ;;  %v710_v25 = vld [vmem:[#allocation2 + $0x8] sm:$0x44]  ;;  %s10872_s29 = smov 113  }
 0x110   : > { %v2313_v63 = vsel %vm11358_vm0, %v2305_v58, %v2312_v13  ;;  %v815_v7 = vsel %vm15764_vm3, %v15763_v22, %v811_v4  ;;  %v690_v39 = vrot.slane %v687_v19, 4  ;;  %v835_v5 = vsel %vm15767_vm13, %v817_v43, %v834_v36  ;;  %v1183_v62 = vpop.permute.xlu1 %1182  ;;  %v1201_v58 = vld [vmem:[#allocation2 + $0x24] sm:$0x4]  ;;  %v1198_v22 = vld [vmem:[#allocation2 + $0x1c] sm:$0x44] }
 0x111   : > { %2314 = vst [vmem:[#allocation2 + $0x3c] sm:$0x88] %v2313_v63  ;;  %v816_v20 = vsel %vm15766_vm6, %v11243_v23, %v815_v7  ;;  %836 = vst [vmem:[#allocation2 + $0x10] sm:$0x8] %v835_v5  ;;  %v15768_v13 = vrot.slane %v11199_v61, 4  ;;  %vm15769_vm10 = vcmask 1031168  }
 0x112   : > { %v832_v32 = vsel %vm11258_vm7, %v816_v20, %v831_v11  ;;  %v696_v4 = vsel %vm15769_vm10, %v687_v19, %v690_v39  ;;  %v1186_v57 = vrot.slane %v1183_v62, 4  ;;  %v868_v63 = vshll.u32 %v855_v21, 16  ;;  %vm15770_vm6 = vmmov %vm15769_vm10  ;;  %v1076_v21 = vld [vmem:[#allocation2 + $0x24] sm:$0x2]  ;;  %v1073_v5 = vld [vmem:[#allocation2 + $0x1c] sm:$0x22] }
 0x113   : > { %v694_v52 = vsel %vm15764_vm3, %v15768_v13, %v690_v39  ;;  %833 = vst [vmem:[#allocation2 + $0x8] sm:$0x88] %v832_v32  ;;  %v714_v36 = vsel %vm15771_vm4, %v696_v4, %v713_v35  ;;  %v1058_v7 = vpop.permute.xlu0 %1057  ;;  %v15772_v43 = vrot.slane %v11335_v18, 4  ;;  %vm15773_vm10 = vmmov %vm15770_vm6  ;;  %v874_v13 = vrot.slane %v872_v31, 6 }
 0x114   : > { %v695_v23 = vsel %vm15770_vm6, %v11199_v61, %v694_v52  ;;  %715 = vst [vmem:[#allocation2 + $0x10] sm:$0x4] %v714_v36  ;;  %v1191_v39 = vsel %vm15773_vm10, %v1183_v62, %v1186_v57  ;;  %v1061_v20 = vrot.slane %v1058_v7, 4  ;;  %v2401_v32 = vpop.permute.xlu1 %2400  ;;  %v15774_v52 = vrot.slane %v11290_v45, 4 }
 0x115   : > { %v711_v11 = vsel %vm11213_vm14, %v695_v23, %v710_v25  ;;  %v1189_v19 = vsel %vm15764_vm3, %v15772_v43, %v1186_v57  ;;  %v1202_v35 = vsel %vm15771_vm4, %v1191_v39, %v1201_v58  ;;  %vm15775_vm10 = vcmask 1039360   ;;  %v1321_v23 = vld [vmem:[#allocation2 + $0x24] sm:$0x8] }
 0x116   : > { %712 = vst [vmem:[#allocation2 + $0x8] sm:$0x44] %v711_v11  ;;  %v1190_v61 = vsel %vm15770_vm6, %v11335_v18, %v1189_v19  ;;  %1203 = vst [vmem:[#allocation2 + $0x24] sm:$0x4] %v1202_v35  ;;  %v1064_v62 = vsel %vm15764_vm3, %v15774_v52, %v1061_v20  ;;  %v1066_v4 = vsel %vm15775_vm10, %v1058_v7, %v1061_v20  ;;  %v870_v57 = vrot.slane %v868_v63, 6 }
 0x117   : > { %v1199_v25 = vsel %vm11213_vm14, %v1190_v61, %v1198_v22  ;;  %vm15776_vm6 = vmmov %vm15775_vm10  ;;  %v1077_v58 = vsel %vm11269_vm12, %v1066_v4, %v1076_v21  ;;  %v1302_v31 = vpop.permute.xlu0 %1301  ;;  %v2406_v7 = vrot.slane %v2401_v32, 4  ;;  %v1318_v63 = vld [vmem:[#allocation2 + $0x1c] sm:$0x88]  ;;  %v15777_v21 = vrot.slane %v11364_v42, 4 }
 0x118   : > { %1200 = vst [vmem:[#allocation2 + $0x1c] sm:$0x44] %v1199_v25  ;;  %v1065_v18 = vsel %vm15776_vm6, %v11290_v45, %v1064_v62  ;;  %1078 = vst [vmem:[#allocation2 + $0x24] sm:$0x2] %v1077_v58  ;;  %v1305_v22 = vrot.slane %v1302_v31, 4  ;;  %v11943_v39 = vpop.permute.xlu1 %9759  ;;  %vm15778_vm10 = vcmask 859136  }
 0x119   : > { %v1074_v36 = vsel %vm11305_vm5, %v1065_v18, %v1073_v5  ;;  %v10539_v11 = vld [vmem:[#allocation2 + $0x2c] ss:$20 sps:$4 sm:$0xff]   ;;  %v10541_v43 = vld [vmem:[#allocation2 + $0x28] ss:$20 sps:$4 sm:$0xff]   ;;  %v889_v19 = vld [vmem:[#allocation2 + $0x10] sm:$0x8]  ;;  %v15560_v5 = vunpack.i.h.bf16 %v11943_v39 }
 0x11a   : > { %1075 = vst [vmem:[#allocation2 + $0x1c] sm:$0x22] %v1074_v36  ;;  %v886_v20 = vld [vmem:[#allocation2 + $0x8] sm:$0x88]  ;;  %v890_v45 = vsel %vm11296_vm15, %v874_v13, %v889_v19  ;;  %v1309_v61 = vsel %vm15764_vm3, %v15777_v21, %v1305_v22  ;;  %v1311_v35 = vsel %vm15778_vm10, %v1302_v31, %v1305_v22  ;;  %3490 = vmatprep.subr.bf16.mxu1 %v10539_v11  ;;  %vm15779_vm6 = vmmov %vm15778_vm10  ;;  %v9761_v13 = vunpack.i.l.bf16 %v11943_v39  ;;  %v3340_v11 = vld [vmem:[%s15457_s2] sm:$0xff] }
 0x11b   : > { %v887_v25 = vsel %vm11358_vm0, %v870_v57, %v886_v20  ;;  %891 = vst [vmem:[#allocation2 + $0x10] sm:$0x8] %v890_v45  ;;  %v1310_v52 = vsel %vm15779_vm6, %v11364_v42, %v1309_v61  ;;  %v1322_v62 = vsel %vm15767_vm13, %v1311_v35, %v1321_v23  ;;  %v11959_v4 = vpop.permute.xlu0 %2402  ;;  %3491 = vmatpush1.bf16.msra.mxu1 %v10541_v43  ;;  %v11965_v57 = vrot.slane %v15560_v5, 4  ;;  %v3341_v43 = vld [vmem:[%s15457_s2 + $0x8] sm:$0xff]  ;;  %vm15780_vm10 = vmmov %vm15764_vm3  ;;  %v2534_v21 = vld [vmem:[#allocation2 + $0x50] sm:$0x22] }
 0x11c   : > { %888 = vst [vmem:[#allocation2 + $0x8] sm:$0x88] %v887_v25  ;;  %v1319_v18 = vsel %vm11258_vm7, %v1310_v52, %v1318_v63  ;;  %1323 = vst [vmem:[#allocation2 + $0x24] sm:$0x8] %v1322_v62  ;;  %v15568_v58 = vrot.slane %v11959_v4, 4  ;;  %v2523_v42 = vrot.slane %v9761_v13, 4  ;;  %v11968_v31 = vpop.permute.xlu1 %9769  ;;  %3346 = vperm.xlu0 %9778, %v3340_v11   ;;  %3351 = vperm.xlu1 %9779, %v3341_v43  }
 0x11d   : > { %1320 = vst [vmem:[#allocation2 + $0x1c] sm:$0x88] %v1319_v18  ;;  %v15559_v36 = vunpack.i.h.bf16 %v11968_v31  ;;  %v9771_v22 = vunpack.i.l.bf16 %v11968_v31  ;;  %v2417_v63 = vld [vmem:[#allocation2 + $0x50] sm:$0x11]  ;;  %vm15781_vm6 = vcmask 654336   ;;  %v15563_v5 = vmov 0.0  }
 0x11e   : > { %v2409_v23 = vsel %vm15764_vm3, %v2406_v7, %v15568_v58  ;;  %v2526_v19 = vsel %vm15780_vm10, %v2523_v42, %v11965_v57  ;;  %vm15782_vm3 = vcmask 670720   ;;  %v3342_v52 = vld [vmem:[%s15457_s2 + $0x10] sm:$0xff]  ;;  %vm15789_vm15 = vcmask 482304  }
 0x11f   : > { %v2410_v20 = vsel %vm15781_vm6, %v2401_v32, %v2409_v23  ;;  %v11984_v45 = vpop.permute.xlu0 %9764  ;;  %v2527_v7 = vsel %vm15782_vm3, %v9761_v13, %v2526_v19  ;;  %v11991_v35 = vrot.slane %v15559_v36, 4  ;;  %v2779_v25 = vrot.slane %v9771_v22, 4  ;;  %v3343_v32 = vld [vmem:[%s15457_s2 + $0x18] sm:$0xff]  ;;  %v2790_v43 = vld [vmem:[#allocation2 + $0x50] sm:$0x88]  ;;  %vm15783_vm3 = vmmov %vm15780_vm10 }
 0x120   : > { %v2418_v61 = vsel %vm11140_vm11, %v2410_v20, %v2417_v63  ;;  %v2535_v62 = vsel %vm11660_vm8, %v2527_v7, %v2534_v21  ;;  %v15562_v13 = vunpack.i.h.bf16 %v11984_v45  ;;  %v9766_v18 = vunpack.i.l.bf16 %v11984_v45  ;;  %v3019_v42 = vpop.permute.xlu1 %3018  ;;  %3356 = vperm.xlu1 %9779, %v3342_v52   ;;  %3361 = vperm.xlu0 %9778, %v3343_v32  }
 0x121   : > { %2419 = vst [vmem:[#allocation2 + $0x50] sm:$0x11] %v2418_v61  ;;  %2536 = vst [vmem:[#allocation2 + $0x50] sm:$0x22] %v2535_v62  ;;  %v2782_v23 = vsel %vm15780_vm10, %v2779_v25, %v11991_v35  ;;  %v2662_v62 = vld [vmem:[#allocation2 + $0x50] sm:$0x44] }
 0x122   : > { %v2783_v11 = vsel %vm15781_vm6, %v9771_v22, %v2782_v23  ;;  %v12008_v19 = vrot.slane %v15562_v13, 4  ;;  %v2651_v63 = vrot.slane %v9766_v18, 4  ;;  %vm15784_vm10 = vcmask 662528   ;;  %vm15786_vm6 = vmmov %vm15783_vm3 }
 0x123   : > { %v12010_v20 = vpop.permute.xlu0 %9774  ;;  %v2791_v7 = vsel %vm11358_vm0, %v2783_v11, %v2790_v43  ;;  %v3024_v36 = vrot.slane %v3019_v42, 4 }
 0x124   : > { %v15561_v21 = vunpack.i.h.bf16 %v12010_v20  ;;  %v9776_v61 = vunpack.i.l.bf16 %v12010_v20  ;;  %2792 = vst [vmem:[#allocation2 + $0x50] sm:$0x88] %v2791_v7  ;;  %v2654_v22 = vsel %vm15783_vm3, %v2651_v63, %v12008_v19  ;;  %v3126_v25 = vpop.permute.xlu1 %3125  ;;  %9796 = vrot.lane.b32.xlu1 %v15563_v5, %s10853_s15  ;;  %9781 = vrot.lane.b32.xlu0 %v15563_v5, %s10853_s15  ;;  %v2924_v7 = vld [vmem:[#allocation2 + $0x64] sm:$0x11]  ;;  %vm15787_vm3 = vcmask 646144  }
 0x125   : > { %v2655_v23 = vsel %vm15784_vm10, %v9766_v18, %v2654_v22  ;;  %vm15788_vm10 = vmmov %vm15786_vm6  ;;  %v3035_v5 = vld [vmem:[#allocation2 + $0x64] sm:$0x22] }
 0x126   : > { %v12021_v52 = vrot.slane %v15561_v21, 4  ;;  %v2913_v32 = vrot.slane %v9776_v61, 4  ;;  %v2663_v11 = vsel %vm11703_vm9, %v2655_v23, %v2662_v62  ;;  %v3131_v23 = vrot.slane %v3126_v25, 4 }
 0x127   : > { %v12025_v43 = vpop.permute.xlu0 %3020  ;;  %2664 = vst [vmem:[#allocation2 + $0x50] sm:$0x44] %v2663_v11 }
 0x128   : > { %15785 = vst [vmem:[#allocation25_spill] sm:$0xff] %v12025_v43  ;;  %v2916_v18 = vsel %vm15786_vm6, %v2913_v32, %v12021_v52  ;;  %v15569_v63 = vrot.slane %v12025_v43, 4  ;;  %v3237_v21 = vpop.permute.xlu1 %3236 }
 0x129   : > { %v2917_v22 = vsel %vm15787_vm3, %v9776_v61, %v2916_v18  ;;  %v3242_v58 = vrot.slane %v3237_v21, 4  ;;  %vm15791_vm3 = vcmask 474112  }
 0x12a   : > { %v2925_v62 = vsel %vm11140_vm11, %v2917_v22, %v2924_v7  ;;  %v3027_v13 = vsel %vm15788_vm10, %v3024_v36, %v15569_v63  ;;  %v1429_v22 = vld [vmem:[#allocation2 + $0x38] sm:$0x1]  ;;  %vm15794_vm10 = vcmask 850944  }
 0x12b   : > { %2926 = vst [vmem:[#allocation2 + $0x64] sm:$0x11] %v2925_v62  ;;  %v3028_v11 = vsel %vm15789_vm15, %v3019_v42, %v3027_v13  ;;  %v12041_v48 = vpop.permute.xlu0 %3127  ;;  %v3142_v62 = vld [vmem:[#allocation2 + $0x64] sm:$0x44]  ;;  %v1426_v13 = vld [vmem:[#allocation2 + $0x30] sm:$0x11]  ;;  %vm15793_vm15 = vmmov %vm15786_vm6 }
 0x12c   : > { %15790 = vst [vmem:[#allocation26_spill] sm:$0xff] %v12041_v48  ;;  %v3036_v32 = vsel %vm11660_vm8, %v3028_v11, %v3035_v5  ;;  %v15574_v61 = vrot.slane %v12041_v48, 4  ;;  %v1410_v18 = vpop.permute.xlu1 %1409  ;;  %v15792_v11 = vrot.slane %v11383_v41, 4 }
 0x12d   : > { %3037 = vst [vmem:[#allocation2 + $0x64] sm:$0x22] %v3036_v32  ;;  %v1413_v36 = vrot.slane %v1410_v18, 4 }
 0x12e   : > { %v3134_v7 = vsel %vm15786_vm6, %v3131_v23, %v15574_v61  ;;  %vm15795_vm6 = vmmov %vm15794_vm10 }
 0x12f   : > { %v3135_v63 = vsel %vm15791_vm3, %v3126_v25, %v3134_v7  ;;  %v12050_v42 = vpop.permute.xlu0 %3238  ;;  %v1417_v32 = vsel %vm15793_vm15, %v15792_v11, %v1413_v36  ;;  %v1419_v43 = vsel %vm15794_vm10, %v1410_v18, %v1413_v36  ;;  %vm15796_vm3 = vnez %v15662_v14  ;;  %v3253_v36 = vld [vmem:[#allocation2 + $0x64] sm:$0x88]  ;;  %v1643_v11 = vld [vmem:[#allocation2 + $0x30] sm:$0x44] }
 0x130   : > { %v3143_v5 = vsel %vm11703_vm9, %v3135_v63, %v3142_v62  ;;  %v3243_v48 = vrot.slane %v12050_v42, 4  ;;  %v1418_v23 = vsel %vm15795_vm6, %v11383_v41, %v1417_v32  ;;  %v1430_v25 = vsel %vm11078_vm2, %v1419_v43, %v1429_v22  ;;  %v1627_v7 = vpop.permute.xlu1 %1626  ;;  %vm15797_vm9 = vmmov %vm15793_vm15  ;;  %v1646_v62 = vld [vmem:[#allocation2 + $0x38] sm:$0x4] }
 0x131   : > { %3144 = vst [vmem:[#allocation2 + $0x64] sm:$0x44] %v3143_v5  ;;  %v1427_v61 = vsel %vm15796_vm3, %v1418_v23, %v1426_v13  ;;  %1431 = vst [vmem:[#allocation2 + $0x38] sm:$0x1] %v1430_v25  ;;  %v1630_v18 = vrot.slane %v1627_v7, 4  ;;  %vm15798_vm15 = vcmask 465920  }
 0x132   : > { %v3245_v63 = vsel %vm15797_vm9, %v3242_v58, %v3243_v48  ;;  %1428 = vst [vmem:[#allocation2 + $0x30] sm:$0x11] %v1427_v61  ;;  %v15799_v22 = vrot.slane %v11414_v15, 4  ;;  %vm15800_vm10 = vmmov %vm15797_vm9  ;;  %vm15801_vm6 = vcmask 834560   ;;  %v1537_v23 = vld [vmem:[#allocation2 + $0x38] sm:$0x2] }
 0x133   : > { %v3246_v5 = vsel %vm15798_vm15, %v3237_v21, %v3245_v63  ;;  %v1518_v41 = vpop.permute.xlu0 %1517  ;;  %v1636_v32 = vsel %vm15801_vm6, %v1627_v7, %v1630_v18  ;;  %vm15802_vm9 = vmmov %vm15801_vm6  ;;  %v1534_v61 = vld [vmem:[#allocation2 + $0x30] sm:$0x22] }
 0x134   : > { %v3254_v43 = vsel %vm11358_vm0, %v3246_v5, %v3253_v36  ;;  %v1634_v13 = vsel %vm15800_vm10, %v15799_v22, %v1630_v18  ;;  %v1521_v25 = vrot.slane %v1518_v41, 4  ;;  %v1647_v21 = vsel %vm15771_vm4, %v1636_v32, %v1646_v62  ;;  %v1887_v63 = vpop.permute.xlu1 %1886  ;;  %vm15804_vm15 = vmmov %vm15800_vm10  ;;  %v1905_v18 = vld [vmem:[#allocation2 + $0x4c] sm:$0x1] }
 0x135   : > { %3255 = vst [vmem:[#allocation2 + $0x64] sm:$0x88] %v3254_v43  ;;  %v1635_v58 = vsel %vm15802_vm9, %v11414_v15, %v1634_v13  ;;  %1648 = vst [vmem:[#allocation2 + $0x38] sm:$0x4] %v1647_v21  ;;  %v15803_v5 = vrot.slane %v11397_v44, 4  ;;  %vm15805_vm10 = vcmask 842752  }
 0x136   : > { %v1644_v36 = vsel %vm11213_vm14, %v1635_v58, %v1643_v11  ;;  %v1527_v7 = vsel %vm15805_vm10, %v1518_v41, %v1521_v25  ;;  %v1890_v43 = vrot.slane %v1887_v63, 4  ;;  %vm15806_vm6 = vmmov %vm15805_vm10  ;;  %v1902_v13 = vld [vmem:[#allocation2 + $0x44] sm:$0x11]  ;;  %v15807_v58 = vrot.slane %v11442_v8, 4 }
 0x137   : > { %v1525_v22 = vsel %vm15804_vm15, %v15803_v5, %v1521_v25  ;;  %1645 = vst [vmem:[#allocation2 + $0x30] sm:$0x44] %v1644_v36  ;;  %v1538_v62 = vsel %vm11269_vm12, %v1527_v7, %v1537_v23  ;;  %v1756_v32 = vpop.permute.xlu0 %1755  ;;  %vm15808_vm9 = vmmov %vm15804_vm15  ;;  %vm15809_vm15 = vcmask 850944   ;;  %v1774_v25 = vld [vmem:[#allocation2 + $0x38] sm:$0x8]  ;;  %v15811_v7 = vrot.slane %v11428_v1, 4 }
 0x138   : > { %v1526_v15 = vsel %vm15806_vm6, %v11397_v44, %v1525_v22  ;;  %1539 = vst [vmem:[#allocation2 + $0x38] sm:$0x2] %v1538_v62  ;;  %v1893_v21 = vsel %vm15808_vm9, %v15807_v58, %v1890_v43  ;;  %v1895_v41 = vsel %vm15809_vm15, %v1887_v63, %v1890_v43  ;;  %v1759_v36 = vrot.slane %v1756_v32, 4  ;;  %vm15810_vm10 = vmmov %vm15809_vm15  ;;  %v1771_v5 = vld [vmem:[#allocation2 + $0x30] sm:$0x88]  ;;  %v2135_v22 = vpop.permute.xlu1 %2134 }
 0x139   : > { %v1535_v11 = vsel %vm11305_vm5, %v1526_v15, %v1534_v61  ;;  %v1894_v44 = vsel %vm15810_vm10, %v11442_v8, %v1893_v21  ;;  %v1906_v23 = vsel %vm11078_vm2, %v1895_v41, %v1905_v18  ;;  %vm15812_vm6 = vmmov %vm15808_vm9  ;;  %vm15813_vm9 = vcmask 859136   ;;  %v2154_v43 = vld [vmem:[#allocation2 + $0x4c] sm:$0x4]  ;;  %v2039_v58 = vld [vmem:[#allocation2 + $0x4c] sm:$0x2] }
 0x13a   : > { %1536 = vst [vmem:[#allocation2 + $0x30] sm:$0x22] %v1535_v11  ;;  %v1903_v61 = vsel %vm15796_vm3, %v1894_v44, %v1902_v13  ;;  %1907 = vst [vmem:[#allocation2 + $0x4c] sm:$0x1] %v1906_v23  ;;  %v1762_v15 = vsel %vm15812_vm6, %v15811_v7, %v1759_v36  ;;  %v1764_v63 = vsel %vm15813_vm9, %v1756_v32, %v1759_v36  ;;  %v2138_v62 = vrot.slane %v2135_v22, 4 }
 0x13b   : > { %1904 = vst [vmem:[#allocation2 + $0x44] sm:$0x11] %v1903_v61  ;;  %vm15814_vm15 = vmmov %vm15813_vm9  ;;  %v1775_v18 = vsel %vm15767_vm13, %v1764_v63, %v1774_v25  ;;  %v2151_v11 = vld [vmem:[#allocation2 + $0x44] sm:$0x44]  ;;  %v2021_v21 = vpop.permute.xlu0 %2020  ;;  %v15815_v41 = vrot.slane %v11468_v0, 4  ;;  %v15819_v63 = vrot.slane %v11453_v27, 4 }
 0x13c   : > { %v1763_v8 = vsel %vm15814_vm15, %v11428_v1, %v1762_v15  ;;  %1776 = vst [vmem:[#allocation2 + $0x38] sm:$0x8] %v1775_v18  ;;  %vm15816_vm10 = vmmov %vm15812_vm6  ;;  %vm15817_vm6 = vcmask 670720   ;;  %v2024_v44 = vrot.slane %v2021_v21, 4  ;;  %v10542_v23 = vld [vmem:[#allocation2 + $0x54] ss:$20 sps:$4 sm:$0xff]   ;;  %v3289_v15 = vpop.permute.xlu1 %3288 }
 0x13d   : > { %v1772_v13 = vsel %vm11258_vm7, %v1763_v8, %v1771_v5  ;;  %v2142_v32 = vsel %vm15816_vm10, %v15815_v41, %v2138_v62  ;;  %v2144_v36 = vsel %vm15817_vm6, %v2135_v22, %v2138_v62  ;;  %v10544_v61 = vld [vmem:[#allocation2 + $0x50] ss:$20 sps:$4 sm:$0xff]   ;;  %vm15818_vm9 = vmmov %vm15817_vm6  ;;  %3492 = vmatprep.subr.bf16.mxu1 %v10542_v23  ;;  %v2371_v23 = vld [vmem:[#allocation2 + $0x60] sm:$0x1] }
 0x13e   : > { %1773 = vst [vmem:[#allocation2 + $0x30] sm:$0x88] %v1772_v13  ;;  %v2143_v1 = vsel %vm15818_vm9, %v11468_v0, %v2142_v32  ;;  %v2155_v25 = vsel %vm15771_vm4, %v2144_v36, %v2154_v43  ;;  %v2036_v7 = vld [vmem:[#allocation2 + $0x44] sm:$0x22]  ;;  %vm15820_vm15 = vmmov %vm15816_vm10  ;;  %vm15821_vm10 = vcmask 842752   ;;  %3493 = vmatpush1.bf16.msra.mxu1 %v10544_v61  ;;  %v15823_v36 = vrot.slane %v11481_v17, 4 }
 0x13f   : > { %v2152_v5 = vsel %vm11213_vm14, %v2143_v1, %v2151_v11  ;;  %2156 = vst [vmem:[#allocation2 + $0x4c] sm:$0x4] %v2155_v25  ;;  %v2027_v22 = vsel %vm15820_vm15, %v15819_v63, %v2024_v44  ;;  %v2029_v62 = vsel %vm15821_vm10, %v2021_v21, %v2024_v44  ;;  %vm15822_vm6 = vmmov %vm15821_vm10  ;;  %v2244_v8 = vpop.permute.xlu0 %2243  ;;  %v2263_v11 = vld [vmem:[#allocation2 + $0x4c] sm:$0x8]  ;;  %v2260_v41 = vld [vmem:[#allocation2 + $0x44] sm:$0x88] }
 0x140   : > { %2153 = vst [vmem:[#allocation2 + $0x44] sm:$0x44] %v2152_v5  ;;  %v2028_v0 = vsel %vm15822_vm6, %v11453_v27, %v2027_v22  ;;  %v2040_v43 = vsel %vm11269_vm12, %v2029_v62, %v2039_v58  ;;  %v2247_v13 = vrot.slane %v2244_v8, 4  ;;  %v2352_v32 = vpop.permute.xlu1 %2351  ;;  %v3294_v21 = vrot.slane %v3289_v15, 4  ;;  %vm15824_vm9 = vmmov %vm15820_vm15  ;;  %v2368_v25 = vld [vmem:[#allocation2 + $0x58] sm:$0x11] }
 0x141   : > { %v2037_v18 = vsel %vm11305_vm5, %v2028_v0, %v2036_v7  ;;  %2041 = vst [vmem:[#allocation2 + $0x4c] sm:$0x2] %v2040_v43  ;;  %vm15825_vm15 = vcmask 662528   ;;  %v2355_v58 = vrot.slane %v2352_v32, 4  ;;  %v15827_v63 = vrot.slane %v11494_v2, 4  ;;  %vm15828_vm6 = vmmov %vm15824_vm9 }
 0x142   : > { %2038 = vst [vmem:[#allocation2 + $0x44] sm:$0x22] %v2037_v18  ;;  %v2251_v44 = vsel %vm15824_vm9, %v15823_v36, %v2247_v13  ;;  %v2253_v27 = vsel %vm15825_vm15, %v2244_v8, %v2247_v13  ;;  %vm15826_vm10 = vmmov %vm15825_vm15  ;;  %vm15829_vm9 = vcmask 654336   ;;  %v3306_v8 = vld [vmem:[#allocation2 + $0x78] sm:$0x11] }
 0x143   : > { %v2252_v61 = vsel %vm15826_vm10, %v11481_v17, %v2251_v44  ;;  %v2264_v1 = vsel %vm15767_vm13, %v2253_v27, %v2263_v11  ;;  %v12139_v7 = vpop.permute.xlu0 %3290  ;;  %v2359_v22 = vsel %vm15828_vm6, %v15827_v63, %v2355_v58  ;;  %v2361_v62 = vsel %vm15829_vm9, %v2352_v32, %v2355_v58  ;;  %vm15830_vm15 = vmmov %vm15829_vm9  ;;  %v2601_v44 = vld [vmem:[#allocation2 + $0x58] sm:$0x44] }
 0x144   : > { %v2261_v5 = vsel %vm11258_vm7, %v2252_v61, %v2260_v41  ;;  %2265 = vst [vmem:[#allocation2 + $0x4c] sm:$0x8] %v2264_v1  ;;  %v3295_v0 = vrot.slane %v12139_v7, 4  ;;  %v2360_v17 = vsel %vm15830_vm15, %v11494_v2, %v2359_v22  ;;  %v2372_v43 = vsel %vm11078_vm2, %v2361_v62, %v2371_v23  ;;  %v2586_v18 = vpop.permute.xlu1 %2585  ;;  %vm15831_vm10 = vmmov %vm15828_vm6  ;;  %v2604_v41 = vld [vmem:[#allocation2 + $0x60] sm:$0x4] }
 0x145   : > { %2262 = vst [vmem:[#allocation2 + $0x44] sm:$0x88] %v2261_v5  ;;  %v2369_v11 = vsel %vm15796_vm3, %v2360_v17, %v2368_v25  ;;  %2373 = vst [vmem:[#allocation2 + $0x60] sm:$0x1] %v2372_v43  ;;  %v2589_v32 = vrot.slane %v2586_v18, 4  ;;  %vm15832_vm6 = vcmask 457728  }
 0x146   : > { %v3297_v13 = vsel %vm15831_vm10, %v3294_v21, %v3295_v0  ;;  %2370 = vst [vmem:[#allocation2 + $0x58] sm:$0x11] %v2369_v11  ;;  %v15833_v23 = vrot.slane %v11526_v30, 4  ;;  %vm15834_vm9 = vmmov %vm15831_vm10  ;;  %vm15835_vm15 = vcmask 670720   ;;  %v2479_v1 = vld [vmem:[#allocation2 + $0x60] sm:$0x2] }
 0x147   : > { %v3299_v36 = vsel %vm15832_vm6, %v3289_v15, %v3297_v13  ;;  %v2460_v2 = vpop.permute.xlu0 %2459  ;;  %v2594_v61 = vsel %vm15835_vm15, %v2586_v18, %v2589_v32  ;;  %vm15836_vm10 = vmmov %vm15835_vm15  ;;  %v2476_v5 = vld [vmem:[#allocation2 + $0x58] sm:$0x22]  ;;  %v15837_v62 = vrot.slane %v11511_v38, 4  ;;  %v2860_v13 = vld [vmem:[#allocation2 + $0x6c] sm:$0x11] }
 0x148   : > { %v3307_v27 = vsel %vm15796_vm3, %v3299_v36, %v3306_v8  ;;  %v2592_v58 = vsel %vm15834_vm9, %v15833_v23, %v2589_v32  ;;  %v2463_v25 = vrot.slane %v2460_v2, 4  ;;  %v2605_v15 = vsel %vm15771_vm4, %v2594_v61, %v2604_v41  ;;  %v2845_v63 = vpop.permute.xlu1 %2844  ;;  %vm15838_vm6 = vmmov %vm15834_vm9  ;;  %v2863_v8 = vld [vmem:[#allocation2 + $0x74] sm:$0x1]  ;;  %v2729_v61 = vld [vmem:[#allocation2 + $0x58] sm:$0x88] }
 0x149   : > { %3308 = vst [vmem:[#allocation2 + $0x78] sm:$0x11] %v3307_v27  ;;  %v2593_v21 = vsel %vm15836_vm10, %v11526_v30, %v2592_v58  ;;  %2606 = vst [vmem:[#allocation2 + $0x60] sm:$0x4] %v2605_v15  ;;  %vm15839_vm9 = vcmask 646144   ;;  %v2848_v18 = vrot.slane %v2845_v63, 4 }
 0x14a   : > { %v2602_v22 = vsel %vm11213_vm14, %v2593_v21, %v2601_v44  ;;  %v2467_v17 = vsel %vm15838_vm6, %v15837_v62, %v2463_v25  ;;  %v2469_v43 = vsel %vm15839_vm9, %v2460_v2, %v2463_v25  ;;  %vm15840_vm15 = vmmov %vm15839_vm9  ;;  %v15841_v36 = vrot.slane %v11558_v59, 4  ;;  %v2732_v27 = vld [vmem:[#allocation2 + $0x60] sm:$0x8] }
 0x14b   : > { %2603 = vst [vmem:[#allocation2 + $0x58] sm:$0x44] %v2602_v22  ;;  %v2468_v30 = vsel %vm15840_vm15, %v11511_v38, %v2467_v17  ;;  %v2480_v11 = vsel %vm11269_vm12, %v2469_v43, %v2479_v1  ;;  %v2714_v41 = vpop.permute.xlu0 %2713  ;;  %vm15842_vm10 = vmmov %vm15838_vm6  ;;  %vm15843_vm6 = vcmask 654336   ;;  %v15845_v21 = vrot.slane %v11539_v28, 4  ;;  %v3092_v17 = vld [vmem:[#allocation2 + $0x6c] sm:$0x44] }
 0x14c   : > { %v2477_v32 = vsel %vm11305_vm5, %v2468_v30, %v2476_v5  ;;  %2481 = vst [vmem:[#allocation2 + $0x60] sm:$0x2] %v2480_v11  ;;  %v2851_v44 = vsel %vm15842_vm10, %v15841_v36, %v2848_v18  ;;  %v2853_v2 = vsel %vm15843_vm6, %v2845_v63, %v2848_v18  ;;  %v2717_v23 = vrot.slane %v2714_v41, 4  ;;  %vm15844_vm9 = vmmov %vm15843_vm6  ;;  %v3076_v1 = vpop.permute.xlu1 %3075  ;;  %v3095_v63 = vld [vmem:[#allocation2 + $0x74] sm:$0x4] }
 0x14d   : > { %2478 = vst [vmem:[#allocation2 + $0x58] sm:$0x22] %v2477_v32  ;;  %v2852_v38 = vsel %vm15844_vm9, %v11558_v59, %v2851_v44  ;;  %v2864_v58 = vsel %vm11078_vm2, %v2853_v2, %v2863_v8  ;;  %vm15846_vm15 = vmmov %vm15842_vm10  ;;  %vm15847_vm10 = vcmask 662528   ;;  %v3079_v22 = vrot.slane %v3076_v1, 4  ;;  %v2983_v44 = vld [vmem:[#allocation2 + $0x6c] sm:$0x22] }
 0x14e   : > { %v2861_v25 = vsel %vm15796_vm3, %v2852_v38, %v2860_v13  ;;  %2865 = vst [vmem:[#allocation2 + $0x74] sm:$0x1] %v2864_v58  ;;  %v2720_v15 = vsel %vm15846_vm15, %v15845_v21, %v2717_v23  ;;  %v2722_v5 = vsel %vm15847_vm10, %v2714_v41, %v2717_v23  ;;  %vm15848_vm6 = vmmov %vm15847_vm10  ;;  %v15849_v18 = vrot.slane %v11605_v50, 4  ;;  %v2986_v13 = vld [vmem:[#allocation2 + $0x74] sm:$0x2] }
 0x14f   : > { %2862 = vst [vmem:[#allocation2 + $0x6c] sm:$0x11] %v2861_v25  ;;  %v2721_v59 = vsel %vm15848_vm6, %v11539_v28, %v2720_v15  ;;  %v2733_v62 = vsel %vm15767_vm13, %v2722_v5, %v2732_v27  ;;  %v2967_v43 = vpop.permute.xlu0 %2966  ;;  %vm15850_vm9 = vmmov %vm15846_vm15  ;;  %vm15851_vm15 = vcmask 474112   ;;  %v15853_v58 = vrot.slane %v11580_v16, 4  ;;  %v652_v5 = vld [vmem:[#allocation2 + $0x10] sm:$0x2] }
 0x150   : > { %v2730_v8 = vsel %vm11258_vm7, %v2721_v59, %v2729_v61  ;;  %2734 = vst [vmem:[#allocation2 + $0x60] sm:$0x8] %v2733_v62  ;;  %v3083_v30 = vsel %vm15850_vm9, %v15849_v18, %v3079_v22  ;;  %v3085_v11 = vsel %vm15851_vm15, %v3076_v1, %v3079_v22  ;;  %v2970_v41 = vrot.slane %v2967_v43, 4  ;;  %v3337_v32 = vld [vmem:[#allocation2 + $0x78] sm:$0xff]  ;;  %vm15852_vm10 = vmmov %vm15851_vm15  ;;  %v629_v2 = vpop.permute.xlu1 %628 }
 0x151   : > { %2731 = vst [vmem:[#allocation2 + $0x58] sm:$0x88] %v2730_v8  ;;  %v3084_v28 = vsel %vm15852_vm10, %v11605_v50, %v3083_v30  ;;  %v3096_v36 = vsel %vm15771_vm4, %v3085_v11, %v3095_v63  ;;  %v9135_v27 = vcombine.high %v3337_v32, %v3337_v32  ;;  %v9134_v23 = vcombine.low %v3337_v32, %v3337_v32  ;;  %vm15854_vm6 = vmmov %vm15850_vm9 }
 0x152   : > { %v3093_v38 = vsel %vm11213_vm14, %v3084_v28, %v3092_v17  ;;  %3097 = vst [vmem:[#allocation2 + $0x74] sm:$0x4] %v3096_v36  ;;  %v2974_v61 = vsel %vm15854_vm6, %v15853_v58, %v2970_v41  ;;  %vm15855_vm9 = vcmask 482304   ;;  %v632_v25 = vrot.slane %v629_v2, 4  ;;  %vm15857_vm4 = vmmov %vm15854_vm6  ;;  %v649_v17 = vld [vmem:[#allocation2 + $0x8] sm:$0x22] }
 0x153   : > { %v2976_v1 = vsel %vm15855_vm9, %v2967_v43, %v2970_v41  ;;  %3094 = vst [vmem:[#allocation2 + $0x6c] sm:$0x44] %v3093_v38  ;;  %vm15856_vm15 = vmmov %vm15855_vm9  ;;  %v3185_v21 = vpop.permute.xlu0 %3184  ;;  %9139 = vmatprep.subr.msk.bf16.mxu1 %vm15857_vm4, %v9135_v27  ;;  %v15859_v63 = vrot.slane %v11664_v9, 4  ;;  %vm15861_vm6 = vcmask 1039360   ;;  %vm15863_vm9 = vnez %v15700_v33  ;;  %v3201_v43 = vld [vmem:[#allocation2 + $0x6c] sm:$0x88] }
 0x154   : > { %v2975_v55 = vsel %vm15856_vm15, %v11580_v16, %v2974_v61  ;;  %v2987_v50 = vsel %vm11269_vm12, %v2976_v1, %v2986_v13  ;;  %vm15858_vm10 = vmmov %vm15857_vm4  ;;  %v637_v59 = vsel %vm15861_vm6, %v629_v2, %v632_v25  ;;  %v3204_v16 = vld [vmem:[#allocation2 + $0x74] sm:$0x8]  ;;  %v3188_v62 = vrot.slane %v3185_v21, 4  ;;  %v991_v8 = vpop.permute.xlu1 %990  ;;  %v1009_v41 = vld [vmem:[#allocation2 + $0x24] sm:$0x1] }
 0x155   : > { %v3474_v6 = vsel %vm15858_vm10, %v9134_v23, 0  ;;  %v2984_v15 = vsel %vm11305_vm5, %v2975_v55, %v2983_v44  ;;  %2988 = vst [vmem:[#allocation2 + $0x74] sm:$0x2] %v2987_v50  ;;  %vm15860_vm14 = vmmov %vm15857_vm4  ;;  %v653_v56 = vsel %vm15863_vm9, %v637_v59, %v652_v5  ;;  %v15864_v30 = vrot.slane %v11635_v24, 4  ;;  %v1006_v36 = vld [vmem:[#allocation2 + $0x1c] sm:$0x11] }
 0x156   : > { %v635_v22 = vsel %vm15860_vm14, %v15859_v63, %v632_v25  ;;  %3495 = vmatpush1.bf16.msra.mxu1 %v3474_v6  ;;  %2985 = vst [vmem:[#allocation2 + $0x6c] sm:$0x22] %v2984_v15  ;;  %vm15862_vm12 = vmmov %vm15861_vm6  ;;  %vm15866_vm15 = vcmask 465920   ;;  %v994_v32 = vrot.slane %v991_v8, 4  ;;  %v12243_v2 = vld [vmem:[%s15456_s1] sm:$0xff]   ;;  %vm15868_vm10 = vcmask 457728  }
 0x157   : > { %v636_v34 = vsel %vm15862_vm12, %v11664_v9, %v635_v22  ;;  %654 = vst [vmem:[#allocation2 + $0x10] sm:$0x2] %v653_v56  ;;  %vm15865_vm5 = vmmov %vm15857_vm4  ;;  %v3194_v13 = vsel %vm15866_vm15, %v3185_v21, %v3188_v62  ;;  %v748_v44 = vpop.permute.xlu0 %747  ;;  %v12252_v38 = vld [vmem:[#allocation2 + $0x80] sm:$0xff]  ;;  %v15871_v58 = vunpack.i.h.bf16 %v11722_v51  ;;  %v15873_v1 = vld [vmem:[#allocation9_spill] sm:$0xff] }
 0x158   : > { %v650_v18 = vsel %vm11660_vm8, %v636_v34, %v649_v17  ;;  %v3192_v11 = vsel %vm15865_vm5, %v15864_v30, %v3188_v62  ;;  %vm15867_vm4 = vmmov %vm15866_vm15  ;;  %v3205_v28 = vsel %vm15767_vm13, %v3194_v13, %v3204_v16  ;;  %v999_v10 = vsel %vm15861_vm6, %v991_v8, %v994_v32  ;;  %15870 = vst [vmem:[#allocation27_spill] sm:$0xff] %v12252_v38  ;;  %v1247_v25 = vpop.permute.xlu1 %1246  ;;  %v15875_v50 = vld [vmem:[#allocation11_spill] sm:$0xff]  ;;  %v1262_v30 = vld [vmem:[#allocation2 + $0x1c] sm:$0x44] }
 0x159   : > { %651 = vst [vmem:[#allocation2 + $0x8] sm:$0x22] %v650_v18  ;;  %v3193_v9 = vsel %vm15867_vm4, %v11635_v24, %v3192_v11  ;;  %9140 = vmatmul.mubr.msk.bf16.vlgmr.msra.gmra.mrb[0].mxu1 %vm15868_vm10, %v12243_v2  ;;  %3206 = vst [vmem:[#allocation2 + $0x74] sm:$0x8] %v3205_v28  ;;  %v751_v23 = vrot.slane %v748_v44, 4  ;;  %vm15874_vm12 = vnez %v15873_v1  ;;  %v15876_v21 = vrot.slane %v15875_v50, 4 }
 0x15a   : > { %v3202_v27 = vsel %vm11258_vm7, %v3193_v9, %v3201_v43  ;;  %vm15869_vm14 = vmmov %vm15865_vm5  ;;  %3530 = vmatprep.mubr.bf16.mxu1 %v12252_v38  ;;  %v1010_v29 = vsel %vm15874_vm12, %v999_v10, %v1009_v41  ;;  %v1250_v5 = vrot.slane %v1247_v25, 4  ;;  %v768_v51 = vld [vmem:[#allocation2 + $0x8] sm:$0x44]  ;;  %vm15881_vm4 = vnez %v15720_v26  ;;  %v1265_v17 = vld [vmem:[#allocation2 + $0x24] sm:$0x4] }
 0x15b   : > { %v997_v24 = vsel %vm15869_vm14, %v11738_v40, %v994_v32  ;;  %3203 = vst [vmem:[#allocation2 + $0x6c] sm:$0x88] %v3202_v27  ;;  %vm15872_vm13 = vmmov %vm15861_vm6  ;;  %v771_v40 = vld [vmem:[#allocation2 + $0x10] sm:$0x4]  ;;  %v1119_v16 = vpop.permute.xlu0 %1118  ;;  %v12273_v62 = vld [vmem:[%s15456_s1 + $0x8] sm:$0xff]   ;;  %vm15884_vm14 = vcmask 1022976  }
 0x15c   : > { %v998_v61 = vsel %vm15872_vm13, %v15871_v58, %v997_v24  ;;  %1011 = vst [vmem:[#allocation2 + $0x24] sm:$0x1] %v1010_v29  ;;  %vm15877_vm7 = vmmov %vm15865_vm5  ;;  %vm15878_vm5 = vcmask 1031168   ;;  %v15882_v56 = vld [vmem:[#allocation15_spill] sm:$0xff]  ;;  %v1255_v8 = vsel %vm15884_vm14, %v1247_v25, %v1250_v5  ;;  %v1122_v18 = vrot.slane %v1119_v16, 4  ;;  %v15885_v11 = vld [vmem:[#allocation14_spill] sm:$0xff]  ;;  %v1463_v9 = vpop.permute.xlu1 %1462 }
 0x15d   : > { %v1007_v55 = vsel %vm11140_vm11, %v998_v61, %v1006_v36  ;;  %v754_v6 = vsel %vm15877_vm7, %v15876_v21, %v751_v23  ;;  %v756_v15 = vsel %vm15878_vm5, %v748_v44, %v751_v23  ;;  %vm15879_vm15 = vmmov %vm15878_vm5  ;;  %v15886_v13 = vunpack.i.h.bf16 %v15885_v11  ;;  %v1137_v36 = vld [vmem:[#allocation2 + $0x24] sm:$0x2]  ;;  %v15888_v44 = vld [vmem:[#allocation13_spill] sm:$0xff] }
 0x15e   : > { %1008 = vst [vmem:[#allocation2 + $0x1c] sm:$0x11] %v1007_v55  ;;  %v755_v63 = vsel %vm15879_vm15, %v15875_v50, %v754_v6  ;;  %v772_v59 = vsel %vm11678_vm1, %v756_v15, %v771_v40  ;;  %vm15883_vm10 = vmmov %vm15877_vm7  ;;  %v1266_v32 = vsel %vm11678_vm1, %v1255_v8, %v1265_v17  ;;  %v1466_v10 = vrot.slane %v1463_v9, 4  ;;  %v1134_v23 = vld [vmem:[#allocation2 + $0x1c] sm:$0x22]  ;;  %v15891_v58 = vld [vmem:[#allocation12_spill] sm:$0xff] }
 0x15f   : > { %v769_v34 = vsel %vm15881_vm4, %v755_v63, %v768_v51  ;;  %773 = vst [vmem:[#allocation2 + $0x10] sm:$0x4] %v772_v59  ;;  %v1253_v43 = vsel %vm15883_vm10, %v15882_v56, %v1250_v5  ;;  %vm15887_vm6 = vmmov %vm15884_vm14  ;;  %v15892_v61 = vunpack.i.h.bf16 %v15891_v58  ;;  %v1358_v55 = vpop.permute.xlu0 %1357  ;;  %vm15893_vm15 = vcmask 457728   ;;  %v1481_v50 = vld [vmem:[#allocation2 + $0x38] sm:$0x1] }
 0x160   : > { %770 = vst [vmem:[#allocation2 + $0x8] sm:$0x44] %v769_v34  ;;  %v1254_v41 = vsel %vm15887_vm6, %v15886_v13, %v1253_v43  ;;  %1267 = vst [vmem:[#allocation2 + $0x24] sm:$0x4] %v1266_v32  ;;  %v15894_v21 = vld [vmem:[#allocation17_spill] sm:$0xff]  ;;  %vm15896_vm14 = vcmask 850944   ;;  %v1692_v34 = vpop.permute.xlu1 %1691 }
 0x161   : > { %v1263_v28 = vsel %vm15881_vm4, %v1254_v41, %v1262_v30  ;;  %vm15889_vm13 = vmmov %vm15877_vm7  ;;  %9141 = vmatmul.mubr.msk.bf16.gmra.mrb[4].mxu1 %vm15893_vm15, %v12273_v62  ;;  %v15895_v6 = vrot.slane %v15894_v21, 4  ;;  %v1471_v5 = vsel %vm15896_vm14, %v1463_v9, %v1466_v10  ;;  %v1361_v51 = vrot.slane %v1358_v55, 4  ;;  %v1478_v63 = vld [vmem:[#allocation2 + $0x30] sm:$0x11]  ;;  %v1376_v56 = vld [vmem:[#allocation2 + $0x24] sm:$0x8] }
 0x162   : > { %v1125_v27 = vsel %vm15889_vm13, %v15888_v44, %v1122_v18  ;;  %vm15890_vm7 = vmmov %vm15878_vm5  ;;  %1264 = vst [vmem:[#allocation2 + $0x1c] sm:$0x44] %v1263_v28  ;;  %3573 = vmatprep.mubr.bf16.mxu1 %v12252_v38  ;;  %v15898_v43 = vld [vmem:[#allocation16_spill] sm:$0xff]  ;;  %v1695_v11 = vrot.slane %v1692_v34, 4  ;;  %v1373_v13 = vld [vmem:[#allocation2 + $0x1c] sm:$0x88]  ;;  %vm15903_vm15 = vnez %v15688_v49 }
 0x163   : > { %v1127_v24 = vsel %vm15890_vm7, %v1119_v16, %v1122_v18  ;;  %v1126_v29 = vsel %vm15878_vm5, %v15892_v61, %v1125_v27  ;;  %v1469_v15 = vsel %vm15883_vm10, %v15895_v6, %v1466_v10  ;;  %vm15897_vm6 = vmmov %vm15896_vm14  ;;  %v1482_v16 = vsel %vm15874_vm12, %v1471_v5, %v1481_v50  ;;  %v1574_v9 = vpop.permute.xlu0 %1573  ;;  %v1707_v10 = vld [vmem:[#allocation2 + $0x30] sm:$0x44]  ;;  %v3038_v22 = vld [vmem:[#allocation2 + $0x6c] sm:$0x22] }
 0x164   : > { %v1138_v25 = vsel %vm15863_vm9, %v1127_v24, %v1137_v36  ;;  %v1135_v40 = vsel %vm11660_vm8, %v1126_v29, %v1134_v23  ;;  %v1470_v59 = vsel %vm15897_vm6, %v15894_v21, %v1469_v15  ;;  %1483 = vst [vmem:[#allocation2 + $0x38] sm:$0x1] %v1482_v16  ;;  %v15899_v8 = vrot.slane %v15898_v43, 4  ;;  %vm15900_vm13 = vmmov %vm15883_vm10  ;;  %v1710_v36 = vld [vmem:[#allocation2 + $0x38] sm:$0x4]  ;;  %v15905_v23 = vld [vmem:[#allocation18_spill] sm:$0xff] }
 0x165   : > { %1139 = vst [vmem:[#allocation2 + $0x24] sm:$0x2] %v1138_v25  ;;  %1136 = vst [vmem:[#allocation2 + $0x1c] sm:$0x22] %v1135_v40  ;;  %v1479_v17 = vsel %vm11140_vm11, %v1470_v59, %v1478_v63  ;;  %vm15901_vm7 = vcmask 859136   ;;  %v1698_v44 = vsel %vm15883_vm10, %v11803_v47, %v1695_v11  ;;  %v1577_v24 = vrot.slane %v1574_v9, 4  ;;  %v1954_v25 = vpop.permute.xlu1 %1953 }
 0x166   : > { %v1364_v18 = vsel %vm15900_vm13, %v15899_v8, %v1361_v51  ;;  %v1366_v30 = vsel %vm15901_vm7, %v1358_v55, %v1361_v51  ;;  %1480 = vst [vmem:[#allocation2 + $0x30] sm:$0x11] %v1479_v17  ;;  %vm15902_vm5 = vmmov %vm15901_vm7  ;;  %v15906_v58 = vunpack.i.h.bf16 %v15905_v23  ;;  %v1592_v40 = vld [vmem:[#allocation2 + $0x38] sm:$0x2]  ;;  %v15908_v47 = vrot.slane %v11797_v3, 4 }
 0x167   : > { %v1365_v41 = vsel %vm15902_vm5, %v15898_v43, %v1364_v18  ;;  %v1377_v32 = vsel %vm15903_vm15, %v1366_v30, %v1376_v56  ;;  %vm15904_vm14 = vmmov %vm15902_vm5  ;;  %vm15910_vm7 = vcmask 842752   ;;  %v1957_v6 = vrot.slane %v1954_v25, 4  ;;  %v1589_v15 = vld [vmem:[#allocation2 + $0x30] sm:$0x22]  ;;  %v1820_v63 = vpop.permute.xlu0 %1819  ;;  %v1972_v16 = vld [vmem:[#allocation2 + $0x4c] sm:$0x1] }
 0x168   : > { %v1374_v28 = vsel %vm11358_vm0, %v1365_v41, %v1373_v13  ;;  %1378 = vst [vmem:[#allocation2 + $0x24] sm:$0x8] %v1377_v32  ;;  %v1700_v27 = vsel %vm15904_vm14, %v1692_v34, %v1695_v11  ;;  %vm15907_vm6 = vmmov %vm15902_vm5  ;;  %v1582_v21 = vsel %vm15910_vm7, %v1574_v9, %v1577_v24  ;;  %v15912_v34 = vld [vmem:[#allocation21_spill] sm:$0xff]  ;;  %v1823_v43 = vrot.slane %v1820_v63, 4  ;;  %v1969_v8 = vld [vmem:[#allocation2 + $0x44] sm:$0x11] }
 0x169   : > { %1375 = vst [vmem:[#allocation2 + $0x1c] sm:$0x88] %v1374_v28  ;;  %v1699_v61 = vsel %vm15907_vm6, %v15906_v58, %v1698_v44  ;;  %v1711_v29 = vsel %vm11678_vm1, %v1700_v27, %v1710_v36  ;;  %vm15909_vm13 = vmmov %vm15883_vm10  ;;  %v1593_v51 = vsel %vm15863_vm9, %v1582_v21, %v1592_v40  ;;  %v1960_v17 = vsel %vm15883_vm10, %v15912_v34, %v1957_v6  ;;  %v15914_v18 = vld [vmem:[#allocation19_spill] sm:$0xff]  ;;  %v2189_v13 = vpop.permute.xlu1 %2188  ;;  %v1835_v32 = vld [vmem:[#allocation2 + $0x30] sm:$0x88] }
 0x16a   : > { %v1708_v55 = vsel %vm15881_vm4, %v1699_v61, %v1707_v10  ;;  %1712 = vst [vmem:[#allocation2 + $0x38] sm:$0x4] %v1711_v29  ;;  %v1580_v50 = vsel %vm15909_vm13, %v15908_v47, %v1577_v24  ;;  %vm15911_vm5 = vmmov %vm15910_vm7  ;;  %v15915_v30 = vunpack.i.h.bf16 %v15914_v18  ;;  %v1838_v9 = vld [vmem:[#allocation2 + $0x38] sm:$0x8]  ;;  %v15917_v28 = vld [vmem:[#allocation22_spill] sm:$0xff]  ;;  %vm15919_vm7 = vcmask 850944  }
 0x16b   : > { %1709 = vst [vmem:[#allocation2 + $0x30] sm:$0x44] %v1708_v55  ;;  %v1581_v5 = vsel %vm15911_vm5, %v11797_v3, %v1580_v50  ;;  %1594 = vst [vmem:[#allocation2 + $0x38] sm:$0x2] %v1593_v51  ;;  %v1828_v44 = vsel %vm15919_vm7, %v1820_v63, %v1823_v43  ;;  %v2192_v27 = vrot.slane %v2189_v13, 4  ;;  %v15920_v24 = vld [vmem:[#allocation20_spill] sm:$0xff]  ;;  %v2082_v29 = vpop.permute.xlu0 %2081 }
 0x16c   : > { %v1590_v59 = vsel %vm11660_vm8, %v1581_v5, %v1589_v15  ;;  %vm15913_vm14 = vmmov %vm15911_vm5  ;;  %v15921_v10 = vunpack.i.h.bf16 %v15920_v24  ;;  %v1839_v58 = vsel %vm15903_vm15, %v1828_v44, %v1838_v9  ;;  %v2207_v61 = vld [vmem:[#allocation2 + $0x4c] sm:$0x4]  ;;  %v15923_v40 = vrot.slane %v11864_v53, 4  ;;  %v2204_v5 = vld [vmem:[#allocation2 + $0x44] sm:$0x44] }
 0x16d   : > { %v1962_v56 = vsel %vm15913_vm14, %v1954_v25, %v1957_v6  ;;  %1591 = vst [vmem:[#allocation2 + $0x30] sm:$0x22] %v1590_v59  ;;  %vm15916_vm6 = vmmov %vm15911_vm5  ;;  %vm15924_vm14 = vcmask 670720   ;;  %v2085_v21 = vrot.slane %v2082_v29, 4  ;;  %v2405_v59 = vpop.permute.xlu1 %2404  ;;  %v2100_v34 = vld [vmem:[#allocation2 + $0x4c] sm:$0x2] }
 0x16e   : > { %v1961_v3 = vsel %vm15916_vm6, %v15915_v30, %v1960_v17  ;;  %v1973_v11 = vsel %vm15874_vm12, %v1962_v56, %v1972_v16  ;;  %vm15918_vm13 = vmmov %vm15883_vm10  ;;  %1840 = vst [vmem:[#allocation2 + $0x38] sm:$0x8] %v1839_v58  ;;  %v2195_v47 = vsel %vm15883_vm10, %v15923_v40, %v2192_v27  ;;  %v2197_v50 = vsel %vm15924_vm14, %v2189_v13, %v2192_v27  ;;  %v15926_v17 = vld [vmem:[#allocation24_spill] sm:$0xff]  ;;  %v15929_v18 = vld [vmem:[#allocation23_spill] sm:$0xff] }
 0x16f   : > { %v1970_v41 = vsel %vm11140_vm11, %v1961_v3, %v1969_v8  ;;  %1974 = vst [vmem:[#allocation2 + $0x4c] sm:$0x1] %v1973_v11  ;;  %v1826_v36 = vsel %vm15918_vm13, %v15917_v28, %v1823_v43  ;;  %vm15922_vm5 = vmmov %vm15919_vm7  ;;  %v10549_v25 = vld [vmem:[#allocation2 + $0x10] ss:$20 sps:$4 sm:$0xff]   ;;  %v2208_v63 = vsel %vm11678_vm1, %v2197_v50, %v2207_v61  ;;  %vm15928_vm7 = vcmask 834560   ;;  %v2300_v13 = vpop.permute.xlu0 %2299 }
 0x170   : > { %1971 = vst [vmem:[#allocation2 + $0x44] sm:$0x11] %v1970_v41  ;;  %v1827_v23 = vsel %vm15922_vm5, %v15921_v10, %v1826_v36  ;;  %v10550_v6 = vld [vmem:[#allocation2 + $0x8] ss:$20 sps:$4 sm:$0xff]   ;;  %v10552_v15 = vld [vmem:[#allocation2 + $0xc] ss:$20 sps:$4 sm:$0xff]   ;;  %vm15925_vm6 = vmmov %vm15924_vm14  ;;  %9570 = vmatprep.subr.bf16.mxu0 %v10549_v25  ;;  %v2090_v43 = vsel %vm15928_vm7, %v2082_v29, %v2085_v21  ;;  %v15930_v30 = vunpack.i.h.bf16 %v15929_v18 }
 0x171   : > { %v1836_v55 = vsel %vm11358_vm0, %v1827_v23, %v1835_v32  ;;  %v2196_v51 = vsel %vm15925_vm6, %v11864_v53, %v2195_v47  ;;  %2209 = vst [vmem:[#allocation2 + $0x4c] sm:$0x4] %v2208_v63  ;;  %vm15927_vm13 = vmmov %vm15883_vm10  ;;  %v2408_v8 = vrot.slane %v2405_v59, 4  ;;  %3541 = vmatprep.subr.bf16.mxu1 %v10552_v15  ;;  %9571 = vmatpush3.bf16.msra.mxu0 %v10549_v25  ;;  %v2097_v53 = vld [vmem:[#allocation2 + $0x44] sm:$0x22]  ;;  %v15932_v9 = vrot.slane %v11959_v4, 4  ;;  %v2650_v23 = vpop.permute.xlu1 %2649 }
 0x172   : > { %1837 = vst [vmem:[#allocation2 + $0x30] sm:$0x88] %v1836_v55  ;;  %v2205_v16 = vsel %vm15881_vm4, %v2196_v51, %v2204_v5  ;;  %v2088_v56 = vsel %vm15927_vm13, %v15926_v17, %v2085_v21  ;;  %vm15931_vm5 = vmmov %vm15928_vm7  ;;  %v2101_v11 = vsel %vm15863_vm9, %v2090_v43, %v2100_v34  ;;  %3542 = vmatpush1.bf16.msra.mxu1 %v10550_v6  ;;  %v2423_v32 = vld [vmem:[#allocation2 + $0x60] sm:$0x1]  ;;  %vm15933_vm14 = vcmask 654336  }
 0x173   : > { %2206 = vst [vmem:[#allocation2 + $0x44] sm:$0x44] %v2205_v16  ;;  %v2089_v3 = vsel %vm15931_vm5, %v15930_v30, %v2088_v56  ;;  %2102 = vst [vmem:[#allocation2 + $0x4c] sm:$0x2] %v2101_v11  ;;  %v2411_v28 = vsel %vm15883_vm10, %v15932_v9, %v2408_v8  ;;  %v2413_v36 = vsel %vm15933_vm14, %v2405_v59, %v2408_v8  ;;  %v2303_v44 = vrot.slane %v2300_v13, 4  ;;  %v2522_v21 = vpop.permute.xlu0 %2521 }
 0x174   : > { %v2098_v41 = vsel %vm11660_vm8, %v2089_v3, %v2097_v53  ;;  %v2420_v27 = vld [vmem:[#allocation2 + $0x58] sm:$0x11]  ;;  %vm15934_vm6 = vmmov %vm15933_vm14  ;;  %v2424_v10 = vsel %vm15874_vm12, %v2413_v36, %v2423_v32  ;;  %v2318_v61 = vld [vmem:[#allocation2 + $0x4c] sm:$0x8]  ;;  %v15935_v29 = vrot.slane %v11878_v12, 4  ;;  %vm15937_vm7 = vcmask 662528  }
 0x175   : > { %2099 = vst [vmem:[#allocation2 + $0x44] sm:$0x22] %v2098_v41  ;;  %v2412_v24 = vsel %vm15934_vm6, %v11959_v4, %v2411_v28  ;;  %2425 = vst [vmem:[#allocation2 + $0x60] sm:$0x1] %v2424_v10  ;;  %v2308_v55 = vsel %vm15937_vm7, %v2300_v13, %v2303_v44  ;;  %v2653_v40 = vrot.slane %v2650_v23, 4  ;;  %v2525_v63 = vrot.slane %v2522_v21, 4  ;;  %v2912_v17 = vpop.permute.xlu1 %2911 }
 0x176   : > { %v2421_v58 = vsel %vm11140_vm11, %v2412_v24, %v2420_v27  ;;  %vm15936_vm13 = vmmov %vm15883_vm10  ;;  %v2315_v47 = vld [vmem:[#allocation2 + $0x44] sm:$0x88]  ;;  %v2319_v50 = vsel %vm15903_vm15, %v2308_v55, %v2318_v61  ;;  %v2668_v15 = vld [vmem:[#allocation2 + $0x60] sm:$0x4]  ;;  %v15940_v16 = vunpack.i.h.bf16 %v11984_v45  ;;  %v2915_v53 = vrot.slane %v2912_v17, 4 }
 0x177   : > { %v2306_v25 = vsel %vm15936_vm13, %v15935_v29, %v2303_v44  ;;  %2422 = vst [vmem:[#allocation2 + $0x58] sm:$0x11] %v2421_v58  ;;  %vm15938_vm5 = vmmov %vm15937_vm7  ;;  %v2656_v5 = vsel %vm15883_vm10, %v12008_v19, %v2653_v40  ;;  %v2665_v59 = vld [vmem:[#allocation2 + $0x58] sm:$0x44]  ;;  %v2540_v43 = vld [vmem:[#allocation2 + $0x60] sm:$0x2]  ;;  %v15944_v45 = vunpack.i.h.bf16 %v11943_v39  ;;  %v2778_v11 = vpop.permute.xlu0 %2777  ;;  %v15947_v39 = vunpack.i.h.bf16 %v12010_v20 }
 0x178   : > { %v2307_v4 = vsel %vm15938_vm5, %v11878_v12, %v2306_v25  ;;  %2320 = vst [vmem:[#allocation2 + $0x4c] sm:$0x8] %v2319_v50  ;;  %vm15939_vm14 = vmmov %vm15938_vm5  ;;  %vm15943_vm7 = vcmask 670720   ;;  %v2537_v18 = vld [vmem:[#allocation2 + $0x58] sm:$0x22]  ;;  %v2781_v9 = vrot.slane %v2778_v11, 4  ;;  %v15951_v20 = vunpack.i.h.bf16 %v11968_v31 }
 0x179   : > { %v2316_v6 = vsel %vm11358_vm0, %v2307_v4, %v2315_v47  ;;  %v2658_v51 = vsel %vm15939_vm14, %v2650_v23, %v2653_v40  ;;  %vm15941_vm6 = vmmov %vm15938_vm5  ;;  %v2530_v8 = vsel %vm15943_vm7, %v2522_v21, %v2525_v63  ;;  %v2930_v41 = vld [vmem:[#allocation2 + $0x74] sm:$0x1]  ;;  %vm15946_vm14 = vcmask 646144   ;;  %v2927_v28 = vld [vmem:[#allocation2 + $0x6c] sm:$0x11]  ;;  %v3130_v27 = vpop.permute.xlu1 %3129 }
 0x17a   : > { %2317 = vst [vmem:[#allocation2 + $0x44] sm:$0x88] %v2316_v6  ;;  %v2657_v12 = vsel %vm15941_vm6, %v15940_v16, %v2656_v5  ;;  %v2669_v34 = vsel %vm11678_vm1, %v2658_v51, %v2668_v15  ;;  %vm15942_vm13 = vmmov %vm15883_vm10  ;;  %v2541_v3 = vsel %vm15863_vm9, %v2530_v8, %v2540_v43  ;;  %v2920_v32 = vsel %vm15946_vm14, %v2912_v17, %v2915_v53  ;;  %v2793_v10 = vld [vmem:[#allocation2 + $0x58] sm:$0x88]  ;;  %v2796_v23 = vld [vmem:[#allocation2 + $0x60] sm:$0x8] }
 0x17b   : > { %v2666_v56 = vsel %vm15881_vm4, %v2657_v12, %v2665_v59  ;;  %2670 = vst [vmem:[#allocation2 + $0x60] sm:$0x4] %v2669_v34  ;;  %v2528_v19 = vsel %vm15942_vm13, %v11965_v57, %v2525_v63  ;;  %vm15945_vm5 = vmmov %vm15943_vm7  ;;  %v2918_v57 = vsel %vm15883_vm10, %v12021_v52, %v2915_v53  ;;  %v2931_v44 = vsel %vm15874_vm12, %v2920_v32, %v2930_v41  ;;  %v3148_v25 = vld [vmem:[#allocation2 + $0x74] sm:$0x4]  ;;  %v3023_v54 = vpop.permute.xlu0 %3022  ;;  %v15953_v47 = vld [vmem:[#allocation26_spill] sm:$0xff] }
 0x17c   : > { %2667 = vst [vmem:[#allocation2 + $0x58] sm:$0x44] %v2666_v56  ;;  %v2529_v30 = vsel %vm15945_vm5, %v15944_v45, %v2528_v19  ;;  %2542 = vst [vmem:[#allocation2 + $0x60] sm:$0x2] %v2541_v3  ;;  %vm15950_vm7 = vcmask 654336   ;;  %v3133_v61 = vrot.slane %v3130_v27, 4 }
 0x17d   : > { %v2538_v13 = vsel %vm11660_vm8, %v2529_v30, %v2537_v18  ;;  %vm15948_vm6 = vmmov %vm15946_vm14  ;;  %2932 = vst [vmem:[#allocation2 + $0x74] sm:$0x1] %v2931_v44  ;;  %v2786_v58 = vsel %vm15950_vm7, %v2778_v11, %v2781_v9  ;;  %vm15956_vm12 = vcmask 474112   ;;  %v3026_v21 = vrot.slane %v3023_v54, 4  ;;  %v3145_v15 = vld [vmem:[#allocation2 + $0x6c] sm:$0x44]  ;;  %v3293_v63 = vpop.permute.xlu1 %3292 }
 0x17e   : > { %2539 = vst [vmem:[#allocation2 + $0x58] sm:$0x22] %v2538_v13  ;;  %v2919_v36 = vsel %vm15948_vm6, %v15947_v39, %v2918_v57  ;;  %vm15949_vm13 = vmmov %vm15883_vm10  ;;  %v2797_v1 = vsel %vm15903_vm15, %v2786_v58, %v2796_v23  ;;  %v3138_v50 = vsel %vm15956_vm12, %v3130_v27, %v3133_v61  ;;  %v3041_v16 = vld [vmem:[#allocation2 + $0x74] sm:$0x2]  ;;  %vm15961_vm6 = vcmask 482304  }
 0x17f   : > { %v2928_v24 = vsel %vm11140_vm11, %v2919_v36, %v2927_v28  ;;  %v2784_v52 = vsel %vm15949_vm13, %v11991_v35, %v2781_v9  ;;  %vm15952_vm5 = vmmov %vm15950_vm7  ;;  %v10553_v55 = vld [vmem:[#allocation2 + $0x38] ss:$20 sps:$4 sm:$0xff]   ;;  %2798 = vst [vmem:[#allocation2 + $0x60] sm:$0x8] %v2797_v1  ;;  %v15954_v35 = vrot.slane %v15953_v47, 4  ;;  %v3149_v51 = vsel %vm11678_vm1, %v3138_v50, %v3148_v25  ;;  %v3241_v18 = vpop.permute.xlu0 %3240 }
 0x180   : > { %2929 = vst [vmem:[#allocation2 + $0x6c] sm:$0x11] %v2928_v24  ;;  %v2785_v29 = vsel %vm15952_vm5, %v15951_v20, %v2784_v52  ;;  %vm15955_vm11 = vmmov %vm15883_vm10  ;;  %9572 = vmatprep.subr.bf16.mxu0 %v10553_v55  ;;  %v15958_v12 = vld [vmem:[#allocation25_spill] sm:$0xff]  ;;  %v3031_v56 = vsel %vm15961_vm6, %v3023_v54, %v3026_v21  ;;  %v3312_v43 = vld [vmem:[#allocation2 + $0x88] sm:$0x1]  ;;  %v3296_v19 = vrot.slane %v3293_v63, 4 }
 0x181   : > { %v2794_v40 = vsel %vm11358_vm0, %v2785_v29, %v2793_v10  ;;  %v3136_v4 = vsel %vm15955_vm11, %v15954_v35, %v3133_v61  ;;  %v10554_v31 = vld [vmem:[#allocation2 + $0x30] ss:$20 sps:$4 sm:$0xff]   ;;  %v10556_v6 = vld [vmem:[#allocation2 + $0x34] ss:$20 sps:$4 sm:$0xff]   ;;  %vm15957_vm10 = vmmov %vm15956_vm12  ;;  %3150 = vst [vmem:[#allocation2 + $0x74] sm:$0x4] %v3149_v51  ;;  %9573 = vmatpush3.bf16.msra.mxu0 %v10553_v55  ;;  %v3042_v26 = vsel %vm15863_vm9, %v3031_v56, %v3041_v16 }
 0x182   : > { %2795 = vst [vmem:[#allocation2 + $0x58] sm:$0x88] %v2794_v40  ;;  %v3137_v5 = vsel %vm15957_vm10, %v15953_v47, %v3136_v4  ;;  %v15959_v34 = vrot.slane %v15958_v12, 4  ;;  %vm15960_vm14 = vmmov %vm15955_vm11  ;;  %3543 = vmatprep.subr.bf16.mxu1 %v10556_v6  ;;  %v3309_v53 = vld [vmem:[#allocation2 + $0x80] sm:$0x11]  ;;  %vm15964_vm13 = vcmask 457728  }
 0x183   : > { %v3146_v59 = vsel %vm15881_vm4, %v3137_v5, %v3145_v15  ;;  %vm15962_vm1 = vmmov %vm15961_vm6  ;;  %3544 = vmatpush1.bf16.msra.mxu1 %v10554_v31  ;;  %3043 = vst [vmem:[#allocation2 + $0x74] sm:$0x2] %v3042_v26  ;;  %v3302_v3 = vsel %vm15964_vm13, %v3293_v63, %v3296_v19  ;;  %v3244_v11 = vrot.slane %v3241_v18, 4  ;;  %v3259_v46 = vld [vmem:[#allocation2 + $0x74] sm:$0x8]  ;;  %vm15967_vm9 = vcmask 465920  }
 0x184   : > { %v3029_v17 = vsel %vm15960_vm14, %v15959_v34, %v3026_v21  ;;  %3147 = vst [vmem:[#allocation2 + $0x6c] sm:$0x44] %v3146_v59  ;;  %vm15963_vm4 = vmmov %vm15955_vm11  ;;  %v3313_v33 = vsel %vm11078_vm2, %v3302_v3, %v3312_v43  ;;  %v3256_v32 = vld [vmem:[#allocation2 + $0x6c] sm:$0x88]  ;;  %vm15996_vm14 = vcmask 1039360   ;;  %vm15997_vm6 = vcmask 1031168  }
 0x185   : > { %v3030_v8 = vsel %vm15962_vm1, %v15958_v12, %v3029_v17  ;;  %v3300_v30 = vsel %vm15963_vm4, %v3295_v0, %v3296_v19  ;;  %vm15965_vm7 = vmmov %vm15964_vm13  ;;  %3314 = vst [vmem:[#allocation2 + $0x88] sm:$0x1] %v3313_v33  ;;  %v3249_v0 = vsel %vm15967_vm9, %v3241_v18, %v3244_v11  ;;  %v15977_v24 = vld [vmem:[#allocation8_spill] sm:$0xff]  ;;  %vm15998_vm1 = vcmask 859136  }
 0x186   : > { %v3039_v45 = vsel %vm11660_vm8, %v3030_v8, %v3038_v22  ;;  %v3301_v13 = vsel %vm15965_vm7, %v12139_v7, %v3300_v30  ;;  %vm15966_vm8 = vmmov %vm15963_vm4  ;;  %v3260_v60 = vsel %vm15903_vm15, %v3249_v0, %v3259_v46  ;;  %v12500_v10 = vsub.s32 0, %v15977_v24 }
 0x187   : > { %3040 = vst [vmem:[#allocation2 + $0x6c] sm:$0x22] %v3039_v45  ;;  %v3310_v41 = vsel %vm15796_vm3, %v3301_v13, %v3309_v53  ;;  %v3247_v57 = vsel %vm15966_vm8, %v3243_v48, %v3244_v11  ;;  %vm15968_vm5 = vmmov %vm15967_vm9  ;;  %v12510_v23 = vsub.s32 1, %v15977_v24  ;;  %v15577_v3 = vsub.s32 4, %v15977_v24 }
 0x188   : > { %3311 = vst [vmem:[#allocation2 + $0x80] sm:$0x11] %v3310_v41  ;;  %v3248_v9 = vsel %vm15968_vm5, %v12050_v42, %v3247_v57  ;;  %3261 = vst [vmem:[#allocation2 + $0x74] sm:$0x8] %v3260_v60  ;;  %v15976_v42 = vmov 0.0   ;;  %v15578_v13 = vsub.s32 2, %v15977_v24 }
 0x189   : > { %v3257_v14 = vsel %vm11358_vm0, %v3248_v9, %v3256_v32  ;;  %vm15969_vm2 = vmmov %vm15963_vm4  ;;  %9801 = vrot.lane.b32.xlu1 %v15976_v42, %s15656_s14  ;;  %9786 = vrot.lane.b32.xlu0 %v15976_v42, %s15656_s14  ;;  %15978 = vst [vmem:[#allocation9_spill] sm:$0xff] %v12500_v10  ;;  %v15579_v33 = vsub.s32 3, %v15977_v24  ;;  %vm16009_vm9 = vcmask 842752  }
 0x18a   : > { %3258 = vst [vmem:[#allocation2 + $0x6c] sm:$0x88] %v3257_v14  ;;  %vm15970_vm3 = vmmov %vm15969_vm2 }
 0x18b   : > { %vm15971_vm15 = vmmov %vm15969_vm2  ;;  %15979 = vst [vmem:[#allocation11_spill] sm:$0xff] %v12510_v23 }
 0x18c   : > { %v10561_v7 = vld [vmem:[#allocation2 + $0x88] ss:$0 sps:$4 sm:$0xff]   ;;  %vm15972_vm0 = vmmov %vm15969_vm2 }
 0x18d   : > { %v3486_v49 = vsel %vm15971_vm15, %v10561_v7, 0  ;;  %vm15973_vm11 = vmmov %vm15965_vm7  ;;  %9806 = vrot.lane.b32.xlu1 %v15976_v42, %s10855_s17  ;;  %9791 = vrot.lane.b32.xlu0 %v15976_v42, %s10855_s17 }
 0x18e   : > { %vm15974_vm12 = vmmov %vm15965_vm7 }
 0x18f   : > { %v10557_v28 = vld [vmem:[#allocation2 + $0x60] ss:$20 sps:$4 sm:$0xff]   ;;  %vm15975_vm10 = vmmov %vm15965_vm7 }
 0x190   : > { %v3338_v39 = vld [vmem:[#allocation2 + $0x80] sm:$0xff]  ;;  %9574 = vmatprep.subr.bf16.mxu0 %v10557_v28  ;;  %vm15999_vm4 = vmmov %vm15996_vm14 }
 0x191   : > { %v10558_v36 = vld [vmem:[#allocation2 + $0x58] ss:$20 sps:$4 sm:$0xff]   ;;  %v10560_v48 = vld [vmem:[#allocation2 + $0x5c] ss:$20 sps:$4 sm:$0xff]   ;;  %9575 = vmatpush3.bf16.msra.mxu0 %v10557_v28  ;;  %v9137_v44 = vcombine.high %v3338_v39, %v3338_v39  ;;  %v9136_v27 = vcombine.low %v3338_v39, %v3338_v39  ;;  %vm16000_vm13 = vmmov %vm15997_vm6 }
 0x192   : > { %3545 = vmatprep.subr.bf16.mxu1 %v10560_v48  ;;  %9670 = vmatprep.subr.msk.bf16.mxu0 %vm15969_vm2, %v10561_v7  ;;  %vm16001_vm7 = vmmov %vm15998_vm1 }
 0x193   : > { %3546 = vmatpush1.bf16.msra.mxu1 %v10558_v36  ;;  %v3480_v37 = vsel %vm15972_vm0, %v9136_v27, 0  ;;  %vm16005_vm8 = vmmov %vm15999_vm4  ;;  %vm16023_vm0 = vcmask 662528  }
 0x194   : > { %9142 = vmatprep.subr.msk.bf16.mxu1 %vm15970_vm3, %v9137_v44  ;;  %vm16012_vm5 = vmmov %vm15997_vm6 }
 0x195   : > { %9577 = vmatpush3.bf16.msra.mxu0 %v3486_v49  ;;  %vm16016_vm2 = vmmov %vm15999_vm4 }
 0x196   : > { %vm16019_vm3 = vmmov %vm15998_vm1 }
 0x197   : > { %3548 = vmatpush1.bf16.msra.mxu1 %v3480_v37  ;;  %vm16022_vm15 = vmmov %vm16016_vm2 }
 0x198   : > { %9579 = vmatmul.mubr.msk.bf16.vlgmr.msra.gmra.mrb[0].mxu0 %vm15973_vm11, %v12273_v62  ;;  %vm16025_vm11 = vmmov %vm16016_vm2 }
 0x19a   : > { %9143 = vmatmul.mubr.msk.bf16.vlgmr.msra.gmra.mrb[8].mxu1 %vm15974_vm12, %v12243_v2  ;;  %vm16028_vm12 = vmmov %vm16012_vm5 }
 0x19b   : > { %3583 = vmatprep.mubr.bf16.mxu1 %v12252_v38  ;;  %v12502_v2 = vpop.permute.xlu0 %3346  ;;  %v12512_v58 = vpop.permute.xlu1 %3351 }
 0x19f   : > { %v12528_v31 = vpop.permute.xlu1 %3356  ;;  %v12534_v51 = vpop.permute.xlu0 %3361 }
 0x1a2   : > { %9144 = vmatmul.mubr.msk.bf16.gmra.mrb[12].mxu1 %vm15975_vm10, %v12273_v62  ;;  %v12507_v62 = vld [vmem:[%s15458_s3] sm:$0x1f]  ;;  %vm16030_vm10 = vcmask 850944  }
 0x1a3   : > { %v12517_v29 = vrot.slane %v12507_v62, %v12500_v10  ;;  %v3672_v25 = vrot.slane %v12507_v62, %v12510_v23  ;;  %v3684_v57 = vrot.slane %v12507_v62, %v15577_v3  ;;  %v3676_v14 = vrot.slane %v12507_v62, %v15578_v13  ;;  %v10585_v23 = vld [vmem:[%s15459_s4 + $0xa8] ss:$12 sps:$4 sm:$0xff]  }
 0x1a4   : > { %v3680_v44 = vrot.slane %v12507_v62, %v15579_v33 }
 0x22c   : > { %v3522_v52 = vpop.f32.mrb[0].mxu1 }
 0x22d   : > { %v3523_v61 = vadd.f32 %v3522_v52, %v12502_v2  ;;  %v3524_v20 = vpop.f32.mrb[1].mxu1 }
 0x22e   : > { %v3525_v1 = vadd.f32 %v3524_v20, %v12502_v2  ;;  %v3526_v54 = vpop.f32.mrb[2].mxu1 }
 0x22f   : > { %v3643_v55 = vmax.f32 %v3523_v61, 0.0  ;;  %v3528_v40 = vpop.f32.mrb[3].mxu1  ;;  %v3527_v11 = vadd.f32 %v3526_v54, %v12512_v58 }
 0x230   : > { %v3644_v47 = vmax.f32 %v3525_v1, 0.0  ;;  %v3529_v35 = vadd.f32 %v3528_v40, %v12512_v58 }
 0x231   : > { %v12524_v4 = vmul.f32 %v12517_v29, %v3643_v55  ;;  %v3648_v9 = vmax.f32 %v3527_v11, 0.0 }
 0x232   : > { %v12526_v50 = vmul.f32 %v3672_v25, %v3644_v47  ;;  %v3649_v21 = vmax.f32 %v3529_v35, 0.0 }
 0x234   : > { %v12530_v6 = vmul.f32 %v3672_v25, %v3649_v21  ;;  %v3532_v15 = vpop.f32.mrb[4].mxu1  ;;  %v9830_v5 = vpack.i.bf16 %v12526_v50, %v12524_v4 }
 0x235   : > { %v3533_v63 = vadd.f32 %v3532_v15, %v12528_v31  ;;  %v3534_v59 = vpop.f32.mrb[5].mxu1 }
 0x236   : > { %v3535_v16 = vadd.f32 %v3534_v59, %v12528_v31  ;;  %9831 = vrot.lane.b32.xlu0 %v9830_v5, %s10857_s19  ;;  %9811 = vrot.lane.b32.xlu1 %v9830_v5, %s10853_s15  ;;  %v3536_v12 = vpop.f32.mrb[6].mxu1 }
 0x237   : > { %v3653_v34 = vmax.f32 %v3533_v63, 0.0  ;;  %v3537_v17 = vadd.f32 %v3536_v12, %v12534_v51  ;;  %v3538_v56 = vpop.f32.mrb[7].mxu1 }
 0x238   : > { %v3654_v43 = vmax.f32 %v3535_v16, 0.0  ;;  %v3539_v19 = vadd.f32 %v3538_v56, %v12534_v51 }
 0x239   : > { %v12543_v22 = vmul.f32 %v12517_v29, %v3653_v34  ;;  %v3658_v8 = vmax.f32 %v3537_v17, 0.0 }
 0x23a   : > { %v12545_v26 = vmul.f32 %v3672_v25, %v3654_v43  ;;  %9841 = vrot.lane.b32.xlu0 %v9830_v5, %s10860_s22  ;;  %9816 = vrot.lane.b32.xlu1 %v9830_v5, %s15656_s14  ;;  %v3659_v53 = vmax.f32 %v3539_v19, 0.0 }
 0x23b   : > { %v12550_v18 = vmul.f32 %v12517_v29, %v3658_v8 }
 0x23c   : > { %15980 = vst [vmem:[#allocation10_spill] sm:$0xff] %v12545_v26  ;;  %v9850_v45 = vpack.i.bf16 %v12545_v26, %v12543_v22  ;;  %v12554_v30 = vmul.f32 %v3672_v25, %v3659_v53 }
 0x23d   : > { %15981 = vst [vmem:[#allocation15_spill] sm:$0xff] %v12550_v18 }
 0x23e   : > { %15982 = vst [vmem:[#allocation14_spill] sm:$0xff] %v12554_v30  ;;  %9851 = vrot.lane.b32.xlu0 %v9850_v45, %s10853_s15  ;;  %9821 = vrot.lane.b32.xlu1 %v9830_v5, %s10855_s17 }
 0x242   : > { %9856 = vrot.lane.b32.xlu0 %v9850_v45, %s15656_s14  ;;  %9826 = vrot.lane.b32.xlu1 %v9830_v5, %s10856_s18 }
 0x246   : > { %9861 = vrot.lane.b32.xlu0 %v9850_v45, %s10855_s17  ;;  %9836 = vrot.lane.b32.xlu1 %v9830_v5, %s15734_s20 }
 0x24a   : > { %9866 = vrot.lane.b32.xlu0 %v9850_v45, %s10856_s18  ;;  %9846 = vrot.lane.b32.xlu1 %v9830_v5, %s10861_s23 }
 0x24e   : > { %9871 = vrot.lane.b32.xlu1 %v9850_v45, %s10857_s19  ;;  %9876 = vrot.lane.b32.xlu0 %v9850_v45, %s15734_s20 }
 0x252   : > { %9881 = vrot.lane.b32.xlu1 %v9850_v45, %s10860_s22  ;;  %9886 = vrot.lane.b32.xlu0 %v9850_v45, %s10861_s23 }
 0x26b   : > { %v9580_v41 = vpop.f32.mrb[0].mxu0 }
 0x26c   : > { %v3637_v46 = vadd.f32 %v9580_v41, %v12528_v31  ;;  %v3628_v32 = vpop.f32.mrb[1].mxu0 }
 0x26d   : > { %v3575_v0 = vpop.f32.mrb[8].mxu1  ;;  %v3629_v7 = vadd.f32 %v3628_v32, %v12502_v2  ;;  %v9581_v39 = vpop.f32.mrb[2].mxu0 }
 0x26e   : > { %v3576_v60 = vadd.f32 %v3575_v0, %v12502_v2  ;;  %v3577_v28 = vpop.f32.mrb[9].mxu1  ;;  %v3657_v36 = vmax.f32 %v3637_v46, 0.0  ;;  %v3640_v27 = vadd.f32 %v9581_v39, %v12534_v51  ;;  %v3631_v37 = vpop.f32.mrb[3].mxu0 }
 0x26f   : > { %v3578_v48 = vadd.f32 %v3577_v28, %v12502_v2  ;;  %v3579_v49 = vpop.f32.mrb[10].mxu1  ;;  %v3647_v61 = vmax.f32 %v3629_v7, 0.0  ;;  %v3632_v20 = vadd.f32 %v3631_v37, %v12512_v58  ;;  %v12591_v2 = vmul.f32 %v12517_v29, %v3648_v9  ;;  %v12656_v28 = vpop.permute.xlu0 %9781 }
 0x270   : > { %v3645_v52 = vmax.f32 %v3576_v60, 0.0  ;;  %v3581_v1 = vpop.f32.mrb[11].mxu1  ;;  %v12587_v25 = vmul.f32 %v3684_v57, %v3657_v36  ;;  %v3662_v55 = vmax.f32 %v3640_v27, 0.0 }
 0x271   : > { %v3646_v54 = vmax.f32 %v3578_v48, 0.0  ;;  %v3582_v40 = vadd.f32 %v3581_v1, %v12512_v58  ;;  %v12595_v62 = vmul.f32 %v3684_v57, %v3647_v61  ;;  %v3652_v35 = vmax.f32 %v3632_v20, 0.0 }
 0x272   : > { %15983 = vst [vmem:[#allocation13_spill] sm:$0xff] %v12587_v25  ;;  %v12593_v47 = vmul.f32 %v3676_v14, %v3645_v52  ;;  %v12599_v15 = vmul.f32 %v3684_v57, %v3662_v55 }
 0x273   : > { %v12597_v21 = vmul.f32 %v3680_v44, %v3646_v54  ;;  %v3651_v5 = vmax.f32 %v3582_v40, 0.0  ;;  %v12601_v63 = vmul.f32 %v3684_v57, %v3652_v35  ;;  %v12664_v36 = vpop.permute.xlu0 %9786 }
 0x274   : > { %15984 = vst [vmem:[#allocation12_spill] sm:$0xff] %v12599_v15  ;;  %v9910_v59 = vpack.i.bf16 %v12591_v2, %v12593_v47 }
 0x275   : > { %v12605_v16 = vmul.f32 %v3680_v44, %v3651_v5  ;;  %v3585_v12 = vpop.f32.mrb[12].mxu1 }
 0x276   : > { %v3586_v29 = vadd.f32 %v3585_v12, %v12528_v31  ;;  %v3587_v34 = vpop.f32.mrb[13].mxu1  ;;  %9911 = vrot.lane.b32.xlu1 %v9910_v59, %s10857_s19  ;;  %9891 = vrot.lane.b32.xlu0 %v9910_v59, %s10853_s15 }
 0x277   : > { %15985 = vst [vmem:[#allocation17_spill] sm:$0xff] %v12605_v16  ;;  %v3588_v17 = vadd.f32 %v3587_v34, %v12528_v31  ;;  %v3589_v56 = vpop.f32.mrb[14].mxu1  ;;  %v9930_v31 = vpack.i.bf16 %v12595_v62, %v12597_v21  ;;  %v12672_v27 = vpop.permute.xlu0 %9791  ;;  %v10566_v34 = vld [vmem:[%s15459_s4 + $0x4] ss:$12 sps:$4 sm:$0xff]  }
 0x278   : > { %v3655_v43 = vmax.f32 %v3586_v29, 0.0  ;;  %v3590_v19 = vadd.f32 %v3589_v56, %v12534_v51  ;;  %v3591_v8 = vpop.f32.mrb[15].mxu1  ;;  %v10564_v29 = vld [vmem:[%s15459_s4] ss:$12 sps:$4 sm:$0xff]   ;;  %5627 = vmatprep.subr.bf16.mxu1 %v10566_v34  ;;  %v9794_v24 = vunpack.i.h.bf16 %v12672_v27 }
 0x279   : > { %v3656_v53 = vmax.f32 %v3588_v17, 0.0  ;;  %v3592_v45 = vadd.f32 %v3591_v8, %v12534_v51  ;;  %v3580_v51 = vadd.f32 %v3579_v49, %v12512_v58  ;;  %v10010_v58 = vpack.i.bf16 %v12601_v63, %v12605_v16  ;;  %5628 = vmatpush1.bf16.msra.mxu1 %v10564_v29 }
 0x27a   : > { %v12613_v11 = vmul.f32 %v3676_v14, %v3655_v43  ;;  %v3660_v41 = vmax.f32 %v3590_v19, 0.0  ;;  %9921 = vrot.lane.b32.xlu1 %v9910_v59, %s10860_s22  ;;  %9896 = vrot.lane.b32.xlu0 %v9910_v59, %s15656_s14  ;;  %v10567_v43 = vld [vmem:[%s15459_s4 + $0x18] ss:$12 sps:$4 sm:$0xff]   ;;  %v10569_v19 = vld [vmem:[%s15459_s4 + $0x1c] ss:$12 sps:$4 sm:$0xff]   ;;  %v9783_v8 = vunpack.i.l.bf16 %v12656_v28 }
 0x27b   : > { %v12617_v46 = vmul.f32 %v3680_v44, %v3656_v53  ;;  %v3661_v57 = vmax.f32 %v3592_v45, 0.0  ;;  %v3650_v9 = vmax.f32 %v3580_v51, 0.0  ;;  %5629 = vmatprep.subr.bf16.mxu1 %v10569_v19  ;;  %v9788_v51 = vunpack.i.l.bf16 %v12664_v36 }
 0x27c   : > { %15986 = vst [vmem:[#allocation16_spill] sm:$0xff] %v12613_v11  ;;  %v12619_v0 = vmul.f32 %v3676_v14, %v3660_v41  ;;  %v10570_v41 = vld [vmem:[%s15459_s4 + $0x30] ss:$12 sps:$4 sm:$0xff]   ;;  %v9793_v19 = vunpack.i.l.bf16 %v12672_v27 }
 0x27d   : > { %15987 = vst [vmem:[#allocation18_spill] sm:$0xff] %v12617_v46  ;;  %v12623_v32 = vmul.f32 %v3680_v44, %v3661_v57  ;;  %v12634_v60 = vmul.f32 %v3676_v14, %v3650_v9  ;;  %v12654_v14 = vpop.permute.xlu1 %9796  ;;  %v10050_v44 = vpack.i.bf16 %v12550_v18, %v12613_v11  ;;  %v12684_v52 = vpack.i.bf16 %v12587_v25, %v12617_v46  ;;  %v10572_v57 = vld [vmem:[%s15459_s4 + $0x34] ss:$12 sps:$4 sm:$0xff]  }
 0x27e   : > { %15988 = vst [vmem:[#allocation21_spill] sm:$0xff] %v12619_v0  ;;  %9931 = vrot.lane.b32.xlu1 %v9930_v31, %s10853_s15  ;;  %9901 = vrot.lane.b32.xlu0 %v9910_v59, %s10855_s17  ;;  %15991 = vst [vmem:[#allocation20_spill] sm:$0xff] %v12654_v14  ;;  %v10105_v55 = vpack.i.bf16 %v12619_v0, %v12554_v30 }
 0x27f   : > { %15989 = vst [vmem:[#allocation19_spill] sm:$0xff] %v12623_v32  ;;  %15990 = vst [vmem:[#allocation22_spill] sm:$0xff] %v12634_v60  ;;  %v9965_v7 = vpack.i.bf16 %v12634_v60, %v12530_v6  ;;  %v12721_v12 = vpack.i.bf16 %v12599_v15, %v12623_v32  ;;  %5630 = vmatpush1.bf16.msra.mxu1 %v10567_v43 }
 0x280   : > { %5631 = vmatprep.subr.bf16.mxu1 %v10572_v57  ;;  %v10591_v57 = vld [vmem:[%s15459_s4 + $0xc8] ss:$12 sps:$4 sm:$0xff]  }
 0x281   : > { %v12660_v39 = vpop.permute.xlu1 %9801  ;;  %9379 = vmatprep.subr.bf16.mxu0 %v10591_v57 }
 0x282   : > { %9941 = vrot.lane.b32.xlu1 %v9930_v31, %s10855_s17  ;;  %9906 = vrot.lane.b32.xlu0 %v9910_v59, %s10856_s18  ;;  %15992 = vst [vmem:[#allocation24_spill] sm:$0xff] %v12660_v39 }
 0x283   : > { %5632 = vmatpush1.bf16.msra.mxu1 %v10570_v41  ;;  %v10576_v41 = vld [vmem:[%s15459_s4 + $0x60] ss:$12 sps:$4 sm:$0xff]  }
 0x285   : > { %v12668_v48 = vpop.permute.xlu1 %9806 }
 0x286   : > { %9951 = vrot.lane.b32.xlu1 %v9930_v31, %s10857_s19  ;;  %9916 = vrot.lane.b32.xlu0 %v9910_v59, %s15734_s20  ;;  %15993 = vst [vmem:[#allocation23_spill] sm:$0xff] %v12668_v48 }
 0x28a   : > { %9956 = vrot.lane.b32.xlu1 %v9930_v31, %s15734_s20  ;;  %9926 = vrot.lane.b32.xlu0 %v9910_v59, %s10861_s23 }
 0x28e   : > { %9961 = vrot.lane.b32.xlu1 %v9930_v31, %s10860_s22  ;;  %9936 = vrot.lane.b32.xlu0 %v9930_v31, %s15656_s14 }
 0x292   : > { %9966 = vrot.lane.b32.xlu1 %v9965_v7, %s10853_s15  ;;  %9946 = vrot.lane.b32.xlu0 %v9930_v31, %s10856_s18 }
 0x296   : > { %9971 = vrot.lane.b32.xlu1 %v9965_v7, %s15656_s14  ;;  %9986 = vrot.lane.b32.xlu0 %v9965_v7, %s10857_s19 }
 0x29a   : > { %9976 = vrot.lane.b32.xlu1 %v9965_v7, %s10855_s17  ;;  %9996 = vrot.lane.b32.xlu0 %v9965_v7, %s10860_s22 }
 0x29e   : > { %9981 = vrot.lane.b32.xlu1 %v9965_v7, %s10856_s18  ;;  %10011 = vrot.lane.b32.xlu0 %v10010_v58, %s10853_s15 }
 0x2a2   : > { %9991 = vrot.lane.b32.xlu1 %v9965_v7, %s15734_s20  ;;  %10021 = vrot.lane.b32.xlu0 %v10010_v58, %s10855_s17 }
 0x2a6   : > { %10001 = vrot.lane.b32.xlu1 %v9965_v7, %s10861_s23  ;;  %10031 = vrot.lane.b32.xlu0 %v10010_v58, %s10857_s19  ;;  %v10573_v7 = vld [vmem:[%s15459_s4 + $0x48] ss:$12 sps:$4 sm:$0xff]  }
 0x2a8   : > { %v12676_v49 = vpop.permute.xlu1 %9811  ;;  %v12680_v37 = vpop.permute.xlu0 %9831 }
 0x2a9   : > { %v9833_v10 = vunpack.i.l.bf16 %v12680_v37  ;;  %v16003_v0 = vunpack.i.h.bf16 %v12676_v49  ;;  %v16008_v32 = vunpack.i.h.bf16 %v12680_v37 }
 0x2aa   : > { %10006 = vrot.lane.b32.xlu1 %v9930_v31, %s10861_s23  ;;  %10036 = vrot.lane.b32.xlu0 %v10010_v58, %s15734_s20  ;;  %v15581_v31 = vunpack.i.l.bf16 %v12676_v49 }
 0x2ac   : > { %v12689_v61 = vpop.permute.xlu1 %9816  ;;  %v12691_v20 = vpop.permute.xlu0 %9841  ;;  %v3835_v9 = vsel %vm15996_vm14, %v9783_v8, %v15581_v31  ;;  %vm16032_vm14 = vmmov %vm15998_vm1 }
 0x2ad   : > { %v3879_v29 = vmax.f32 %v3835_v9, 0.0  ;;  %v10581_v9 = vld [vmem:[%s15459_s4 + $0x7c] ss:$12 sps:$4 sm:$0xff]   ;;  %v9819_v30 = vunpack.i.h.bf16 %v12689_v61 }
 0x2ae   : > { %10016 = vrot.lane.b32.xlu1 %v10010_v58, %s15656_s14  ;;  %10041 = vrot.lane.b32.xlu0 %v10010_v58, %s10860_s22 }
 0x2b0   : > { %v12696_v1 = vpop.permute.xlu1 %9821  ;;  %v12701_v54 = vpop.permute.xlu0 %9851 }
 0x2b2   : > { %10026 = vrot.lane.b32.xlu1 %v10010_v58, %s10856_s18  ;;  %10046 = vrot.lane.b32.xlu0 %v10010_v58, %s10861_s23  ;;  %v10575_v58 = vld [vmem:[%s15459_s4 + $0x4c] ss:$12 sps:$4 sm:$0xff]  }
 0x2b3   : > { %5633 = vmatprep.subr.bf16.mxu1 %v10575_v58  ;;  %v15582_v58 = vunpack.i.l.bf16 %v12696_v1 }
 0x2b4   : > { %v12707_v40 = vpop.permute.xlu1 %9826  ;;  %v12709_v35 = vpop.permute.xlu0 %9856  ;;  %5634 = vmatpush1.bf16.msra.mxu1 %v10573_v7 }
 0x2b5   : > { %15994 = vst [vmem:[#allocation26_spill] sm:$0xff] %v12709_v35  ;;  %v4069_v7 = vsel %vm15998_vm1, %v9793_v19, %v15582_v58  ;;  %v9789_v19 = vunpack.i.h.bf16 %v12664_v36  ;;  %vm16035_vm1 = vmmov %vm16012_vm5 }
 0x2b6   : > { %10051 = vrot.lane.b32.xlu1 %v10050_v44, %s10853_s15  ;;  %10071 = vrot.lane.b32.xlu0 %v10050_v44, %s10857_s19 }
 0x2b8   : > { %v12713_v5 = vpop.permute.xlu1 %9836  ;;  %v12717_v59 = vpop.permute.xlu0 %9861 }
 0x2b9   : > { %15995 = vst [vmem:[#allocation25_spill] sm:$0xff] %v12717_v59 }
 0x2ba   : > { %10056 = vrot.lane.b32.xlu1 %v10050_v44, %s15656_s14  ;;  %10081 = vrot.lane.b32.xlu0 %v10050_v44, %s10860_s22 }
 0x2bc   : > { %v12732_v17 = vpop.permute.xlu1 %9846  ;;  %v12734_v56 = vpop.permute.xlu0 %9866 }
 0x2bd   : > { %v16013_v16 = vunpack.i.l.bf16 %v12732_v17 }
 0x2be   : > { %10061 = vrot.lane.b32.xlu1 %v10050_v44, %s10855_s17  ;;  %10091 = vrot.lane.b32.xlu0 %v12684_v52, %s10853_s15 }
 0x2c0   : > { %v12746_v53 = vpop.permute.xlu1 %9871  ;;  %v12748_v45 = vpop.permute.xlu0 %9876 }
 0x2c2   : > { %10066 = vrot.lane.b32.xlu1 %v10050_v44, %s10856_s18  ;;  %10096 = vrot.lane.b32.xlu0 %v12684_v52, %s15656_s14 }
 0x2c4   : > { %v12774_v34 = vpop.permute.xlu1 %9881  ;;  %v12776_v43 = vpop.permute.xlu0 %9886 }
 0x2c6   : > { %10076 = vrot.lane.b32.xlu1 %v10050_v44, %s15734_s20  ;;  %10101 = vrot.lane.b32.xlu0 %v12684_v52, %s10855_s17 }
 0x2ca   : > { %10086 = vrot.lane.b32.xlu1 %v10050_v44, %s10861_s23  ;;  %10106 = vrot.lane.b32.xlu0 %v10105_v55, %s10853_s15  ;;  %v10578_v44 = vld [vmem:[%s15459_s4 + $0x64] ss:$12 sps:$4 sm:$0xff]  }
 0x2cb   : > { %5635 = vmatprep.subr.bf16.mxu1 %v10578_v44  ;;  %v10579_v44 = vld [vmem:[%s15459_s4 + $0x78] ss:$12 sps:$4 sm:$0xff]  }
 0x2cc   : > { %5636 = vmatpush1.bf16.msra.mxu1 %v10576_v41 }
 0x2cd   : > { %5637 = vmatprep.subr.bf16.mxu1 %v10581_v9  ;;  %v10582_v9 = vld [vmem:[%s15459_s4 + $0x90] ss:$12 sps:$4 sm:$0xff]  }
 0x2ce   : > { %10126 = vrot.lane.b32.xlu1 %v10105_v55, %s10857_s19  ;;  %10111 = vrot.lane.b32.xlu0 %v10105_v55, %s15656_s14 }
 0x2d0   : > { %5638 = vmatpush1.bf16.msra.mxu1 %v10579_v44 }
 0x2d2   : > { %10136 = vrot.lane.b32.xlu1 %v10105_v55, %s10860_s22  ;;  %10116 = vrot.lane.b32.xlu0 %v10105_v55, %s10855_s17 }
 0x2d6   : > { %10146 = vrot.lane.b32.xlu1 %v12721_v12, %s10853_s15  ;;  %10121 = vrot.lane.b32.xlu0 %v10105_v55, %s10856_s18 }
 0x2da   : > { %10151 = vrot.lane.b32.xlu1 %v12721_v12, %s15656_s14  ;;  %10131 = vrot.lane.b32.xlu0 %v10105_v55, %s15734_s20 }
 0x2de   : > { %10156 = vrot.lane.b32.xlu1 %v12721_v12, %s10855_s17  ;;  %10141 = vrot.lane.b32.xlu0 %v10105_v55, %s10861_s23  ;;  %v15580_v55 = vunpack.i.l.bf16 %v12689_v61  ;;  %s10870_s17 = smov 124  }
 0x2e0   : > { %v3952_v8 = vsel %vm15997_vm6, %v9788_v51, %v15580_v55  ;;  %vm16033_vm6 = vmmov %vm16030_vm10 }
 0x2e1   : > { %v3996_v3 = vmax.f32 %v3879_v29, %v3952_v8  ;;  %v10584_v29 = vld [vmem:[%s15459_s4 + $0x94] ss:$12 sps:$4 sm:$0xff]   ;;  %v9784_v8 = vunpack.i.h.bf16 %v12656_v28  ;;  %v15590_v28 = vunpack.i.l.bf16 %v12707_v40 }
 0x2e2   : > { %5639 = vmatprep.subr.bf16.mxu1 %v10584_v29 }
 0x2e3   : > { %v4113_v57 = vmax.f32 %v3996_v3, %v4069_v7  ;;  %v10587_v3 = vld [vmem:[%s15459_s4 + $0xac] ss:$12 sps:$4 sm:$0xff]   ;;  %5640 = vmatpush1.bf16.msra.mxu1 %v10582_v9 }
 0x2e4   : > { %5641 = vmatprep.subr.bf16.mxu1 %v10587_v3  ;;  %v10588_v3 = vld [vmem:[%s15459_s4 + $0xc0] ss:$12 sps:$4 sm:$0xff]  }
 0x2e5   : > { %v4218_v7 = vmax.f32 %v4113_v57, %v15590_v28  ;;  %v10590_v57 = vld [vmem:[%s15459_s4 + $0xc4] ss:$12 sps:$4 sm:$0xff]  }
 0x2e7   : > { %v4383_v27 = vmax.f32 %v4218_v7, %v9833_v10  ;;  %5642 = vmatpush1.bf16.msra.mxu1 %v10585_v23  ;;  %v10595_v7 = vld [vmem:[%s15459_s4 + $0xdc] ss:$12 sps:$4 sm:$0xff]  }
 0x2e8   : > { %v12792_v13 = vpop.permute.xlu1 %9911  ;;  %v12794_v51 = vpop.permute.xlu0 %9891  ;;  %5643 = vmatprep.subr.bf16.mxu1 %v10590_v57 }
 0x2e9   : > { %v15583_v33 = vunpack.i.h.bf16 %v12794_v51  ;;  %v16002_v25 = vunpack.i.h.bf16 %v12792_v13  ;;  %v16020_v11 = vunpack.i.l.bf16 %v12794_v51 }
 0x2eb   : > { %v3840_v41 = vsel %vm15999_vm4, %v9784_v8, %v15583_v33  ;;  %5644 = vmatpush1.bf16.msra.mxu1 %v10588_v3  ;;  %v10600_v3 = vld [vmem:[%s15459_s4 + $0xf4] ss:$12 sps:$4 sm:$0xff]   ;;  %vm16038_vm4 = vmmov %vm16035_vm1 }
 0x2ec   : > { %v12807_v55 = vpop.permute.xlu1 %9921  ;;  %v12809_v31 = vpop.permute.xlu0 %9896  ;;  %v3885_v8 = vmax.f32 %v3840_v41, 0.0  ;;  %5645 = vmatprep.subr.bf16.mxu1 %v10595_v7 }
 0x2ed   : > { %v15589_v58 = vunpack.i.h.bf16 %v12809_v31 }
 0x2ef   : > { %v3957_v36 = vsel %vm16000_vm13, %v9789_v19, %v15589_v58  ;;  %vm16040_vm13 = vmmov %vm16016_vm2 }
 0x2f0   : > { %v12828_v44 = vpop.permute.xlu1 %9931  ;;  %v12830_v33 = vpop.permute.xlu0 %9901  ;;  %v4002_v19 = vmax.f32 %v3885_v8, %v3957_v36  ;;  %v15600_v36 = vunpack.i.l.bf16 %v12713_v5  ;;  %v10597_v8 = vld [vmem:[%s15459_s4 + $0x20] ss:$12 sps:$4 sm:$0xff]  }
 0x2f1   : > { %v15595_v29 = vunpack.i.h.bf16 %v12830_v33 }
 0x2f2   : > { %v4500_v57 = vmax.f32 %v4383_v27, %v15600_v36  ;;  %v10593_v27 = vld [vmem:[%s15459_s4 + $0xd8] ss:$12 sps:$4 sm:$0xff]   ;;  %v16004_v36 = vunpack.i.l.bf16 %v12676_v49 }
 0x2f3   : > { %v4074_v41 = vsel %vm16001_vm7, %v9794_v24, %v15595_v29  ;;  %v10592_v24 = vld [vmem:[%s15459_s4 + $0x8] ss:$12 sps:$4 sm:$0xff]   ;;  %5646 = vmatpush1.bf16.msra.mxu1 %v10593_v27  ;;  %v10605_v27 = vld [vmem:[%s15459_s4 + $0x10c] ss:$12 sps:$4 sm:$0xff]   ;;  %vm16042_vm7 = vmmov %vm16016_vm2 }
 0x2f4   : > { %v12844_v58 = vpop.permute.xlu1 %9941  ;;  %v12846_v9 = vpop.permute.xlu0 %9906  ;;  %v4119_v28 = vmax.f32 %v4002_v19, %v4074_v41  ;;  %v10596_v19 = vld [vmem:[%s15459_s4 + $0xe0] ss:$12 sps:$4 sm:$0xff]   ;;  %9380 = vmatpush3.bf16.msra.mxu0 %v10592_v24  ;;  %v10601_v24 = vld [vmem:[%s15459_s4 + $0xf8] ss:$12 sps:$4 sm:$0xff]   ;;  %v9843_v41 = vunpack.i.l.bf16 %v12691_v20  ;;  %5647 = vmatprep.subr.bf16.mxu1 %v10600_v3 }
 0x2f5   : > { %v15597_v38 = vunpack.i.h.bf16 %v12846_v9  ;;  %9381 = vmatprep.subr.bf16.mxu0 %v10596_v19  ;;  %v10602_v19 = vld [vmem:[%s15459_s4 + $0x38] ss:$12 sps:$4 sm:$0xff]  }
 0x2f6   : > { %v4617_v18 = vmax.f32 %v4500_v57, %v9843_v41  ;;  %v15613_v57 = vunpack.i.h.bf16 %v12691_v20 }
 0x2f7   : > { %v4224_v23 = vmax.f32 %v4119_v28, %v15597_v38  ;;  %v9798_v38 = vunpack.i.l.bf16 %v12654_v14  ;;  %v3836_v28 = vsel %vm16005_vm8, %v16004_v36, %v16003_v0  ;;  %v12914_v0 = vsel %vm16009_vm9, %v9833_v10, %v16008_v32  ;;  %vm16044_vm8 = vmmov %vm16019_vm3 }
 0x2f8   : > { %v12868_v29 = vpop.permute.xlu1 %9951  ;;  %v12870_v15 = vpop.permute.xlu0 %9916  ;;  %9382 = vmatpush3.bf16.msra.mxu0 %v10597_v8  ;;  %v10606_v8 = vld [vmem:[%s15459_s4 + $0x110] ss:$12 sps:$4 sm:$0xff]   ;;  %v16010_v32 = vunpack.i.h.bf16 %v12807_v55  ;;  %v9853_v14 = vunpack.i.l.bf16 %v12701_v54  ;;  %vm16046_vm9 = vmmov %vm16019_vm3 }
 0x2f9   : > { %v4389_v46 = vmax.f32 %v4224_v23, %v16002_v25  ;;  %v16006_v7 = vunpack.i.h.bf16 %v12870_v15  ;;  %9383 = vmatprep.subr.bf16.mxu0 %v10601_v24  ;;  %v3880_v24 = vmax.f32 %v12524_v4, %v3836_v28  ;;  %v16011_v25 = vunpack.i.l.bf16 %v12689_v61  ;;  %v10607_v28 = vld [vmem:[%s15459_s4 + $0x50] ss:$12 sps:$4 sm:$0xff]  }
 0x2fa   : > { %v12952_v61 = vsel %vm16016_vm2, %v9798_v38, %v9853_v14  ;;  %v16018_v38 = vunpack.i.l.bf16 %v12696_v1  ;;  %vm16050_vm2 = vmmov %vm16035_vm1 }
 0x2fb   : > { %v4506_v23 = vmax.f32 %v4389_v46, %v16006_v7  ;;  %v10598_v46 = vld [vmem:[%s15459_s4 + $0xf0] ss:$12 sps:$4 sm:$0xff]   ;;  %v9824_v7 = vunpack.i.h.bf16 %v12696_v1  ;;  %v3953_v10 = vsel %vm16012_vm5, %v16011_v25, %v9819_v30  ;;  %v9829_v25 = vunpack.i.h.bf16 %v12707_v40  ;;  %vm16048_vm5 = vmmov %vm16035_vm1 }
 0x2fc   : > { %v12904_v26 = vpop.permute.xlu1 %9956  ;;  %v12906_v42 = vpop.permute.xlu0 %9926  ;;  %9384 = vmatpush3.bf16.msra.mxu0 %v10602_v19  ;;  %5648 = vmatpush1.bf16.msra.mxu1 %v10598_v46  ;;  %v10603_v19 = vld [vmem:[%s15459_s4 + $0x108] ss:$12 sps:$4 sm:$0xff]   ;;  %v12980_v1 = vsel %vm16023_vm0, %v9843_v41, %v15613_v57  ;;  %v15614_v46 = vunpack.i.h.bf16 %v12844_v58  ;;  %v15615_v41 = vunpack.i.l.bf16 %v12846_v9 }
 0x2fd   : > { %16007 = vst [vmem:[#allocation28_spill] sm:$0xff] %v12904_v26  ;;  %v4623_v36 = vmax.f32 %v4506_v23, %v16010_v32  ;;  %v4734_v23 = vmax.f32 %v4617_v18, %v16013_v16  ;;  %v16014_v32 = vunpack.i.h.bf16 %v12906_v42  ;;  %v16017_v18 = vunpack.i.h.bf16 %v12828_v44  ;;  %9385 = vmatprep.subr.bf16.mxu0 %v10606_v8  ;;  %5649 = vmatprep.subr.bf16.mxu1 %v10605_v27  ;;  %v10610_v8 = vld [vmem:[%s15459_s4 + $0x124] ss:$12 sps:$4 sm:$0xff]  }
 0x2fe   : > { %v4070_v3 = vsel %vm16019_vm3, %v16018_v38, %v9824_v7  ;;  %v3997_v38 = vmax.f32 %v3880_v24, %v3953_v10  ;;  %v16027_v27 = vunpack.i.l.bf16 %v12809_v31  ;;  %vm16052_vm3 = vcmask 670720  }
 0x2ff   : > { %v4740_v60 = vmax.f32 %v4623_v36, %v16014_v32  ;;  %v3884_v16 = vmax.f32 %v12595_v62, %v16017_v18  ;;  %v10611_v32 = vld [vmem:[%s15459_s4 + $0x128] ss:$12 sps:$4 sm:$0xff]   ;;  %v16021_v62 = vunpack.i.h.bf16 %v12676_v49  ;;  %vm16057_vm0 = vmmov %vm16052_vm3 }
 0x300   : > { %v12944_v26 = vpop.permute.xlu1 %9961  ;;  %v12946_v4 = vpop.permute.xlu0 %9936  ;;  %9386 = vmatpush3.bf16.msra.mxu0 %v10607_v28  ;;  %v4114_v24 = vmax.f32 %v3997_v38, %v4070_v3  ;;  %5650 = vmatpush1.bf16.msra.mxu1 %v10603_v19  ;;  %v10616_v28 = vld [vmem:[%s15459_s4 + $0x140] ss:$12 sps:$4 sm:$0xff]   ;;  %v9858_v3 = vunpack.i.l.bf16 %v12709_v35  ;;  %v16031_v38 = vunpack.i.l.bf16 %v12830_v33  ;;  %v10615_v19 = vld [vmem:[%s15459_s4 + $0x13c] ss:$12 sps:$4 sm:$0xff]  }
 0x301   : > { %16015 = vst [vmem:[#allocation29_spill] sm:$0xff] %v12944_v26  ;;  %v3837_v18 = vsel %vm16022_vm15, %v16021_v62, %v16020_v11  ;;  %v4758_v36 = vpack.c.bf16 %v4740_v60, %v4734_v23  ;;  %v16024_v26 = vunpack.i.h.bf16 %v12701_v54  ;;  %v16026_v11 = vunpack.i.h.bf16 %v12946_v4  ;;  %9387 = vmatprep.subr.bf16.mxu0 %v10611_v32  ;;  %5651 = vmatprep.subr.bf16.mxu1 %v10610_v8 }
 0x302   : > { %v3891_v60 = vmax.f32 %v12952_v61, 0.0  ;;  %v3954_v23 = vsel %vm16028_vm12, %v9819_v30, %v16027_v27  ;;  %v16029_v30 = vunpack.i.l.bf16 %v12707_v40  ;;  %v4071_v40 = vsel %vm16032_vm14, %v9824_v7, %v16031_v38  ;;  %vm16061_vm12 = vmmov %vm16044_vm8 }
 0x303   : > { %v12985_v49 = vsel %vm16025_vm11, %v9853_v14, %v16024_v26  ;;  %v4001_v62 = vmax.f32 %v3884_v16, %v16026_v11  ;;  %4942 = vrot.lane.b32.xlu1 %v4758_v36, %s10869_s21  ;;  %v10612_v14 = vld [vmem:[%s15459_s4 + $0x68] ss:$12 sps:$4 sm:$0xff]   ;;  %v3881_v11 = vmax.f32 %v12526_v50, %v3837_v18  ;;  %v10608_v36 = vld [vmem:[%s15459_s4 + $0x120] ss:$12 sps:$4 sm:$0xff]   ;;  %v9863_v38 = vunpack.i.l.bf16 %v12717_v59  ;;  %vm16059_vm11 = vmmov %vm16044_vm8 }
 0x304   : > { %v12996_v10 = vpop.permute.xlu1 %9966  ;;  %v12998_v26 = vpop.permute.xlu0 %9946  ;;  %v4178_v16 = vsel %vm16030_vm10, %v16029_v30, %v9829_v25  ;;  %v4179_v8 = vsel %vm16033_vm6, %v9829_v25, %v15615_v41  ;;  %9388 = vmatpush3.bf16.msra.mxu0 %v10612_v14  ;;  %5652 = vmatpush1.bf16.msra.mxu1 %v10608_v36  ;;  %v10613_v14 = vld [vmem:[%s15459_s4 + $0x138] ss:$12 sps:$4 sm:$0xff]   ;;  %v16037_v7 = vunpack.i.h.bf16 %v12709_v35  ;;  %v16039_v25 = vunpack.i.h.bf16 %v12794_v51  ;;  %vm16063_vm10 = vmmov %vm16033_vm6 }
 0x305   : > { %v15616_v27 = vunpack.i.h.bf16 %v12998_v26  ;;  %v4118_v50 = vmax.f32 %v4001_v62, %v15614_v46  ;;  %v3998_v18 = vmax.f32 %v3881_v11, %v3954_v23  ;;  %v9968_v57 = vunpack.i.l.bf16 %v12996_v10  ;;  %v10617_v23 = vld [vmem:[%s15459_s4 + $0x80] ss:$12 sps:$4 sm:$0xff]   ;;  %9389 = vmatprep.subr.bf16.mxu0 %v10616_v28  ;;  %v10621_v41 = vld [vmem:[%s15459_s4 + $0x158] ss:$12 sps:$4 sm:$0xff]   ;;  %5653 = vmatprep.subr.bf16.mxu1 %v10615_v19  ;;  %vm16064_vm14 = vmmov %vm16033_vm6 }
 0x306   : > { %v4219_v61 = vmax.f32 %v4114_v24, %v4178_v16  ;;  %v16034_v11 = vunpack.i.l.bf16 %v12660_v39  ;;  %v10620_v28 = vld [vmem:[%s15459_s4 + $0x154] ss:$12 sps:$4 sm:$0xff]   ;;  %v16045_v35 = vunpack.i.h.bf16 %v12717_v59  ;;  %vm16055_vm15 = vcmask 842752  }
 0x307   : > { %v4115_v16 = vmax.f32 %v3998_v18, %v4071_v40  ;;  %v13045_v32 = vmax.f32 %v4118_v50, %v15616_v27  ;;  %v13057_v40 = vsel %vm16038_vm4, %v9858_v3, %v16037_v7  ;;  %v9839_v50 = vunpack.i.h.bf16 %v12713_v5  ;;  %vm16066_vm6 = vmmov %vm16055_vm15 }
 0x308   : > { %v13033_v62 = vpop.permute.xlu1 %9971  ;;  %v13035_v46 = vpop.permute.xlu0 %9986  ;;  %v3962_v24 = vsel %vm16035_vm1, %v16034_v11, %v9858_v3  ;;  %v3841_v30 = vsel %vm16040_vm13, %v16039_v25, %v9968_v57  ;;  %v16041_v3 = vunpack.i.h.bf16 %v12996_v10  ;;  %v16043_v18 = vunpack.i.l.bf16 %v12668_v48  ;;  %9390 = vmatpush3.bf16.msra.mxu0 %v10617_v23  ;;  %5654 = vmatpush1.bf16.msra.mxu1 %v10613_v14  ;;  %v10626_v23 = vld [vmem:[%s15459_s4 + $0x170] ss:$12 sps:$4 sm:$0xff]   ;;  %vm16068_vm1 = vmmov %vm16066_vm6 }
 0x309   : > { %16036 = vst [vmem:[#allocation30_spill] sm:$0xff] %v13045_v32  ;;  %v9973_v36 = vunpack.i.l.bf16 %v13033_v62  ;;  %v4220_v11 = vmax.f32 %v4115_v16, %v4179_v8  ;;  %v13072_v32 = vmax.f32 %v3891_v60, %v3962_v24  ;;  %v13082_v8 = vsel %vm16046_vm9, %v9863_v38, %v16045_v35  ;;  %9391 = vmatprep.subr.bf16.mxu0 %v10621_v41  ;;  %v10625_v41 = vld [vmem:[%s15459_s4 + $0x16c] ss:$12 sps:$4 sm:$0xff]  }
 0x30a   : > { %v3842_v7 = vsel %vm16042_vm7, %v9968_v57, %v16041_v3  ;;  %v13077_v19 = vsel %vm16044_vm8, %v16043_v18, %v9863_v38  ;;  %v4384_v16 = vmax.f32 %v4219_v61, %v12914_v0  ;;  %v10622_v57 = vld [vmem:[%s15459_s4 + $0x98] ss:$12 sps:$4 sm:$0xff]   ;;  %v16047_v60 = vunpack.i.h.bf16 %v12809_v31  ;;  %v10618_v61 = vld [vmem:[%s15459_s4 + $0x150] ss:$12 sps:$4 sm:$0xff]   ;;  %5655 = vmatprep.subr.bf16.mxu1 %v10620_v28  ;;  %vm16075_vm7 = vmmov %vm16057_vm0 }
 0x30b   : > { %v16049_v18 = vunpack.i.h.bf16 %v13033_v62  ;;  %v16051_v3 = vunpack.i.l.bf16 %v12713_v5  ;;  %v3886_v14 = vmax.f32 %v12591_v2, %v3841_v30  ;;  %v3887_v59 = vmax.f32 %v12530_v6, %v3842_v7  ;;  %vm16076_vm8 = vmmov %vm16057_vm0 }
 0x30c   : > { %v13085_v27 = vpop.permute.xlu1 %9976  ;;  %v13087_v25 = vpop.permute.xlu0 %9996  ;;  %v3958_v24 = vsel %vm16048_vm5, %v16047_v60, %v9973_v36  ;;  %v16056_v5 = vunpack.i.l.bf16 %v12870_v15  ;;  %v16058_v39 = vunpack.i.h.bf16 %v12830_v33  ;;  %v9988_v7 = vunpack.i.l.bf16 %v13035_v46  ;;  %9392 = vmatpush3.bf16.msra.mxu0 %v10622_v57  ;;  %5656 = vmatpush1.bf16.msra.mxu1 %v10618_v61 }
 0x30d   : > { %v3959_v35 = vsel %vm16050_vm2, %v9973_v36, %v16049_v18  ;;  %v9978_v0 = vunpack.i.l.bf16 %v13085_v27  ;;  %v4456_v60 = vsel %vm16052_vm3, %v16051_v3, %v9839_v50  ;;  %v16053_v36 = vunpack.i.l.bf16 %v12792_v13  ;;  %9393 = vmatprep.subr.bf16.mxu0 %v10626_v23  ;;  %5657 = vmatprep.subr.bf16.mxu1 %v10625_v41 }
 0x30e   : > { %v16054_v18 = vunpack.i.h.bf16 %v12680_v37  ;;  %v4457_v3 = vsel %vm16057_vm0, %v9839_v50, %v16056_v5  ;;  %v4003_v30 = vmax.f32 %v3886_v14, %v3958_v24  ;;  %v4004_v6 = vmax.f32 %v3887_v59, %v3959_v35  ;;  %v10627_v50 = vld [vmem:[%s15459_s4 + $0xb0] ss:$12 sps:$4 sm:$0xff]   ;;  %v10623_v24 = vld [vmem:[%s15459_s4 + $0x168] ss:$12 sps:$4 sm:$0xff]  }
 0x30f   : > { %v4075_v37 = vsel %vm16059_vm11, %v16058_v39, %v9978_v0  ;;  %v4501_v39 = vmax.f32 %v4384_v16, %v4456_v60  ;;  %v9849_v35 = vunpack.i.h.bf16 %v12732_v17  ;;  %v15622_v60 = vunpack.i.l.bf16 %v12906_v42  ;;  %vm16089_vm11 = vmmov %vm16063_vm10 }
 0x310   : > { %v4340_v38 = vsel %vm16055_vm15, %v16054_v18, %v16053_v36  ;;  %v16060_v36 = vunpack.i.h.bf16 %v13085_v27  ;;  %v13130_v18 = vpop.permute.xlu1 %9981  ;;  %v4120_v14 = vmax.f32 %v4003_v30, %v4075_v37  ;;  %v16065_v23 = vunpack.i.h.bf16 %v12792_v13  ;;  %9394 = vmatpush3.bf16.msra.mxu0 %v10627_v50  ;;  %5658 = vmatpush1.bf16.msra.mxu1 %v10623_v24 }
 0x311   : > { %v4385_v48 = vmax.f32 %v4220_v11, %v4340_v38  ;;  %v13132_v11 = vpop.permute.xlu0 %10011  ;;  %v9983_v59 = vunpack.i.l.bf16 %v13130_v18  ;;  %v16067_v57 = vunpack.i.h.bf16 %v13035_v46  ;;  %vm16070_vm4 = vcmask 654336  }
 0x312   : > { %v4076_v2 = vsel %vm16061_vm12, %v9978_v0, %v16060_v36  ;;  %v15621_v0 = vunpack.i.h.bf16 %v13130_v18  ;;  %v16062_v36 = vunpack.i.h.bf16 %v12846_v9  ;;  %v4344_v28 = vsel %vm16066_vm6, %v16065_v23, %v9988_v7  ;;  %vm16077_vm9 = vmmov %vm16070_vm4 }
 0x313   : > { %v4121_v5 = vmax.f32 %v4004_v6, %v4076_v2  ;;  %v4502_v16 = vmax.f32 %v4385_v48, %v4457_v3  ;;  %v4345_v37 = vsel %vm16068_vm1, %v9988_v7, %v16067_v57  ;;  %v9998_v6 = vunpack.i.l.bf16 %v13087_v25  ;;  %vm16083_vm3 = vmmov %vm16070_vm4 }
 0x314   : > { %v4182_v38 = vsel %vm16063_vm10, %v16062_v36, %v9983_v59  ;;  %v4183_v61 = vsel %vm16064_vm14, %v9983_v59, %v15621_v0  ;;  %v13158_v3 = vpop.permute.xlu1 %9991  ;;  %v9868_v23 = vunpack.i.l.bf16 %v12734_v56  ;;  %v4618_v7 = vmax.f32 %v4501_v39, %v12980_v1  ;;  %vm16084_vm15 = vmmov %vm16083_vm3 }
 0x315   : > { %v4225_v41 = vmax.f32 %v4120_v14, %v4182_v38  ;;  %v4226_v48 = vmax.f32 %v4121_v5, %v4183_v61  ;;  %v13160_v2 = vpop.permute.xlu0 %10021  ;;  %v15624_v59 = vunpack.i.h.bf16 %v13158_v3  ;;  %v9993_v36 = vunpack.i.l.bf16 %v13158_v3  ;;  %vm16092_vm10 = vmmov %vm16068_vm1 }
 0x316   : > { %v16069_v14 = vunpack.i.l.bf16 %v12732_v17  ;;  %v16071_v50 = vunpack.i.l.bf16 %v12807_v55  ;;  %v16072_v61 = vunpack.i.h.bf16 %v12691_v20  ;;  %vm16073_vm13 = vcmask 662528   ;;  %vm16097_vm1 = vmmov %vm16075_vm7 }
 0x317   : > { %v4390_v38 = vmax.f32 %v4225_v41, %v4344_v28  ;;  %v4391_v57 = vmax.f32 %v4226_v48, %v4345_v37  ;;  %v16074_v30 = vunpack.i.h.bf16 %v12870_v15  ;;  %v4462_v1 = vsel %vm16076_vm8, %v9993_v36, %v15624_v59  ;;  %vm16079_vm5 = vmmov %vm16073_vm13 }
 0x318   : > { %v4690_v5 = vsel %vm16070_vm4, %v16069_v14, %v9849_v35  ;;  %v4574_v0 = vsel %vm16073_vm13, %v16072_v61, %v16071_v50  ;;  %v4691_v17 = vsel %vm16077_vm9, %v9849_v35, %v15622_v60  ;;  %v13185_v41 = vpop.permute.xlu1 %10001  ;;  %v16078_v48 = vunpack.i.h.bf16 %v12807_v55  ;;  %vm16081_vm2 = vmmov %vm16079_vm5 }
 0x319   : > { %v4461_v24 = vsel %vm16075_vm7, %v16074_v30, %v9993_v36  ;;  %v4619_v28 = vmax.f32 %v4502_v16, %v4574_v0  ;;  %v4508_v37 = vmax.f32 %v4391_v57, %v4462_v1  ;;  %v13187_v20 = vpop.permute.xlu0 %10031  ;;  %v16080_v30 = vunpack.i.h.bf16 %v13087_v25  ;;  %vm16104_vm7 = vmmov %vm16089_vm11 }
 0x31a   : > { %v4507_v39 = vmax.f32 %v4390_v38, %v4461_v24  ;;  %v4578_v14 = vsel %vm16079_vm5, %v16078_v48, %v9998_v6  ;;  %v15623_v0 = vunpack.i.h.bf16 %v13185_v41  ;;  %v10003_v16 = vunpack.i.l.bf16 %v13185_v41  ;;  %vm16105_vm8 = vmmov %vm16081_vm2 }
 0x31b   : > { %v4579_v50 = vsel %vm16081_vm2, %v9998_v6, %v16080_v30  ;;  %v4735_v36 = vmax.f32 %v4618_v7, %v4690_v5  ;;  %v9933_v35 = vunpack.i.l.bf16 %v12828_v44  ;;  %v15636_v61 = vunpack.i.h.bf16 %v12746_v53  ;;  %v10630_v7 = vld [vmem:[%s15459_s4 + $0x184] ss:$12 sps:$4 sm:$0xff]   ;;  %vm16107_vm9 = vmmov %vm16104_vm7 }
 0x31c   : > { %v4624_v38 = vmax.f32 %v4507_v39, %v4578_v14  ;;  %v4625_v57 = vmax.f32 %v4508_v37, %v4579_v50  ;;  %v9873_v24 = vunpack.i.l.bf16 %v12746_v53  ;;  %v16082_v1 = vunpack.i.h.bf16 %v12906_v42  ;;  %v13210_v30 = vpop.permute.xlu1 %10006  ;;  %5680 = vmatprep.subr.bf16.mxu1 %v10630_v7  ;;  %vm16108_vm5 = vmmov %vm16083_vm3 }
 0x31d   : > { %v4696_v6 = vsel %vm16084_vm15, %v10003_v16, %v15623_v0  ;;  %v4736_v5 = vmax.f32 %v4619_v28, %v4691_v17  ;;  %v9938_v39 = vunpack.i.l.bf16 %v12946_v4  ;;  %v13212_v50 = vpop.permute.xlu0 %10036  ;;  %v4125_v0 = vmax.f32 %v13072_v32, %v13077_v19  ;;  %vm16111_vm2 = vmmov %vm16092_vm10 }
 0x31e   : > { %v4695_v48 = vsel %vm16083_vm3, %v16082_v1, %v10003_v16  ;;  %v4742_v14 = vmax.f32 %v4625_v57, %v4696_v6  ;;  %v16085_v1 = vmax.f32 %v12543_v22, %v12985_v49  ;;  %v10014_v16 = vunpack.i.h.bf16 %v13132_v11  ;;  %vm16114_vm15 = vmmov %vm16111_vm2 }
 0x31f   : > { %v4741_v37 = vmax.f32 %v4624_v38, %v4695_v48  ;;  %v16086_v28 = vunpack.i.l.bf16 %v12794_v51  ;;  %vm16087_vm0 = vcmask 1039360   ;;  %v16088_v6 = vunpack.i.h.bf16 %v12734_v56 }
 0x320   : > { %v4009_v60 = vmax.f32 %v16085_v1, %v13057_v40  ;;  %v4760_v57 = vpack.c.bf16 %v4742_v14, %v4736_v5  ;;  %v16090_v22 = vunpack.i.h.bf16 %v12828_v44  ;;  %vm16091_vm12 = vmmov %vm16087_vm0  ;;  %v4349_v32 = vsel %vm16092_vm10, %v9873_v24, %v15636_v61 }
 0x321   : > { %v3838_v17 = vsel %vm16087_vm0, %v16086_v28, %v9933_v35  ;;  %v4759_v38 = vpack.c.bf16 %v4741_v37, %v4735_v36  ;;  %v4186_v59 = vsel %vm16089_vm11, %v9868_v23, %v16088_v6  ;;  %v15628_v51 = vunpack.i.h.bf16 %v12748_v45  ;;  %v13241_v36 = vpop.permute.xlu0 %10041  ;;  %vm16113_vm3 = vmmov %vm16087_vm0 }
 0x322   : > { %v4126_v48 = vmax.f32 %v4009_v60, %v13082_v8  ;;  %v3839_v49 = vsel %vm16091_vm12, %v9933_v35, %v16090_v22  ;;  %v9878_v40 = vunpack.i.l.bf16 %v12748_v45  ;;  %v16093_v19 = vunpack.i.l.bf16 %v12809_v31  ;;  %v13239_v60 = vpop.permute.xlu1 %10016  ;;  %4946 = vrot.lane.b32.xlu0 %v4760_v57, %s10869_s21  ;;  %vm16119_vm11 = vmmov %vm16097_vm1 }
 0x323   : > { %vm16094_vm14 = vcmask 1031168   ;;  %4944 = vrot.lane.b32.xlu1 %v4759_v38, %s10869_s21  ;;  %v3882_v44 = vmax.f32 %v12593_v47, %v3838_v17  ;;  %v16095_v35 = vunpack.i.h.bf16 %v12946_v4  ;;  %v3890_v31 = vmax.f32 %v12601_v63, %v10014_v16  ;;  %vm16120_vm12 = vmmov %vm16097_vm1 }
 0x324   : > { %v3955_v8 = vsel %vm16094_vm14, %v16093_v19, %v9938_v39  ;;  %vm16096_vm6 = vmmov %vm16094_vm14  ;;  %v10019_v5 = vunpack.i.h.bf16 %v13239_v60  ;;  %v4230_v37 = vmax.f32 %v4125_v0, %v9868_v23  ;;  %v4231_v14 = vmax.f32 %v4126_v48, %v4186_v59 }
 0x325   : > { %v3956_v7 = vsel %vm16096_vm6, %v9938_v39, %v16095_v35  ;;  %v3883_v1 = vmax.f32 %v12597_v21, %v3839_v49  ;;  %v9943_v28 = vunpack.i.l.bf16 %v12844_v58  ;;  %v3999_v38 = vmax.f32 %v3882_v44, %v3955_v8  ;;  %v13264_v59 = vpop.permute.xlu0 %10046  ;;  %vm16117_vm0 = vmmov %vm16096_vm6 }
 0x326   : > { %v10024_v57 = vunpack.i.h.bf16 %v13160_v2  ;;  %v4007_v47 = vmax.f32 %v3890_v31, %v10019_v5  ;;  %v4396_v4 = vmax.f32 %v4231_v14, %v4349_v32  ;;  %v4466_v39 = vsel %vm16097_vm1, %v9878_v40, %v15628_v51  ;;  %v13262_v23 = vpop.permute.xlu1 %10026  ;;  %10161 = vrot.lane.b32.xlu0 %v12684_v52, %s10856_s18  ;;  %vm16122_vm10 = vmmov %vm16113_vm3 }
 0x327   : > { %v4000_v63 = vmax.f32 %v3883_v1, %v3956_v7  ;;  %v9948_v17 = vunpack.i.l.bf16 %v12998_v26  ;;  %10166 = vrot.lane.b32.xlu1 %v12721_v12, %s10856_s18  ;;  %v15627_v21 = vunpack.i.h.bf16 %v12774_v34  ;;  %v9883_v0 = vunpack.i.l.bf16 %v12774_v34  ;;  %vm16124_vm14 = vmmov %vm16105_vm8  ;;  %s10876_s18 = smov 100  }
 0x328   : > { %v10029_v48 = vunpack.i.h.bf16 %v13262_v23  ;;  %v4124_v6 = vmax.f32 %v4007_v47, %v10024_v57  ;;  %v4395_v22 = vmax.f32 %v4230_v37, %v9873_v24  ;;  %v16098_v49 = vunpack.i.l.bf16 %v12830_v33  ;;  %vm16125_vm6 = vmmov %vm16117_vm0 }
 0x329   : > { %vm16099_vm4 = vcmask 859136   ;;  %v16100_v19 = vunpack.i.h.bf16 %v12844_v58  ;;  %v4513_v7 = vmax.f32 %v4396_v4, %v4466_v39  ;;  %v16103_v14 = vunpack.i.l.bf16 %v12846_v9  ;;  %v13290_v33 = vpop.permute.xlu0 %10071  ;;  %vm16126_vm1 = vmmov %vm16113_vm3 }
 0x32a   : > { %v4072_v32 = vsel %vm16099_vm4, %v16098_v49, %v9943_v28  ;;  %vm16101_vm13 = vmmov %vm16099_vm4  ;;  %v13283_v35 = vmax.f32 %v4124_v6, %v10029_v48  ;;  %v13288_v24 = vpop.permute.xlu1 %10051  ;;  %v4583_v58 = vsel %vm16105_vm8, %v9883_v0, %v15627_v21  ;;  %v15626_v37 = vunpack.i.h.bf16 %v12776_v43  ;;  %10171 = vrot.lane.b32.xlu0 %v12684_v52, %s10857_s19 }
 0x32b   : > { %v4073_v8 = vsel %vm16101_vm13, %v9943_v28, %v16100_v19  ;;  %v4116_v44 = vmax.f32 %v3999_v38, %v4072_v32  ;;  %v4180_v1 = vsel %vm16104_vm7, %v16103_v14, %v9948_v17  ;;  %10176 = vrot.lane.b32.xlu1 %v12721_v12, %s10857_s19  ;;  %v15625_v28 = vunpack.i.l.bf16 %v12776_v43  ;;  %vm16129_vm13 = vmmov %vm16099_vm4 }
 0x32c   : > { %16102 = vst [vmem:[#allocation31_spill] sm:$0xff] %v13283_v35  ;;  %v4117_v31 = vmax.f32 %v4000_v63, %v4073_v8  ;;  %v16106_v38 = vunpack.i.h.bf16 %v12998_v26  ;;  %v4512_v47 = vmax.f32 %v4395_v22, %v9878_v40  ;;  %v9953_v4 = vunpack.i.l.bf16 %v12868_v29  ;;  %vm16132_vm7 = vmmov %vm16126_vm1 }
 0x32d   : > { %v10013_v39 = vunpack.i.l.bf16 %v13132_v11  ;;  %v15630_v63 = vunpack.i.h.bf16 %v12868_v29  ;;  %v4221_v6 = vmax.f32 %v4116_v44, %v4180_v1  ;;  %v4630_v49 = vmax.f32 %v4513_v7, %v4583_v58  ;;  %v13310_v26 = vpop.permute.xlu0 %10081  ;;  %vm16135_vm8 = vmmov %vm16126_vm1 }
 0x32e   : > { %v4181_v9 = vsel %vm16107_vm9, %v9948_v17, %v16106_v38  ;;  %v10018_v19 = vunpack.i.l.bf16 %v13239_v60  ;;  %v13308_v8 = vpop.permute.xlu1 %10056  ;;  %v4700_v40 = vsel %vm16108_vm5, %v15625_v28, %v15626_v37  ;;  %v16109_v17 = vld [vmem:[#allocation28_spill] sm:$0xff]  ;;  %10181 = vrot.lane.b32.xlu0 %v12684_v52, %s15734_s20  ;;  %v13323_v7 = vmax.f32 %v4512_v47, %v9883_v0  ;;  %vm16138_vm9 = vmmov %vm16117_vm0 }
 0x32f   : > { %v4222_v32 = vmax.f32 %v4117_v31, %v4181_v9  ;;  %10186 = vrot.lane.b32.xlu1 %v12721_v12, %s15734_s20  ;;  %v15629_v22 = vunpack.i.h.bf16 %v16109_v17  ;;  %v9958_v44 = vunpack.i.l.bf16 %v16109_v17  ;;  %v16110_v31 = vunpack.i.l.bf16 %v12792_v13  ;;  %v16115_v9 = vld [vmem:[#allocation29_spill] sm:$0xff]  ;;  %vm16139_vm5 = vmmov %vm16117_vm0 }
 0x330   : > { %v16112_v1 = vunpack.i.h.bf16 %v12996_v10  ;;  %v4342_v38 = vsel %vm16114_vm15, %v9953_v4, %v15630_v63  ;;  %v15632_v28 = vunpack.i.l.bf16 %v16115_v9  ;;  %v13335_v21 = vmax.f32 %v4630_v49, %v4700_v40  ;;  %vm16148_vm15 = vmmov %vm16099_vm4 }
 0x331   : > { %v4341_v14 = vsel %vm16111_vm2, %v16110_v31, %v9953_v4  ;;  %v4387_v51 = vmax.f32 %v4222_v32, %v4342_v38  ;;  %v16116_v0 = vunpack.i.h.bf16 %v13033_v62  ;;  %v16118_v10 = vunpack.i.l.bf16 %v12870_v15  ;;  %v13352_v62 = vpop.permute.xlu0 %10091 }
 0x332   : > { %v3843_v58 = vsel %vm16113_vm3, %v16112_v1, %v10013_v39  ;;  %v4386_v37 = vmax.f32 %v4221_v6, %v4341_v14  ;;  %v13340_v47 = vpop.permute.xlu1 %10061  ;;  %v4459_v4 = vsel %vm16120_vm12, %v9958_v44, %v15629_v22  ;;  %v16121_v6 = vld [vmem:[#allocation22_spill] sm:$0xff]  ;;  %v10023_v32 = vunpack.i.l.bf16 %v13160_v2  ;;  %10191 = vrot.lane.b32.xlu0 %v12684_v52, %s10860_s22  ;;  %vm16145_vm3 = vmmov %vm16117_vm0 }
 0x333   : > { %v3960_v13 = vsel %vm16117_vm0, %v16116_v0, %v10018_v19  ;;  %10196 = vrot.lane.b32.xlu1 %v12721_v12, %s10860_s22  ;;  %v4458_v31 = vsel %vm16119_vm11, %v16118_v10, %v9958_v44  ;;  %v3888_v49 = vmax.f32 %v16121_v6, %v3843_v58  ;;  %v3844_v40 = vsel %vm16122_vm10, %v10013_v39, %v10014_v16  ;;  %v16146_v44 = vld [vmem:[#allocation23_spill] sm:$0xff]  ;;  %vm16153_vm11 = vmmov %vm16099_vm4 }
 0x334   : > { %v15635_v15 = vunpack.i.h.bf16 %v13288_v24  ;;  %v10053_v14 = vunpack.i.l.bf16 %v13288_v24  ;;  %v15631_v1 = vunpack.i.l.bf16 %v13352_v62  ;;  %v16123_v58 = vunpack.i.l.bf16 %v12807_v55  ;;  %v16127_v55 = vld [vmem:[#allocation17_spill] sm:$0xff]  ;;  %vm16154_vm12 = vmmov %vm16099_vm4 }
 0x335   : > { %v13370_v0 = vmax.f32 %v4386_v37, %v4458_v31  ;;  %v4005_v11 = vmax.f32 %v3888_v49, %v3960_v13  ;;  %v13372_v10 = vmax.f32 %v4387_v51, %v4459_v4  ;;  %v3961_v16 = vsel %vm16125_vm6, %v10018_v19, %v10019_v5  ;;  %v13393_v19 = vpop.permute.xlu0 %10096 }
 0x336   : > { %v13368_v38 = vsel %vm16124_vm14, %v16123_v58, %v15632_v28  ;;  %v15634_v39 = vunpack.i.h.bf16 %v13308_v8  ;;  %v3848_v6 = vsel %vm16126_vm1, %v10053_v14, %v15631_v1  ;;  %v13381_v22 = vpop.permute.xlu1 %10066  ;;  %v3889_v37 = vmax.f32 %v16127_v55, %v3844_v40  ;;  %10201 = vrot.lane.b32.xlu0 %v12684_v52, %s10861_s23  ;;  %v16133_v58 = vld [vmem:[#allocation16_spill] sm:$0xff] }
 0x337   : > { %10206 = vrot.lane.b32.xlu1 %v12721_v12, %s10861_s23  ;;  %v16128_v51 = vunpack.i.h.bf16 %v13085_v27  ;;  %v4078_v60 = vsel %vm16129_vm13, %v10023_v32, %v10024_v57  ;;  %v10028_v5 = vunpack.i.l.bf16 %v13262_v23  ;;  %v16130_v12 = vld [vmem:[#allocation20_spill] sm:$0xff]  ;;  %v10058_v27 = vunpack.i.l.bf16 %v13308_v8 }
 0x338   : > { %v16131_v31 = vunpack.i.h.bf16 %v16130_v12  ;;  %v15637_v49 = vunpack.i.h.bf16 %v13340_v47  ;;  %v15633_v2 = vunpack.i.l.bf16 %v13393_v19  ;;  %v15639_v57 = vunpack.i.h.bf16 %v13187_v20  ;;  %v16136_v12 = vld [vmem:[#allocation24_spill] sm:$0xff] }
 0x339   : > { %v4077_v13 = vsel %vm16099_vm4, %v16128_v51, %v10023_v32  ;;  %v4006_v32 = vmax.f32 %v3889_v37, %v3961_v16  ;;  %v3894_v55 = vmax.f32 %v16133_v58, %v3848_v6  ;;  %v16134_v52 = vunpack.i.h.bf16 %v12701_v54  ;;  %v13429_v58 = vpop.permute.xlu0 %10101 }
 0x33a   : > { %v3850_v4 = vsel %vm16132_vm7, %v16131_v31, %v15635_v15  ;;  %v4122_v40 = vmax.f32 %v4005_v11, %v4077_v13  ;;  %v16137_v31 = vunpack.i.h.bf16 %v16136_v12  ;;  %v10063_v1 = vunpack.i.l.bf16 %v13340_v47  ;;  %v13419_v16 = vpop.permute.xlu1 %10076  ;;  %v16143_v12 = vld [vmem:[#allocation26_spill] sm:$0xff] }
 0x33b   : > { %v3847_v51 = vsel %vm16135_vm8, %v16134_v52, %v10053_v14  ;;  %v3965_v28 = vsel %vm16139_vm5, %v10058_v27, %v15633_v2  ;;  %v16140_v11 = vmov 0.0   ;;  %v10033_v54 = vunpack.i.l.bf16 %v13187_v20  ;;  %vm16170_vm5 = vmmov %vm16145_vm3 }
 0x33c   : > { %v3967_v63 = vsel %vm16138_vm9, %v16137_v31, %v15634_v39  ;;  %10216 = vrot.lane.b32.xlu1 %v16140_v11, %s10857_s19  ;;  %v16141_v14 = vunpack.i.h.bf16 %v13130_v18  ;;  %vm16142_vm2 = vcmask 850944   ;;  %v3897_v37 = vmax.f32 %v3850_v4, 0.0  ;;  %10211 = vrot.lane.b32.xlu0 %v16140_v11, %s10857_s19  ;;  %vm16168_vm9 = vmmov %vm16135_vm8  ;;  %s10877_s19 = smov 99  }
 0x33d   : > { %v13427_v13 = vmax.f32 %v3894_v55, %v3965_v28  ;;  %v15638_v52 = vunpack.i.h.bf16 %v13212_v50  ;;  %v16144_v31 = vunpack.i.h.bf16 %v16143_v12  ;;  %v16147_v18 = vunpack.i.h.bf16 %v16146_v44  ;;  %v16149_v55 = vld [vmem:[#allocation10_spill] sm:$0xff]  ;;  %v10655_v12 = vld [vmem:[%s15459_s4 + $0x248] ss:$12 sps:$4 sm:$0xff]   ;;  %vm16150_vm0 = vmmov %vm16142_vm2 }
 0x33e   : > { %v4184_v6 = vsel %vm16142_vm2, %v16141_v14, %v10028_v5  ;;  %v15640_v28 = vunpack.i.l.bf16 %v13381_v22  ;;  %v4123_v4 = vmax.f32 %v4006_v32, %v4078_v60  ;;  %v3893_v39 = vmax.f32 %v16149_v55, %v3847_v51  ;;  %v13455_v32 = vpop.permute.xlu1 %10086  ;;  %9407 = vmatprep.subr.bf16.mxu0 %v10655_v12  ;;  %vm16158_vm14 = vmmov %vm16150_vm0 }
 0x33f   : > { %v3964_v2 = vsel %vm16145_vm3, %v16144_v31, %v10058_v27  ;;  %v4084_v14 = vsel %vm16148_vm15, %v16147_v18, %v15637_v49  ;;  %v4014_v15 = vmax.f32 %v3897_v37, %v3967_v63  ;;  %v15641_v61 = vunpack.i.l.bf16 %v13429_v58  ;;  %v16151_v18 = vld [vmem:[#allocation25_spill] sm:$0xff]  ;;  %vm16171_vm2 = vmmov %vm16145_vm3 }
 0x340   : > { %v10038_v27 = vunpack.i.l.bf16 %v13212_v50  ;;  %v4185_v44 = vsel %vm16150_vm0, %v10028_v5, %v10029_v48  ;;  %v4227_v31 = vmax.f32 %v4122_v40, %v4184_v6  ;;  %v16152_v49 = vunpack.i.h.bf16 %v16151_v18  ;;  %10226 = vrot.lane.b32.xlu1 %v16140_v11, %s15734_s20  ;;  %v13465_v48 = vpop.permute.xlu0 %10106  ;;  %10221 = vrot.lane.b32.xlu0 %v16140_v11, %s15734_s20  ;;  %vm16179_vm0 = vmmov %vm16153_vm11 }
 0x341   : > { %v4010_v63 = vmax.f32 %v3893_v39, %v3964_v2  ;;  %v10069_v51 = vunpack.i.h.bf16 %v13381_v22  ;;  %v4131_v37 = vmax.f32 %v4014_v15, %v4084_v14  ;;  %v13463_v23 = vsel %vm16154_vm12, %v10063_v1, %v15641_v61  ;;  %vm16181_vm12 = vmmov %vm16135_vm8 }
 0x342   : > { %v4081_v60 = vsel %vm16153_vm11, %v16152_v49, %v10063_v1  ;;  %v16155_v5 = vunpack.i.h.bf16 %v13035_v46  ;;  %vm16156_vm10 = vcmask 842752   ;;  %v15643_v39 = vunpack.i.l.bf16 %v13241_v36  ;;  %vm16180_vm11 = vmmov %vm16179_vm0 }
 0x343   : > { %v16157_v15 = vunpack.i.h.bf16 %v12734_v56  ;;  %vm16159_vm6 = vmmov %vm16156_vm10  ;;  %v4228_v46 = vmax.f32 %v4123_v4, %v4185_v44  ;;  %v4127_v14 = vmax.f32 %v4010_v63, %v4081_v60  ;;  %v16160_v55 = vunpack.i.h.bf16 %v13158_v3 }
 0x344   : > { %v4346_v49 = vsel %vm16156_vm10, %v16155_v5, %v10033_v54  ;;  %v4347_v40 = vsel %vm16159_vm6, %v10033_v54, %v15639_v57  ;;  %vm16161_vm1 = vcmask 670720   ;;  %v15642_v18 = vunpack.i.l.bf16 %v13290_v33  ;;  %10236 = vrot.lane.b32.xlu1 %v16140_v11, %s10860_s22  ;;  %v13499_v60 = vpop.permute.xlu0 %10111  ;;  %10231 = vrot.lane.b32.xlu0 %v16140_v11, %s10860_s22  ;;  %vm16166_vm7 = vmmov %vm16159_vm6  ;;  %s10878_s22 = smov 98  }
 0x345   : > { %v4187_v2 = vsel %vm16158_vm14, %v16157_v15, %v15640_v28  ;;  %v4463_v12 = vsel %vm16161_vm1, %v16160_v55, %v10038_v27  ;;  %v10109_v56 = vunpack.i.h.bf16 %v13465_v48  ;;  %v10108_v5 = vunpack.i.l.bf16 %v13465_v48  ;;  %v13490_v15 = vpop.permute.xlu1 %10126  ;;  %vm16162_vm4 = vmmov %vm16161_vm1 }
 0x346   : > { %v4464_v54 = vsel %vm16162_vm4, %v10038_v27, %v15638_v52  ;;  %v4392_v4 = vmax.f32 %v4227_v31, %v4346_v49  ;;  %v4232_v44 = vmax.f32 %v4127_v14, %v4187_v2  ;;  %v4236_v3 = vmax.f32 %v4131_v37, %v10069_v51  ;;  %vm16173_vm3 = vmmov %vm16161_vm1 }
 0x347   : > { %v16163_v48 = vunpack.i.h.bf16 %v13087_v25  ;;  %vm16164_vm13 = vcmask 662528   ;;  %v10114_v31 = vunpack.i.h.bf16 %v13499_v60  ;;  %v4393_v49 = vmax.f32 %v4228_v46, %v4347_v40  ;;  %vm16182_vm10 = vmmov %vm16158_vm14 }
 0x348   : > { %v10074_v37 = vunpack.i.h.bf16 %v13290_v33  ;;  %v15644_v2 = vunpack.i.l.bf16 %v13419_v16  ;;  %v10113_v14 = vunpack.i.l.bf16 %v13499_v60  ;;  %v16165_v52 = vunpack.i.h.bf16 %v12746_v53  ;;  %10246 = vrot.lane.b32.xlu1 %v16140_v11, %s10861_s23  ;;  %10241 = vrot.lane.b32.xlu0 %v16140_v11, %s10861_s23  ;;  %vm16177_vm15 = vmmov %vm16164_vm13  ;;  %s10879_s23 = smov 97  }
 0x349   : > { %v13509_v55 = vsel %vm16164_vm13, %v16163_v48, %v15643_v39  ;;  %v15645_v48 = vunpack.i.l.bf16 %v13310_v26  ;;  %v16167_v57 = vunpack.i.h.bf16 %v13288_v24  ;;  %v3852_v40 = vsel %vm16168_vm9, %v10108_v5, %v10109_v56  ;;  %v13526_v46 = vpop.permute.xlu1 %10136  ;;  %v16175_v39 = vld [vmem:[#allocation14_spill] sm:$0xff]  ;;  %vm16183_vm14 = vmmov %vm16182_vm10 }
 0x34a   : > { %v4350_v25 = vsel %vm16166_vm7, %v16165_v52, %v15642_v18  ;;  %v13530_v60 = vmax.f32 %v4392_v4, %v4463_v12  ;;  %v10079_v28 = vunpack.i.h.bf16 %v13419_v16  ;;  %v4401_v61 = vmax.f32 %v4236_v3, %v10074_v37  ;;  %v13533_v52 = vpop.permute.xlu0 %10116  ;;  %vm16185_vm1 = vmmov %vm16159_vm6 }
 0x34b   : > { %v3851_v1 = vsel %vm16135_vm8, %v16167_v57, %v10108_v5  ;;  %v4397_v53 = vmax.f32 %v4232_v44, %v4350_v25  ;;  %v16169_v24 = vunpack.i.h.bf16 %v13308_v8  ;;  %v3969_v5 = vsel %vm16171_vm2, %v10113_v14, %v10114_v31  ;;  %v16174_v25 = vld [vmem:[#allocation15_spill] sm:$0xff]  ;;  %vm16186_vm4 = vmmov %vm16171_vm2 }
 0x34c   : > { %v10119_v18 = vunpack.i.h.bf16 %v13533_v52  ;;  %v10118_v12 = vunpack.i.l.bf16 %v13533_v52  ;;  %v13543_v4 = vmax.f32 %v4393_v49, %v4464_v54  ;;  %v16172_v44 = vunpack.i.h.bf16 %v12748_v45  ;;  %vm16187_vm13 = vmmov %vm16173_vm3 }
 0x34d   : > { %v3968_v57 = vsel %vm16170_vm5, %v16169_v24, %v10113_v14  ;;  %v3898_v27 = vmax.f32 %v16174_v25, %v3851_v1  ;;  %v3899_v8 = vmax.f32 %v16175_v39, %v3852_v40  ;;  %v10084_v24 = vunpack.i.h.bf16 %v13310_v26  ;;  %vm16189_vm7 = vmmov %vm16173_vm3 }
 0x34e   : > { %v4467_v3 = vsel %vm16173_vm3, %v16172_v44, %v15644_v2  ;;  %v16176_v14 = vunpack.i.h.bf16 %v12774_v34  ;;  %v16178_v54 = vunpack.i.h.bf16 %v13340_v47  ;;  %v4086_v45 = vsel %vm16180_vm11, %v10118_v12, %v10119_v18  ;;  %v13564_v44 = vpop.permute.xlu1 %10146  ;;  %v13568_v2 = vpop.permute.xlu0 %10121  ;;  %vm16190_vm8 = vmmov %vm16177_vm15 }
 0x34f   : > { %v10128_v1 = vunpack.i.l.bf16 %v13490_v15  ;;  %v4015_v39 = vmax.f32 %v3898_v27, %v3968_v57  ;;  %v4016_v40 = vmax.f32 %v3899_v8, %v3969_v5  ;;  %v15646_v25 = vunpack.i.l.bf16 %v13564_v44  ;;  %vm16195_vm5 = vmmov %vm16190_vm8 }
 0x350   : > { %v13558_v52 = vsel %vm16177_vm15, %v16176_v14, %v15645_v48  ;;  %v4085_v49 = vsel %vm16179_vm0, %v16178_v54, %v10118_v12  ;;  %v4514_v34 = vmax.f32 %v4397_v53, %v4467_v3  ;;  %v4518_v63 = vmax.f32 %v4401_v61, %v10079_v28  ;;  %vm16196_vm2 = vmmov %vm16179_vm0 }
 0x351   : > { %v15647_v14 = vunpack.i.h.bf16 %v13568_v2  ;;  %v10123_v47 = vunpack.i.l.bf16 %v13568_v2  ;;  %v15649_v54 = vunpack.i.h.bf16 %v13490_v15  ;;  %v4132_v48 = vmax.f32 %v4015_v39, %v4085_v49  ;;  %vm16204_vm11 = vmmov %vm16195_vm5 }
 0x352   : > { %v4133_v12 = vmax.f32 %v4016_v40, %v4086_v45  ;;  %v3853_v6 = vsel %vm16181_vm12, %v10109_v56, %v15646_v25  ;;  %v10089_v27 = vunpack.i.h.bf16 %v13455_v32  ;;  %v13584_v5 = vpop.permute.xlu1 %10151  ;;  %v4354_v3 = vsel %vm16159_vm6, %v10074_v37, %v10128_v1  ;;  %v13588_v45 = vpop.permute.xlu0 %10131  ;;  %v16184_v40 = vld [vmem:[#allocation21_spill] sm:$0xff] }
 0x353   : > { %v4190_v61 = vsel %vm16182_vm10, %v10069_v51, %v10123_v47  ;;  %v4191_v53 = vsel %vm16183_vm14, %v10123_v47, %v15647_v14  ;;  %v10153_v56 = vunpack.i.l.bf16 %v13584_v5  ;;  %v10138_v39 = vunpack.i.l.bf16 %v13526_v46  ;;  %vm16211_vm10 = vmmov %vm16195_vm5 }
 0x354   : > { %v4237_v8 = vmax.f32 %v4132_v48, %v4190_v61  ;;  %v4238_v49 = vmax.f32 %v4133_v12, %v4191_v53  ;;  %v3900_v25 = vmax.f32 %v16184_v40, %v3853_v6  ;;  %v10133_v57 = vunpack.i.l.bf16 %v13588_v45 }
 0x355   : > { %v4355_v47 = vsel %vm16185_vm1, %v10128_v1, %v15649_v54  ;;  %v3970_v48 = vsel %vm16186_vm4, %v10114_v31, %v10153_v56  ;;  %v4635_v61 = vmax.f32 %v4518_v63, %v10084_v24  ;;  %v4631_v51 = vmax.f32 %v4514_v34, %v13558_v52 }
 0x356   : > { %v4402_v12 = vmax.f32 %v4237_v8, %v4354_v3  ;;  %v13601_v53 = vmax.f32 %v3900_v25, %v3970_v48  ;;  %v4403_v14 = vmax.f32 %v4238_v49, %v4355_v47  ;;  %v4471_v6 = vsel %vm16187_vm13, %v10079_v28, %v10133_v57  ;;  %v13604_v40 = vpop.permute.xlu1 %10156  ;;  %v13611_v35 = vpop.permute.xlu0 %10141 }
 0x357   : > { %v16188_v11 = vunpack.i.h.bf16 %v13588_v45  ;;  %v10158_v37 = vunpack.i.l.bf16 %v13604_v40  ;;  %v4588_v63 = vsel %vm16190_vm8, %v10084_v24, %v10138_v39  ;;  %v10144_v25 = vunpack.i.h.bf16 %v13611_v35 }
 0x358   : > { %v4519_v54 = vmax.f32 %v4402_v12, %v4471_v6  ;;  %v10143_v28 = vunpack.i.l.bf16 %v13611_v35  ;;  %v16191_v3 = vunpack.i.l.bf16 %v13455_v32  ;;  %v16192_v52 = vunpack.i.h.bf16 %v12776_v43  ;;  %v10646_v35 = vld [vmem:[%s15459_s4 + $0x210] ss:$12 sps:$4 sm:$0xff]  }
 0x359   : > { %v4472_v1 = vsel %vm16189_vm7, %v10133_v57, %v16188_v11  ;;  %vm16193_vm9 = vcmask 654336   ;;  %v16194_v11 = vunpack.i.h.bf16 %v13526_v46  ;;  %v13627_v8 = vsel %vm16196_vm2, %v10119_v18, %v10158_v37 }
 0x35a   : > { %v4520_v31 = vmax.f32 %v4403_v14, %v4472_v1  ;;  %v4701_v34 = vsel %vm16193_vm9, %v16192_v52, %v16191_v3  ;;  %v4636_v24 = vmax.f32 %v4519_v54, %v4588_v63  ;;  %v4626_v14 = vmax.f32 %v13530_v60, %v13509_v55  ;;  %vm16197_vm3 = vmmov %vm16193_vm9 }
 0x35b   : > { %v4589_v57 = vsel %vm16195_vm5, %v10138_v39, %v16194_v11  ;;  %v4134_v49 = vmax.f32 %v13601_v53, %v13627_v8  ;;  %v4705_v48 = vsel %vm16197_vm3, %v10089_v27, %v10143_v28  ;;  %v15650_v12 = vunpack.i.h.bf16 %v13210_v30  ;;  %vm16200_vm15 = vmmov %vm16197_vm3 }
 0x35c   : > { %v4637_v47 = vmax.f32 %v4520_v31, %v4589_v57  ;;  %v16198_v6 = vunpack.i.l.bf16 %v13210_v30  ;;  %v16199_v39 = vunpack.i.l.bf16 %v12906_v42  ;;  %vm16201_vm0 = vmmov %vm16197_vm3  ;;  %v4753_v54 = vmax.f32 %v4636_v24, %v4705_v48 }
 0x35d   : > { %v4706_v18 = vsel %vm16201_vm0, %v10143_v28, %v10144_v25  ;;  %v16202_v55 = vunpack.i.h.bf16 %v13241_v36  ;;  %v16203_v60 = vunpack.i.l.bf16 %v13241_v36  ;;  %v15651_v31 = vunpack.i.h.bf16 %v13264_v59  ;;  %vm16207_vm12 = vmmov %vm16201_vm0 }
 0x35e   : > { %v4692_v1 = vsel %vm16200_vm15, %v16199_v39, %v16198_v6  ;;  %v4748_v3 = vmax.f32 %v4631_v51, %v4701_v34  ;;  %v4754_v52 = vmax.f32 %v4637_v47, %v4706_v18  ;;  %v16205_v42 = vunpack.i.l.bf16 %v13264_v59  ;;  %vm16213_vm14 = vmmov %vm16201_vm0 }
 0x35f   : > { %v4581_v63 = vsel %vm16204_vm11, %v16203_v60, %v16202_v55  ;;  %v16206_v57 = vunpack.i.h.bf16 %v13185_v41  ;;  %v4752_v28 = vmax.f32 %v4635_v61, %v10089_v27  ;;  %v4765_v24 = vpack.c.bf16 %v4753_v54, %v13335_v21  ;;  %vm16215_vm6 = vmmov %vm16201_vm0 }
 0x360   : > { %v4627_v11 = vmax.f32 %v13543_v4, %v4581_v63  ;;  %v4620_v48 = vmax.f32 %v13370_v0, %v13368_v38  ;;  %v4766_v55 = vpack.c.bf16 %v4754_v52, %v4748_v3  ;;  %v16208_v60 = vunpack.i.l.bf16 %v12776_v43  ;;  %vm16226_vm9 = vmmov %vm16196_vm2 }
 0x361   : > { %v4697_v6 = vsel %vm16207_vm12, %v16206_v57, %v16205_v42  ;;  %4956 = vrot.lane.b32.xlu0 %v4765_v24, %s10869_s21  ;;  %v16209_v4 = vunpack.i.h.bf16 %v16115_v9  ;;  %v16210_v41 = vunpack.i.l.bf16 %v16115_v9  ;;  %v16212_v21 = vunpack.i.l.bf16 %v13210_v30  ;;  %v10660_v24 = vld [vmem:[%s15459_s4 + $0x260] ss:$12 sps:$4 sm:$0xff]   ;;  %vm16227_vm5 = vmmov %vm16196_vm2 }
 0x362   : > { %v4743_v39 = vmax.f32 %v4626_v14, %v4697_v6  ;;  %v4746_v51 = vmax.f32 %v13323_v7, %v16208_v60  ;;  %v4737_v0 = vmax.f32 %v4620_v48, %v4692_v1  ;;  %v16214_v43 = vmov %v16205_v42  ;;  %4958 = vrot.lane.b32.xlu1 %v4766_v55, %s10869_s21 }
 0x363   : > { %v4576_v34 = vsel %vm16211_vm10, %v16210_v41, %v16209_v4  ;;  %v4693_v38 = vsel %vm16213_vm14, %v16212_v21, %v15650_v12  ;;  %v4698_v7 = vsel %vm16215_vm6, %v16214_v43, %v15651_v31  ;;  %vm4966_vm1 = vcmask 195584   ;;  %v10636_v43 = vld [vmem:[%s15459_s4 + $0x1b4] ss:$12 sps:$4 sm:$0xff]  }
 0x364   : > { %v4621_v27 = vmax.f32 %v13372_v10, %v4576_v34  ;;  %v4744_v61 = vmax.f32 %v4627_v11, %v4698_v7  ;;  %v4764_v14 = vpack.c.bf16 %v4752_v28, %v4746_v51  ;;  %v4761_v47 = vpack.c.bf16 %v4743_v39, %v4737_v0  ;;  %v10628_v10 = vld [vmem:[%s15459_s4 + $0x180] ss:$12 sps:$4 sm:$0xff]   ;;  %v10656_v11 = vld [vmem:[%s15459_s4 + $0x188] ss:$12 sps:$4 sm:$0xff]   ;;  %v10631_v0 = vld [vmem:[%s15459_s4 + $0x198] ss:$12 sps:$4 sm:$0xff]  }
 0x365   : > { %v10094_v63 = vunpack.i.h.bf16 %v13352_v62  ;;  %v10149_v3 = vunpack.i.h.bf16 %v13564_v44  ;;  %v10633_v28 = vld [vmem:[%s15459_s4 + $0x19c] ss:$12 sps:$4 sm:$0xff]   ;;  %v10099_v48 = vunpack.i.h.bf16 %v13393_v19  ;;  %v10154_v39 = vunpack.i.h.bf16 %v13584_v5  ;;  %v10661_v7 = vld [vmem:[%s15459_s4 + $0x1a0] ss:$12 sps:$4 sm:$0xff]  }
 0x366   : > { %v4738_v18 = vmax.f32 %v4621_v27, %v4693_v38  ;;  %4954 = vrot.lane.b32.xlu0 %v4764_v14, %s10869_s21  ;;  %4948 = vrot.lane.b32.xlu1 %v4761_v47, %s10869_s21  ;;  %v16216_v55 = vunpack.i.l.bf16 %v13352_v62  ;;  %vm16217_vm4 = vcmask 1039360   ;;  %v10104_v51 = vunpack.i.h.bf16 %v13429_v58  ;;  %v10665_v47 = vld [vmem:[%s15459_s4 + $0x278] ss:$12 sps:$4 sm:$0xff]  }
 0x367   : > { %v16218_v4 = vunpack.i.l.bf16 %v13564_v44  ;;  %vm16219_vm13 = vmmov %vm16217_vm4  ;;  %v15655_v34 = vunpack.i.h.bf16 %v13604_v40  ;;  %v16220_v27 = vunpack.i.l.bf16 %v13393_v19  ;;  %vm16221_vm7 = vcmask 1031168   ;;  %v10640_v44 = vld [vmem:[%s15459_s4 + $0x1e0] ss:$12 sps:$4 sm:$0xff]   ;;  %v10690_v19 = vld [vmem:[%s15459_s4 + $0x2f0] ss:$12 sps:$4 sm:$0xff]  }
 0x368   : > { %v4762_v54 = vpack.c.bf16 %v4744_v61, %v4738_v18  ;;  %v3849_v60 = vsel %vm16217_vm4, %v16216_v55, %v10094_v63  ;;  %vm16222_vm8 = vmmov %vm16221_vm7  ;;  %v16223_v18 = vld [vmem:[#allocation18_spill] sm:$0xff]  ;;  %vm16229_vm2 = vcmask 850944   ;;  %vm16235_vm11 = vcmask 842752  }
 0x369   : > { %v3854_v41 = vsel %vm16219_vm13, %v16218_v4, %v10149_v3  ;;  %v3966_v61 = vsel %vm16221_vm7, %v16220_v27, %v10099_v48  ;;  %v3971_v14 = vsel %vm16222_vm8, %v10153_v56, %v10154_v39  ;;  %v4088_v56 = vsel %vm16227_vm5, %v10158_v37, %v15655_v34  ;;  %v10639_v37 = vld [vmem:[%s15459_s4 + $0x1cc] ss:$12 sps:$4 sm:$0xff]   ;;  %vm16230_vm3 = vmmov %vm16229_vm2 }
 0x36a   : > { %4950 = vrot.lane.b32.xlu0 %v4762_v54, %s10869_s21  ;;  %v3895_v54 = vmax.f32 %v16223_v18, %v3849_v60  ;;  %v10634_v60 = vld [vmem:[%s15459_s4 + $0x1b0] ss:$12 sps:$4 sm:$0xff]   ;;  %vm16232_vm15 = vmmov %vm16229_vm2  ;;  %v16239_v8 = vmax.f32 %v13427_v13, %v13463_v23  ;;  %v16243_v13 = vunpack.i.h.bf16 %v13588_v45  ;;  %vm16244_vm6 = vcmask 670720   ;;  %v10676_v45 = vld [vmem:[%s15459_s4 + $0x1e8] ss:$12 sps:$4 sm:$0xff]  }
 0x36b   : > { %vm16233_vm0 = vmmov %vm16229_vm2  ;;  %vm16250_vm8 = vcmask 662528  }
 0x36c   : > { %v4012_v4 = vmax.f32 %v3895_v54, %v3966_v61  ;;  %v10670_v61 = vld [vmem:[%s15459_s4 + $0x290] ss:$12 sps:$4 sm:$0xff]   ;;  %vm16236_vm12 = vmmov %vm16235_vm11 }
 0x36d   : > { %vm16241_vm10 = vmmov %vm16235_vm11 }
 0x36e   : > { %vm16242_vm14 = vmmov %vm16241_vm10 }
 0x36f   : > { %vm16245_vm4 = vmmov %vm16244_vm6 }
 0x370   : > { %vm16247_vm13 = vmmov %vm16245_vm4 }
 0x371   : > { %vm16248_vm7 = vmmov %vm16245_vm4 }
 0x372   : > { %vm16253_vm5 = vmmov %vm16250_vm8 }
 0x375   : > { %v4943_v1 = vpop.permute.xlu1 %4942 }
 0x394   : > { %v13684_v42 = vpop.permute.xlu0 %4946 }
 0x395   : > { %v4945_v52 = vpop.permute.xlu1 %4944 }
 0x396   : > { %v4967_v57 = vsel %vm4966_vm1, %v4943_v1, %v4945_v52  ;;  %v4968_v6 = vsel %vm4966_vm1, %v4945_v52, %v13684_v42  ;;  %v16224_v1 = vld [vmem:[#allocation19_spill] sm:$0xff] }
 0x397   : > { %5659 = vmatprep.mubr.bf16.mxu1 %v4968_v6  ;;  %5818 = vmatprep.mubr.bf16.mxu0 %v4968_v6  ;;  %v3901_v52 = vmax.f32 %v16224_v1, %v3854_v41 }
 0x398   : > { %5660 = vmatmul.mubr.bf16.vlgmr.msra.gmra.mrb[16].mxu1 %v4967_v57  ;;  %5819 = vmatmul.mubr.bf16.vlgmr.msra.gmra.mrb[4].mxu0 %v4967_v57  ;;  %v13717_v38 = vpop.permute.xlu0 %10161  ;;  %v16225_v57 = vunpack.i.l.bf16 %v13429_v58 }
 0x399   : > { %v13715_v21 = vpop.permute.xlu1 %10166  ;;  %5681 = vmatpush1.bf16.msra.mxu1 %v10628_v10  ;;  %9408 = vmatpush3.bf16.msra.mxu0 %v10656_v11  ;;  %v4018_v41 = vmax.f32 %v3901_v52, %v3971_v14  ;;  %v16228_v52 = vunpack.i.h.bf16 %v13568_v2  ;;  %v10637_v2 = vld [vmem:[%s15459_s4 + $0x1c8] ss:$12 sps:$4 sm:$0xff]  }
 0x39a   : > { %5682 = vmatprep.subr.bf16.mxu1 %v10633_v28  ;;  %9409 = vmatprep.subr.bf16.mxu0 %v10660_v24  ;;  %v15653_v10 = vunpack.i.h.bf16 %v13715_v21  ;;  %v10168_v11 = vunpack.i.l.bf16 %v13715_v21  ;;  %v4083_v6 = vsel %vm16226_vm9, %v16225_v57, %v10104_v51  ;;  %v15652_v28 = vunpack.i.h.bf16 %v13717_v38  ;;  %vm16251_vm9 = vmmov %vm16250_vm8 }
 0x39b   : > { %v10163_v24 = vunpack.i.l.bf16 %v13717_v38  ;;  %v4129_v14 = vmax.f32 %v4012_v4, %v4083_v6  ;;  %v4135_v54 = vmax.f32 %v4018_v41, %v4088_v56 }
 0x39c   : > { %v13764_v1 = vpop.permute.xlu0 %10171  ;;  %v4193_v57 = vsel %vm16230_vm3, %v10168_v11, %v15653_v10  ;;  %vm16255_vm3 = vcmask 654336  }
 0x39d   : > { %v13757_v55 = vpop.permute.xlu1 %10176  ;;  %5683 = vmatpush1.bf16.msra.mxu1 %v10631_v0  ;;  %9410 = vmatpush3.bf16.msra.mxu0 %v10661_v7  ;;  %v10666_v0 = vld [vmem:[%s15459_s4 + $0x1b8] ss:$12 sps:$4 sm:$0xff]   ;;  %v16231_v7 = vunpack.i.l.bf16 %v13381_v22  ;;  %v10174_v31 = vunpack.i.h.bf16 %v13764_v1  ;;  %v10173_v6 = vunpack.i.l.bf16 %v13764_v1 }
 0x39e   : > { %v15654_v27 = vunpack.i.h.bf16 %v13757_v55  ;;  %v10178_v18 = vunpack.i.l.bf16 %v13757_v55  ;;  %5684 = vmatprep.subr.bf16.mxu1 %v10636_v43  ;;  %9411 = vmatprep.subr.bf16.mxu0 %v10665_v47  ;;  %v4192_v43 = vsel %vm16229_vm2, %v16228_v52, %v10168_v11  ;;  %v4189_v47 = vsel %vm16233_vm0, %v10163_v24, %v15652_v28  ;;  %vm16254_vm2 = vmmov %vm16253_vm5 }
 0x39f   : > { %v4188_v12 = vsel %vm16232_vm15, %v16231_v7, %v10163_v24  ;;  %v16234_v11 = vunpack.i.h.bf16 %v13490_v15  ;;  %v10671_v15 = vld [vmem:[%s15459_s4 + $0x1d0] ss:$12 sps:$4 sm:$0xff]   ;;  %v4240_v7 = vmax.f32 %v4135_v54, %v4193_v57  ;;  %v4234_v54 = vmax.f32 %v4129_v14, %v4189_v47  ;;  %vm16256_vm15 = vmmov %vm16255_vm3 }
 0x3a0   : > { %v4357_v4 = vsel %vm16236_vm12, %v10178_v18, %v15654_v27  ;;  %v13802_v52 = vpop.permute.xlu0 %10181  ;;  %v16238_v27 = vld [vmem:[#allocation12_spill] sm:$0xff]  ;;  %v16240_v57 = vunpack.i.l.bf16 %v13290_v33  ;;  %v4352_v62 = vsel %vm16242_vm14, %v10173_v6, %v10174_v31  ;;  %v10645_v14 = vld [vmem:[%s15459_s4 + $0x1fc] ss:$12 sps:$4 sm:$0xff]   ;;  %v16246_v47 = vunpack.i.l.bf16 %v13419_v16  ;;  %vm16258_vm0 = vmmov %vm16255_vm3 }
 0x3a1   : > { %v13789_v56 = vpop.permute.xlu1 %10186  ;;  %5685 = vmatpush1.bf16.msra.mxu1 %v10634_v60  ;;  %v4356_v22 = vsel %vm16235_vm11, %v16234_v11, %v10178_v18  ;;  %v10642_v60 = vld [vmem:[%s15459_s4 + $0x1e4] ss:$12 sps:$4 sm:$0xff]   ;;  %9412 = vmatpush3.bf16.msra.mxu0 %v10666_v0  ;;  %v4239_v18 = vmax.f32 %v4134_v49, %v4192_v43  ;;  %v10184_v11 = vunpack.i.h.bf16 %v13802_v52  ;;  %v10183_v28 = vunpack.i.l.bf16 %v13802_v52  ;;  %v16237_v0 = vld [vmem:[#allocation13_spill] sm:$0xff]  ;;  %vm16259_vm11 = vmmov %vm16258_vm0 }
 0x3a2   : > { %v10189_v24 = vunpack.i.h.bf16 %v13789_v56  ;;  %v10188_v41 = vunpack.i.l.bf16 %v13789_v56  ;;  %5686 = vmatprep.subr.bf16.mxu1 %v10639_v37  ;;  %9413 = vmatprep.subr.bf16.mxu0 %v10670_v61  ;;  %v10675_v37 = vld [vmem:[%s15459_s4 + $0x2a8] ss:$12 sps:$4 sm:$0xff]   ;;  %v13821_v10 = vmax.f32 %v16237_v0, %v10094_v63  ;;  %v13826_v53 = vmax.f32 %v16238_v27, %v10149_v3  ;;  %vm16261_vm12 = vmmov %vm16241_vm10 }
 0x3a3   : > { %v4233_v49 = vmax.f32 %v16239_v8, %v4188_v12  ;;  %v4404_v61 = vmax.f32 %v4239_v18, %v4356_v22  ;;  %v4405_v43 = vmax.f32 %v4240_v7, %v4357_v4  ;;  %v4351_v34 = vsel %vm16241_vm10, %v16240_v57, %v10173_v6  ;;  %vm16266_vm14 = vmmov %vm16241_vm10 }
 0x3a4   : > { %v4473_v23 = vsel %vm16244_vm6, %v16243_v13, %v10188_v41  ;;  %v4474_v33 = vsel %vm16245_vm4, %v10188_v41, %v10189_v24  ;;  %v13850_v27 = vpop.permute.xlu0 %10191  ;;  %v4468_v6 = vsel %vm16247_vm13, %v16246_v47, %v10183_v28  ;;  %v10680_v41 = vld [vmem:[%s15459_s4 + $0x2c0] ss:$12 sps:$4 sm:$0xff]   ;;  %v16249_v18 = vunpack.i.h.bf16 %v13526_v46  ;;  %v10643_v46 = vld [vmem:[%s15459_s4 + $0x1f8] ss:$12 sps:$4 sm:$0xff]   ;;  %vm16268_vm6 = vmmov %vm16241_vm10 }
 0x3a5   : > { %v13837_v63 = vpop.permute.xlu1 %10196  ;;  %5687 = vmatpush1.bf16.msra.mxu1 %v10637_v2  ;;  %9414 = vmatpush3.bf16.msra.mxu0 %v10671_v15  ;;  %v4469_v2 = vsel %vm16248_vm7, %v10183_v28, %v10184_v11  ;;  %v10194_v22 = vunpack.i.h.bf16 %v13850_v27  ;;  %v10193_v4 = vunpack.i.l.bf16 %v13850_v27  ;;  %v4399_v15 = vmax.f32 %v4234_v54, %v4352_v62  ;;  %v10648_v62 = vld [vmem:[%s15459_s4 + $0x214] ss:$12 sps:$4 sm:$0xff]   ;;  %vm16269_vm13 = vmmov %vm16245_vm4 }
 0x3a6   : > { %v10199_v12 = vunpack.i.h.bf16 %v13837_v63  ;;  %v10198_v3 = vunpack.i.l.bf16 %v13837_v63  ;;  %5688 = vmatprep.subr.bf16.mxu1 %v10642_v60  ;;  %9415 = vmatprep.subr.bf16.mxu0 %v10675_v37  ;;  %v4398_v60 = vmax.f32 %v4233_v49, %v4351_v34  ;;  %v4521_v28 = vmax.f32 %v4404_v61, %v4473_v23  ;;  %vm16271_vm7 = vmmov %vm16245_vm4  ;;  %v10657_v63 = vld [vmem:[%s15459_s4 + $0x258] ss:$12 sps:$4 sm:$0xff]  }
 0x3a7   : > { %v4522_v0 = vmax.f32 %v4405_v43, %v4474_v33  ;;  %v16252_v8 = vunpack.i.l.bf16 %v13310_v26  ;;  %v4586_v57 = vsel %vm16254_vm2, %v10193_v4, %v10194_v22  ;;  %v4516_v54 = vmax.f32 %v4399_v15, %v4469_v2 }
 0x3a8   : > { %v4590_v16 = vsel %vm16250_vm8, %v16249_v18, %v10198_v3  ;;  %v4591_v7 = vsel %vm16251_vm9, %v10198_v3, %v10199_v12  ;;  %v4515_v49 = vmax.f32 %v4398_v60, %v4468_v6  ;;  %v13888_v26 = vpop.permute.xlu0 %10201  ;;  %v16257_v15 = vunpack.i.l.bf16 %v13455_v32  ;;  %vm16273_vm8 = vmmov %vm16245_vm4 }
 0x3a9   : > { %v4585_v37 = vsel %vm16253_vm5, %v16252_v8, %v10193_v4  ;;  %v13881_v34 = vpop.permute.xlu1 %10206  ;;  %5689 = vmatpush1.bf16.msra.mxu1 %v10640_v44  ;;  %9416 = vmatpush3.bf16.msra.mxu0 %v10676_v45  ;;  %v10681_v44 = vld [vmem:[%s15459_s4 + $0x200] ss:$12 sps:$4 sm:$0xff]   ;;  %v4638_v13 = vmax.f32 %v4521_v28, %v4590_v16  ;;  %v4639_v23 = vmax.f32 %v4522_v0, %v4591_v7  ;;  %v10204_v33 = vunpack.i.h.bf16 %v13888_v26  ;;  %vm16276_vm9 = vmmov %vm16254_vm2 }
 0x3aa   : > { %v10209_v61 = vunpack.i.h.bf16 %v13881_v34  ;;  %v10208_v43 = vunpack.i.l.bf16 %v13881_v34  ;;  %5690 = vmatprep.subr.bf16.mxu1 %v10645_v14  ;;  %v10203_v3 = vunpack.i.l.bf16 %v13888_v26  ;;  %9417 = vmatprep.subr.bf16.mxu0 %v10680_v41  ;;  %v10685_v14 = vld [vmem:[%s15459_s4 + $0x2d8] ss:$12 sps:$4 sm:$0xff]   ;;  %v4632_v47 = vmax.f32 %v4515_v49, %v4585_v37  ;;  %vm16277_vm5 = vmmov %vm16254_vm2  ;;  %v10662_v26 = vld [vmem:[%s15459_s4 + $0x270] ss:$12 sps:$4 sm:$0xff]  }
 0x3ab   : > { %v4633_v6 = vmax.f32 %v4516_v54, %v4586_v57  ;;  %v4013_v32 = vmax.f32 %v13821_v10, %v10099_v48  ;;  %v4019_v37 = vmax.f32 %v13826_v53, %v10154_v39  ;;  %v10651_v57 = vld [vmem:[%s15459_s4 + $0x22c] ss:$12 sps:$4 sm:$0xff]   ;;  %v16260_v48 = vunpack.i.h.bf16 %v13604_v40 }
 0x3ac   : > { %v4707_v45 = vsel %vm16255_vm3, %v10144_v25, %v10208_v43  ;;  %v4708_v2 = vsel %vm16256_vm15, %v10208_v43, %v10209_v61  ;;  %v4702_v41 = vsel %vm16258_vm0, %v16257_v15, %v10203_v3  ;;  %v4703_v18 = vsel %vm16259_vm11, %v10203_v3, %v10204_v33  ;;  %v10654_v3 = vld [vmem:[%s15459_s4 + $0x244] ss:$12 sps:$4 sm:$0xff]   ;;  %vm16280_vm3 = vmmov %vm16254_vm2  ;;  %v10669_v34 = vld [vmem:[%s15459_s4 + $0x28c] ss:$12 sps:$4 sm:$0xff]  }
 0x3ad   : > { %v4755_v4 = vmax.f32 %v4638_v13, %v4707_v45  ;;  %v4756_v60 = vmax.f32 %v4639_v23, %v4708_v2  ;;  %5691 = vmatpush1.bf16.msra.mxu1 %v10643_v46  ;;  %v4749_v25 = vmax.f32 %v4632_v47, %v4702_v41  ;;  %v4750_v7 = vmax.f32 %v4633_v6, %v4703_v18  ;;  %v10686_v46 = vld [vmem:[%s15459_s4 + $0x218] ss:$12 sps:$4 sm:$0xff]   ;;  %v10691_v45 = vld [vmem:[%s15459_s4 + $0x230] ss:$12 sps:$4 sm:$0xff]   ;;  %v13959_v2 = vld [vmem:[%s15459_s4 + $0x308] ss:$12 sps:$4 sm:$0xff]  }
 0x3ae   : > { %v10217_v16 = vpop.permute.xlu1 %10216  ;;  %v10212_v8 = vpop.permute.xlu0 %10211  ;;  %5692 = vmatprep.subr.bf16.mxu1 %v10648_v62  ;;  %9418 = vmatpush3.bf16.msra.mxu0 %v10681_v44  ;;  %v4130_v5 = vmax.f32 %v4013_v32, %v10104_v51  ;;  %v4136_v39 = vmax.f32 %v4019_v37, %v16260_v48  ;;  %v10649_v62 = vld [vmem:[%s15459_s4 + $0x228] ss:$12 sps:$4 sm:$0xff]   ;;  %v16262_v13 = vunpack.i.h.bf16 %v13757_v55  ;;  %v16267_v15 = vunpack.i.h.bf16 %v12868_v29  ;;  %vm16281_vm15 = vmmov %vm16258_vm0 }
 0x3af   : > { %v10219_v28 = vunpack.i.h.bf16 %v10217_v16  ;;  %v10218_v0 = vunpack.i.l.bf16 %v10217_v16  ;;  %9419 = vmatprep.subr.bf16.mxu0 %v10685_v14  ;;  %v4768_v49 = vpack.c.bf16 %v4756_v60, %v4750_v7  ;;  %v4767_v54 = vpack.c.bf16 %v4755_v4, %v4749_v25  ;;  %v10652_v16 = vld [vmem:[%s15459_s4 + $0x240] ss:$12 sps:$4 sm:$0xff]   ;;  %v10659_v29 = vld [vmem:[%s15459_s4 + $0x25c] ss:$12 sps:$4 sm:$0xff]   ;;  %vm16283_vm11 = vmmov %vm16258_vm0 }
 0x3b0   : > { %v10214_v10 = vunpack.i.h.bf16 %v10212_v8  ;;  %v10213_v53 = vunpack.i.l.bf16 %v10212_v8  ;;  %v16263_v14 = vunpack.i.h.bf16 %v13715_v21  ;;  %v16265_v60 = vunpack.i.h.bf16 %v13187_v20 }
 0x3b1   : > { %5693 = vmatpush1.bf16.msra.mxu1 %v10646_v35  ;;  %v4353_v44 = vsel %vm16261_vm12, %v10174_v31, %v10218_v0  ;;  %v4358_v58 = vsel %vm16241_vm10, %v16262_v13, %v10219_v28  ;;  %4962 = vrot.lane.b32.xlu0 %v4768_v49, %s10869_s21  ;;  %v16264_v31 = vunpack.i.h.bf16 %v13717_v38  ;;  %v16270_v0 = vunpack.i.h.bf16 %v13212_v50  ;;  %vm16285_vm12 = vmmov %vm16258_vm0 }
 0x3b2   : > { %v10227_v43 = vpop.permute.xlu1 %10226  ;;  %v10222_v40 = vpop.permute.xlu0 %10221  ;;  %4960 = vrot.lane.b32.xlu1 %v4767_v54, %s10869_s21  ;;  %v4241_v1 = vmax.f32 %v4136_v39, %v16263_v14  ;;  %5694 = vmatprep.subr.bf16.mxu1 %v10651_v57  ;;  %v4348_v38 = vsel %vm16266_vm14, %v16265_v60, %v10214_v10  ;;  %v4343_v41 = vsel %vm16268_vm6, %v16267_v15, %v10213_v53  ;;  %v16272_v52 = vunpack.i.h.bf16 %v16109_v17  ;;  %v16275_v57 = vld [vmem:[#allocation30_spill] sm:$0xff]  ;;  %v10677_v60 = vld [vmem:[%s15459_s4 + $0x2b8] ss:$12 sps:$4 sm:$0xff]  }
 0x3b3   : > { %v10229_v51 = vunpack.i.h.bf16 %v10227_v43  ;;  %v10228_v23 = vunpack.i.l.bf16 %v10227_v43  ;;  %v4235_v47 = vmax.f32 %v4130_v5, %v16264_v31  ;;  %v10224_v55 = vunpack.i.h.bf16 %v10222_v40  ;;  %9420 = vmatpush3.bf16.msra.mxu0 %v10686_v46 }
 0x3b4   : > { %v10223_v6 = vunpack.i.l.bf16 %v10222_v40  ;;  %9421 = vmatprep.subr.bf16.mxu0 %v10690_v19  ;;  %v4406_v21 = vmax.f32 %v4241_v1, %v4358_v58  ;;  %v4388_v46 = vmax.f32 %v16275_v57, %v4343_v41  ;;  %v16278_v19 = vunpack.i.h.bf16 %v13241_v36  ;;  %v10664_v36 = vld [vmem:[%s15459_s4 + $0x274] ss:$12 sps:$4 sm:$0xff]   ;;  %v10682_v41 = vld [vmem:[%s15459_s4 + $0x2d0] ss:$12 sps:$4 sm:$0xff]   ;;  %v10703_v57 = vld [vmem:[%s15459_s4 + $0x338] ss:$12 sps:$4 sm:$0xff]  }
 0x3b5   : > { %v4400_v4 = vmax.f32 %v4235_v47, %v4353_v44  ;;  %5695 = vmatpush1.bf16.msra.mxu1 %v10649_v62  ;;  %v4470_v35 = vsel %vm16245_vm4, %v10184_v11, %v10228_v23  ;;  %v4475_v20 = vsel %vm16269_vm13, %v10189_v24, %v10229_v51  ;;  %v4465_v8 = vsel %vm16271_vm7, %v16270_v0, %v10224_v55  ;;  %v16274_v24 = vld [vmem:[#allocation31_spill] sm:$0xff] }
 0x3b6   : > { %v10237_v18 = vpop.permute.xlu1 %10236  ;;  %v10232_v28 = vpop.permute.xlu0 %10231  ;;  %5696 = vmatprep.subr.bf16.mxu1 %v10654_v3  ;;  %v4460_v11 = vsel %vm16273_vm8, %v16272_v52, %v10223_v6  ;;  %v4394_v37 = vmax.f32 %v16274_v24, %v4348_v38  ;;  %v4523_v54 = vmax.f32 %v4406_v21, %v4475_v20  ;;  %v16279_v48 = vunpack.i.h.bf16 %v16115_v9  ;;  %v10679_v21 = vld [vmem:[%s15459_s4 + $0x2bc] ss:$12 sps:$4 sm:$0xff]   ;;  %v10684_v38 = vld [vmem:[%s15459_s4 + $0x2d4] ss:$12 sps:$4 sm:$0xff]   ;;  %v10696_v24 = vld [vmem:[%s15459_s4 + $0x318] ss:$12 sps:$4 sm:$0xff]  }
 0x3b7   : > { %v10239_v25 = vunpack.i.h.bf16 %v10237_v18  ;;  %v10238_v7 = vunpack.i.l.bf16 %v10237_v18  ;;  %v10234_v32 = vunpack.i.h.bf16 %v10232_v28  ;;  %v10233_v56 = vunpack.i.l.bf16 %v10232_v28  ;;  %9422 = vmatpush3.bf16.msra.mxu0 %v10691_v45  ;;  %v10674_v45 = vld [vmem:[%s15459_s4 + $0x2a4] ss:$12 sps:$4 sm:$0xff]   ;;  %v10692_v52 = vld [vmem:[%s15459_s4 + $0x300] ss:$12 sps:$4 sm:$0xff]  }
 0x3b8   : > { %9582 = vmatprep.subr.bf16.mxu0 %v13959_v2  ;;  %v4517_v17 = vmax.f32 %v4400_v4, %v4470_v35  ;;  %v4505_v27 = vmax.f32 %v4388_v46, %v4460_v11  ;;  %v16282_v1 = vunpack.i.h.bf16 %v13264_v59  ;;  %v16284_v47 = vunpack.i.h.bf16 %v13210_v30  ;;  %v10667_v30 = vld [vmem:[%s15459_s4 + $0x288] ss:$12 sps:$4 sm:$0xff]   ;;  %v10672_v4 = vld [vmem:[%s15459_s4 + $0x2a0] ss:$12 sps:$4 sm:$0xff]   ;;  %v10694_v28 = vld [vmem:[%s15459_s4 + $0x304] ss:$12 sps:$4 sm:$0xff]  }
 0x3b9   : > { %v4587_v49 = vsel %vm16276_vm9, %v10194_v22, %v10238_v7  ;;  %v4592_v50 = vsel %vm16277_vm5, %v10199_v12, %v10239_v25  ;;  %v4582_v5 = vsel %vm16254_vm2, %v16278_v19, %v10234_v32  ;;  %v4577_v39 = vsel %vm16280_vm3, %v16279_v48, %v10233_v56  ;;  %5697 = vmatpush1.bf16.msra.mxu1 %v10652_v16  ;;  %v10689_v16 = vld [vmem:[%s15459_s4 + $0x2ec] ss:$12 sps:$4 sm:$0xff]   ;;  %v10687_v25 = vld [vmem:[%s15459_s4 + $0x2e8] ss:$12 sps:$4 sm:$0xff]   ;;  %v10707_v46 = vld [vmem:[%s15459_s4 + $0x350] ss:$12 sps:$4 sm:$0xff]  }
 0x3ba   : > { %v10247_v10 = vpop.permute.xlu1 %10246  ;;  %v4511_v12 = vmax.f32 %v4394_v37, %v4465_v8  ;;  %v10242_v43 = vpop.permute.xlu0 %10241  ;;  %5698 = vmatprep.subr.bf16.mxu1 %v10659_v29  ;;  %v4634_v62 = vmax.f32 %v4517_v17, %v4587_v49  ;;  %v4640_v9 = vmax.f32 %v4523_v54, %v4592_v50  ;;  %v4622_v58 = vmax.f32 %v4505_v27, %v4577_v39  ;;  %v10698_v11 = vld [vmem:[%s15459_s4 + $0x31c] ss:$12 sps:$4 sm:$0xff]   ;;  %v10699_v32 = vld [vmem:[%s15459_s4 + $0x320] ss:$12 sps:$4 sm:$0xff]   ;;  %v10710_v50 = vld [vmem:[%s15459_s4 + $0x364] ss:$12 sps:$4 sm:$0xff]  }
 0x3bb   : > { %v10249_v22 = vunpack.i.h.bf16 %v10247_v10  ;;  %v10248_v53 = vunpack.i.l.bf16 %v10247_v10  ;;  %v10244_v44 = vunpack.i.h.bf16 %v10242_v43  ;;  %v10243_v13 = vunpack.i.l.bf16 %v10242_v43  ;;  %v10702_v37 = vld [vmem:[%s15459_s4 + $0x334] ss:$12 sps:$4 sm:$0xff]   ;;  %v10714_v19 = vld [vmem:[%s15459_s4 + $0x37c] ss:$12 sps:$4 sm:$0xff]   ;;  %v10712_v48 = vld [vmem:[%s15459_s4 + $0x378] ss:$12 sps:$4 sm:$0xff]  }
 0x3bc   : > { %v4628_v51 = vmax.f32 %v4511_v12, %v4582_v5  ;;  %v10704_v49 = vld [vmem:[%s15459_s4 + $0x348] ss:$12 sps:$4 sm:$0xff]   ;;  %v10708_v54 = vld [vmem:[%s15459_s4 + $0x360] ss:$12 sps:$4 sm:$0xff]   ;;  %v10719_v10 = vld [vmem:[%s15459_s4 + $0x398] ss:$12 sps:$4 sm:$0xff]  }
 0x3bd   : > { %v4704_v23 = vsel %vm16281_vm15, %v10204_v33, %v10248_v53  ;;  %v4709_v40 = vsel %vm16258_vm0, %v10209_v61, %v10249_v22  ;;  %v4699_v31 = vsel %vm16283_vm11, %v16282_v1, %v10244_v44  ;;  %v4694_v55 = vsel %vm16285_vm12, %v16284_v47, %v10243_v13  ;;  %5699 = vmatpush1.bf16.msra.mxu1 %v10657_v63  ;;  %v10711_v17 = vld [vmem:[%s15459_s4 + $0x368] ss:$12 sps:$4 sm:$0xff]   ;;  %v10715_v5 = vld [vmem:[%s15459_s4 + $0x380] ss:$12 sps:$4 sm:$0xff]   ;;  %v10716_v63 = vld [vmem:[%s15459_s4 + $0x390] ss:$12 sps:$4 sm:$0xff]  }
 0x3be   : > { %v4751_v3 = vmax.f32 %v4634_v62, %v4704_v23  ;;  %v4757_v14 = vmax.f32 %v4640_v9, %v4709_v40  ;;  %v4739_v33 = vmax.f32 %v4622_v58, %v4694_v55  ;;  %v4745_v6 = vmax.f32 %v4628_v51, %v4699_v31  ;;  %5700 = vmatprep.subr.bf16.mxu1 %v10664_v36  ;;  %v10718_v39 = vld [vmem:[%s15459_s4 + $0x394] ss:$12 sps:$4 sm:$0xff]   ;;  %v10722_v27 = vld [vmem:[%s15459_s4 + $0x3ac] ss:$12 sps:$4 sm:$0xff]   ;;  %v10723_v12 = vld [vmem:[%s15459_s4 + $0x3b0] ss:$12 sps:$4 sm:$0xff]  }
 0x3bf   : > { %v10720_v22 = vld [vmem:[%s15459_s4 + $0x3a8] ss:$12 sps:$4 sm:$0xff]   ;;  %vm16292_vm4 = vcmask 1031168   ;;  %vm16296_vm9 = vcmask 1022976   ;;  %vm6085_vm3 = vcmask 1014784   ;;  %vm6122_vm0 = vcmask 932864  }
 0x3c0   : > { %v4769_v61 = vpack.c.bf16 %v4757_v14, %v4751_v3  ;;  %v4763_v59 = vpack.c.bf16 %v4745_v6, %v4739_v33  ;;  %v16286_v9 = vld [vmem:[#allocation27_spill] sm:$0xff]  ;;  %vm16293_vm13 = vmmov %vm16292_vm4  ;;  %vm6159_vm11 = vcmask 924672   ;;  %vm6196_vm12 = vcmask 916480  }
 0x3c1   : > { %5701 = vmatpush1.bf16.msra.mxu1 %v10662_v26  ;;  %vm16294_vm7 = vmmov %vm16292_vm4 }
 0x3c2   : > { %4964 = vrot.lane.b32.xlu0 %v4769_v61, %s10869_s21  ;;  %4952 = vrot.lane.b32.xlu1 %v4763_v59, %s10869_s21  ;;  %s10875_s21 = smov 110   ;;  %vm16295_vm8 = vmmov %vm16292_vm4 }
 0x3c3   : > { %5702 = vmatprep.subr.bf16.mxu1 %v10669_v34  ;;  %vm16297_vm5 = vmmov %vm16296_vm9 }
 0x3c4   : > { %vm16298_vm2 = vmmov %vm16297_vm5 }
 0x3c5   : > { %5703 = vmatpush1.bf16.msra.mxu1 %v10667_v30  ;;  %vm16299_vm15 = vmmov %vm16298_vm2 }
 0x3c6   : > { %5704 = vmatprep.subr.bf16.mxu1 %v10674_v45 }
 0x3c9   : > { %5705 = vmatpush1.bf16.msra.mxu1 %v10672_v4 }
 0x3ca   : > { %5706 = vmatprep.subr.bf16.mxu1 %v10679_v21 }
 0x3cd   : > { %5707 = vmatpush1.bf16.msra.mxu1 %v10677_v60 }
 0x3ce   : > { %5708 = vmatprep.subr.bf16.mxu1 %v10684_v38 }
 0x3d1   : > { %5709 = vmatpush1.bf16.msra.mxu1 %v10682_v41 }
 0x3d2   : > { %5710 = vmatprep.subr.bf16.mxu1 %v10689_v16 }
 0x3d3   : > { %v4957_v15 = vpop.permute.xlu0 %4956 }
 0x3d4   : > { %v14047_v18 = vpop.permute.xlu1 %4958 }
 0x3d5   : > { %v4973_v35 = vsel %vm4966_vm1, %v4957_v15, %v14047_v18  ;;  %5711 = vmatpush1.bf16.msra.mxu1 %v10687_v25 }
 0x3d6   : > { %5669 = vmatprep.mubr.bf16.mxu1 %v4973_v35  ;;  %5826 = vmatprep.mubr.bf16.mxu0 %v4973_v35 }
 0x3d7   : > { %5733 = vmatprep.subr.bf16.mxu1 %v10694_v28 }
 0x3d8   : > { %v4955_v20 = vpop.permute.xlu0 %4954  ;;  %v4949_v29 = vpop.permute.xlu1 %4948 }
 0x3d9   : > { %v4972_v7 = vsel %vm4966_vm1, %v4955_v20, %v4957_v15  ;;  %v4969_v56 = vsel %vm4966_vm1, %v13684_v42, %v4949_v29  ;;  %v10700_v42 = vld [vmem:[%s15459_s4 + $0x330] ss:$12 sps:$4 sm:$0xff]  }
 0x3da   : > { %5670 = vmatmul.mubr.bf16.gmra.mrb[20].mxu1 %v4972_v7  ;;  %5827 = vmatmul.mubr.bf16.gmra.mrb[8].mxu0 %v4972_v7 }
 0x3dc   : > { %v14061_v0 = vpop.permute.xlu0 %4950 }
 0x3dd   : > { %v4970_v8 = vsel %vm4966_vm1, %v4949_v29, %v14061_v0 }
 0x3de   : > { %5712 = vmatprep.mubr.bf16.mxu1 %v4970_v8  ;;  %5867 = vmatprep.mubr.bf16.mxu0 %v4970_v8 }
 0x3e2   : > { %5713 = vmatmul.mubr.bf16.vlgmr.msra.gmra.mrb[16].mxu1 %v4969_v56  ;;  %5868 = vmatmul.mubr.bf16.vlgmr.msra.gmra.mrb[12].mxu0 %v4969_v56 }
 0x3e3   : > { %5734 = vmatpush1.bf16.msra.mxu1 %v10692_v52  ;;  %9583 = vmatpush3.bf16.msra.mxu0 %v13959_v2  ;;  %v10706_v2 = vld [vmem:[%s15459_s4 + $0x34c] ss:$12 sps:$4 sm:$0xff]  }
 0x3e4   : > { %5735 = vmatprep.subr.bf16.mxu1 %v10698_v11  ;;  %9584 = vmatprep.subr.bf16.mxu0 %v10699_v32 }
 0x3e7   : > { %5736 = vmatpush1.bf16.msra.mxu1 %v10696_v24  ;;  %9585 = vmatpush3.bf16.msra.mxu0 %v10699_v32 }
 0x3e8   : > { %5737 = vmatprep.subr.bf16.mxu1 %v10702_v37  ;;  %9586 = vmatprep.subr.bf16.mxu0 %v10703_v57 }
 0x3eb   : > { %5738 = vmatpush1.bf16.msra.mxu1 %v10700_v42  ;;  %9587 = vmatpush3.bf16.msra.mxu0 %v10703_v57 }
 0x3ec   : > { %5739 = vmatprep.subr.bf16.mxu1 %v10706_v2  ;;  %9588 = vmatprep.subr.bf16.mxu0 %v10707_v46 }
 0x3ef   : > { %5740 = vmatpush1.bf16.msra.mxu1 %v10704_v49  ;;  %9589 = vmatpush3.bf16.msra.mxu0 %v10707_v46 }
 0x3f0   : > { %5741 = vmatprep.subr.bf16.mxu1 %v10710_v50  ;;  %9590 = vmatprep.subr.bf16.mxu0 %v10711_v17 }
 0x3f3   : > { %5742 = vmatpush1.bf16.msra.mxu1 %v10708_v54  ;;  %9591 = vmatpush3.bf16.msra.mxu0 %v10711_v17 }
 0x3f4   : > { %5743 = vmatprep.subr.bf16.mxu1 %v10714_v19  ;;  %9592 = vmatprep.subr.bf16.mxu0 %v10715_v5 }
 0x3f7   : > { %5744 = vmatpush1.bf16.msra.mxu1 %v10712_v48  ;;  %9593 = vmatpush3.bf16.msra.mxu0 %v10715_v5 }
 0x3f8   : > { %5745 = vmatprep.subr.bf16.mxu1 %v10718_v39  ;;  %9594 = vmatprep.subr.bf16.mxu0 %v10719_v10 }
 0x3fb   : > { %5746 = vmatpush1.bf16.msra.mxu1 %v10716_v63  ;;  %9595 = vmatpush3.bf16.msra.mxu0 %v10719_v10 }
 0x3fc   : > { %5747 = vmatprep.subr.bf16.mxu1 %v10722_v27  ;;  %9596 = vmatprep.subr.bf16.mxu0 %v10723_v12 }
 0x3ff   : > { %5748 = vmatpush1.bf16.msra.mxu1 %v10720_v22  ;;  %9597 = vmatpush3.bf16.msra.mxu0 %v10723_v12 }
 0x423   : > { %v4963_v53 = vpop.permute.xlu0 %4962 }
 0x424   : > { %v4961_v43 = vpop.permute.xlu1 %4960 }
 0x425   : > { %v4975_v36 = vsel %vm4966_vm1, %v4961_v43, %v4963_v53  ;;  %v4974_v62 = vsel %vm4966_vm1, %v14047_v18, %v4961_v43 }
 0x426   : > { %5722 = vmatprep.mubr.bf16.mxu1 %v4975_v36  ;;  %5875 = vmatprep.mubr.bf16.mxu0 %v4975_v36 }
 0x427   : > { %5723 = vmatmul.mubr.bf16.gmra.mrb[20].mxu1 %v4974_v62  ;;  %5876 = vmatmul.mubr.bf16.gmra.mrb[16].mxu0 %v4974_v62 }
 0x428   : > { %5765 = vmatprep.mubr.bf16.mxu1 %v16286_v9 }
 0x434   : > { %v4965_v44 = vpop.permute.xlu0 %4964  ;;  %v4953_v58 = vpop.permute.xlu1 %4952 }
 0x435   : > { %v4976_v13 = vsel %vm4966_vm1, %v4963_v53, %v4965_v44  ;;  %v4971_v51 = vsel %vm4966_vm1, %v14061_v0, %v4953_v58  ;;  %vm16288_vm1 = vcmask 1039360  }
 0x436   : > { %5766 = vmatmul.mubr.bf16.vlgmr.msra.gmra.mrb[16].mxu1 %v4971_v51  ;;  %9598 = vmatprep.mubr.bf16.mxu0 %v4971_v51  ;;  %v10726_v51 = vld [vmem:[%s15460_s5 + $0x4] ss:$28 sps:$4 sm:$0xff]   ;;  %vm16289_vm10 = vmmov %vm16288_vm1 }
 0x437   : > { %9599 = vmatmul.mubr.bf16.vlgmr.msra.gmra.mrb[20].mxu0 %v4976_v13  ;;  %5775 = vmatprep.mubr.bf16.mxu1 %v16286_v9  ;;  %vm16290_vm14 = vmmov %vm16288_vm1 }
 0x438   : > { %7086 = vmatprep.mubr.bf16.mxu0 %v10726_v51  ;;  %vm16291_vm6 = vmmov %vm16288_vm1 }
 0x43e   : > { %5776 = vmatmul.mubr.bf16.gmra.mrb[20].mxu1 %v4976_v13 }
 0x46b   : > { %v9395_v23 = vpop.f32.mrb[4].mxu0 }
 0x46c   : > { %v9396_v40 = vpop.f32.mrb[5].mxu0 }
 0x46d   : > { %v9397_v3 = vadd.f32 %v9396_v40, %v9395_v23  ;;  %v9398_v14 = vpop.f32.mrb[6].mxu0 }
 0x46e   : > { %v9399_v1 = vpop.f32.mrb[7].mxu0 }
 0x46f   : > { %v9400_v31 = vadd.f32 %v9399_v1, %v9398_v14 }
 0x4ad   : > { %v9401_v47 = vpop.f32.mrb[8].mxu0 }
 0x4ae   : > { %v9402_v55 = vpop.f32.mrb[9].mxu0 }
 0x4af   : > { %v9403_v26 = vadd.f32 %v9402_v55, %v9401_v47  ;;  %v9404_v33 = vpop.f32.mrb[10].mxu0 }
 0x4b0   : > { %v9405_v6 = vpop.f32.mrb[11].mxu0 }
 0x4b1   : > { %v9406_v34 = vadd.f32 %v9405_v6, %v9404_v33 }
 0x4b5   : > { %v9423_v61 = vpop.f32.mrb[12].mxu0 }
 0x4b6   : > { %v9424_v59 = vpop.f32.mrb[13].mxu0 }
 0x4b7   : > { %v9425_v30 = vadd.f32 %v9424_v59, %v9423_v61  ;;  %v9426_v45 = vpop.f32.mrb[14].mxu0 }
 0x4b8   : > { %v9427_v4 = vpop.f32.mrb[15].mxu0 }
 0x4b9   : > { %v9428_v21 = vadd.f32 %v9427_v4, %v9426_v45  ;;  %v5870_v60 = vadd.f32 %v9425_v30, %v9397_v3 }
 0x4bb   : > { %v5873_v38 = vadd.f32 %v9428_v21, %v9400_v31 }
 0x4fa   : > { %v9429_v15 = vpop.f32.mrb[16].mxu0 }
 0x4fb   : > { %v9430_v41 = vpop.f32.mrb[17].mxu0 }
 0x4fc   : > { %v9431_v18 = vadd.f32 %v9430_v41, %v9429_v15  ;;  %v9432_v16 = vpop.f32.mrb[18].mxu0 }
 0x4fd   : > { %v9433_v35 = vpop.f32.mrb[19].mxu0 }
 0x4fe   : > { %v9434_v20 = vadd.f32 %v9433_v35, %v9432_v16  ;;  %v5878_v25 = vadd.f32 %v9431_v18, %v9403_v26 }
 0x500   : > { %v5881_v7 = vadd.f32 %v9434_v20, %v9406_v34 }
 0x509   : > { %v5767_v28 = vpop.f32.mrb[16].mxu1 }
 0x50a   : > { %v5769_v29 = vpop.f32.mrb[17].mxu1  ;;  %v9600_v0 = vpop.f32.mrb[20].mxu0 }
 0x50b   : > { %v5927_v8 = vadd.f32 %v9600_v0, %v5878_v25  ;;  %v5771_v52 = vpop.f32.mrb[18].mxu1  ;;  %v5918_v11 = vpop.f32.mrb[21].mxu0 }
 0x50c   : > { %v14142_v32 = vpack.c.bf16 %v5771_v52, %v5767_v28  ;;  %v5919_v56 = vadd.f32 %v5918_v11, %v5870_v60  ;;  %v5773_v24 = vpop.f32.mrb[19].mxu1  ;;  %v9601_v37 = vpop.f32.mrb[22].mxu0 }
 0x50d   : > { %v14144_v57 = vpack.c.bf16 %v5773_v24, %v5769_v29  ;;  %v5930_v42 = vadd.f32 %v9601_v37, %v5881_v7  ;;  %v5921_v2 = vpop.f32.mrb[23].mxu0 }
 0x50e   : > { %v5922_v46 = vadd.f32 %v5921_v2, %v5873_v38 }
 0x50f   : > { %v14146_v49 = vpack.c.bf16 %v5930_v42, %v5927_v8  ;;  %7054 = vmatprep.subr.bf16.mxu0 %v14144_v57 }
 0x510   : > { %v14149_v50 = vpack.c.bf16 %v5922_v46, %v5919_v56  ;;  %7055 = vmatpush1.bf16.msra.mxu0 %v14142_v32 }
 0x511   : > { %5975 = vrot.lane.b32.xlu1 %v14146_v49, %s10853_s15  ;;  %v5777_v17 = vpop.f32.mrb[20].mxu1 }
 0x512   : > { %5969 = vrot.lane.b32.xlu0 %v14149_v50, %s10853_s15  ;;  %v5779_v54 = vpop.f32.mrb[21].mxu1 }
 0x513   : > { %v5781_v19 = vpop.f32.mrb[22].mxu1 }
 0x514   : > { %v14156_v5 = vpack.c.bf16 %v5781_v19, %v5777_v17  ;;  %v5783_v48 = vpop.f32.mrb[23].mxu1 }
 0x515   : > { %v14158_v39 = vpack.c.bf16 %v5783_v48, %v5779_v54  ;;  %6011 = vrot.lane.b32.xlu1 %v14146_v49, %s15656_s14 }
 0x516   : > { %6005 = vrot.lane.b32.xlu0 %v14149_v50, %s15656_s14 }
 0x517   : > { %7056 = vmatprep.subr.bf16.mxu0 %v14158_v39 }
 0x518   : > { %7057 = vmatpush1.bf16.msra.mxu0 %v14156_v5 }
 0x519   : > { %6047 = vrot.lane.b32.xlu1 %v14146_v49, %s16287_s27 }
 0x51a   : > { %6041 = vrot.lane.b32.xlu0 %v14149_v50, %s16287_s27 }
 0x51d   : > { %6083 = vrot.lane.b32.xlu1 %v14146_v49, %s10870_s17 }
 0x51e   : > { %6077 = vrot.lane.b32.xlu0 %v14149_v50, %s10870_s17 }
 0x521   : > { %6120 = vrot.lane.b32.xlu1 %v14146_v49, %s10871_s28 }
 0x522   : > { %6114 = vrot.lane.b32.xlu0 %v14149_v50, %s10871_s28 }
 0x525   : > { %6157 = vrot.lane.b32.xlu1 %v14146_v49, %s10872_s29 }
 0x526   : > { %6151 = vrot.lane.b32.xlu0 %v14149_v50, %s10872_s29 }
 0x529   : > { %6194 = vrot.lane.b32.xlu1 %v14146_v49, %s10873_s24 }
 0x52a   : > { %6188 = vrot.lane.b32.xlu0 %v14149_v50, %s10873_s24 }
 0x52d   : > { %6231 = vrot.lane.b32.xlu1 %v14146_v49, %s10874_s16 }
 0x52e   : > { %6225 = vrot.lane.b32.xlu0 %v14149_v50, %s10874_s16 }
 0x531   : > { %6268 = vrot.lane.b32.xlu1 %v14146_v49, %s10875_s21 }
 0x532   : > { %6262 = vrot.lane.b32.xlu0 %v14149_v50, %s10875_s21 }
 0x535   : > { %6305 = vrot.lane.b32.xlu1 %v14146_v49, %s10876_s18 }
 0x536   : > { %6299 = vrot.lane.b32.xlu0 %v14149_v50, %s10876_s18 }
 0x539   : > { %6342 = vrot.lane.b32.xlu1 %v14146_v49, %s10877_s19 }
 0x53a   : > { %6336 = vrot.lane.b32.xlu0 %v14149_v50, %s10877_s19 }
 0x53d   : > { %5965 = vrot.lane.b32.xlu1 %v14142_v32, %s10853_s15 }
 0x53e   : > { %6373 = vrot.lane.b32.xlu0 %v14149_v50, %s10878_s22 }
 0x541   : > { %6001 = vrot.lane.b32.xlu1 %v14142_v32, %s15656_s14 }
 0x542   : > { %5971 = vrot.lane.b32.xlu0 %v14156_v5, %s10853_s15 }
 0x545   : > { %6037 = vrot.lane.b32.xlu1 %v14142_v32, %s16287_s27 }
 0x546   : > { %6007 = vrot.lane.b32.xlu0 %v14156_v5, %s15656_s14 }
 0x549   : > { %6073 = vrot.lane.b32.xlu1 %v14142_v32, %s10870_s17 }
 0x54a   : > { %6043 = vrot.lane.b32.xlu0 %v14156_v5, %s16287_s27 }
 0x54d   : > { %6110 = vrot.lane.b32.xlu1 %v14142_v32, %s10871_s28 }
 0x54e   : > { %6079 = vrot.lane.b32.xlu0 %v14156_v5, %s10870_s17 }
 0x551   : > { %6147 = vrot.lane.b32.xlu1 %v14142_v32, %s10872_s29 }
 0x552   : > { %6116 = vrot.lane.b32.xlu0 %v14156_v5, %s10871_s28 }
 0x555   : > { %6184 = vrot.lane.b32.xlu1 %v14142_v32, %s10873_s24 }
 0x556   : > { %6153 = vrot.lane.b32.xlu0 %v14156_v5, %s10872_s29 }
 0x559   : > { %6221 = vrot.lane.b32.xlu1 %v14142_v32, %s10874_s16 }
 0x55a   : > { %6190 = vrot.lane.b32.xlu0 %v14156_v5, %s10873_s24 }
 0x55d   : > { %6258 = vrot.lane.b32.xlu1 %v14142_v32, %s10875_s21 }
 0x55e   : > { %6227 = vrot.lane.b32.xlu0 %v14156_v5, %s10874_s16 }
 0x561   : > { %6295 = vrot.lane.b32.xlu1 %v14142_v32, %s10876_s18 }
 0x562   : > { %6264 = vrot.lane.b32.xlu0 %v14156_v5, %s10875_s21 }
 0x565   : > { %6332 = vrot.lane.b32.xlu1 %v14142_v32, %s10877_s19 }
 0x566   : > { %6301 = vrot.lane.b32.xlu0 %v14156_v5, %s10876_s18 }
 0x569   : > { %6369 = vrot.lane.b32.xlu1 %v14142_v32, %s10878_s22 }
 0x56a   : > { %6338 = vrot.lane.b32.xlu0 %v14156_v5, %s10877_s19 }
 0x56d   : > { %5967 = vrot.lane.b32.xlu1 %v14144_v57, %s10853_s15 }
 0x56e   : > { %5973 = vrot.lane.b32.xlu0 %v14158_v39, %s10853_s15 }
 0x571   : > { %6379 = vrot.lane.b32.xlu1 %v14146_v49, %s10878_s22 }
 0x572   : > { %6375 = vrot.lane.b32.xlu0 %v14156_v5, %s10878_s22 }
 0x575   : > { %6003 = vrot.lane.b32.xlu1 %v14144_v57, %s15656_s14 }
 0x576   : > { %6009 = vrot.lane.b32.xlu0 %v14158_v39, %s15656_s14  ;;  %s10881_s14 = smov 86  }
 0x579   : > { %6039 = vrot.lane.b32.xlu1 %v14144_v57, %s16287_s27 }
 0x57a   : > { %6410 = vrot.lane.b32.xlu0 %v14149_v50, %s10879_s23 }
 0x57d   : > { %6075 = vrot.lane.b32.xlu1 %v14144_v57, %s10870_s17 }
 0x57e   : > { %6045 = vrot.lane.b32.xlu0 %v14158_v39, %s16287_s27  ;;  %s10882_s27 = smov 85  }
 0x581   : > { %6112 = vrot.lane.b32.xlu1 %v14144_v57, %s10871_s28 }
 0x582   : > { %6412 = vrot.lane.b32.xlu0 %v14156_v5, %s10879_s23 }
 0x583   : > { %v14274_v10 = vpop.permute.xlu1 %5975 }
 0x584   : > { %v14276_v63 = vpop.permute.xlu0 %5969 }
 0x585   : > { %6149 = vrot.lane.b32.xlu1 %v14144_v57, %s10872_s29 }
 0x586   : > { %6081 = vrot.lane.b32.xlu0 %v14158_v39, %s10870_s17 }
 0x587   : > { %v14282_v27 = vpop.permute.xlu1 %6011 }
 0x588   : > { %v14284_v12 = vpop.permute.xlu0 %6005 }
 0x589   : > { %6186 = vrot.lane.b32.xlu1 %v14144_v57, %s10873_s24 }
 0x58a   : > { %6447 = vrot.lane.b32.xlu0 %v14149_v50, %s10880_s30 }
 0x58b   : > { %v14290_v22 = vpop.permute.xlu1 %6047 }
 0x58c   : > { %v14292_v53 = vpop.permute.xlu0 %6041 }
 0x58d   : > { %6223 = vrot.lane.b32.xlu1 %v14144_v57, %s10874_s16 }
 0x58e   : > { %6118 = vrot.lane.b32.xlu0 %v14158_v39, %s10871_s28 }
 0x58f   : > { %v14298_v43 = vpop.permute.xlu1 %6083 }
 0x590   : > { %v14300_v36 = vpop.permute.xlu0 %6077 }
 0x591   : > { %6260 = vrot.lane.b32.xlu1 %v14144_v57, %s10875_s21 }
 0x592   : > { %6449 = vrot.lane.b32.xlu0 %v14156_v5, %s10880_s30 }
 0x593   : > { %v14306_v62 = vpop.permute.xlu1 %6120 }
 0x594   : > { %v14308_v44 = vpop.permute.xlu0 %6114 }
 0x595   : > { %6297 = vrot.lane.b32.xlu1 %v14144_v57, %s10876_s18 }
 0x596   : > { %6155 = vrot.lane.b32.xlu0 %v14158_v39, %s10872_s29 }
 0x597   : > { %v14314_v13 = vpop.permute.xlu1 %6157 }
 0x598   : > { %v14316_v58 = vpop.permute.xlu0 %6151 }
 0x599   : > { %6334 = vrot.lane.b32.xlu1 %v14144_v57, %s10877_s19 }
 0x59a   : > { %6484 = vrot.lane.b32.xlu0 %v14149_v50, %s10881_s14 }
 0x59b   : > { %v14325_v23 = vpop.permute.xlu1 %6194 }
 0x59c   : > { %v14327_v40 = vpop.permute.xlu0 %6188 }
 0x59d   : > { %6371 = vrot.lane.b32.xlu1 %v14144_v57, %s10878_s22 }
 0x59e   : > { %6192 = vrot.lane.b32.xlu0 %v14158_v39, %s10873_s24 }
 0x59f   : > { %v14333_v3 = vpop.permute.xlu1 %6231 }
 0x5a0   : > { %v14335_v14 = vpop.permute.xlu0 %6225 }
 0x5a1   : > { %6408 = vrot.lane.b32.xlu1 %v14144_v57, %s10879_s23 }
 0x5a2   : > { %6486 = vrot.lane.b32.xlu0 %v14156_v5, %s10881_s14 }
 0x5a3   : > { %v14341_v1 = vpop.permute.xlu1 %6268 }
 0x5a4   : > { %v14343_v31 = vpop.permute.xlu0 %6262 }
 0x5a5   : > { %6406 = vrot.lane.b32.xlu1 %v14142_v32, %s10879_s23 }
 0x5a6   : > { %6229 = vrot.lane.b32.xlu0 %v14158_v39, %s10874_s16  ;;  %s10883_s16 = smov 84  }
 0x5a7   : > { %v14349_v47 = vpop.permute.xlu1 %6305 }
 0x5a8   : > { %v14351_v55 = vpop.permute.xlu0 %6299 }
 0x5a9   : > { %6416 = vrot.lane.b32.xlu1 %v14146_v49, %s10879_s23 }
 0x5aa   : > { %6521 = vrot.lane.b32.xlu0 %v14149_v50, %s10882_s27 }
 0x5ab   : > { %v14357_v26 = vpop.permute.xlu1 %6342 }
 0x5ac   : > { %v14359_v33 = vpop.permute.xlu0 %6336 }
 0x5ad   : > { %6445 = vrot.lane.b32.xlu1 %v14144_v57, %s10880_s30 }
 0x5ae   : > { %6266 = vrot.lane.b32.xlu0 %v14158_v39, %s10875_s21  ;;  %s10884_s21 = smov 83  }
 0x5af   : > { %v5966_v6 = vpop.permute.xlu1 %5965 }
 0x5b0   : > { %v14365_v34 = vpop.permute.xlu0 %6373 }
 0x5b1   : > { %6443 = vrot.lane.b32.xlu1 %v14142_v32, %s10880_s30 }
 0x5b2   : > { %6523 = vrot.lane.b32.xlu0 %v14156_v5, %s10882_s27 }
 0x5b3   : > { %v14371_v61 = vpop.permute.xlu1 %6001 }
 0x5b4   : > { %v5972_v59 = vpop.permute.xlu0 %5971 }
 0x5b5   : > { %6453 = vrot.lane.b32.xlu1 %v14146_v49, %s10880_s30 }
 0x5b6   : > { %6303 = vrot.lane.b32.xlu0 %v14158_v39, %s10876_s18 }
 0x5b7   : > { %v14377_v30 = vpop.permute.xlu1 %6037 }
 0x5b8   : > { %v14379_v45 = vpop.permute.xlu0 %6007 }
 0x5b9   : > { %6482 = vrot.lane.b32.xlu1 %v14144_v57, %s10881_s14 }
 0x5ba   : > { %6558 = vrot.lane.b32.xlu0 %v14149_v50, %s10883_s16 }
 0x5bb   : > { %v14385_v4 = vpop.permute.xlu1 %6073 }
 0x5bc   : > { %v14387_v21 = vpop.permute.xlu0 %6043 }
 0x5bd   : > { %6480 = vrot.lane.b32.xlu1 %v14142_v32, %s10881_s14 }
 0x5be   : > { %6340 = vrot.lane.b32.xlu0 %v14158_v39, %s10877_s19 }
 0x5bf   : > { %v14393_v60 = vpop.permute.xlu1 %6110 }
 0x5c0   : > { %v14395_v38 = vpop.permute.xlu0 %6079 }
 0x5c1   : > { %6490 = vrot.lane.b32.xlu1 %v14146_v49, %s10881_s14 }
 0x5c2   : > { %6560 = vrot.lane.b32.xlu0 %v14156_v5, %s10883_s16 }
 0x5c3   : > { %v14401_v15 = vpop.permute.xlu1 %6147 }
 0x5c4   : > { %v14403_v41 = vpop.permute.xlu0 %6116 }
 0x5c5   : > { %6519 = vrot.lane.b32.xlu1 %v14144_v57, %s10882_s27 }
 0x5c6   : > { %6377 = vrot.lane.b32.xlu0 %v14158_v39, %s10878_s22 }
 0x5c7   : > { %v14409_v18 = vpop.permute.xlu1 %6184 }
 0x5c8   : > { %v14411_v16 = vpop.permute.xlu0 %6153 }
 0x5c9   : > { %6517 = vrot.lane.b32.xlu1 %v14142_v32, %s10882_s27 }
 0x5ca   : > { %6595 = vrot.lane.b32.xlu0 %v14149_v50, %s10884_s21 }
 0x5cb   : > { %v14417_v35 = vpop.permute.xlu1 %6221 }
 0x5cc   : > { %v14419_v20 = vpop.permute.xlu0 %6190 }
 0x5cd   : > { %6527 = vrot.lane.b32.xlu1 %v14146_v49, %s10882_s27 }
 0x5ce   : > { %6414 = vrot.lane.b32.xlu0 %v14158_v39, %s10879_s23  ;;  %s10886_s23 = smov 71  }
 0x5cf   : > { %v14425_v25 = vpop.permute.xlu1 %6258 }
 0x5d0   : > { %v14427_v7 = vpop.permute.xlu0 %6227 }
 0x5d1   : > { %6556 = vrot.lane.b32.xlu1 %v14144_v57, %s10883_s16 }
 0x5d2   : > { %6597 = vrot.lane.b32.xlu0 %v14156_v5, %s10884_s21 }
 0x5d3   : > { %v14433_v28 = vpop.permute.xlu1 %6295 }
 0x5d4   : > { %v14435_v29 = vpop.permute.xlu0 %6264 }
 0x5d5   : > { %6554 = vrot.lane.b32.xlu1 %v14142_v32, %s10883_s16 }
 0x5d6   : > { %6451 = vrot.lane.b32.xlu0 %v14158_v39, %s10880_s30 }
 0x5d7   : > { %v14441_v0 = vpop.permute.xlu1 %6332 }
 0x5d8   : > { %v14443_v8 = vpop.permute.xlu0 %6301 }
 0x5d9   : > { %6564 = vrot.lane.b32.xlu1 %v14146_v49, %s10883_s16 }
 0x5da   : > { %6632 = vrot.lane.b32.xlu0 %v14149_v50, %s15734_s20 }
 0x5db   : > { %v14449_v52 = vpop.permute.xlu1 %6369 }
 0x5dc   : > { %v14451_v11 = vpop.permute.xlu0 %6338 }
 0x5dd   : > { %6593 = vrot.lane.b32.xlu1 %v14144_v57, %s10884_s21 }
 0x5de   : > { %6488 = vrot.lane.b32.xlu0 %v14158_v39, %s10881_s14  ;;  %s10885_s14 = smov 72  }
 0x5df   : > { %v5968_v56 = vpop.permute.xlu1 %5967 }
 0x5e0   : > { %v5974_v24 = vpop.permute.xlu0 %5973  ;;  %v5978_v37 = vsel %vm16288_vm1, %v5968_v56, %v14276_v63  ;;  %v5977_v42 = vsel %vm16289_vm10, %v5966_v6, %v5968_v56  ;;  %vm6233_vm1 = vcmask 908288   ;;  %vm6270_vm10 = vcmask 900096  }
 0x5e1   : > { %6591 = vrot.lane.b32.xlu1 %v14142_v32, %s10884_s21  ;;  %7058 = vmatprep.subr.bf16.mxu0 %v5978_v37  ;;  %v5980_v2 = vsel %vm16290_vm14, %v5974_v24, %v14274_v10  ;;  %v5979_v54 = vsel %vm16291_vm6, %v5972_v59, %v5974_v24  ;;  %vm6307_vm14 = vcmask 818176   ;;  %vm6344_vm6 = vcmask 809984  }
 0x5e2   : > { %6634 = vrot.lane.b32.xlu0 %v14156_v5, %s15734_s20  ;;  %7059 = vmatpush1.bf16.msra.mxu0 %v5977_v42 }
 0x5e3   : > { %v14466_v46 = vpop.permute.xlu1 %6379  ;;  %7060 = vmatprep.subr.bf16.mxu0 %v5980_v2 }
 0x5e4   : > { %v14468_v17 = vpop.permute.xlu0 %6375 }
 0x5e5   : > { %6601 = vrot.lane.b32.xlu1 %v14146_v49, %s10884_s21 }
 0x5e6   : > { %6525 = vrot.lane.b32.xlu0 %v14158_v39, %s10882_s27  ;;  %7061 = vmatpush1.bf16.msra.mxu0 %v5979_v54  ;;  %s16305_s27 = smov 126  }
 0x5e7   : > { %v6004_v19 = vpop.permute.xlu1 %6003 }
 0x5e8   : > { %v6010_v48 = vpop.permute.xlu0 %6009  ;;  %v6014_v10 = vsel %vm16292_vm4, %v6004_v19, %v14284_v12  ;;  %v6013_v63 = vsel %vm16293_vm13, %v14371_v61, %v6004_v19  ;;  %vm6381_vm4 = vcmask 801792   ;;  %vm6418_vm13 = vcmask 793600  }
 0x5e9   : > { %6630 = vrot.lane.b32.xlu1 %v14144_v57, %s15734_s20  ;;  %7062 = vmatprep.subr.bf16.mxu0 %v6014_v10  ;;  %v6016_v51 = vsel %vm16294_vm7, %v6010_v48, %v14282_v27  ;;  %v6015_v12 = vsel %vm16295_vm8, %v14379_v45, %v6010_v48  ;;  %vm6455_vm7 = vcmask 785408   ;;  %vm6492_vm8 = vcmask 703488  }
 0x5ea   : > { %6668 = vrot.lane.b32.xlu0 %v14149_v50, %s10885_s14  ;;  %7063 = vmatpush1.bf16.msra.mxu0 %v6013_v63 }
 0x5eb   : > { %v6040_v6 = vpop.permute.xlu1 %6039  ;;  %7064 = vmatprep.subr.bf16.mxu0 %v6016_v51 }
 0x5ec   : > { %v14485_v59 = vpop.permute.xlu0 %6410  ;;  %v6050_v27 = vsel %vm16296_vm9, %v6040_v6, %v14292_v53  ;;  %v6049_v24 = vsel %vm16297_vm5, %v14377_v30, %v6040_v6  ;;  %vm6529_vm9 = vcmask 695296   ;;  %vm6566_vm5 = vcmask 687104  }
 0x5ed   : > { %6628 = vrot.lane.b32.xlu1 %v14142_v32, %s15734_s20 }
 0x5ee   : > { %6562 = vrot.lane.b32.xlu0 %v14158_v39, %s10883_s16  ;;  %7065 = vmatpush1.bf16.msra.mxu0 %v6015_v12  ;;  %s10889_s16 = smov 68  }
 0x5ef   : > { %v6076_v61 = vpop.permute.xlu1 %6075  ;;  %7066 = vmatprep.subr.bf16.mxu0 %v6050_v27 }
 0x5f0   : > { %v6046_v56 = vpop.permute.xlu0 %6045  ;;  %v6086_v54 = vsel %vm6085_vm3, %v14385_v4, %v6076_v61 }
 0x5f1   : > { %6638 = vrot.lane.b32.xlu1 %v14146_v49, %s15734_s20  ;;  %v6052_v37 = vsel %vm16298_vm2, %v6046_v56, %v14290_v22  ;;  %v6051_v42 = vsel %vm16299_vm15, %v14387_v21, %v6046_v56  ;;  %v6087_v22 = vsel %vm6085_vm3, %v6076_v61, %v14300_v36  ;;  %vm6603_vm2 = vcmask 678912  }
 0x5f2   : > { %6670 = vrot.lane.b32.xlu0 %v14156_v5, %s10885_s14  ;;  %7067 = vmatpush1.bf16.msra.mxu0 %v6049_v24 }
 0x5f3   : > { %v6113_v45 = vpop.permute.xlu1 %6112  ;;  %7068 = vmatprep.subr.bf16.mxu0 %v6052_v37 }
 0x5f4   : > { %v14503_v53 = vpop.permute.xlu0 %6412  ;;  %v6123_v63 = vsel %vm6122_vm0, %v14393_v60, %v6113_v45 }
 0x5f5   : > { %6666 = vrot.lane.b32.xlu1 %v14144_v57, %s10885_s14 }
 0x5f6   : > { %6599 = vrot.lane.b32.xlu0 %v14158_v39, %s10884_s21  ;;  %7069 = vmatpush1.bf16.msra.mxu0 %v6051_v42 }
 0x5f7   : > { %v6150_v30 = vpop.permute.xlu1 %6149  ;;  %7070 = vmatprep.subr.bf16.mxu0 %v6087_v22 }
 0x5f8   : > { %v6082_v2 = vpop.permute.xlu0 %6081  ;;  %v6160_v27 = vsel %vm6159_vm11, %v14401_v15, %v6150_v30 }
 0x5f9   : > { %6664 = vrot.lane.b32.xlu1 %v14142_v32, %s10885_s14  ;;  %v6089_v19 = vsel %vm6085_vm3, %v6082_v2, %v14298_v43  ;;  %v6088_v48 = vsel %vm6085_vm3, %v14395_v38, %v6082_v2  ;;  %v6124_v43 = vsel %vm6122_vm0, %v6113_v45, %v14308_v44  ;;  %vm16301_vm3 = vcmask 670720  }
 0x5fa   : > { %6705 = vrot.lane.b32.xlu0 %v14149_v50, %s10886_s23  ;;  %7071 = vmatpush1.bf16.msra.mxu0 %v6086_v54  ;;  %vm16302_vm15 = vmmov %vm16301_vm3 }
 0x5fb   : > { %v6187_v21 = vpop.permute.xlu1 %6186  ;;  %7072 = vmatprep.subr.bf16.mxu0 %v6089_v19 }
 0x5fc   : > { %v14521_v36 = vpop.permute.xlu0 %6447  ;;  %v6197_v37 = vsel %vm6196_vm12, %v14409_v18, %v6187_v21  ;;  %v10724_v18 = vld [vmem:[%s15460_s5] ss:$28 sps:$4 sm:$0xff]  }
 0x5fd   : > { %6674 = vrot.lane.b32.xlu1 %v14146_v49, %s10885_s14 }
 0x5fe   : > { %6636 = vrot.lane.b32.xlu0 %v14158_v39, %s15734_s20  ;;  %7073 = vmatpush1.bf16.msra.mxu0 %v6088_v48  ;;  %s10887_s20 = smov 70  }
 0x5ff   : > { %v6224_v4 = vpop.permute.xlu1 %6223  ;;  %7074 = vmatprep.subr.bf16.mxu0 %v6124_v43  ;;  %v10732_v43 = vld [vmem:[%s15460_s5 + $0xc] ss:$28 sps:$4 sm:$0xff]  }
 0x600   : > { %v6119_v10 = vpop.permute.xlu0 %6118 }
 0x601   : > { %6703 = vrot.lane.b32.xlu1 %v14144_v57, %s10886_s23  ;;  %v6126_v51 = vsel %vm6122_vm0, %v6119_v10, %v14306_v62  ;;  %v6125_v6 = vsel %vm6122_vm0, %v14403_v41, %v6119_v10  ;;  %v6161_v62 = vsel %vm6159_vm11, %v6150_v30, %v14316_v58  ;;  %v10727_v30 = vld [vmem:[%s15460_s5 + $0x3c] ss:$28 sps:$4 sm:$0xff]  }
 0x602   : > { %6707 = vrot.lane.b32.xlu0 %v14156_v5, %s10886_s23  ;;  %7075 = vmatpush1.bf16.msra.mxu0 %v6123_v63 }
 0x603   : > { %v14539_v38 = vpop.permute.xlu1 %6260  ;;  %7076 = vmatprep.subr.bf16.mxu0 %v6126_v51 }
 0x604   : > { %v14541_v44 = vpop.permute.xlu0 %6449 }
 0x605   : > { %6701 = vrot.lane.b32.xlu1 %v14142_v32, %s10886_s23 }
 0x606   : > { %6672 = vrot.lane.b32.xlu0 %v14158_v39, %s10885_s14  ;;  %7077 = vmatpush1.bf16.msra.mxu0 %v6125_v6  ;;  %s10888_s14 = smov 69  }
 0x607   : > { %v14551_v60 = vpop.permute.xlu1 %6297  ;;  %7078 = vmatprep.subr.bf16.mxu0 %v6161_v62 }
 0x608   : > { %v6156_v12 = vpop.permute.xlu0 %6155 }
 0x609   : > { %6711 = vrot.lane.b32.xlu1 %v14146_v49, %s10886_s23  ;;  %v6163_v41 = vsel %vm6159_vm11, %v6156_v12, %v14314_v13  ;;  %v6162_v56 = vsel %vm6159_vm11, %v14411_v16, %v6156_v12  ;;  %v6198_v13 = vsel %vm6196_vm12, %v6187_v21, %v14327_v40 }
 0x60a   : > { %6742 = vrot.lane.b32.xlu0 %v14149_v50, %s10887_s20  ;;  %7079 = vmatpush1.bf16.msra.mxu0 %v6160_v27 }
 0x60b   : > { %v14560_v61 = vpop.permute.xlu1 %6334  ;;  %7080 = vmatprep.subr.bf16.mxu0 %v6163_v41 }
 0x60c   : > { %v14562_v58 = vpop.permute.xlu0 %6484 }
 0x60d   : > { %6740 = vrot.lane.b32.xlu1 %v14144_v57, %s10887_s20 }
 0x60e   : > { %6709 = vrot.lane.b32.xlu0 %v14158_v39, %s10886_s23  ;;  %7081 = vmatpush1.bf16.msra.mxu0 %v6162_v56  ;;  %s10890_s23 = smov 15  }
 0x60f   : > { %v14571_v15 = vpop.permute.xlu1 %6371  ;;  %7082 = vmatprep.subr.bf16.mxu0 %v6198_v13  ;;  %v16300_v13 = vmov 0.0  }
 0x610   : > { %v6193_v24 = vpop.permute.xlu0 %6192 }
 0x611   : > { %6738 = vrot.lane.b32.xlu1 %v14142_v32, %s10887_s20  ;;  %v6200_v45 = vsel %vm6196_vm12, %v6193_v24, %v14325_v23  ;;  %v6199_v42 = vsel %vm6196_vm12, %v14419_v20, %v6193_v24  ;;  %v6235_v23 = vsel %vm6233_vm1, %v6224_v4, %v14335_v14  ;;  %v6234_v20 = vsel %vm6233_vm1, %v14417_v35, %v6224_v4  ;;  %v10729_v35 = vld [vmem:[%s15460_s5 + $0x38] ss:$28 sps:$4 sm:$0xff]  }
 0x612   : > { %6744 = vrot.lane.b32.xlu0 %v14156_v5, %s10887_s20  ;;  %7083 = vmatpush1.bf16.msra.mxu0 %v6197_v37 }
 0x613   : > { %v14579_v16 = vpop.permute.xlu1 %6408  ;;  %7084 = vmatprep.subr.bf16.mxu0 %v6200_v45 }
 0x614   : > { %v14581_v40 = vpop.permute.xlu0 %6486 }
 0x615   : > { %6748 = vrot.lane.b32.xlu1 %v14146_v49, %s10887_s20 }
 0x616   : > { %6746 = vrot.lane.b32.xlu0 %v14158_v39, %s10887_s20  ;;  %7085 = vmatpush1.bf16.msra.mxu0 %v6199_v42  ;;  %s10891_s20 = smov 32  }
 0x617   : > { %v14592_v22 = vpop.permute.xlu1 %6406  ;;  %7107 = vmatprep.subr.bf16.mxu0 %v6235_v23 }
 0x618   : > { %v6230_v2 = vpop.permute.xlu0 %6229  ;;  %v6419_v37 = vsel %vm6418_vm13, %v14592_v22, %v14579_v16 }
 0x619   : > { %6777 = vrot.lane.b32.xlu1 %v14144_v57, %s10888_s14  ;;  %7087 = vmatmul.mubr.bf16.vlgmr.msra.gmra.mrb[24].mxu0 %v10724_v18  ;;  %v6237_v54 = vsel %vm6233_vm1, %v6230_v2, %v14333_v3  ;;  %v6236_v21 = vsel %vm6233_vm1, %v14427_v7, %v6230_v2  ;;  %v6272_v3 = vsel %vm6270_vm10, %v14539_v38, %v14343_v31  ;;  %vm16303_vm1 = vmmov %vm16301_vm3 }
 0x61a   : > { %6779 = vrot.lane.b32.xlu0 %v14149_v50, %s10888_s14  ;;  %7108 = vmatpush1.bf16.msra.mxu0 %v6234_v20  ;;  %v6271_v7 = vsel %vm6270_vm10, %v14425_v25, %v14539_v38 }
 0x61b   : > { %v14603_v14 = vpop.permute.xlu1 %6416  ;;  %7109 = vmatprep.subr.bf16.mxu0 %v6237_v54  ;;  %7096 = vmatprep.mubr.bf16.mxu0 %v10727_v30 }
 0x61c   : > { %v14605_v19 = vpop.permute.xlu0 %6521 }
 0x61d   : > { %6775 = vrot.lane.b32.xlu1 %v14142_v32, %s10888_s14 }
 0x61e   : > { %6783 = vrot.lane.b32.xlu0 %v14158_v39, %s10888_s14  ;;  %7110 = vmatpush1.bf16.msra.mxu0 %v6236_v21 }
 0x61f   : > { %v14617_v48 = vpop.permute.xlu1 %6445  ;;  %7111 = vmatprep.subr.bf16.mxu0 %v6272_v3 }
 0x620   : > { %v6267_v4 = vpop.permute.xlu0 %6266 }
 0x621   : > { %6785 = vrot.lane.b32.xlu1 %v14146_v49, %s10888_s14  ;;  %v6274_v10 = vsel %vm6270_vm10, %v6267_v4, %v14341_v1  ;;  %7097 = vmatmul.mubr.bf16.gmra.mrb[28].mxu0 %v10729_v35  ;;  %v6273_v25 = vsel %vm6270_vm10, %v14435_v29, %v6267_v4  ;;  %v6309_v1 = vsel %vm6307_vm14, %v14551_v60, %v14351_v55  ;;  %v10733_v4 = vld [vmem:[%s15460_s5 + $0x44] ss:$28 sps:$4 sm:$0xff]   ;;  %vm6676_vm10 = vcmask 588800  }
 0x622   : > { %6781 = vrot.lane.b32.xlu0 %v14156_v5, %s10888_s14  ;;  %7112 = vmatpush1.bf16.msra.mxu0 %v6271_v7 }
 0x623   : > { %v14629_v31 = vpop.permute.xlu1 %6443  ;;  %7113 = vmatprep.subr.bf16.mxu0 %v6274_v10  ;;  %7139 = vmatprep.mubr.bf16.mxu0 %v10732_v43 }
 0x624   : > { %v14631_v63 = vpop.permute.xlu0 %6523  ;;  %v6456_v22 = vsel %vm6455_vm7, %v14629_v31, %v14617_v48 }
 0x625   : > { %6814 = vrot.lane.b32.xlu1 %v14144_v57, %s10889_s16  ;;  %v6308_v57 = vsel %vm6307_vm14, %v14433_v28, %v14551_v60  ;;  %v6956_v60 = vld [vmem:[%s15461_s6 + $0x18] sm:$0xff] }
 0x626   : > { %6816 = vrot.lane.b32.xlu0 %v14149_v50, %s10889_s16  ;;  %7114 = vmatpush1.bf16.msra.mxu0 %v6273_v25 }
 0x627   : > { %v14640_v51 = vpop.permute.xlu1 %6453  ;;  %7115 = vmatprep.subr.bf16.mxu0 %v6309_v1 }
 0x628   : > { %v6304_v38 = vpop.permute.xlu0 %6303 }
 0x629   : > { %6812 = vrot.lane.b32.xlu1 %v14142_v32, %s10889_s16  ;;  %v6311_v29 = vsel %vm6307_vm14, %v6304_v38, %v14349_v47  ;;  %v6310_v32 = vsel %vm6307_vm14, %v14443_v8, %v6304_v38  ;;  %v6346_v47 = vsel %vm6344_vm6, %v14560_v61, %v14359_v33  ;;  %v6955_v8 = vld [vmem:[%s15461_s6 + $0x10] sm:$0xff] }
 0x62a   : > { %6820 = vrot.lane.b32.xlu0 %v14158_v39, %s10889_s16  ;;  %7116 = vmatpush1.bf16.msra.mxu0 %v6308_v57  ;;  %v6953_v39 = vld [vmem:[%s15461_s6] sm:$0xff]  ;;  %v10738_v57 = vld [vmem:[%s15460_s5 + $0x14] ss:$28 sps:$4 sm:$0xff]  }
 0x62b   : > { %v14649_v50 = vpop.permute.xlu1 %6482  ;;  %7117 = vmatprep.subr.bf16.mxu0 %v6311_v29 }
 0x62c   : > { %v14651_v55 = vpop.permute.xlu0 %6558 }
 0x62d   : > { %6822 = vrot.lane.b32.xlu1 %v14146_v49, %s10889_s16  ;;  %v6954_v49 = vld [vmem:[%s15461_s6 + $0x8] sm:$0xff] }
 0x62e   : > { %6818 = vrot.lane.b32.xlu0 %v14156_v5, %s10889_s16  ;;  %7118 = vmatpush1.bf16.msra.mxu0 %v6310_v32  ;;  %v6345_v5 = vsel %vm6344_vm6, %v14441_v0, %v14560_v61  ;;  %v6382_v61 = vsel %vm6381_vm4, %v14449_v52, %v14571_v15  ;;  %v6420_v52 = vsel %vm6418_vm13, %v14579_v16, %v14485_v59 }
 0x62f   : > { %v14663_v28 = vpop.permute.xlu1 %6480  ;;  %7119 = vmatprep.subr.bf16.mxu0 %v6346_v47  ;;  %v6457_v16 = vsel %vm6455_vm7, %v14617_v48, %v14521_v36  ;;  %v6494_v36 = vsel %vm6492_vm8, %v14649_v50, %v14562_v58  ;;  %v10730_v58 = vld [vmem:[%s15460_s5 + $0x8] ss:$28 sps:$4 sm:$0xff]  }
 0x630   : > { %v6341_v6 = vpop.permute.xlu0 %6340  ;;  %v6493_v21 = vsel %vm6492_vm8, %v14663_v28, %v14649_v50 }
 0x631   : > { %6959 = vperm.xlu1 %9779, %v6953_v39   ;;  %v6348_v33 = vsel %vm6344_vm6, %v6341_v6, %v14357_v26  ;;  %v6347_v0 = vsel %vm6344_vm6, %v14451_v11, %v6341_v6  ;;  %v6383_v26 = vsel %vm6381_vm4, %v14571_v15, %v14365_v34 }
 0x632   : > { %6964 = vperm.xlu0 %9778, %v6954_v49   ;;  %7120 = vmatpush1.bf16.msra.mxu0 %v6345_v5 }
 0x633   : > { %v6491_v62 = vpop.permute.xlu1 %6490  ;;  %7121 = vmatprep.subr.bf16.mxu0 %v6348_v33 }
 0x634   : > { %v14679_v12 = vpop.permute.xlu0 %6560 }
 0x635   : > { %6969 = vperm.xlu1 %9779, %v6955_v8  }
 0x636   : > { %6974 = vperm.xlu0 %9778, %v6956_v60   ;;  %7122 = vmatpush1.bf16.msra.mxu0 %v6347_v0 }
 0x637   : > { %v6520_v27 = vpop.permute.xlu1 %6519  ;;  %7123 = vmatprep.subr.bf16.mxu0 %v6383_v26 }
 0x638   : > { %v6378_v41 = vpop.permute.xlu0 %6377  ;;  %v6531_v43 = vsel %vm6529_vm9, %v6520_v27, %v14605_v19 }
 0x639   : > { %v6385_v56 = vsel %vm6381_vm4, %v6378_v41, %v14466_v46  ;;  %10251 = vrot.lane.b32.xlu1 %v16300_v13, %s10853_s15  ;;  %v6384_v34 = vsel %vm6381_vm4, %v14468_v17, %v6378_v41 }
 0x63a   : > { %7124 = vmatpush1.bf16.msra.mxu0 %v6382_v61  ;;  %10256 = vrot.lane.b32.xlu0 %v16300_v13, %s16305_s27 }
 0x63b   : > { %v6518_v11 = vpop.permute.xlu1 %6517  ;;  %7125 = vmatprep.subr.bf16.mxu0 %v6385_v56 }
 0x63c   : > { %v14693_v24 = vpop.permute.xlu0 %6595  ;;  %v6530_v31 = vsel %vm6529_vm9, %v6518_v11, %v6520_v27 }
 0x63d   : > { %10261 = vrot.lane.b32.xlu1 %v16300_v13, %s10871_s28 }
 0x63e   : > { %7126 = vmatpush1.bf16.msra.mxu0 %v6384_v34 }
 0x63f   : > { %v6528_v46 = vpop.permute.xlu1 %6527  ;;  %7127 = vmatprep.subr.bf16.mxu0 %v6420_v52 }
 0x640   : > { %v6415_v15 = vpop.permute.xlu0 %6414 }
 0x641   : > { %v6422_v45 = vsel %vm6418_vm13, %v6415_v15, %v14603_v14  ;;  %10266 = vrot.lane.b32.xlu1 %v16300_v13, %s10853_s15  ;;  %v6421_v59 = vsel %vm6418_vm13, %v14503_v53, %v6415_v15  ;;  %vm16304_vm13 = vmmov %vm16303_vm1 }
 0x642   : > { %7128 = vmatpush1.bf16.msra.mxu0 %v6419_v37 }
 0x643   : > { %v6557_v17 = vpop.permute.xlu1 %6556  ;;  %7129 = vmatprep.subr.bf16.mxu0 %v6422_v45 }
 0x644   : > { %v14709_v42 = vpop.permute.xlu0 %6597  ;;  %v6568_v38 = vsel %vm6566_vm5, %v6557_v17, %v14651_v55 }
 0x645   : > { %10271 = vrot.lane.b32.xlu1 %v16300_v13, %s16305_s27 }
 0x646   : > { %7130 = vmatpush1.bf16.msra.mxu0 %v6421_v59 }
 0x647   : > { %v6555_v18 = vpop.permute.xlu1 %6554  ;;  %7131 = vmatprep.subr.bf16.mxu0 %v6457_v16 }
 0x648   : > { %v6452_v23 = vpop.permute.xlu0 %6451  ;;  %v6567_v32 = vsel %vm6566_vm5, %v6555_v18, %v6557_v17 }
 0x649   : > { %v6459_v30 = vsel %vm6455_vm7, %v6452_v23, %v14640_v51  ;;  %v6458_v20 = vsel %vm6455_vm7, %v14541_v44, %v6452_v23  ;;  %v10735_v51 = vld [vmem:[%s15460_s5 + $0x40] ss:$28 sps:$4 sm:$0xff]   ;;  %vm6713_vm7 = vcmask 580608   ;;  %10276 = vrot.lane.b32.xlu1 %v16300_v13, %s10871_s28 }
 0x64a   : > { %7132 = vmatpush1.bf16.msra.mxu0 %v6456_v22 }
 0x64b   : > { %v6565_v2 = vpop.permute.xlu1 %6564  ;;  %7133 = vmatprep.subr.bf16.mxu0 %v6459_v30 }
 0x64c   : > { %v14721_v53 = vpop.permute.xlu0 %6632 }
 0x64e   : > { %7134 = vmatpush1.bf16.msra.mxu0 %v6458_v20 }
 0x64f   : > { %v6594_v54 = vpop.permute.xlu1 %6593  ;;  %7135 = vmatprep.subr.bf16.mxu0 %v6494_v36 }
 0x650   : > { %v6489_v14 = vpop.permute.xlu0 %6488  ;;  %v6605_v28 = vsel %vm6603_vm2, %v6594_v54, %v14693_v24 }
 0x651   : > { %v6496_v35 = vsel %vm6492_vm8, %v6489_v14, %v6491_v62  ;;  %v6495_v44 = vsel %vm6492_vm8, %v14581_v40, %v6489_v14  ;;  %vm6750_vm8 = vcmask 572416  }
 0x652   : > { %7136 = vmatpush1.bf16.msra.mxu0 %v6493_v21 }
 0x653   : > { %v6592_v3 = vpop.permute.xlu1 %6591  ;;  %7137 = vmatprep.subr.bf16.mxu0 %v6496_v35 }
 0x654   : > { %v6635_v48 = vpop.permute.xlu0 %6634  ;;  %v6604_v5 = vsel %vm6603_vm2, %v6592_v3, %v6594_v54 }
 0x656   : > { %7138 = vmatpush1.bf16.msra.mxu0 %v6495_v44 }
 0x657   : > { %v6602_v7 = vpop.permute.xlu1 %6601  ;;  %7160 = vmatprep.subr.bf16.mxu0 %v6531_v43 }
 0x658   : > { %v6526_v10 = vpop.permute.xlu0 %6525 }
 0x659   : > { %7140 = vmatmul.mubr.bf16.vlgmr.msra.gmra.mrb[24].mxu0 %v10730_v58  ;;  %v6533_v40 = vsel %vm6529_vm9, %v6526_v10, %v6528_v46  ;;  %v6532_v19 = vsel %vm6529_vm9, %v14631_v63, %v6526_v10  ;;  %vm6787_vm9 = vcmask 564224  }
 0x65a   : > { %7161 = vmatpush1.bf16.msra.mxu0 %v6530_v31  ;;  %7149 = vmatprep.mubr.bf16.mxu0 %v10733_v4 }
 0x65b   : > { %v6631_v25 = vpop.permute.xlu1 %6630  ;;  %7162 = vmatprep.subr.bf16.mxu0 %v6533_v40  ;;  %v10736_v40 = vld [vmem:[%s15460_s5 + $0x10] ss:$28 sps:$4 sm:$0xff]  }
 0x65c   : > { %v6669_v1 = vpop.permute.xlu0 %6668 }
 0x65e   : > { %7163 = vmatpush1.bf16.msra.mxu0 %v6532_v19 }
 0x65f   : > { %v6629_v29 = vpop.permute.xlu1 %6628  ;;  %7164 = vmatprep.subr.bf16.mxu0 %v6568_v38 }
 0x660   : > { %v6563_v50 = vpop.permute.xlu0 %6562  ;;  %v6640_v27 = vsel %vm16302_vm15, %v6629_v29, %v6631_v25 }
 0x661   : > { %v6570_v47 = vsel %vm6566_vm5, %v6563_v50, %v6565_v2  ;;  %7150 = vmatmul.mubr.bf16.gmra.mrb[28].mxu0 %v10735_v51  ;;  %v6569_v55 = vsel %vm6566_vm5, %v14679_v12, %v6563_v50  ;;  %v6641_v12 = vsel %vm16301_vm3, %v6631_v25, %v14721_v53  ;;  %vm6824_vm5 = vcmask 556032   ;;  %v10739_v25 = vld [vmem:[%s15460_s5 + $0x4c] ss:$28 sps:$4 sm:$0xff]  }
 0x662   : > { %7165 = vmatpush1.bf16.msra.mxu0 %v6567_v32  ;;  %7192 = vmatprep.mubr.bf16.mxu0 %v10738_v57  ;;  %v10741_v50 = vld [vmem:[%s15460_s5 + $0x48] ss:$28 sps:$4 sm:$0xff]   ;;  %vm16308_vm3 = vcmask 1039360  }
 0x663   : > { %v6639_v63 = vpop.permute.xlu1 %6638  ;;  %7166 = vmatprep.subr.bf16.mxu0 %v6570_v47  ;;  %vm16309_vm15 = vmmov %vm16308_vm3 }
 0x664   : > { %v6671_v39 = vpop.permute.xlu0 %6670 }
 0x666   : > { %7167 = vmatpush1.bf16.msra.mxu0 %v6569_v55  ;;  %v10742_v55 = vld [vmem:[%s15460_s5 + $0x18] ss:$28 sps:$4 sm:$0xff]  }
 0x667   : > { %v6667_v49 = vpop.permute.xlu1 %6666  ;;  %7168 = vmatprep.subr.bf16.mxu0 %v6605_v28  ;;  %v10743_v28 = vld [vmem:[%s15460_s5 + $0x50] ss:$28 sps:$4 sm:$0xff]  }
 0x668   : > { %v6600_v6 = vpop.permute.xlu0 %6599  ;;  %v6678_v24 = vsel %vm6676_vm10, %v6667_v49, %v6669_v1 }
 0x669   : > { %v6607_v33 = vsel %vm6603_vm2, %v6600_v6, %v6602_v7  ;;  %v6606_v60 = vsel %vm6603_vm2, %v14709_v42, %v6600_v6  ;;  %vm7047_vm2 = vcmask 261120  }
 0x66a   : > { %7169 = vmatpush1.bf16.msra.mxu0 %v6604_v5 }
 0x66b   : > { %v6665_v8 = vpop.permute.xlu1 %6664  ;;  %7170 = vmatprep.subr.bf16.mxu0 %v6607_v33  ;;  %v16306_v33 = vld [vmem:[#allocation9_spill] sm:$0xff] }
 0x66c   : > { %v6706_v62 = vpop.permute.xlu0 %6705  ;;  %v6677_v46 = vsel %vm6676_vm10, %v6665_v8, %v6667_v49  ;;  %v7274_v49 = vld [vmem:[%s15462_s7] sm:$0x3] }
 0x66d   : > { %v7279_v8 = vrot.slane %v7274_v49, %v16306_v33 }
 0x66e   : > { %7171 = vmatpush1.bf16.msra.mxu0 %v6606_v60 }
 0x66f   : > { %v6675_v0 = vpop.permute.xlu1 %6674  ;;  %7172 = vmatprep.subr.bf16.mxu0 %v6641_v12  ;;  %v16307_v12 = vld [vmem:[#allocation11_spill] sm:$0xff] }
 0x670   : > { %v6637_v26 = vpop.permute.xlu0 %6636 }
 0x671   : > { %v6643_v41 = vsel %vm16303_vm1, %v6637_v26, %v6639_v63  ;;  %v6642_v11 = vsel %vm16304_vm13, %v6635_v48, %v6637_v26  ;;  %vm16310_vm1 = vcmask 1031168   ;;  %vm16312_vm13 = vmmov %vm16308_vm3 }
 0x672   : > { %7173 = vmatpush1.bf16.msra.mxu0 %v6640_v27 }
 0x673   : > { %v6704_v61 = vpop.permute.xlu1 %6703  ;;  %7174 = vmatprep.subr.bf16.mxu0 %v6643_v41 }
 0x674   : > { %v6708_v56 = vpop.permute.xlu0 %6707  ;;  %v6715_v42 = vsel %vm6713_vm7, %v6704_v61, %v6706_v62 }
 0x676   : > { %7175 = vmatpush1.bf16.msra.mxu0 %v6642_v11 }
 0x677   : > { %v6702_v34 = vpop.permute.xlu1 %6701  ;;  %7176 = vmatprep.subr.bf16.mxu0 %v6678_v24 }
 0x678   : > { %v6673_v52 = vpop.permute.xlu0 %6672  ;;  %v6714_v18 = vsel %vm6713_vm7, %v6702_v34, %v6704_v61 }
 0x679   : > { %v6680_v15 = vsel %vm6676_vm10, %v6673_v52, %v6675_v0  ;;  %v6679_v17 = vsel %vm6676_vm10, %v6671_v39, %v6673_v52  ;;  %v7283_v0 = vrot.slane %v7274_v49, %v16307_v12  ;;  %v10755_v49 = vld [vmem:[%s15463_s8 + $0x28] sm:$0xff]   ;;  %vm16311_vm10 = vmmov %vm16310_vm1 }
 0x67a   : > { %7177 = vmatpush1.bf16.msra.mxu0 %v6677_v46 }
 0x67b   : > { %v6712_v37 = vpop.permute.xlu1 %6711  ;;  %7178 = vmatprep.subr.bf16.mxu0 %v6680_v15 }
 0x67c   : > { %v6743_v45 = vpop.permute.xlu0 %6742 }
 0x67e   : > { %7179 = vmatpush1.bf16.msra.mxu0 %v6679_v17 }
 0x67f   : > { %v6741_v59 = vpop.permute.xlu1 %6740  ;;  %7180 = vmatprep.subr.bf16.mxu0 %v6715_v42 }
 0x680   : > { %v6710_v16 = vpop.permute.xlu0 %6709  ;;  %v6752_v53 = vsel %vm6750_vm8, %v6741_v59, %v6743_v45 }
 0x681   : > { %v6717_v23 = vsel %vm6713_vm7, %v6710_v16, %v6712_v37  ;;  %v6716_v2 = vsel %vm6713_vm7, %v6708_v56, %v6710_v16  ;;  %vm16313_vm7 = vmmov %vm16308_vm3 }
 0x682   : > { %7181 = vmatpush1.bf16.msra.mxu0 %v6714_v18 }
 0x683   : > { %v6739_v22 = vpop.permute.xlu1 %6738  ;;  %7182 = vmatprep.subr.bf16.mxu0 %v6717_v23 }
 0x684   : > { %v6745_v30 = vpop.permute.xlu0 %6744  ;;  %v6751_v54 = vsel %vm6750_vm8, %v6739_v22, %v6741_v59 }
 0x686   : > { %7183 = vmatpush1.bf16.msra.mxu0 %v6716_v2 }
 0x687   : > { %v6749_v20 = vpop.permute.xlu1 %6748  ;;  %7184 = vmatprep.subr.bf16.mxu0 %v6752_v53 }
 0x688   : > { %v6747_v36 = vpop.permute.xlu0 %6746 }
 0x689   : > { %v6754_v14 = vsel %vm6750_vm8, %v6747_v36, %v6749_v20  ;;  %v6753_v3 = vsel %vm6750_vm8, %v6745_v30, %v6747_v36  ;;  %vm16314_vm8 = vmmov %vm16310_vm1 }
 0x68a   : > { %7185 = vmatpush1.bf16.msra.mxu0 %v6751_v54 }
 0x68b   : > { %v6778_v21 = vpop.permute.xlu1 %6777  ;;  %7186 = vmatprep.subr.bf16.mxu0 %v6754_v14 }
 0x68c   : > { %v6780_v35 = vpop.permute.xlu0 %6779 }
 0x68d   : > { %v6789_v48 = vsel %vm6787_vm9, %v6778_v21, %v6780_v35 }
 0x68e   : > { %7187 = vmatpush1.bf16.msra.mxu0 %v6753_v3 }
 0x68f   : > { %v6776_v44 = vpop.permute.xlu1 %6775  ;;  %7188 = vmatprep.subr.bf16.mxu0 %v6789_v48 }
 0x690   : > { %v6788_v58 = vsel %vm6787_vm9, %v6776_v44, %v6778_v21  ;;  %v6784_v43 = vpop.permute.xlu0 %6783 }
 0x692   : > { %7189 = vmatpush1.bf16.msra.mxu0 %v6788_v58 }
 0x693   : > { %v6786_v4 = vpop.permute.xlu1 %6785 }
 0x694   : > { %v6782_v7 = vpop.permute.xlu0 %6781  ;;  %v6791_v10 = vsel %vm6787_vm9, %v6784_v43, %v6786_v4 }
 0x695   : > { %v6790_v31 = vsel %vm6787_vm9, %v6782_v7, %v6784_v43  ;;  %7190 = vmatprep.subr.bf16.mxu0 %v6791_v10  ;;  %vm16315_vm9 = vmmov %vm16310_vm1 }
 0x696   : > { %7191 = vmatpush1.bf16.msra.mxu0 %v6790_v31 }
 0x697   : > { %v6815_v1 = vpop.permute.xlu1 %6814 }
 0x698   : > { %v6817_v19 = vpop.permute.xlu0 %6816 }
 0x699   : > { %7193 = vmatmul.mubr.bf16.vlgmr.msra.gmra.mrb[24].mxu0 %v10736_v40  ;;  %v6826_v51 = vsel %vm6824_vm5, %v6815_v1, %v6817_v19  ;;  %v10746_v19 = vld [vmem:[%s15463_s8 + $0x48] sm:$0xff]  }
 0x69a   : > { %7213 = vmatprep.subr.bf16.mxu0 %v6826_v51  ;;  %7202 = vmatprep.mubr.bf16.mxu0 %v10739_v25  ;;  %v10744_v25 = vld [vmem:[%s15463_s8 + $0x40] sm:$0xff]  }
 0x69b   : > { %v6813_v38 = vpop.permute.xlu1 %6812  ;;  %9445 = vmatprep.subr.bf16.mxu1 %v10744_v25 }
 0x69c   : > { %v6825_v57 = vsel %vm6824_vm5, %v6813_v38, %v6815_v1  ;;  %v6821_v29 = vpop.permute.xlu0 %6820  ;;  %v10745_v1 = vld [vmem:[%s15463_s8] sm:$0xff]   ;;  %v10747_v38 = vld [vmem:[%s15463_s8 + $0x8] sm:$0xff]  }
 0x69d   : > { %7214 = vmatpush1.bf16.msra.mxu0 %v6825_v57  ;;  %9446 = vmatpush3.bf16.msra.mxu1 %v10745_v1  ;;  %v10748_v57 = vld [vmem:[%s15463_s8 + $0x50] sm:$0xff]  }
 0x69e   : > { %9447 = vmatprep.subr.bf16.mxu1 %v10746_v19 }
 0x69f   : > { %v6823_v32 = vpop.permute.xlu1 %6822 }
 0x6a0   : > { %v6819_v47 = vpop.permute.xlu0 %6818  ;;  %v6828_v63 = vsel %vm6824_vm5, %v6821_v29, %v6823_v32  ;;  %v10750_v32 = vld [vmem:[%s15463_s8 + $0x58] sm:$0xff]  }
 0x6a1   : > { %v6827_v39 = vsel %vm6824_vm5, %v6819_v47, %v6821_v29  ;;  %7203 = vmatmul.mubr.bf16.gmra.mrb[28].mxu0 %v10741_v50  ;;  %7215 = vmatprep.subr.bf16.mxu0 %v6828_v63  ;;  %v10749_v29 = vld [vmem:[%s15463_s8 + $0x10] sm:$0xff]   ;;  %v10751_v47 = vld [vmem:[%s15463_s8 + $0x18] sm:$0xff]   ;;  %v10752_v63 = vld [vmem:[%s15463_s8 + $0x60] sm:$0xff]  }
 0x6a2   : > { %7216 = vmatpush1.bf16.msra.mxu0 %v6827_v39  ;;  %7245 = vmatprep.mubr.bf16.mxu0 %v16286_v9  ;;  %vm16316_vm5 = vmmov %vm16308_vm3 }
 0x6a3   : > { %9602 = vmatprep.subr.bf16.mxu0 %v16300_v13  ;;  %9448 = vmatpush3.bf16.msra.mxu1 %v10747_v38 }
 0x6a4   : > { %9449 = vmatprep.subr.bf16.mxu1 %v10748_v57 }
 0x6a7   : > { %9450 = vmatpush3.bf16.msra.mxu1 %v10749_v29 }
 0x6a8   : > { %9451 = vmatprep.subr.bf16.mxu1 %v10750_v32 }
 0x6a9   : > { %9281 = vmatmul.mubr.msk.bf16.vlgmr.msra.gmra.mrb[24].mxu0 %vm7047_vm2, %v10742_v55  ;;  %v10753_v55 = vld [vmem:[%s15463_s8 + $0x20] sm:$0xff]  }
 0x6aa   : > { %7255 = vmatprep.mubr.bf16.mxu0 %v16286_v9 }
 0x6ab   : > { %9452 = vmatpush3.bf16.msra.mxu1 %v10751_v47 }
 0x6ac   : > { %9453 = vmatprep.subr.bf16.mxu1 %v10752_v63 }
 0x6af   : > { %9454 = vmatpush3.bf16.msra.mxu1 %v10753_v55 }
 0x6b0   : > { %v6960_v6 = vpop.permute.xlu1 %6959 }
 0x6b1   : > { %9282 = vmatmul.mubr.msk.bf16.gmra.mrb[28].mxu0 %vm7047_vm2, %v10743_v28  ;;  %v6965_v27 = vpop.permute.xlu0 %6964  ;;  %v10754_v28 = vld [vmem:[%s15463_s8 + $0x68] sm:$0xff]   ;;  %vm16317_vm2 = vmmov %vm16308_vm3 }
 0x6b2   : > { %9455 = vmatprep.subr.bf16.mxu1 %v10754_v28 }
 0x6b3   : > { %9456 = vmatpush3.bf16.msra.mxu1 %v10755_v49 }
 0x6b4   : > { %v6970_v23 = vpop.permute.xlu1 %6969 }
 0x6b5   : > { %v6975_v54 = vpop.permute.xlu0 %6974 }
 0x6b8   : > { %v14895_v51 = vpop.permute.xlu1 %10251 }
 0x6bc   : > { %v14906_v50 = vpop.permute.xlu1 %10261 }
 0x6bd   : > { %v10264_v1 = vunpack.i.h.bf16 %v14906_v50 }
 0x6c0   : > { %v14917_v39 = vpop.permute.xlu1 %10266 }
 0x6c1   : > { %v10269_v19 = vunpack.i.h.bf16 %v14917_v39 }
 0x77c   : > { %v7247_v9 = vpop.f32.mrb[24].mxu0 }
 0x77d   : > { %v9622_v5 = vadd.f32 %v7247_v9, %v6960_v6  ;;  %v7249_v62 = vpop.f32.mrb[25].mxu0  ;;  %v10756_v9 = vld [vmem:[%s15463_s8 + $0x70] sm:$0xff]  }
 0x77e   : > { %v9623_v60 = vadd.f32 %v7249_v62, %v6960_v6  ;;  %v7251_v26 = vpop.f32.mrb[26].mxu0  ;;  %v14928_v6 = vpop.permute.xlu1 %10271  ;;  %9457 = vmatprep.subr.bf16.mxu1 %v10756_v9 }
 0x77f   : > { %v7266_v41 = vmax.f32 %v9622_v5, 0.0  ;;  %v7253_v61 = vpop.f32.mrb[27].mxu0  ;;  %v9624_v11 = vadd.f32 %v7251_v26, %v6965_v27  ;;  %v10757_v5 = vld [vmem:[%s15463_s8 + $0x30] sm:$0xff]   ;;  %v14938_v62 = vpop.permute.xlu0 %10256 }
 0x780   : > { %v7267_v56 = vmax.f32 %v9623_v60, 0.0  ;;  %v9625_v16 = vadd.f32 %v7253_v61, %v6965_v27  ;;  %9458 = vmatpush3.bf16.msra.mxu1 %v10757_v5  ;;  %v10259_v38 = vunpack.i.h.bf16 %v14938_v62 }
 0x781   : > { %v14814_v24 = vmul.f32 %v7279_v8, %v7266_v41  ;;  %v7268_v52 = vmax.f32 %v9624_v11, 0.0  ;;  %v10253_v11 = vunpack.i.l.bf16 %v14895_v51 }
 0x782   : > { %v14816_v34 = vmul.f32 %v7283_v0, %v7267_v56  ;;  %v7269_v18 = vmax.f32 %v9625_v16, 0.0 }
 0x783   : > { %v14822_v42 = vmul.f32 %v7279_v8, %v7268_v52 }
 0x784   : > { %v7257_v46 = vpop.f32.mrb[28].mxu0  ;;  %v10285_v15 = vpack.i.bf16 %v14816_v34, %v14814_v24  ;;  %v14834_v22 = vmul.f32 %v7283_v0, %v7269_v18 }
 0x785   : > { %v7259_v37 = vpop.f32.mrb[29].mxu0  ;;  %v10320_v59 = vpack.i.bf16 %v14822_v42, %v16300_v13  ;;  %v9626_v30 = vadd.f32 %v7257_v46, %v6970_v23 }
 0x786   : > { %v7261_v45 = vpop.f32.mrb[30].mxu0  ;;  %10286 = vrot.lane.b32.xlu0 %v10285_v15, %s16305_s27  ;;  %10281 = vrot.lane.b32.xlu1 %v10285_v15, %s10853_s15  ;;  %v9627_v2 = vadd.f32 %v7259_v37, %v6970_v23  ;;  %v10340_v36 = vpack.i.bf16 %v14834_v22, %v14822_v42  ;;  %v10360_v44 = vpack.i.bf16 %v16300_v13, %v14834_v22  ;;  %v10258_v23 = vunpack.i.l.bf16 %v14938_v62 }
 0x787   : > { %v7263_v17 = vpop.f32.mrb[31].mxu0  ;;  %v7270_v53 = vmax.f32 %v9626_v30, 0.0  ;;  %v9628_v14 = vadd.f32 %v7261_v45, %v6975_v54 }
 0x788   : > { %v7271_v20 = vmax.f32 %v9627_v2, 0.0  ;;  %v9629_v48 = vadd.f32 %v7263_v17, %v6975_v54 }
 0x789   : > { %v14842_v21 = vmul.f32 %v7279_v8, %v7270_v53  ;;  %v7272_v3 = vmax.f32 %v9628_v14, 0.0 }
 0x78a   : > { %10296 = vrot.lane.b32.xlu0 %v10285_v15, %s10872_s29  ;;  %10291 = vrot.lane.b32.xlu1 %v10285_v15, %s10871_s28  ;;  %v14844_v35 = vmul.f32 %v7283_v0, %v7271_v20  ;;  %v7273_v4 = vmax.f32 %v9629_v48, 0.0 }
 0x78b   : > { %v14854_v43 = vmul.f32 %v7279_v8, %v7272_v3  ;;  %v14936_v8 = vpop.permute.xlu1 %10276 }
 0x78c   : > { %v10400_v58 = vpack.i.bf16 %v14844_v35, %v14842_v21  ;;  %v14858_v7 = vmul.f32 %v7283_v0, %v7273_v4 }
 0x78d   : > { %v10425_v10 = vpack.i.bf16 %v14854_v43, %v16300_v13 }
 0x78e   : > { %10301 = vrot.lane.b32.xlu0 %v10285_v15, %s10873_s24  ;;  %10321 = vrot.lane.b32.xlu1 %v10320_v59, %s10873_s24  ;;  %v10435_v31 = vpack.i.bf16 %v14858_v7, %v14854_v43  ;;  %v10455_v40 = vpack.i.bf16 %v16300_v13, %v14858_v7 }
 0x792   : > { %10306 = vrot.lane.b32.xlu0 %v10285_v15, %s10876_s18  ;;  %10326 = vrot.lane.b32.xlu1 %v10320_v59, %s10876_s18 }
 0x796   : > { %10311 = vrot.lane.b32.xlu0 %v10285_v15, %s10877_s19  ;;  %10331 = vrot.lane.b32.xlu1 %v10320_v59, %s10877_s19 }
 0x79a   : > { %10316 = vrot.lane.b32.xlu0 %v10285_v15, %s10878_s22  ;;  %10336 = vrot.lane.b32.xlu1 %v10320_v59, %s10878_s22 }
 0x79e   : > { %10341 = vrot.lane.b32.xlu0 %v10340_v36, %s10853_s15  ;;  %10346 = vrot.lane.b32.xlu1 %v10340_v36, %s16305_s27 }
 0x7a2   : > { %10351 = vrot.lane.b32.xlu0 %v10340_v36, %s10871_s28  ;;  %10356 = vrot.lane.b32.xlu1 %v10340_v36, %s10872_s29  ;;  %v10263_v36 = vunpack.i.l.bf16 %v14906_v50 }
 0x7a6   : > { %10361 = vrot.lane.b32.xlu0 %v10360_v44, %s10873_s24  ;;  %10401 = vrot.lane.b32.xlu1 %v10400_v58, %s10873_s24 }
 0x7aa   : > { %10366 = vrot.lane.b32.xlu0 %v10360_v44, %s10876_s18  ;;  %10411 = vrot.lane.b32.xlu1 %v10400_v58, %s10877_s19 }
 0x7ae   : > { %10371 = vrot.lane.b32.xlu0 %v10360_v44, %s10877_s19  ;;  %10426 = vrot.lane.b32.xlu1 %v10425_v10, %s10876_s18 }
 0x7b2   : > { %10376 = vrot.lane.b32.xlu0 %v10360_v44, %s10878_s22  ;;  %10436 = vrot.lane.b32.xlu1 %v10435_v31, %s10853_s15 }
 0x7b6   : > { %10381 = vrot.lane.b32.xlu0 %v10400_v58, %s10853_s15  ;;  %10441 = vrot.lane.b32.xlu1 %v10435_v31, %s16305_s27 }
 0x7ba   : > { %10386 = vrot.lane.b32.xlu0 %v10400_v58, %s16305_s27  ;;  %10446 = vrot.lane.b32.xlu1 %v10435_v31, %s10871_s28  ;;  %s9050_s27 = sshll.u32 %s16329_s26, 3 }
 0x7be   : > { %10391 = vrot.lane.b32.xlu0 %v10400_v58, %s10871_s28  ;;  %10451 = vrot.lane.b32.xlu1 %v10435_v31, %s10872_s29 }
 0x7c2   : > { %10396 = vrot.lane.b32.xlu0 %v10400_v58, %s10872_s29  ;;  %10456 = vrot.lane.b32.xlu1 %v10455_v40, %s10873_s24 }
 0x7c6   : > { %10406 = vrot.lane.b32.xlu0 %v10400_v58, %s10876_s18  ;;  %10466 = vrot.lane.b32.xlu1 %v10455_v40, %s10877_s19 }
 0x7ca   : > { %10416 = vrot.lane.b32.xlu0 %v10400_v58, %s10878_s22  ;;  %10471 = vrot.lane.b32.xlu1 %v10425_v10, %s10878_s22 }
 0x7ce   : > { %10421 = vrot.lane.b32.xlu0 %v10425_v10, %s10873_s24  ;;  %s10892_s24 = smov 64  }
 0x7d2   : > { %10431 = vrot.lane.b32.xlu0 %v10425_v10, %s10877_s19 }
 0x7d6   : > { %10461 = vrot.lane.b32.xlu0 %v10455_v40, %s10876_s18 }
 0x7da   : > { %10476 = vrot.lane.b32.xlu0 %v10455_v40, %s10878_s22  ;;  %v10254_v40 = vunpack.i.h.bf16 %v14895_v51 }
 0x7f8   : > { %v10287_v60 = vpop.permute.xlu0 %10286  ;;  %v10282_v0 = vpop.permute.xlu1 %10281 }
 0x7f9   : > { %v10283_v56 = vunpack.i.l.bf16 %v10282_v0  ;;  %v10284_v52 = vunpack.i.h.bf16 %v10282_v0  ;;  %v10288_v45 = vunpack.i.l.bf16 %v10287_v60  ;;  %v10289_v30 = vunpack.i.h.bf16 %v10287_v60 }
 0x7fb   : > { %v7358_v37 = vsel %vm16308_vm3, %v10253_v11, %v10283_v56  ;;  %v7359_v17 = vsel %vm16309_vm15, %v10283_v56, %v10284_v52  ;;  %v7380_v53 = vmax.f32 %v14816_v34, %v10284_v52  ;;  %v7414_v54 = vsel %vm16310_vm1, %v10258_v23, %v10288_v45  ;;  %vm16318_vm3 = vmmov %vm16310_vm1 }
 0x7fc   : > { %v14940_v26 = vpop.permute.xlu0 %10296  ;;  %v10292_v27 = vpop.permute.xlu1 %10291  ;;  %v7378_v59 = vmax.f32 %v7358_v37, 0.0  ;;  %v7379_v20 = vmax.f32 %v14814_v24, %v7359_v17  ;;  %v7415_v58 = vsel %vm16311_vm10, %v10288_v45, %v10289_v30  ;;  %vm16319_vm15 = vmmov %vm16310_vm1 }
 0x7fd   : > { %v10293_v2 = vunpack.i.l.bf16 %v10292_v27  ;;  %v10294_v14 = vunpack.i.h.bf16 %v10292_v27  ;;  %v10299_v4 = vunpack.i.h.bf16 %v14940_v26  ;;  %v10298_v10 = vunpack.i.l.bf16 %v14940_v26  ;;  %vm16320_vm1 = vmmov %vm16317_vm2 }
 0x7fe   : > { %v7434_v3 = vmax.f32 %v7378_v59, %v7414_v54  ;;  %v7435_v31 = vmax.f32 %v7379_v20, %v7415_v58  ;;  %v7436_v24 = vmax.f32 %v7380_v53, %v10289_v30  ;;  %vm16321_vm10 = vmmov %vm16318_vm3 }
 0x7ff   : > { %v7471_v34 = vsel %vm6122_vm0, %v10263_v36, %v10293_v2  ;;  %v7472_v25 = vsel %vm6122_vm0, %v10293_v2, %v10294_v14  ;;  %v7520_v47 = vsel %vm6159_vm11, %v10298_v10, %v10299_v4 }
 0x800   : > { %v14942_v41 = vpop.permute.xlu0 %10301  ;;  %v14944_v61 = vpop.permute.xlu1 %10321  ;;  %v7491_v57 = vmax.f32 %v7434_v3, %v7471_v34  ;;  %v7492_v49 = vmax.f32 %v7435_v31, %v7472_v25  ;;  %v7493_v9 = vmax.f32 %v7436_v24, %v10294_v14 }
 0x801   : > { %v10304_v51 = vunpack.i.h.bf16 %v14942_v41  ;;  %v10303_v60 = vunpack.i.l.bf16 %v14942_v41  ;;  %v10323_v27 = vunpack.i.l.bf16 %v14944_v61  ;;  %v10324_v31 = vunpack.i.h.bf16 %v14944_v61 }
 0x802   : > { %v7536_v26 = vmax.f32 %v7491_v57, %v10298_v10  ;;  %v7537_v23 = vmax.f32 %v7492_v49, %v7520_v47  ;;  %v7538_v54 = vmax.f32 %v7493_v9, %v10299_v4 }
 0x803   : > { %v7597_v14 = vsel %vm6196_vm12, %v10303_v60, %v10304_v51  ;;  %v7598_v24 = vsel %vm6196_vm12, %v10304_v51, %v10323_v27 }
 0x804   : > { %v14947_v46 = vpop.permute.xlu0 %10306  ;;  %v14949_v15 = vpop.permute.xlu1 %10326 }
 0x805   : > { %v10309_v53 = vunpack.i.h.bf16 %v14947_v46  ;;  %v10308_v20 = vunpack.i.l.bf16 %v14947_v46  ;;  %v10268_v46 = vunpack.i.l.bf16 %v14917_v39  ;;  %v10273_v39 = vunpack.i.l.bf16 %v14928_v6 }
 0x807   : > { %v7654_v4 = vsel %vm6307_vm14, %v10308_v20, %v10309_v53 }
 0x808   : > { %v14953_v16 = vpop.permute.xlu0 %10311  ;;  %v14955_v18 = vpop.permute.xlu1 %10331 }
 0x809   : > { %v10314_v61 = vunpack.i.h.bf16 %v14953_v16  ;;  %v10313_v49 = vunpack.i.l.bf16 %v14953_v16 }
 0x80c   : > { %v14962_v48 = vpop.permute.xlu0 %10316  ;;  %v14964_v44 = vpop.permute.xlu1 %10336 }
 0x810   : > { %v10342_v29 = vpop.permute.xlu0 %10341  ;;  %v10347_v32 = vpop.permute.xlu1 %10346 }
 0x811   : > { %v10344_v63 = vunpack.i.h.bf16 %v10342_v29  ;;  %v10343_v55 = vunpack.i.l.bf16 %v10342_v29  ;;  %v10349_v28 = vunpack.i.h.bf16 %v10347_v32  ;;  %v10348_v5 = vunpack.i.l.bf16 %v10347_v32 }
 0x812   : > { %v7618_v32 = vmax.f32 %v7537_v23, %v7597_v14  ;;  %v10338_v23 = vunpack.i.l.bf16 %v14964_v44 }
 0x813   : > { %v7383_v50 = vmax.f32 %v14834_v22, %v10344_v63  ;;  %v7360_v0 = vsel %vm16312_vm13, %v10254_v40, %v10343_v55  ;;  %v7361_v62 = vsel %vm16313_vm7, %v10343_v55, %v10344_v63  ;;  %v7416_v45 = vsel %vm16314_vm8, %v10259_v38, %v10348_v5  ;;  %vm16322_vm13 = vmmov %vm16320_vm1 }
 0x814   : > { %v7381_v56 = vmax.f32 %v7360_v0, 0.0  ;;  %v7382_v11 = vmax.f32 %v14822_v42, %v7361_v62  ;;  %v10352_v52 = vpop.permute.xlu0 %10351  ;;  %v10357_v37 = vpop.permute.xlu1 %10356  ;;  %v7417_v17 = vsel %vm16315_vm9, %v10348_v5, %v10349_v28  ;;  %v10328_v40 = vunpack.i.l.bf16 %v14949_v15  ;;  %vm16323_vm7 = vmmov %vm16318_vm3 }
 0x815   : > { %v10354_v59 = vunpack.i.h.bf16 %v10352_v52  ;;  %v10353_v41 = vunpack.i.l.bf16 %v10352_v52  ;;  %v7439_v22 = vmax.f32 %v7383_v50, %v10349_v28  ;;  %v10358_v3 = vunpack.i.l.bf16 %v10357_v37 }
 0x816   : > { %v7437_v30 = vmax.f32 %v7381_v56, %v7416_v45  ;;  %v7438_v2 = vmax.f32 %v7382_v11, %v7417_v17  ;;  %v10359_v25 = vunpack.i.h.bf16 %v10357_v37  ;;  %v7617_v38 = vmax.f32 %v7536_v26, %v10303_v60 }
 0x817   : > { %v7473_v36 = vsel %vm6122_vm0, %v10264_v1, %v10353_v41  ;;  %v7474_v42 = vsel %vm6122_vm0, %v10353_v41, %v10354_v59  ;;  %v7496_v1 = vmax.f32 %v7439_v22, %v10354_v59  ;;  %v7619_v55 = vmax.f32 %v7538_v54, %v7598_v24 }
 0x818   : > { %v7494_v58 = vmax.f32 %v7437_v30, %v7473_v36  ;;  %v10362_v10 = vpop.permute.xlu0 %10361  ;;  %v14990_v34 = vpop.permute.xlu1 %10401  ;;  %v7495_v57 = vmax.f32 %v7438_v2, %v7474_v42  ;;  %v10329_v28 = vunpack.i.h.bf16 %v14949_v15  ;;  %v7655_v5 = vsel %vm6307_vm14, %v10309_v53, %v10328_v40  ;;  %v10758_v15 = vld [vmem:[%s15463_s8 + $0x78] sm:$0xff]  }
 0x819   : > { %v10364_v47 = vunpack.i.h.bf16 %v10362_v10  ;;  %v10363_v63 = vunpack.i.l.bf16 %v10362_v10  ;;  %v7521_v60 = vsel %vm6159_vm11, %v10358_v3, %v10359_v25  ;;  %v7675_v62 = vmax.f32 %v7618_v32, %v7654_v4  ;;  %9459 = vmatprep.subr.bf16.mxu1 %v10758_v15 }
 0x81a   : > { %v7539_v29 = vmax.f32 %v7494_v58, %v10358_v3  ;;  %v7540_v26 = vmax.f32 %v7495_v57, %v7521_v60  ;;  %v7541_v27 = vmax.f32 %v7496_v1, %v10359_v25  ;;  %v10334_v11 = vunpack.i.h.bf16 %v14955_v18 }
 0x81b   : > { %v10333_v52 = vunpack.i.l.bf16 %v14955_v18  ;;  %v7599_v37 = vsel %vm6196_vm12, %v10324_v31, %v10363_v63  ;;  %v7600_v45 = vsel %vm6196_vm12, %v10363_v63, %v10364_v47  ;;  %v7711_v17 = vsel %vm6344_vm6, %v10313_v49, %v10314_v61  ;;  %v10759_v18 = vld [vmem:[%s15463_s8 + $0x38] sm:$0xff]  }
 0x81c   : > { %v10367_v9 = vpop.permute.xlu0 %10366  ;;  %v15001_v51 = vpop.permute.xlu1 %10411  ;;  %v7620_v56 = vmax.f32 %v7539_v29, %v10324_v31  ;;  %v10319_v59 = vunpack.i.h.bf16 %v14962_v48  ;;  %v10318_v41 = vunpack.i.l.bf16 %v14962_v48  ;;  %v7676_v54 = vmax.f32 %v7619_v55, %v7655_v5  ;;  %9460 = vmatpush3.bf16.msra.mxu1 %v10759_v18 }
 0x81d   : > { %v10369_v50 = vunpack.i.h.bf16 %v10367_v9  ;;  %v10368_v0 = vunpack.i.l.bf16 %v10367_v9  ;;  %v7621_v3 = vmax.f32 %v7540_v26, %v7599_v37  ;;  %v7622_v48 = vmax.f32 %v7541_v27, %v7600_v45 }
 0x81e   : > { %v7677_v14 = vmax.f32 %v7620_v56, %v10329_v28  ;;  %v7732_v58 = vmax.f32 %v7675_v62, %v7711_v17  ;;  %v7712_v10 = vsel %vm6344_vm6, %v10314_v61, %v10333_v52  ;;  %v7768_v40 = vsel %vm6381_vm4, %v10318_v41, %v10319_v59 }
 0x81f   : > { %v7656_v2 = vsel %vm6307_vm14, %v10329_v28, %v10368_v0  ;;  %v7657_v53 = vsel %vm6307_vm14, %v10368_v0, %v10369_v50  ;;  %v10339_v25 = vunpack.i.h.bf16 %v14964_v44  ;;  %v7769_v4 = vsel %vm6381_vm4, %v10319_v59, %v10338_v23 }
 0x820   : > { %v10372_v22 = vpop.permute.xlu0 %10371  ;;  %v15018_v30 = vpop.permute.xlu1 %10426  ;;  %v7678_v57 = vmax.f32 %v7621_v3, %v7656_v2  ;;  %v7679_v1 = vmax.f32 %v7622_v48, %v7657_v53  ;;  %v7733_v28 = vmax.f32 %v7676_v54, %v7712_v10  ;;  %v7734_v61 = vmax.f32 %v7677_v14, %v10334_v11 }
 0x821   : > { %v10374_v36 = vunpack.i.h.bf16 %v10372_v22  ;;  %v10373_v42 = vunpack.i.l.bf16 %v10372_v22  ;;  %v7674_v60 = vmax.f32 %v7617_v38, %v10308_v20  ;;  %v7789_v50 = vmax.f32 %v7732_v58, %v7768_v40 }
 0x822   : > { %v7790_v62 = vmax.f32 %v7733_v28, %v7769_v4  ;;  %v10274_v20 = vunpack.i.h.bf16 %v14928_v6  ;;  %v7791_v59 = vmax.f32 %v7734_v61, %v10339_v25  ;;  %v10278_v3 = vunpack.i.l.bf16 %v14936_v8 }
 0x823   : > { %v7713_v31 = vsel %vm6344_vm6, %v10334_v11, %v10373_v42  ;;  %v7714_v24 = vsel %vm6344_vm6, %v10373_v42, %v10374_v36  ;;  %v7731_v38 = vmax.f32 %v7674_v60, %v10313_v49  ;;  %v10404_v6 = vunpack.i.h.bf16 %v14990_v34 }
 0x824   : > { %v10377_v29 = vpop.permute.xlu0 %10376  ;;  %v15030_v32 = vpop.permute.xlu1 %10436  ;;  %v7735_v9 = vmax.f32 %v7678_v57, %v7713_v31  ;;  %v7736_v5 = vmax.f32 %v7679_v1, %v7714_v24  ;;  %v10403_v40 = vunpack.i.l.bf16 %v14990_v34  ;;  %v10279_v28 = vunpack.i.h.bf16 %v14936_v8 }
 0x825   : > { %v10379_v47 = vunpack.i.h.bf16 %v10377_v29  ;;  %v10378_v63 = vunpack.i.l.bf16 %v10377_v29  ;;  %v10438_v55 = vunpack.i.l.bf16 %v15030_v32  ;;  %v10439_v29 = vunpack.i.h.bf16 %v15030_v32 }
 0x826   : > { %v15077_v34 = vsel %vm6196_vm12, %v10403_v40, %v10404_v6 }
 0x827   : > { %v7770_v44 = vsel %vm6381_vm4, %v10339_v25, %v10378_v63  ;;  %v7771_v0 = vsel %vm6381_vm4, %v10378_v63, %v10379_v47  ;;  %v7364_v56 = vsel %vm16316_vm5, %v10269_v19, %v10438_v55  ;;  %v7788_v19 = vmax.f32 %v7731_v38, %v10318_v41 }
 0x828   : > { %v7792_v26 = vmax.f32 %v7735_v9, %v7770_v44  ;;  %v7793_v27 = vmax.f32 %v7736_v5, %v7771_v0  ;;  %v10382_v15 = vpop.permute.xlu0 %10381  ;;  %v15043_v11 = vpop.permute.xlu1 %10441  ;;  %v7387_v23 = vmax.f32 %v7364_v56, 0.0  ;;  %v7365_v8 = vsel %vm16322_vm13, %v10438_v55, %v10439_v29 }
 0x829   : > { %v10383_v52 = vunpack.i.l.bf16 %v10382_v15  ;;  %v10443_v37 = vunpack.i.l.bf16 %v15043_v11  ;;  %v7800_v42 = vpack.c.bf16 %v7791_v59, %v7788_v19  ;;  %v10384_v10 = vunpack.i.h.bf16 %v10382_v15 }
 0x82a   : > { %v7802_v45 = vpack.c.bf16 %v7793_v27, %v7790_v62  ;;  %v7801_v17 = vpack.c.bf16 %v7792_v26, %v7789_v50  ;;  %v10444_v61 = vunpack.i.h.bf16 %v15043_v11  ;;  %v10414_v50 = vunpack.i.h.bf16 %v15001_v51 }
 0x82b   : > { %v7362_v22 = vsel %vm16317_vm2, %v10268_v46, %v10383_v52  ;;  %v7420_v18 = vsel %vm16318_vm3, %v10274_v20, %v10443_v37  ;;  %v7363_v47 = vsel %vm16320_vm1, %v10383_v52, %v10384_v10  ;;  %v10413_v62 = vunpack.i.l.bf16 %v15001_v51 }
 0x82c   : > { %v10387_v2 = vpop.permute.xlu0 %10386  ;;  %v15052_v53 = vpop.permute.xlu1 %10446  ;;  %7848 = vrot.lane.b32.xlu0 %v7802_v45, %s10890_s23  ;;  %7846 = vrot.lane.b32.xlu1 %v7801_v17, %s10890_s23  ;;  %v15057_v16 = vmax.f32 %v7387_v23, %v7420_v18  ;;  %v7384_v36 = vmax.f32 %v7362_v22, 0.0  ;;  %v7385_v26 = vmax.f32 %v14842_v21, %v7363_v47  ;;  %v7389_v56 = vmax.f32 %v14858_v7, %v10439_v29 }
 0x82d   : > { %v10388_v49 = vunpack.i.l.bf16 %v10387_v2  ;;  %v10389_v25 = vunpack.i.h.bf16 %v10387_v2  ;;  %v10448_v4 = vunpack.i.l.bf16 %v15052_v53  ;;  %v7386_v15 = vmax.f32 %v14844_v35, %v10384_v10 }
 0x82e   : > { %v10449_v11 = vunpack.i.h.bf16 %v15052_v53  ;;  %v7421_v20 = vsel %vm16323_vm7, %v10443_v37, %v10444_v61  ;;  %v7388_v21 = vmax.f32 %v14854_v43, %v7365_v8  ;;  %v10429_v17 = vunpack.i.h.bf16 %v15018_v30 }
 0x82f   : > { %v7418_v54 = vsel %vm16319_vm15, %v10273_v39, %v10388_v49  ;;  %v7419_v44 = vsel %vm16321_vm10, %v10388_v49, %v10389_v25  ;;  %v7477_v27 = vsel %vm6122_vm0, %v10279_v28, %v10448_v4  ;;  %v7445_v59 = vmax.f32 %v7389_v56, %v10444_v61 }
 0x830   : > { %v7440_v41 = vmax.f32 %v7384_v36, %v7418_v54  ;;  %v10392_v14 = vpop.permute.xlu0 %10391  ;;  %7844 = vrot.lane.b32.xlu1 %v7800_v42, %s10890_s23  ;;  %v15062_v58 = vpop.permute.xlu1 %10451  ;;  %v7441_v38 = vmax.f32 %v7385_v26, %v7419_v44  ;;  %v7500_v7 = vmax.f32 %v15057_v16, %v7477_v27  ;;  %v7442_v23 = vmax.f32 %v7386_v15, %v10389_v25 }
 0x831   : > { %v10393_v48 = vunpack.i.l.bf16 %v10392_v14  ;;  %v10394_v63 = vunpack.i.h.bf16 %v10392_v14  ;;  %v10453_v55 = vunpack.i.l.bf16 %v15062_v58  ;;  %v10428_v19 = vunpack.i.l.bf16 %v15018_v30 }
 0x832   : > { %v7444_v18 = vmax.f32 %v7388_v21, %v7421_v20  ;;  %v7478_v2 = vsel %vm6122_vm0, %v10448_v4, %v10449_v11  ;;  %v10454_v43 = vunpack.i.h.bf16 %v15062_v58  ;;  %v7502_v53 = vmax.f32 %v7445_v59, %v10449_v11 }
 0x833   : > { %v7475_v31 = vsel %vm6122_vm0, %v10278_v3, %v10393_v48  ;;  %v7476_v46 = vsel %vm6122_vm0, %v10393_v48, %v10394_v63  ;;  %v7499_v39 = vmax.f32 %v7442_v23, %v10394_v63  ;;  %v7545_v42 = vmax.f32 %v7500_v7, %v10453_v55 }
 0x834   : > { %v10397_v24 = vpop.permute.xlu0 %10396  ;;  %v7497_v1 = vmax.f32 %v7440_v41, %v7475_v31  ;;  %v15072_v5 = vpop.permute.xlu1 %10456  ;;  %v7498_v22 = vmax.f32 %v7441_v38, %v7476_v46  ;;  %v7501_v3 = vmax.f32 %v7444_v18, %v7478_v2  ;;  %v7523_v31 = vsel %vm6159_vm11, %v10453_v55, %v10454_v43 }
 0x835   : > { %v10398_v57 = vunpack.i.l.bf16 %v10397_v24  ;;  %v10399_v0 = vunpack.i.h.bf16 %v10397_v24  ;;  %v10459_v10 = vunpack.i.h.bf16 %v15072_v5  ;;  %v10458_v30 = vunpack.i.l.bf16 %v15072_v5 }
 0x836   : > { %v7547_v24 = vmax.f32 %v7502_v53, %v10454_v43  ;;  %v7546_v5 = vmax.f32 %v7501_v3, %v7523_v31  ;;  %v7715_v21 = vsel %vm6344_vm6, %v10413_v62, %v10414_v50  ;;  %vm7856_vm0 = vcmask 121856  }
 0x837   : > { %v7542_v9 = vmax.f32 %v7497_v1, %v10398_v57  ;;  %v7522_v35 = vsel %vm6159_vm11, %v10398_v57, %v10399_v0  ;;  %v7544_v48 = vmax.f32 %v7499_v39, %v10399_v0  ;;  %vm8010_vm11 = vcmask 253952  }
 0x838   : > { %v15074_v60 = vpop.permute.xlu0 %10406  ;;  %v15100_v37 = vpop.permute.xlu1 %10466  ;;  %v7543_v49 = vmax.f32 %v7498_v22, %v7522_v35 }
 0x839   : > { %v10408_v52 = vunpack.i.l.bf16 %v15074_v60  ;;  %v7623_v32 = vmax.f32 %v7542_v9, %v10403_v40  ;;  %v10409_v54 = vunpack.i.h.bf16 %v15074_v60  ;;  %v7604_v60 = vsel %vm6196_vm12, %v10458_v30, %v10459_v10 }
 0x83a   : > { %v7624_v25 = vmax.f32 %v7543_v49, %v15077_v34  ;;  %v10468_v34 = vunpack.i.l.bf16 %v15100_v37  ;;  %v7628_v55 = vmax.f32 %v7547_v24, %v7604_v60 }
 0x83b   : > { %v7680_v16 = vmax.f32 %v7623_v32, %v10408_v52  ;;  %v7658_v63 = vsel %vm6307_vm14, %v10408_v52, %v10409_v54  ;;  %v7659_v44 = vsel %vm6307_vm14, %v10409_v54, %v10428_v19 }
 0x83c   : > { %v15093_v45 = vpop.permute.xlu0 %10416  ;;  %v10472_v29 = vpop.permute.xlu1 %10471  ;;  %v7681_v27 = vmax.f32 %v7624_v25, %v7658_v63 }
 0x83d   : > { %v10418_v57 = vunpack.i.l.bf16 %v15093_v45  ;;  %v7737_v1 = vmax.f32 %v7680_v16, %v10413_v62  ;;  %v10474_v0 = vunpack.i.h.bf16 %v10472_v29  ;;  %v10419_v56 = vunpack.i.h.bf16 %v15093_v45 }
 0x83e   : > { %v10473_v35 = vunpack.i.l.bf16 %v10472_v29 }
 0x83f   : > { %v7794_v15 = vmax.f32 %v7737_v1, %v10418_v57  ;;  %v7772_v53 = vsel %vm6381_vm4, %v10418_v57, %v10419_v56 }
 0x840   : > { %v10422_v36 = vpop.permute.xlu0 %10421  ;;  %v7773_v16 = vsel %vm6381_vm4, %v10419_v56, %v10473_v35  ;;  %v10765_v35 = vld [vmem:[%s15464_s9 + $0x10] sm:$0xff]  }
 0x841   : > { %v10424_v41 = vunpack.i.h.bf16 %v10422_v36  ;;  %v10423_v14 = vunpack.i.l.bf16 %v10422_v36 }
 0x843   : > { %v7602_v58 = vsel %vm6196_vm12, %v10404_v6, %v10423_v14  ;;  %v7626_v40 = vmax.f32 %v7545_v42, %v10424_v41  ;;  %v10469_v6 = vunpack.i.h.bf16 %v15100_v37  ;;  %v7603_v8 = vsel %vm6196_vm12, %v10424_v41, %v10458_v30 }
 0x844   : > { %v7625_v4 = vmax.f32 %v7544_v48, %v7602_v58  ;;  %v10432_v47 = vpop.permute.xlu0 %10431  ;;  %v7627_v45 = vmax.f32 %v7546_v5, %v7603_v8  ;;  %v7738_v37 = vmax.f32 %v7681_v27, %v7715_v21  ;;  %v10763_v21 = vld [vmem:[%s15464_s9 + $0x8] sm:$0xff]   ;;  %vm8017_vm12 = vcmask 516352  }
 0x845   : > { %v10434_v28 = vunpack.i.h.bf16 %v10432_v47  ;;  %v10433_v61 = vunpack.i.l.bf16 %v10432_v47  ;;  %v7683_v9 = vmax.f32 %v7626_v40, %v10429_v17  ;;  %v7718_v7 = vsel %vm6344_vm6, %v10468_v34, %v10469_v6 }
 0x846   : > { %v7682_v11 = vmax.f32 %v7625_v4, %v7659_v44  ;;  %v7795_v42 = vmax.f32 %v7738_v37, %v7772_v53  ;;  %v10767_v53 = vld [vmem:[%s15464_s9 + $0x18] sm:$0xff]  }
 0x847   : > { %v7740_v26 = vmax.f32 %v7683_v9, %v10434_v28  ;;  %v7716_v20 = vsel %vm6344_vm6, %v10414_v50, %v10433_v61  ;;  %v7717_v51 = vsel %vm6344_vm6, %v10434_v28, %v10468_v34  ;;  %vm8029_vm6 = vcmask 1041152  }
 0x848   : > { %v10462_v46 = vpop.permute.xlu0 %10461  ;;  %v7739_v19 = vmax.f32 %v7682_v11, %v7716_v20 }
 0x849   : > { %v7797_v38 = vmax.f32 %v7740_v26, %v10474_v0  ;;  %v10464_v52 = vunpack.i.h.bf16 %v10462_v46  ;;  %v10463_v32 = vunpack.i.l.bf16 %v10462_v46 }
 0x84a   : > { %v7796_v54 = vmax.f32 %v7739_v19, %v7773_v16 }
 0x84b   : > { %v7660_v59 = vsel %vm6307_vm14, %v10429_v17, %v10463_v32  ;;  %v7661_v23 = vsel %vm6307_vm14, %v10463_v32, %v10464_v52  ;;  %v7803_v22 = vpack.c.bf16 %v7797_v38, %v7794_v15  ;;  %v10760_v38 = vld [vmem:[%s15464_s9 + $0x40] sm:$0xff]   ;;  %v10762_v32 = vld [vmem:[%s15464_s9 + $0x48] sm:$0xff]   ;;  %vm8023_vm14 = vcmask 778752  }
 0x84c   : > { %v7684_v18 = vmax.f32 %v7627_v45, %v7660_v59  ;;  %v7685_v2 = vmax.f32 %v7628_v55, %v7661_v23  ;;  %v10477_v43 = vpop.permute.xlu0 %10476  ;;  %v10761_v52 = vld [vmem:[%s15464_s9] sm:$0xff]   ;;  %9473 = vmatprep.subr.bf16.mxu1 %v10760_v38  ;;  %v10764_v45 = vld [vmem:[%s15464_s9 + $0x50] sm:$0xff]  }
 0x84d   : > { %v10479_v50 = vunpack.i.h.bf16 %v10477_v43  ;;  %v10478_v62 = vunpack.i.l.bf16 %v10477_v43  ;;  %v10766_v43 = vld [vmem:[%s15464_s9 + $0x58] sm:$0xff]  }
 0x84e   : > { %v7741_v39 = vmax.f32 %v7684_v18, %v7717_v51  ;;  %v7742_v49 = vmax.f32 %v7685_v2, %v7718_v7 }
 0x84f   : > { %v7774_v17 = vsel %vm6381_vm4, %v10474_v0, %v10478_v62  ;;  %v7775_v36 = vsel %vm6381_vm4, %v10478_v62, %v10479_v50  ;;  %vm10893_vm4 = vmmov 0  }
 0x850   : > { %v7798_v41 = vmax.f32 %v7741_v39, %v7774_v17  ;;  %v7799_v14 = vmax.f32 %v7742_v49, %v7775_v36  ;;  %v10768_v39 = vld [vmem:[%s15464_s9 + $0x60] sm:$0xff]   ;;  %9618 = vmatprep.mubr.msk.bf16.mxu0 %vm10893_vm4, %v16300_v13 }
 0x851   : > { %v10769_v49 = vld [vmem:[%s15464_s9 + $0x20] sm:$0xff]  }
 0x852   : > { %v7804_v3 = vpack.c.bf16 %v7798_v41, %v7795_v42  ;;  %v7805_v48 = vpack.c.bf16 %v7799_v14, %v7796_v54  ;;  %v10770_v14 = vld [vmem:[%s15464_s9 + $0x68] sm:$0xff]  }
 0x854   : > { %7852 = vrot.lane.b32.xlu0 %v7804_v3, %s10890_s23  ;;  %7854 = vrot.lane.b32.xlu1 %v7805_v48, %s10890_s23  ;;  %v10771_v3 = vld [vmem:[%s15464_s9 + $0x28] sm:$0xff]   ;;  %v10772_v48 = vld [vmem:[%s15464_s9 + $0x70] sm:$0xff]  }
 0x858   : > { %7850 = vrot.lane.b32.xlu0 %v7803_v22, %s10890_s23 }
 0x89e   : > { %v7849_v10 = vpop.permute.xlu0 %7848  ;;  %v7847_v30 = vpop.permute.xlu1 %7846 }
 0x89f   : > { %v7858_v31 = vsel %vm7856_vm0, %v7847_v30, %v7849_v10 }
 0x8a0   : > { %7993 = vmatprep.mubr.bf16.mxu1 %v7858_v31  ;;  %v10773_v31 = vld [vmem:[%s15464_s9 + $0x30] sm:$0xff]  }
 0x8a2   : > { %v7845_v24 = vpop.permute.xlu1 %7844 }
 0x8a3   : > { %v7857_v58 = vsel %vm7856_vm0, %v7845_v24, %v7847_v30  ;;  %v10774_v24 = vld [vmem:[%s15464_s9 + $0x78] sm:$0xff]  }
 0x8a4   : > { %7994 = vmatmul.mubr.bf16.vlgmr.msra.gmra.mrb[24].mxu1 %v7857_v58  ;;  %v10775_v58 = vld [vmem:[%s15464_s9 + $0x38] sm:$0xff]  }
 0x8a5   : > { %9474 = vmatpush3.bf16.msra.mxu1 %v10761_v52 }
 0x8a6   : > { %9475 = vmatprep.subr.bf16.mxu1 %v10762_v32 }
 0x8a9   : > { %9476 = vmatpush3.bf16.msra.mxu1 %v10763_v21 }
 0x8aa   : > { %9477 = vmatprep.subr.bf16.mxu1 %v10764_v45 }
 0x8ad   : > { %9478 = vmatpush3.bf16.msra.mxu1 %v10765_v35 }
 0x8ae   : > { %9479 = vmatprep.subr.bf16.mxu1 %v10766_v43  ;;  %v10782_v43 = vld [vmem:[%s15464_s9 + $0xd8] sm:$0xff]  }
 0x8b1   : > { %9480 = vmatpush3.bf16.msra.mxu1 %v10767_v53  ;;  %v10783_v53 = vld [vmem:[%s15464_s9 + $0x98] sm:$0xff]  }
 0x8b2   : > { %9481 = vmatprep.subr.bf16.mxu1 %v10768_v39  ;;  %v10787_v39 = vld [vmem:[%s15464_s9 + $0xa8] sm:$0xff]  }
 0x8b5   : > { %9482 = vmatpush3.bf16.msra.mxu1 %v10769_v49  ;;  %v10788_v49 = vld [vmem:[%s15464_s9 + $0xf0] sm:$0xff]  }
 0x8b6   : > { %9483 = vmatprep.subr.bf16.mxu1 %v10770_v14  ;;  %v10792_v14 = vld [vmem:[%s15464_s9 + $0x140] sm:$0xff]  }
 0x8b9   : > { %9484 = vmatpush3.bf16.msra.mxu1 %v10771_v3 }
 0x8ba   : > { %9485 = vmatprep.subr.bf16.mxu1 %v10772_v48  ;;  %v10793_v48 = vld [vmem:[%s15464_s9 + $0x100] sm:$0xff]  }
 0x8bd   : > { %9486 = vmatpush3.bf16.msra.mxu1 %v10773_v31 }
 0x8be   : > { %9487 = vmatprep.subr.bf16.mxu1 %v10774_v24  ;;  %v10795_v24 = vld [vmem:[%s15464_s9 + $0x108] sm:$0xff]  }
 0x8c1   : > { %9488 = vmatpush3.bf16.msra.mxu1 %v10775_v58  ;;  %v10796_v58 = vld [vmem:[%s15464_s9 + $0x150] sm:$0xff]  }
 0x8c6   : > { %v7853_v40 = vpop.permute.xlu0 %7852  ;;  %v7855_v25 = vpop.permute.xlu1 %7854 }
 0x8c7   : > { %v7860_v57 = vsel %vm7856_vm0, %v7853_v40, %v7855_v25 }
 0x8c8   : > { %8001 = vmatprep.mubr.bf16.mxu1 %v7860_v57 }
 0x8ca   : > { %v7851_v1 = vpop.permute.xlu0 %7850 }
 0x8cb   : > { %v7859_v29 = vsel %vm7856_vm0, %v7851_v1, %v7853_v40  ;;  %v10776_v40 = vld [vmem:[%s15464_s9 + $0xc0] sm:$0xff]  }
 0x8cc   : > { %8002 = vmatmul.mubr.bf16.gmra.mrb[28].mxu1 %v7859_v29  ;;  %9495 = vmatprep.subr.bf16.mxu1 %v10776_v40  ;;  %v10797_v40 = vld [vmem:[%s15464_s9 + $0x110] sm:$0xff]  }
 0x977   : > { %v9461_v4 = vpop.f32.mrb[24].mxu1 }
 0x978   : > { %v9462_v47 = vpop.f32.mrb[25].mxu1 }
 0x979   : > { %v9463_v63 = vadd.f32 %v9462_v47, %v9461_v4  ;;  %v9464_v28 = vpop.f32.mrb[26].mxu1 }
 0x97a   : > { %v9465_v61 = vpop.f32.mrb[27].mxu1 }
 0x97b   : > { %v9466_v9 = vadd.f32 %v9465_v61, %v9464_v28  ;;  %v8034_v5 = vrot.slane %v9463_v63, 5  ;;  %v8013_v60 = vrot.slane %v9463_v63, 1  ;;  %8011 = vst.msk [vmem:[#allocation7] sm:$0x1] %vm8010_vm11, %v9463_v63  ;;  %v8031_v6 = vrot.slane %v9463_v63, 4 }
 0x97c   : > { %v8039_v44 = vrot.slane %v9463_v63, 6  ;;  %v8019_v0 = vrot.slane %v9463_v63, 2  ;;  %v8044_v8 = vrot.slane %v9463_v63, 7  ;;  %v8025_v26 = vrot.slane %v9463_v63, 3 }
 0x97d   : > { %8035 = vrot.lane.b32.xlu0 %v8034_v5, %s10891_s20  ;;  %8014 = vrot.lane.b32.xlu1 %v8013_v60, %s10891_s20  ;;  %8049 = vst.msk [vmem:[#allocation7 + $0x10] sm:$0x1] %vm8010_vm11, %v9466_v9  ;;  %8033 = vst.msk [vmem:[#allocation7 + $0x8] sm:$0x1] %vm8010_vm11, %v8031_v6  ;;  %v8066_v34 = vrot.slane %v9466_v9, 4  ;;  %v8069_v27 = vrot.slane %v9466_v9, 5 }
 0x97e   : > { %v8051_v56 = vrot.slane %v9466_v9, 1  ;;  %v8074_v15 = vrot.slane %v9466_v9, 6  ;;  %v8056_v11 = vrot.slane %v9466_v9, 2  ;;  %v8079_v46 = vrot.slane %v9466_v9, 7 }
 0x97f   : > { %8068 = vst.msk [vmem:[#allocation7 + $0x18] sm:$0x1] %vm8010_vm11, %v8066_v34  ;;  %v8061_v20 = vrot.slane %v9466_v9, 3 }
 0x981   : > { %8040 = vrot.lane.b32.xlu0 %v8039_v44, %s10892_s24  ;;  %8020 = vrot.lane.b32.xlu1 %v8019_v0, %s10892_s24 }
 0x985   : > { %8045 = vrot.lane.b32.xlu0 %v8044_v8, %s10880_s30  ;;  %8026 = vrot.lane.b32.xlu1 %v8025_v26, %s10880_s30 }
 0x989   : > { %8070 = vrot.lane.b32.xlu0 %v8069_v27, %s10891_s20  ;;  %8052 = vrot.lane.b32.xlu1 %v8051_v56, %s10891_s20 }
 0x98d   : > { %8075 = vrot.lane.b32.xlu0 %v8074_v15, %s10892_s24  ;;  %8057 = vrot.lane.b32.xlu1 %v8056_v11, %s10892_s24 }
 0x991   : > { %8080 = vrot.lane.b32.xlu0 %v8079_v46, %s10880_s30  ;;  %8062 = vrot.lane.b32.xlu1 %v8061_v20, %s10880_s30 }
 0x99f   : > { %v9467_v55 = vpop.f32.mrb[28].mxu1 }
 0x9a0   : > { %v9468_v7 = vpop.f32.mrb[29].mxu1 }
 0x9a1   : > { %v9469_v59 = vadd.f32 %v9468_v7, %v9467_v55  ;;  %v9470_v23 = vpop.f32.mrb[30].mxu1  ;;  %v16324_v7 = vld [vmem:[#allocation8_spill] sm:$0xff] }
 0x9a2   : > { %v9471_v22 = vpop.f32.mrb[31].mxu1  ;;  %v16325_v45 = vsub.s32 3, %v16324_v7 }
 0x9a3   : > { %v9472_v37 = vadd.f32 %v9471_v22, %v9470_v23  ;;  %v8104_v19 = vrot.slane %v9469_v59, 5  ;;  %v8086_v18 = vrot.slane %v9469_v59, 1  ;;  %8084 = vst.msk [vmem:[#allocation7 + $0x20] sm:$0x1] %vm8010_vm11, %v9469_v59  ;;  %v8101_v2 = vrot.slane %v9469_v59, 4  ;;  %v10777_v22 = vld [vmem:[%s15464_s9 + $0x80] sm:$0xff]  }
 0x9a4   : > { %v8109_v50 = vrot.slane %v9469_v59, 6  ;;  %v8091_v62 = vrot.slane %v9469_v59, 2  ;;  %v8114_v16 = vrot.slane %v9469_v59, 7  ;;  %v8096_v17 = vrot.slane %v9469_v59, 3 }
 0x9a5   : > { %8105 = vrot.lane.b32.xlu0 %v8104_v19, %s10891_s20  ;;  %8087 = vrot.lane.b32.xlu1 %v8086_v18, %s10891_s20  ;;  %8119 = vst.msk [vmem:[#allocation7 + $0x30] sm:$0x1] %vm8010_vm11, %v9472_v37  ;;  %8103 = vst.msk [vmem:[#allocation7 + $0x28] sm:$0x1] %vm8010_vm11, %v8101_v2  ;;  %v8136_v51 = vrot.slane %v9472_v37, 4  ;;  %v8139_v36 = vrot.slane %v9472_v37, 5 }
 0x9a6   : > { %v8121_v42 = vrot.slane %v9472_v37, 1  ;;  %v8144_v54 = vrot.slane %v9472_v37, 6  ;;  %v8126_v41 = vrot.slane %v9472_v37, 2  ;;  %v8149_v10 = vrot.slane %v9472_v37, 7  ;;  %v10780_v18 = vld [vmem:[%s15464_s9 + $0xd0] sm:$0xff]  }
 0x9a7   : > { %8138 = vst.msk [vmem:[#allocation7 + $0x38] sm:$0x1] %vm8010_vm11, %v8136_v51  ;;  %v8131_v30 = vrot.slane %v9472_v37, 3  ;;  %v10778_v37 = vld [vmem:[%s15464_s9 + $0xc8] sm:$0xff]   ;;  %v10781_v2 = vld [vmem:[%s15464_s9 + $0x90] sm:$0xff]   ;;  %v10784_v51 = vld [vmem:[%s15464_s9 + $0xe0] sm:$0xff]  }
 0x9a9   : > { %8110 = vrot.lane.b32.xlu0 %v8109_v50, %s10892_s24  ;;  %8092 = vrot.lane.b32.xlu1 %v8091_v62, %s10892_s24  ;;  %v10785_v50 = vld [vmem:[%s15464_s9 + $0xa0] sm:$0xff]   ;;  %v10786_v62 = vld [vmem:[%s15464_s9 + $0xe8] sm:$0xff]  }
 0x9ad   : > { %8115 = vrot.lane.b32.xlu0 %v8114_v16, %s10880_s30  ;;  %8097 = vrot.lane.b32.xlu1 %v8096_v17, %s10880_s30  ;;  %v10789_v16 = vld [vmem:[%s15464_s9 + $0xb0] sm:$0xff]   ;;  %v10790_v17 = vld [vmem:[%s15464_s9 + $0xf8] sm:$0xff]  }
 0x9b1   : > { %8140 = vrot.lane.b32.xlu0 %v8139_v36, %s10891_s20  ;;  %8122 = vrot.lane.b32.xlu1 %v8121_v42, %s10891_s20  ;;  %v8180_v36 = vsub.s32 5, %v16324_v7  ;;  %v10791_v42 = vld [vmem:[%s15464_s9 + $0xb8] sm:$0xff]  }
 0x9b5   : > { %8145 = vrot.lane.b32.xlu0 %v8144_v54, %s10892_s24  ;;  %8127 = vrot.lane.b32.xlu1 %v8126_v41, %s10892_s24  ;;  %v16326_v54 = vsub.s32 2, %v16324_v7  ;;  %s438_s24 = scalar_lea.vmem %s15468_s13, %s9050_s27 }
 0x9b9   : > { %8150 = vrot.lane.b32.xlu0 %v8149_v10, %s10880_s30  ;;  %8132 = vrot.lane.b32.xlu1 %v8131_v30, %s10880_s30  ;;  %v10794_v30 = vld [vmem:[%s15464_s9 + $0x148] sm:$0xff]  }
 0x9ef   : > { %v8036_v25 = vpop.permute.xlu0 %8035  ;;  %v8015_v57 = vpop.permute.xlu1 %8014 }
 0x9f0   : > { %8038 = vst.msk [vmem:[#allocation7 + $0x8] sm:$0x1] %vm8017_vm12, %v8036_v25  ;;  %8018 = vst.msk [vmem:[#allocation7] sm:$0x1] %vm8017_vm12, %v8015_v57  ;;  %v10798_v25 = vld [vmem:[%s15464_s9 + $0x158] sm:$0xff]  }
 0x9f1   : > { %v10799_v57 = vld [vmem:[%s15464_s9 + $0x118] sm:$0xff]  }
 0x9f3   : > { %v8041_v1 = vpop.permute.xlu0 %8040  ;;  %v8021_v29 = vpop.permute.xlu1 %8020 }
 0x9f4   : > { %8043 = vst.msk [vmem:[#allocation7 + $0x8] sm:$0x1] %vm8023_vm14, %v8041_v1  ;;  %8024 = vst.msk [vmem:[#allocation7] sm:$0x1] %vm8023_vm14, %v8021_v29  ;;  %v10800_v1 = vld [vmem:[%s15464_s9 + $0x160] sm:$0xff]  }
 0x9f5   : > { %v10801_v29 = vld [vmem:[%s15464_s9 + $0x120] sm:$0xff]  }
 0x9f7   : > { %v8046_v4 = vpop.permute.xlu0 %8045  ;;  %v8027_v47 = vpop.permute.xlu1 %8026 }
 0x9f8   : > { %8048 = vst.msk [vmem:[#allocation7 + $0x8] sm:$0x1] %vm8029_vm6, %v8046_v4  ;;  %8030 = vst.msk [vmem:[#allocation7] sm:$0x1] %vm8029_vm6, %v8027_v47  ;;  %v10802_v4 = vld [vmem:[%s15464_s9 + $0x168] sm:$0xff]  }
 0x9f9   : > { %v10803_v47 = vld [vmem:[%s15464_s9 + $0x128] sm:$0xff]  }
 0x9fb   : > { %v8071_v63 = vpop.permute.xlu0 %8070  ;;  %v8053_v28 = vpop.permute.xlu1 %8052 }
 0x9fc   : > { %8073 = vst.msk [vmem:[#allocation7 + $0x18] sm:$0x1] %vm8017_vm12, %v8071_v63  ;;  %8055 = vst.msk [vmem:[#allocation7 + $0x10] sm:$0x1] %vm8017_vm12, %v8053_v28  ;;  %v10804_v63 = vld [vmem:[%s15464_s9 + $0x170] sm:$0xff]  }
 0x9fd   : > { %v10805_v28 = vld [vmem:[%s15464_s9 + $0x130] sm:$0xff]  }
 0x9ff   : > { %v8076_v61 = vpop.permute.xlu0 %8075  ;;  %v8058_v9 = vpop.permute.xlu1 %8057 }
 0xa00   : > { %8078 = vst.msk [vmem:[#allocation7 + $0x18] sm:$0x1] %vm8023_vm14, %v8076_v61  ;;  %8060 = vst.msk [vmem:[#allocation7 + $0x10] sm:$0x1] %vm8023_vm14, %v8058_v9  ;;  %v10806_v61 = vld [vmem:[%s15464_s9 + $0x178] sm:$0xff]   ;;  %v8188_v9 = vsub.s32 7, %v16324_v7 }
 0xa03   : > { %v8081_v5 = vpop.permute.xlu0 %8080  ;;  %v8063_v60 = vpop.permute.xlu1 %8062 }
 0xa04   : > { %8083 = vst.msk [vmem:[#allocation7 + $0x18] sm:$0x1] %vm8029_vm6, %v8081_v5  ;;  %8065 = vst.msk [vmem:[#allocation7 + $0x10] sm:$0x1] %vm8029_vm6, %v8063_v60  ;;  %v10807_v5 = vld [vmem:[%s15464_s9 + $0x138] sm:$0xff]   ;;  %v16327_v60 = vsub.s32 4, %v16324_v7 }
 0xa0b   : > { %v8154_v38 = vld [vmem:[#allocation7] ss:$8 sm:$0xf] }
 0xa17   : > { %v8106_v6 = vpop.permute.xlu0 %8105  ;;  %v8088_v34 = vpop.permute.xlu1 %8087 }
 0xa18   : > { %8108 = vst.msk [vmem:[#allocation7 + $0x28] sm:$0x1] %vm8017_vm12, %v8106_v6  ;;  %8090 = vst.msk [vmem:[#allocation7 + $0x20] sm:$0x1] %vm8017_vm12, %v8088_v34  ;;  %v10808_v34 = vld [vmem:[%s15464_s9 + $0x1c0] sm:$0xff]  }
 0xa1b   : > { %v8111_v44 = vpop.permute.xlu0 %8110  ;;  %v8093_v0 = vpop.permute.xlu1 %8092 }
 0xa1c   : > { %8113 = vst.msk [vmem:[#allocation7 + $0x28] sm:$0x1] %vm8023_vm14, %v8111_v44  ;;  %8095 = vst.msk [vmem:[#allocation7 + $0x20] sm:$0x1] %vm8023_vm14, %v8093_v0  ;;  %v10809_v0 = vld [vmem:[%s15464_s9 + $0x180] sm:$0xff]  }
 0xa1f   : > { %v8116_v8 = vpop.permute.xlu0 %8115  ;;  %v8098_v26 = vpop.permute.xlu1 %8097 }
 0xa20   : > { %8118 = vst.msk [vmem:[#allocation7 + $0x28] sm:$0x1] %vm8029_vm6, %v8116_v8  ;;  %8100 = vst.msk [vmem:[#allocation7 + $0x20] sm:$0x1] %vm8029_vm6, %v8098_v26  ;;  %v10810_v26 = vld [vmem:[%s15464_s9 + $0x1c8] sm:$0xff]  }
 0xa23   : > { %v8141_v27 = vpop.permute.xlu0 %8140  ;;  %v8123_v56 = vpop.permute.xlu1 %8122 }
 0xa24   : > { %8143 = vst.msk [vmem:[#allocation7 + $0x38] sm:$0x1] %vm8017_vm12, %v8141_v27  ;;  %8125 = vst.msk [vmem:[#allocation7 + $0x30] sm:$0x1] %vm8017_vm12, %v8123_v56  ;;  %v10811_v56 = vld [vmem:[%s15464_s9 + $0x188] sm:$0xff]  }
 0xa27   : > { %v8146_v15 = vpop.permute.xlu0 %8145  ;;  %v8128_v11 = vpop.permute.xlu1 %8127 }
 0xa28   : > { %8148 = vst.msk [vmem:[#allocation7 + $0x38] sm:$0x1] %vm8023_vm14, %v8146_v15  ;;  %8130 = vst.msk [vmem:[#allocation7 + $0x30] sm:$0x1] %vm8023_vm14, %v8128_v11  ;;  %v10812_v15 = vld [vmem:[%s15464_s9 + $0x1d0] sm:$0xff]  }
 0xa29   : > { %v10813_v11 = vld [vmem:[%s15464_s9 + $0x190] sm:$0xff]  }
 0xa2b   : > { %v8151_v46 = vpop.permute.xlu0 %8150  ;;  %v8133_v20 = vpop.permute.xlu1 %8132 }
 0xa2c   : > { %8153 = vst.msk [vmem:[#allocation7 + $0x38] sm:$0x1] %vm8029_vm6, %v8151_v46  ;;  %8135 = vst.msk [vmem:[#allocation7 + $0x30] sm:$0x1] %vm8029_vm6, %v8133_v20  ;;  %v10814_v46 = vld [vmem:[%s15464_s9 + $0x1d8] sm:$0xff]  }
 0xa2d   : > { %v10815_v20 = vld [vmem:[%s15464_s9 + $0x198] sm:$0xff]  }
 0xa33   : > { %v8155_v52 = vld [vmem:[#allocation7] ss:$8 sm:$0xf0] }
 0xa34   : > { %v15247_v32 = vor.u32 %v8155_v52, %v8154_v38  ;;  %v10816_v38 = vld [vmem:[%s15464_s9 + $0x1e0] sm:$0xff]  }
 0xa35   : > { %v10817_v52 = vld [vmem:[%s15464_s9 + $0x1a0] sm:$0xff]  }
 0xa36   : > { %v8165_v21 = vrot.slane %v15247_v32, %v16307_v12  ;;  %v8161_v55 = vrot.slane %v15247_v32, %v16306_v33  ;;  %v8173_v35 = vrot.slane %v15247_v32, %v16325_v45  ;;  %v10779_v12 = vld [vmem:[%s15464_s9 + $0x88] sm:$0xff]   ;;  %v8169_v41 = vrot.slane %v15247_v32, %v16326_v54  ;;  %v10820_v45 = vld [vmem:[%s15464_s9 + $0x1f0] sm:$0xff]  }
 0xa37   : > { %v8181_v3 = vrot.slane %v15247_v32, %v8180_v36  ;;  %v8177_v6 = vrot.slane %v15247_v32, %v16327_v60  ;;  %v8189_v44 = vrot.slane %v15247_v32, %v8188_v9 }
 0xa38   : > { %v8199_v59 = vpack.c.bf16 %v8165_v21, %v8165_v21  ;;  %v8198_v23 = vpack.c.bf16 %v8161_v55, %v8161_v55  ;;  %v8201_v19 = vpack.c.bf16 %v8173_v35, %v8173_v35  ;;  %v8200_v10 = vpack.c.bf16 %v8169_v41, %v8169_v41  ;;  %v10818_v21 = vld [vmem:[%s15464_s9 + $0x1e8] sm:$0xff]   ;;  %v10821_v35 = vld [vmem:[%s15464_s9 + $0x1b0] sm:$0xff]  }
 0xa39   : > { %v8203_v31 = vpack.c.bf16 %v8181_v3, %v8181_v3  ;;  %v8202_v8 = vpack.c.bf16 %v8177_v6, %v8177_v6  ;;  %v8205_v27 = vpack.c.bf16 %v8189_v44, %v8189_v44  ;;  %v10819_v55 = vld [vmem:[%s15464_s9 + $0x1a8] sm:$0xff]  }
 0xa3a   : > { %8751 = vmatprep.mubr.bf16.mxu1 %v8199_v59  ;;  %v10822_v59 = vld [vmem:[%s15464_s9 + $0x1f8] sm:$0xff]  }
 0xa3b   : > { %8752 = vmatmul.mubr.bf16.vlgmr.msra.gmra.mrb[32].mxu1 %v8198_v23  ;;  %v8184_v23 = vsub.s32 6, %v16324_v7  ;;  %v10825_v7 = vld [vmem:[%s15466_s11 + $0x8] sm:$0xff]  }
 0xa3c   : > { %9496 = vmatpush3.bf16.msra.mxu1 %v10777_v22  ;;  %8791 = vmatprep.mubr.bf16.mxu1 %v8201_v19  ;;  %v10823_v22 = vld [vmem:[%s15464_s9 + $0x1b8] sm:$0xff]  }
 0xa3d   : > { %9497 = vmatprep.subr.bf16.mxu1 %v10778_v37  ;;  %v8185_v37 = vrot.slane %v15247_v32, %v8184_v23  ;;  %v10827_v32 = vld [vmem:[%s15466_s11 + $0x18] sm:$0xff]  }
 0xa3f   : > { %v8204_v19 = vpack.c.bf16 %v8185_v37, %v8185_v37 }
 0xa40   : > { %9498 = vmatpush3.bf16.msra.mxu1 %v10779_v12  ;;  %v10824_v12 = vld [vmem:[%s15466_s11] sm:$0xff]  }
 0xa41   : > { %9499 = vmatprep.subr.bf16.mxu1 %v10780_v18  ;;  %9603 = vmatpush3.bf16.msra.mxu0 %v10824_v12  ;;  %v10826_v18 = vld [vmem:[%s15466_s11 + $0x10] sm:$0xff]  }
 0xa42   : > { %9604 = vmatprep.subr.bf16.mxu0 %v16300_v13 }
 0xa44   : > { %9500 = vmatpush3.bf16.msra.mxu1 %v10781_v2  ;;  %v10828_v2 = vld [vmem:[%s15466_s11 + $0x20] sm:$0xff]  }
 0xa45   : > { %9501 = vmatprep.subr.bf16.mxu1 %v10782_v43  ;;  %9605 = vmatpush3.bf16.msra.mxu0 %v10825_v7  ;;  %v10829_v43 = vld [vmem:[%s15466_s11 + $0x28] sm:$0xff]  }
 0xa46   : > { %9606 = vmatprep.subr.bf16.mxu0 %v16300_v13 }
 0xa48   : > { %9502 = vmatpush3.bf16.msra.mxu1 %v10783_v53  ;;  %v10830_v53 = vld [vmem:[%s15466_s11 + $0x30] sm:$0xff]  }
 0xa49   : > { %9503 = vmatprep.subr.bf16.mxu1 %v10784_v51  ;;  %9607 = vmatpush3.bf16.msra.mxu0 %v10826_v18  ;;  %v10831_v51 = vld [vmem:[%s15466_s11 + $0x38] sm:$0xff]  }
 0xa4a   : > { %9608 = vmatprep.subr.bf16.mxu0 %v16300_v13 }
 0xa4c   : > { %9504 = vmatpush3.bf16.msra.mxu1 %v10785_v50 }
 0xa4d   : > { %9505 = vmatprep.subr.bf16.mxu1 %v10786_v62  ;;  %9609 = vmatpush3.bf16.msra.mxu0 %v10827_v32 }
 0xa4e   : > { %9610 = vmatprep.subr.bf16.mxu0 %v16300_v13 }
 0xa50   : > { %9506 = vmatpush3.bf16.msra.mxu1 %v10787_v39 }
 0xa51   : > { %9507 = vmatprep.subr.bf16.mxu1 %v10788_v49  ;;  %9611 = vmatpush3.bf16.msra.mxu0 %v10828_v2 }
 0xa52   : > { %9612 = vmatprep.subr.bf16.mxu0 %v16300_v13 }
 0xa54   : > { %9508 = vmatpush3.bf16.msra.mxu1 %v10789_v16 }
 0xa55   : > { %9509 = vmatprep.subr.bf16.mxu1 %v10790_v17  ;;  %9613 = vmatpush3.bf16.msra.mxu0 %v10829_v43  ;;  %v8334_v17 = vld [vmem:[%s15465_s10] sm:$0x1] }
 0xa56   : > { %9614 = vmatprep.subr.bf16.mxu0 %v16300_v13 }
 0xa58   : > { %9510 = vmatpush3.bf16.msra.mxu1 %v10791_v42 }
 0xa59   : > { %9517 = vmatprep.subr.bf16.mxu1 %v10792_v14  ;;  %9615 = vmatpush3.bf16.msra.mxu0 %v10830_v53 }
 0xa5a   : > { %9616 = vmatprep.subr.bf16.mxu0 %v16300_v13 }
 0xa5b   : > { %8792 = vmatmul.mubr.bf16.vlgmr.msra.gmra.mrb[36].mxu1 %v8200_v10 }
 0xa5c   : > { %9518 = vmatpush3.bf16.msra.mxu1 %v10793_v48  ;;  %8831 = vmatprep.mubr.bf16.mxu1 %v8203_v31 }
 0xa5d   : > { %9519 = vmatprep.subr.bf16.mxu1 %v10794_v30  ;;  %9617 = vmatpush3.bf16.msra.mxu0 %v10831_v51 }
 0xa60   : > { %9520 = vmatpush3.bf16.msra.mxu1 %v10795_v24 }
 0xa61   : > { %9521 = vmatprep.subr.bf16.mxu1 %v10796_v58 }
 0xa64   : > { %9522 = vmatpush3.bf16.msra.mxu1 %v10797_v40 }
 0xa65   : > { %9523 = vmatprep.subr.bf16.mxu1 %v10798_v25 }
 0xa68   : > { %9524 = vmatpush3.bf16.msra.mxu1 %v10799_v57 }
 0xa69   : > { %9525 = vmatprep.subr.bf16.mxu1 %v10800_v1 }
 0xa6c   : > { %9526 = vmatpush3.bf16.msra.mxu1 %v10801_v29 }
 0xa6d   : > { %9527 = vmatprep.subr.bf16.mxu1 %v10802_v4 }
 0xa70   : > { %9528 = vmatpush3.bf16.msra.mxu1 %v10803_v47 }
 0xa71   : > { %9529 = vmatprep.subr.bf16.mxu1 %v10804_v63 }
 0xa74   : > { %9530 = vmatpush3.bf16.msra.mxu1 %v10805_v28  ;;  %v8897_v28 = vld [vmem:[%s15467_s12] sm:$0x1] }
 0xa75   : > { %9531 = vmatprep.subr.bf16.mxu1 %v10806_v61 }
 0xa78   : > { %9532 = vmatpush3.bf16.msra.mxu1 %v10807_v5 }
 0xa79   : > { %9539 = vmatprep.subr.bf16.mxu1 %v10808_v34 }
 0xa7b   : > { %8832 = vmatmul.mubr.bf16.vlgmr.msra.gmra.mrb[40].mxu1 %v8202_v8 }
 0xa7c   : > { %9540 = vmatpush3.bf16.msra.mxu1 %v10809_v0  ;;  %8871 = vmatprep.mubr.bf16.mxu1 %v8205_v27 }
 0xa7d   : > { %9541 = vmatprep.subr.bf16.mxu1 %v10810_v26 }
 0xa80   : > { %9542 = vmatpush3.bf16.msra.mxu1 %v10811_v56 }
 0xa81   : > { %9543 = vmatprep.subr.bf16.mxu1 %v10812_v15 }
 0xa84   : > { %9544 = vmatpush3.bf16.msra.mxu1 %v10813_v11 }
 0xa85   : > { %9545 = vmatprep.subr.bf16.mxu1 %v10814_v46 }
 0xa88   : > { %9546 = vmatpush3.bf16.msra.mxu1 %v10815_v20 }
 0xa89   : > { %9547 = vmatprep.subr.bf16.mxu1 %v10816_v38 }
 0xa8c   : > { %9548 = vmatpush3.bf16.msra.mxu1 %v10817_v52 }
 0xa8d   : > { %9549 = vmatprep.subr.bf16.mxu1 %v10818_v21 }
 0xa90   : > { %9550 = vmatpush3.bf16.msra.mxu1 %v10819_v55 }
 0xa91   : > { %9551 = vmatprep.subr.bf16.mxu1 %v10820_v45 }
 0xa94   : > { %9552 = vmatpush3.bf16.msra.mxu1 %v10821_v35 }
 0xa95   : > { %9553 = vmatprep.subr.bf16.mxu1 %v10822_v59 }
 0xa98   : > { %9554 = vmatpush3.bf16.msra.mxu1 %v10823_v22 }
 0xa9b   : > { %8872 = vmatmul.mubr.bf16.vlgmr.msra.gmra.mrb[44].mxu1 %v8204_v19 }
 0xb0e   : > { %v9489_v50 = vpop.f32.mrb[32].mxu1 }
 0xb0f   : > { %v9490_v62 = vpop.f32.mrb[33].mxu1 }
 0xb10   : > { %v9491_v39 = vadd.f32 %v9490_v62, %v9489_v50  ;;  %v9492_v49 = vpop.f32.mrb[34].mxu1 }
 0xb11   : > { %v9493_v16 = vpop.f32.mrb[35].mxu1 }
 0xb12   : > { %v8754_v54 = vadd.f32 %v9491_v39, %v8334_v17 }
 0xb2e   : > { %v9511_v36 = vpop.f32.mrb[36].mxu1 }
 0xb2f   : > { %v9512_v42 = vpop.f32.mrb[37].mxu1 }
 0xb30   : > { %v9513_v41 = vadd.f32 %v9512_v42, %v9511_v36  ;;  %v9514_v14 = vpop.f32.mrb[38].mxu1 }
 0xb31   : > { %v9515_v3 = vpop.f32.mrb[39].mxu1 }
 0xb32   : > { %v8794_v48 = vadd.f32 %v9513_v41, %v8754_v54 }
 0xb4e   : > { %v9533_v10 = vpop.f32.mrb[40].mxu1 }
 0xb4f   : > { %v9534_v13 = vpop.f32.mrb[41].mxu1 }
 0xb50   : > { %v9535_v30 = vadd.f32 %v9534_v13, %v9533_v10  ;;  %v9536_v31 = vpop.f32.mrb[42].mxu1 }
 0xb51   : > { %v9537_v24 = vpop.f32.mrb[43].mxu1 }
 0xb52   : > { %v8834_v58 = vadd.f32 %v9535_v30, %v8794_v48 }
 0xb6e   : > { %v9555_v40 = vpop.f32.mrb[44].mxu1 }
 0xb6f   : > { %v9556_v25 = vpop.f32.mrb[45].mxu1 }
 0xb70   : > { %v9557_v57 = vadd.f32 %v9556_v25, %v9555_v40  ;;  %v9558_v1 = vpop.f32.mrb[46].mxu1 }
 0xb71   : > { %v9559_v29 = vpop.f32.mrb[47].mxu1 }
 0xb72   : > { %v8874_v4 = vadd.f32 %v9557_v57, %v8834_v58 }
 0xb74   : > { %v8879_v47 = vmax.f32 %v8874_v4, 0.0 }
 0xb76   : > { %v8880_v63 = vpack.c.bf16 %v8879_v47, %v8879_v47 }
 0xb78   : > { %9619 = vmatmul.mubr.bf16.vlgmr.msra.gmra.mrb[32].mxu0 %v8880_v63 }
 0xc4b   : > { %v8980_v61 = vpop.f32.mrb[32].mxu0 }
 0xc4c   : > { %v8981_v9 = vadd.f32 %v8980_v61, %v8897_v28  ;;  %v9620_v5 = vpop.f32.mrb[33].mxu0 }
 0xc4d   : > { %v8983_v60 = vpop.f32.mrb[34].mxu0 }
 0xc4e   : > { %v8989_v6 = vrot.slane %v8981_v9, %v16306_v33  ;;  %v9621_v34 = vpop.f32.mrb[35].mxu0 }
 0xc50   : > { %8990 = vst [vmem:[%s438_s24] sm:$0xff] %v8989_v6 }
 0xc51 PF: > { %s23_s25 = sadd.s32 1, %s10849_s25  }
 0xc52   : > { %p20_p4 = scmp.ge.s32.totalorder %s23_s25, 4  }
 0xc54   :  { %22 = sbr.rel (!%p20_p4) target bundleno = 1 (0x1), region = 102 }

</bundles_post_ra>
